<compile_context>
chip_gen: v5e
topology: v5e:2x2
jax: 0.10.0
libtpu: 0.0.40
codegen_flags: <defaults>
</compile_context>

<pallas_src>
import functools

import jax
import jax.numpy as jnp
from jax.experimental import pallas as pl
from jax.experimental.pallas import tpu as pltpu

LANE = 128
VMEM_LIMIT = 48 * 1024 * 1024  # v7x-safe (64 MiB physical); plenty on v5e/v6e.


def _round_up(x, m):
    return (x + m - 1) // m * m


def _pad_axis(a, axis, target):
    pad = target - a.shape[axis]
    if pad == 0:
        return a
    widths = [(0, 0)] * a.ndim
    widths[axis] = (0, pad)
    return jnp.pad(a, widths)


# ----------------------------------------------------------------------------
# Fused (positive + corrupted) encoder kernel
#   H_pos = relu((A @ X) @ W + b),  H_neg = relu((A @ X_perm) @ W + b)
#   One pass over A per call; f32 VMEM accumulator of shape (2*TM, Dp) holding
#   both branches so the finalize epilogue is a single (2*TM, Dp)@(Dp, H) matmul.
# ----------------------------------------------------------------------------

def _fused_encoder_kernel(a_ref, x_ref, xp_ref, w_ref, b_ref,
                          hpos_ref, hneg_ref, acc_ref):
    k = pl.program_id(1)
    tm = a_ref.shape[0]

    @pl.when(k == 0)
    def _init():
        acc_ref[...] = jnp.zeros_like(acc_ref)

    a = a_ref[...]                                            # (TM, TK) bf16
    # Positive branch rows [0:TM), corrupted branch rows [TM:2TM) -- static slices.
    acc_ref[:tm, :] += jnp.dot(a, x_ref[...],
                               preferred_element_type=jnp.float32)
    acc_ref[tm:, :] += jnp.dot(a, xp_ref[...],
                               preferred_element_type=jnp.float32)

    @pl.when(k == pl.num_programs(1) - 1)
    def _finalize():
        ax = acc_ref[...].astype(jnp.bfloat16)                # (2TM, Dp)
        h = jnp.dot(ax, w_ref[...], preferred_element_type=jnp.float32)
        h = jnp.maximum(h + b_ref[...], 0.0)                  # (2TM, H) f32
        hpos_ref[...] = h[:tm, :]
        hneg_ref[...] = h[tm:, :].astype(jnp.bfloat16)


def fused_encoder(adj_bf, x_bf, x_perm_bf, w_enc_bf, b_enc, *, tm=512, tk=512):
    n = adj_bf.shape[0]
    dp = x_bf.shape[1]
    h = w_enc_bf.shape[1]
    tm = min(tm, n)
    tk = min(tk, n)
    assert n % tm == 0 and n % tk == 0, "toy sizes chosen tile-aligned"

    return pl.pallas_call(
        _fused_encoder_kernel,
        out_shape=(jax.ShapeDtypeStruct((n, h), jnp.float32),   # positive (returned)
                   jax.ShapeDtypeStruct((n, h), jnp.bfloat16)), # negative (bf16 only)
        grid=(n // tm, n // tk),                                # reduction axis last
        in_specs=[
            pl.BlockSpec((tm, tk), lambda i, k: (i, k)),        # A tile (bf16)
            pl.BlockSpec((tk, dp), lambda i, k: (k, 0)),        # X tile (bf16)
            pl.BlockSpec((tk, dp), lambda i, k: (k, 0)),        # X_perm tile (bf16)
            pl.BlockSpec((dp, h), lambda i, k: (0, 0)),         # W_enc (resident)
            pl.BlockSpec((1, h), lambda i, k: (0, 0)),          # b_enc (f32)
        ],
        out_specs=(
            pl.BlockSpec((tm, h), lambda i, k: (i, 0)),         # H_pos
            pl.BlockSpec((tm, h), lambda i, k: (i, 0)),         # H_neg
        ),
        scratch_shapes=[pltpu.VMEM((2 * tm, dp), jnp.float32)],
        compiler_params=pltpu.CompilerParams(
            dimension_semantics=("parallel", "arbitrary"),
            vmem_limit_bytes=VMEM_LIMIT),
    )(adj_bf, x_bf, x_perm_bf, w_enc_bf, b_enc)


# ----------------------------------------------------------------------------
# Fused, row-tiled decoder kernel: 'mid' + 'crd' + 'nmd' + 'lpd' in one launch.
# grid=(N/TN,), partial sums accumulated in VMEM scratch, finalize at last tile.
# ----------------------------------------------------------------------------

def _bce_with_logits(x, y):
    # numerically-stable BCEWithLogits (matches PyTorch)
    return jnp.maximum(x, 0.0) - x * y + jnp.log1p(jnp.exp(-jnp.abs(x)))


def _fused_decoder_kernel(pos_ref, neg_ref, v_ref, wcat_ref, bcat_ref,
                          x_ref, mask_ref, motif_ref,
                          src_ref, dst_ref, lbl_ref, loss_ref,
                          midpos_acc, midneg_acc, crd_acc, msk_acc, nmd_acc,
                          *, d_pad, d_actual, m_actual, n_nodes):
    i = pl.program_id(0)

    @pl.when(i == 0)
    def _init():
        midpos_acc[...] = jnp.zeros_like(midpos_acc)
        midneg_acc[...] = jnp.zeros_like(midneg_acc)
        crd_acc[...] = jnp.zeros_like(crd_acc)
        msk_acc[...] = jnp.zeros_like(msk_acc)
        nmd_acc[...] = jnp.zeros_like(nmd_acc)

    pos = pos_ref[...]                                   # (TN, H) f32
    pos_b = pos.astype(jnp.bfloat16)
    neg_b = neg_ref[...]                                 # (TN, H) bf16 (as produced)

    # ----- 'mid' partials: strength-reduced bilinear, s = H @ (W_d @ summary^T)
    v_b = v_ref[...].astype(jnp.bfloat16)                # (H, 1)
    s_pos = jnp.dot(pos_b, v_b, preferred_element_type=jnp.float32)   # (TN, 1)
    s_neg = jnp.dot(neg_b, v_b, preferred_element_type=jnp.float32)   # (TN, 1)
    midpos_acc[...] += jnp.sum(_bce_with_logits(s_pos, 1.0), keepdims=True)
    midneg_acc[...] += jnp.sum(_bce_with_logits(s_neg, 0.0), keepdims=True)

    # ----- 'crd' + 'nmd' partials via ONE matmul against [W_rec | W_mot]
    yhat = (jnp.dot(pos_b, wcat_ref[...], preferred_element_type=jnp.float32)
            + bcat_ref[...])                             # (TN, Dp+Mp) f32
    xhat = yhat[:, :d_pad]                               # lane-aligned slice
    mhat = yhat[:, d_pad:]
    mask = mask_ref[...]                                 # (TN, 1)
    crd_acc[...] += jnp.sum((xhat - x_ref[...]) ** 2 * mask, keepdims=True)
    msk_acc[...] += jnp.sum(mask, keepdims=True)
    nmd_acc[...] += jnp.sum((mhat - motif_ref[...]) ** 2, keepdims=True)

    # ----- finalize: divides + 'lpd' (E rows, resident blocks)
    @pl.when(i == pl.num_programs(0) - 1)
    def _finalize():
        score = jnp.sum(src_ref[...] * dst_ref[...], axis=1, keepdims=True)  # (E,1)
        lpd = jnp.mean(_bce_with_logits(score, lbl_ref[...]), keepdims=True)
        mid = (midpos_acc[...] + midneg_acc[...]) / n_nodes
        crd = crd_acc[...] / (msk_acc[...] * d_actual + 1e-8)
        nmd = nmd_acc[...] / (n_nodes * m_actual)
        loss_ref[...] = mid + crd + nmd + lpd


def fused_decoder_loss(pos, neg, v, w_cat, b_cat, x_pad, mask, motif_pad,
                       src_emb, dst_emb, labels,
                       *, d_actual, m_actual, tn=512):
    n, h = pos.shape
    dmp = w_cat.shape[1]
    d_pad = x_pad.shape[1]
    m_pad = motif_pad.shape[1]
    e = src_emb.shape[0]
    tn = min(tn, n)
    assert n % tn == 0, "toy sizes chosen tile-aligned"

    kernel = functools.partial(_fused_decoder_kernel,
                               d_pad=d_pad,
                               d_actual=float(d_actual),
                               m_actual=float(m_actual),
                               n_nodes=float(n))
    loss = pl.pallas_call(
        kernel,
        out_shape=jax.ShapeDtypeStruct((1, 1), jnp.float32),
        grid=(n // tn,),
        in_specs=[
            pl.BlockSpec((tn, h), lambda i: (i, 0)),        # positive (f32)
            pl.BlockSpec((tn, h), lambda i: (i, 0)),        # negative (bf16)
            pl.BlockSpec((h, 1), lambda i: (0, 0)),         # v = W_d @ summary^T
            pl.BlockSpec((h, dmp), lambda i: (0, 0)),       # [W_rec | W_mot] (bf16)
            pl.BlockSpec((1, dmp), lambda i: (0, 0)),       # [b_rec | b_mot]
            pl.BlockSpec((tn, d_pad), lambda i: (i, 0)),    # X (padded, f32)
            pl.BlockSpec((tn, 1), lambda i: (i, 0)),        # masked_nodes
            pl.BlockSpec((tn, m_pad), lambda i: (i, 0)),    # motif (padded, f32)
            pl.BlockSpec((e, h), lambda i: (0, 0)),         # src embeddings
            pl.BlockSpec((e, h), lambda i: (0, 0)),         # dst embeddings
            pl.BlockSpec((e, 1), lambda i: (0, 0)),         # link labels
        ],
        out_specs=pl.BlockSpec((1, 1), lambda i: (0, 0)),
        scratch_shapes=[pltpu.VMEM((1, 1), jnp.float32)] * 5,
        compiler_params=pltpu.CompilerParams(
            # row axis carries the loss accumulators -> must be "arbitrary"
            dimension_semantics=("arbitrary",),
            vmem_limit_bytes=VMEM_LIMIT),
    )(pos, neg, v, w_cat, b_cat, x_pad, mask, motif_pad, src_emb, dst_emb, labels)
    return loss[0, 0]


# ----------------------------------------------------------------------------
# PanRepHetero (JAX / Pallas)
# ----------------------------------------------------------------------------

class PanRepHeteroPallas:
    """Mirrors PanRepHetero.forward: loss = sum over decoders, returns (loss, positive)."""

    def __init__(self, params, corrupt_perm, d_in, n_motif,
                 enc_tm=512, enc_tk=512, dec_tn=512):
        self.corrupt_perm = corrupt_perm
        self.d_in = d_in
        self.n_motif = n_motif
        self.d_pad = _round_up(d_in, LANE)
        self.m_pad = _round_up(n_motif, LANE)
        self.enc_tm, self.enc_tk, self.dec_tn = enc_tm, enc_tk, dec_tn

        # One-time weight prep: lane-pad, pre-cast MXU operands to bf16,
        # concatenate decoder RHS matrices.
        self.w_enc = _pad_axis(params["w_enc"], 0, self.d_pad).astype(jnp.bfloat16)
        self.b_enc = params["b_enc"]                                     # (1, H) f32
        self.w_d = params["w_d"]                                         # (H, H) f32
        w_rec_p = _pad_axis(params["w_rec"], 1, self.d_pad)
        w_mot_p = _pad_axis(params["w_mot"], 1, self.m_pad)
        self.w_cat = jnp.concatenate([w_rec_p, w_mot_p], axis=1).astype(jnp.bfloat16)
        self.b_cat = jnp.concatenate([_pad_axis(params["b_rec"], 1, self.d_pad),
                                      _pad_axis(params["b_mot"], 1, self.m_pad)],
                                     axis=1)                             # (1, Dp+Mp) f32

    def prepare_graph(self, g):
        """One-time graph data prep (hoisted out of the per-call hot path):
        bf16 copy of A (avoids an N^2 f32->bf16 convert per forward), padded
        f32 features (decoder target) and their bf16 copy (encoder operand)."""
        x_pad = _pad_axis(g["feat"], 1, self.d_pad)
        return {
            "adj_bf": g["adj"].astype(jnp.bfloat16),
            "x_pad": x_pad,
            "x_bf": x_pad.astype(jnp.bfloat16),
            "motif_pad": _pad_axis(g["motif"], 1, self.m_pad),
        }

    def forward(self, gp, masked_nodes, sampled_links, sampled_link_labels):
        # TODO(synk): DGI corruption gather could move in-kernel via a
        # scalar-prefetch Element BlockSpec; this bf16 N x Dp gather is tiny.
        x_perm_bf = gp["x_bf"][self.corrupt_perm]

        # Fused pos/neg encoder: one pass over A, negative emitted as bf16.
        positive, negative = fused_encoder(gp["adj_bf"], gp["x_bf"], x_perm_bf,
                                           self.w_enc, self.b_enc,
                                           tm=self.enc_tm, tk=self.enc_tk)

        # Strength-reduced DGI bilinear: v = W_d @ sigmoid(mean(pos))^T  (tiny XLA).
        summary = jax.nn.sigmoid(jnp.mean(positive, axis=0, keepdims=True))  # (1, H)
        v = jnp.dot(self.w_d, summary.T)                                     # (H, 1)

        # TODO(synk): link gather could also move in-kernel with scalar prefetch;
        # for E rows this XLA gather is negligible.
        src_emb = jnp.take(positive, sampled_links[:, 0], axis=0)
        dst_emb = jnp.take(positive, sampled_links[:, 1], axis=0)

        loss = fused_decoder_loss(
            positive, negative, v, self.w_cat, self.b_cat,
            gp["x_pad"], masked_nodes, gp["motif_pad"],
            src_emb, dst_emb, sampled_link_labels,
            d_actual=self.d_in, m_actual=self.n_motif, tn=self.dec_tn)

        return loss, positive


# ----------------------------------------------------------------------------
# Pure-f32 reference (for tolerance validation of the mixed-precision kernels)
# ----------------------------------------------------------------------------

def reference_forward(params, perm, g, masked_nodes, links, labels, d_in, n_motif):
    bce = lambda x, y: jnp.maximum(x, 0.0) - x * y + jnp.log1p(jnp.exp(-jnp.abs(x)))
    pos = jax.nn.relu(g["adj"] @ g["feat"] @ params["w_enc"] + params["b_enc"])
    neg = jax.nn.relu(g["adj"] @ g["feat"][perm] @ params["w_enc"] + params["b_enc"])
    summary = jax.nn.sigmoid(jnp.mean(pos, axis=0, keepdims=True))
    s_pos = jnp.sum((pos @ params["w_d"]) * summary, axis=1, keepdims=True)
    s_neg = jnp.sum((neg @ params["w_d"]) * summary, axis=1, keepdims=True)
    mid = jnp.mean(bce(s_pos, 1.0)) + jnp.mean(bce(s_neg, 0.0))
    xhat = pos @ params["w_rec"] + params["b_rec"]
    crd = (jnp.sum((xhat - g["feat"]) ** 2 * masked_nodes)
           / (jnp.sum(masked_nodes) * d_in + 1e-8))
    mhat = pos @ params["w_mot"] + params["b_mot"]
    nmd = jnp.sum((mhat - g["motif"]) ** 2) / (pos.shape[0] * n_motif)
    score = jnp.sum(pos[links[:, 0]] * pos[links[:, 1]], axis=1, keepdims=True)
    lpd = jnp.mean(bce(score, labels))
    return mid + crd + nmd + lpd, pos


# ----------------------------------------------------------------------------
# Deterministic setup + smoke test
# ----------------------------------------------------------------------------

def _init(key, n_nodes, d_in, h_dim, n_motif, n_links):
    ks = jax.random.split(key, 12)

    # graph: symmetric-normalized random adjacency with self loops
    a = (jax.random.uniform(ks[0], (n_nodes, n_nodes)) < 0.05).astype(jnp.float32)
    a = jnp.maximum(a, a.T) + jnp.eye(n_nodes, dtype=jnp.float32)
    deg = jnp.sum(a, axis=1, keepdims=True)
    adj = a / jnp.sqrt(deg) / jnp.sqrt(deg.T)

    feat = jax.random.normal(ks[1], (n_nodes, d_in), jnp.float32)
    motif = jax.random.uniform(ks[2], (n_nodes, n_motif), jnp.float32)

    params = {
        "w_enc": jax.random.normal(ks[3], (d_in, h_dim), jnp.float32) * 0.1,
        "b_enc": jnp.zeros((1, h_dim), jnp.float32),
        "w_d":   jax.random.normal(ks[4], (h_dim, h_dim), jnp.float32) * 0.1,
        "w_rec": jax.random.normal(ks[5], (h_dim, d_in), jnp.float32) * 0.1,
        "b_rec": jnp.zeros((1, d_in), jnp.float32),
        "w_mot": jax.random.normal(ks[6], (h_dim, n_motif), jnp.float32) * 0.1,
        "b_mot": jnp.zeros((1, n_motif), jnp.float32),
    }

    corrupt_perm = jax.random.permutation(ks[7], n_nodes)

    masked_nodes = (jax.random.uniform(ks[8], (n_nodes, 1)) < 0.8).astype(jnp.float32)
    sampled_links = jax.random.randint(ks[9], (n_links, 2), 0, n_nodes, jnp.int32)
    sampled_link_labels = (jax.random.uniform(ks[10], (n_links, 1)) < 0.5).astype(jnp.float32)

    g = {"adj": adj, "feat": feat, "motif": motif}
    return params, corrupt_perm, g, masked_nodes, sampled_links, sampled_link_labels


if __name__ == "__main__":
    key = jax.random.PRNGKey(0)
    # Small but tile/lane-friendly: N multiple of the tiles, H = 128 lane-dense;
    # D_IN / N_MOTIF are intentionally non-multiples to exercise the padding path.
    N, D_IN, H, N_MOTIF, E = 512, 96, 128, 16, 128

    (params, perm, g, masked_nodes,
     sampled_links, sampled_link_labels) = _init(key, N, D_IN, H, N_MOTIF, E)

    # Tiles of 256 at N=512 exercise the multi-step grids (encoder 2x2, decoder 2);
    # production defaults are 512/512 per the tile-size sweep guidance.
    model = PanRepHeteroPallas(params, perm, d_in=D_IN, n_motif=N_MOTIF,
                               enc_tm=256, enc_tk=256, dec_tn=256)
    gp = model.prepare_graph(g)   # one-time data prep (bf16 A, padded features)

    @jax.jit
    def run(gp, masked_nodes, links, labels):
        return model.forward(gp, masked_nodes, links, labels)

    loss, positive = run(gp, masked_nodes, sampled_links, sampled_link_labels)
    jax.block_until_ready((loss, positive))

    assert positive.shape == (N, H)
    assert positive.dtype == jnp.float32
    assert loss.shape == ()
    assert bool(jnp.isfinite(loss))

    # Mixed-precision validation against a pure-f32 reference (loose tolerance:
    # bf16 MXU operands + bf16-rounded accumulator in the encoder epilogue).
    ref_loss, ref_pos = reference_forward(params, perm, g, masked_nodes,
                                          sampled_links, sampled_link_labels,
                                          D_IN, N_MOTIF)
    rel_err = abs(float(loss) - float(ref_loss)) / max(1.0, abs(float(ref_loss)))
    assert rel_err < 0.05, f"loss rel err {rel_err}"
    assert bool(jnp.allclose(positive, ref_pos, atol=0.1, rtol=0.1)), "positive mismatch"

    print("KERNEL_OK")
</pallas_src>

<mosaic_0001>
module attributes {stable_mosaic.version = 11 : i64} {
  func.func @_fused_encoder_kernel(%arg0: i32, %arg1: i32, %arg2: memref<256x256xbf16, #tpu.memory_space<vmem>>, %arg3: memref<256x128xbf16, #tpu.memory_space<vmem>>, %arg4: memref<256x128xbf16, #tpu.memory_space<vmem>>, %arg5: memref<128x128xbf16, #tpu.memory_space<vmem>>, %arg6: memref<1x128xf32, #tpu.memory_space<vmem>>, %arg7: memref<256x128xf32, #tpu.memory_space<vmem>>, %arg8: memref<256x128xbf16, #tpu.memory_space<vmem>>, %arg9: memref<512x128xf32, #tpu.memory_space<vmem>>) attributes {dimension_semantics = [#tpu.dimension_semantics<parallel>, #tpu.dimension_semantics<arbitrary>], iteration_bounds = array<i64: 2, 2>, scalar_prefetch = 0 : i64, scratch_operands = 1 : i64, tpu.core_type = #tpu.core_type<tc>, window_params = [{transform_indices = @transform_0, window_bounds = array<i64: 256, 256>}, {transform_indices = @transform_1, window_bounds = array<i64: 256, 128>}, {transform_indices = @transform_2, window_bounds = array<i64: 256, 128>}, {pipeline_mode = #tpu.pipeline_mode<synchronous>, transform_indices = @transform_3, window_bounds = array<i64: 128, 128>}, {pipeline_mode = #tpu.pipeline_mode<synchronous>, transform_indices = @transform_4, window_bounds = array<i64: 1, 128>}, {transform_indices = @transform_5, window_bounds = array<i64: 256, 128>}, {transform_indices = @transform_6, window_bounds = array<i64: 256, 128>}]} {
    %c0_i32 = arith.constant 0 : i32
    %0 = arith.cmpi eq, %arg1, %c0_i32 : i32
    %1 = arith.extui %0 : i1 to i32
    %c0_i32_0 = arith.constant 0 : i32
    %2 = arith.cmpi ne, %1, %c0_i32_0 : i32
    scf.if %2 {
      %cst_15 = arith.constant 0.000000e+00 : f32
      %17 = vector.broadcast %cst_15 : f32 to vector<512x128xf32>
      %c0_16 = arith.constant 0 : index
      %c0_17 = arith.constant 0 : index
      %18 = vector.load %arg9[%c0_16, %c0_17] : memref<512x128xf32, #tpu.memory_space<vmem>>, vector<512x128xf32>
      tpu.vector_store %arg9[%c0_16, %c0_17], %17 {strides = array<i32>} : memref<512x128xf32, #tpu.memory_space<vmem>>, vector<512x128xf32>,
    } else {
    }
    %c0 = arith.constant 0 : index
    %c0_1 = arith.constant 0 : index
    %3 = vector.load %arg2[%c0, %c0_1] : memref<256x256xbf16, #tpu.memory_space<vmem>>, vector<256x256xbf16>
    %c0_2 = arith.constant 0 : index
    %c0_3 = arith.constant 0 : index
    %4 = vector.load %arg9[%c0_2, %c0_3] : memref<512x128xf32, #tpu.memory_space<vmem>>, vector<256x128xf32>
    %c0_4 = arith.constant 0 : index
    %c0_5 = arith.constant 0 : index
    %5 = vector.load %arg3[%c0_4, %c0_5] : memref<256x128xbf16, #tpu.memory_space<vmem>>, vector<256x128xbf16>
    %cst = arith.constant dense<0.000000e+00> : vector<256x128xf32>
    %6 = tpu.matmul %3, %5, %cst {dimension_numbers = #tpu.dot_dimension_numbers<[1], [0], [0], [1], [0, 0, 1, 1], [], []>} : vector<256x256xbf16>, vector<256x128xbf16>, vector<256x128xf32> -> vector<256x128xf32>
    %7 = arith.addf %4, %6 : vector<256x128xf32>
    %c0_6 = arith.constant 0 : index
    %c0_7 = arith.constant 0 : index
    %8 = vector.load %arg9[%c0_6, %c0_7] : memref<512x128xf32, #tpu.memory_space<vmem>>, vector<256x128xf32>
    tpu.vector_store %arg9[%c0_6, %c0_7], %7 {strides = array<i32>} : memref<512x128xf32, #tpu.memory_space<vmem>>, vector<256x128xf32>,
    %c256 = arith.constant 256 : index
    %c0_8 = arith.constant 0 : index
    %9 = vector.load %arg9[%c256, %c0_8] : memref<512x128xf32, #tpu.memory_space<vmem>>, vector<256x128xf32>
    %c0_9 = arith.constant 0 : index
    %c0_10 = arith.constant 0 : index
    %10 = vector.load %arg4[%c0_9, %c0_10] : memref<256x128xbf16, #tpu.memory_space<vmem>>, vector<256x128xbf16>
    %cst_11 = arith.constant dense<0.000000e+00> : vector<256x128xf32>
    %11 = tpu.matmul %3, %10, %cst_11 {dimension_numbers = #tpu.dot_dimension_numbers<[1], [0], [0], [1], [0, 0, 1, 1], [], []>} : vector<256x256xbf16>, vector<256x128xbf16>, vector<256x128xf32> -> vector<256x128xf32>
    %12 = arith.addf %9, %11 : vector<256x128xf32>
    %c256_12 = arith.constant 256 : index
    %c0_13 = arith.constant 0 : index
    %13 = vector.load %arg9[%c256_12, %c0_13] : memref<512x128xf32, #tpu.memory_space<vmem>>, vector<256x128xf32>
    tpu.vector_store %arg9[%c256_12, %c0_13], %12 {strides = array<i32>} : memref<512x128xf32, #tpu.memory_space<vmem>>, vector<256x128xf32>,
    %c1_i32 = arith.constant 1 : i32
    %14 = arith.cmpi eq, %arg1, %c1_i32 : i32
    %15 = arith.extui %14 : i1 to i32
    %c0_i32_14 = arith.constant 0 : i32
    %16 = arith.cmpi ne, %15, %c0_i32_14 : i32
    scf.if %16 {
      %c0_15 = arith.constant 0 : index
      %c0_16 = arith.constant 0 : index
      %17 = vector.load %arg9[%c0_15, %c0_16] : memref<512x128xf32, #tpu.memory_space<vmem>>, vector<512x128xf32>
      %18 = arith.truncf %17 : vector<512x128xf32> to vector<512x128xbf16>
      %c0_17 = arith.constant 0 : index
      %c0_18 = arith.constant 0 : index
      %19 = vector.load %arg5[%c0_17, %c0_18] : memref<128x128xbf16, #tpu.memory_space<vmem>>, vector<128x128xbf16>
      %cst_19 = arith.constant dense<0.000000e+00> : vector<512x128xf32>
      %20 = tpu.matmul %18, %19, %cst_19 {dimension_numbers = #tpu.dot_dimension_numbers<[1], [0], [0], [1], [0, 0, 1, 1], [], []>} : vector<512x128xbf16>, vector<128x128xbf16>, vector<512x128xf32> -> vector<512x128xf32>
      %c0_20 = arith.constant 0 : index
      %c0_21 = arith.constant 0 : index
      %21 = vector.load %arg6[%c0_20, %c0_21] : memref<1x128xf32, #tpu.memory_space<vmem>>, vector<1x128xf32>
      %22 = vector.broadcast %21 : vector<1x128xf32> to vector<512x128xf32>
      %23 = arith.addf %20, %22 : vector<512x128xf32>
      %cst_22 = arith.constant 0.000000e+00 : f32
      %24 = vector.broadcast %cst_22 : f32 to vector<512x128xf32>
      %25 = arith.maximumf %23, %24 : vector<512x128xf32>
      %26 = vector.extract_strided_slice %25 {offsets = [0, 0], sizes = [256, 128], strides = [1, 1]} : vector<512x128xf32> to vector<256x128xf32>
      %c0_23 = arith.constant 0 : index
      %c0_24 = arith.constant 0 : index
      %27 = vector.load %arg7[%c0_23, %c0_24] : memref<256x128xf32, #tpu.memory_space<vmem>>, vector<256x128xf32>
      tpu.vector_store %arg7[%c0_23, %c0_24], %26 {strides = array<i32>} : memref<256x128xf32, #tpu.memory_space<vmem>>, vector<256x128xf32>,
      %28 = vector.extract_strided_slice %25 {offsets = [256, 0], sizes = [256, 128], strides = [1, 1]} : vector<512x128xf32> to vector<256x128xf32>
      %29 = arith.truncf %28 : vector<256x128xf32> to vector<256x128xbf16>
      %c0_25 = arith.constant 0 : index
      %c0_26 = arith.constant 0 : index
      %30 = vector.load %arg8[%c0_25, %c0_26] : memref<256x128xbf16, #tpu.memory_space<vmem>>, vector<256x128xbf16>
      tpu.vector_store %arg8[%c0_25, %c0_26], %29 {strides = array<i32>} : memref<256x128xbf16, #tpu.memory_space<vmem>>, vector<256x128xbf16>,
    } else {
    }
    return
  }
  func.func @transform_0(%arg0: i32, %arg1: i32) -> (i32, i32) {
    %c0_i32 = arith.constant 0 : i32
    return %arg0, %arg1 : i32, i32
  }
  func.func @transform_1(%arg0: i32, %arg1: i32) -> (i32, i32) {
    %c0_i32 = arith.constant 0 : i32
    %c0_i32_0 = arith.constant 0 : i32
    return %arg1, %c0_i32 : i32, i32
  }
  func.func @transform_2(%arg0: i32, %arg1: i32) -> (i32, i32) {
    %c0_i32 = arith.constant 0 : i32
    %c0_i32_0 = arith.constant 0 : i32
    return %arg1, %c0_i32 : i32, i32
  }
  func.func @transform_3(%arg0: i32, %arg1: i32) -> (i32, i32) {
    %c0_i32 = arith.constant 0 : i32
    %c0_i32_0 = arith.constant 0 : i32
    %c0_i32_1 = arith.constant 0 : i32
    return %c0_i32, %c0_i32_0 : i32, i32
  }
  func.func @transform_4(%arg0: i32, %arg1: i32) -> (i32, i32) {
    %c0_i32 = arith.constant 0 : i32
    %c0_i32_0 = arith.constant 0 : i32
    %c0_i32_1 = arith.constant 0 : i32
    return %c0_i32, %c0_i32_0 : i32, i32
  }
  func.func @transform_5(%arg0: i32, %arg1: i32) -> (i32, i32) {
    %c0_i32 = arith.constant 0 : i32
    %c0_i32_0 = arith.constant 0 : i32
    return %arg0, %c0_i32 : i32, i32
  }
  func.func @transform_6(%arg0: i32, %arg1: i32) -> (i32, i32) {
    %c0_i32 = arith.constant 0 : i32
    %c0_i32_0 = arith.constant 0 : i32
    return %arg0, %c0_i32 : i32, i32
  }
}

module attributes {stable_mosaic.version = 11 : i64} {
  func.func @_fused_decoder_kernel(%arg0: i32, %arg1: memref<256x128xf32, #tpu.memory_space<vmem>>, %arg2: memref<256x128xbf16, #tpu.memory_space<vmem>>, %arg3: memref<128x1xf32, #tpu.memory_space<vmem>>, %arg4: memref<128x256xbf16, #tpu.memory_space<vmem>>, %arg5: memref<1x256xf32, #tpu.memory_space<vmem>>, %arg6: memref<256x128xf32, #tpu.memory_space<vmem>>, %arg7: memref<256x1xf32, #tpu.memory_space<vmem>>, %arg8: memref<256x128xf32, #tpu.memory_space<vmem>>, %arg9: memref<128x128xf32, #tpu.memory_space<vmem>>, %arg10: memref<128x128xf32, #tpu.memory_space<vmem>>, %arg11: memref<128x1xf32, #tpu.memory_space<vmem>>, %arg12: memref<1x1xf32, #tpu.memory_space<vmem>>, %arg13: memref<1x1xf32, #tpu.memory_space<vmem>>, %arg14: memref<1x1xf32, #tpu.memory_space<vmem>>, %arg15: memref<1x1xf32, #tpu.memory_space<vmem>>, %arg16: memref<1x1xf32, #tpu.memory_space<vmem>>, %arg17: memref<1x1xf32, #tpu.memory_space<vmem>>) attributes {dimension_semantics = [#tpu.dimension_semantics<arbitrary>], iteration_bounds = array<i64: 2>, scalar_prefetch = 0 : i64, scratch_operands = 5 : i64, tpu.core_type = #tpu.core_type<tc>, window_params = [{transform_indices = @transform_0, window_bounds = array<i64: 256, 128>}, {transform_indices = @transform_1, window_bounds = array<i64: 256, 128>}, {pipeline_mode = #tpu.pipeline_mode<synchronous>, transform_indices = @transform_2, window_bounds = array<i64: 128, 1>}, {pipeline_mode = #tpu.pipeline_mode<synchronous>, transform_indices = @transform_3, window_bounds = array<i64: 128, 256>}, {pipeline_mode = #tpu.pipeline_mode<synchronous>, transform_indices = @transform_4, window_bounds = array<i64: 1, 256>}, {transform_indices = @transform_5, window_bounds = array<i64: 256, 128>}, {transform_indices = @transform_6, window_bounds = array<i64: 256, 1>}, {transform_indices = @transform_7, window_bounds = array<i64: 256, 128>}, {pipeline_mode = #tpu.pipeline_mode<synchronous>, transform_indices = @transform_8, window_bounds = array<i64: 128, 128>}, {pipeline_mode = #tpu.pipeline_mode<synchronous>, transform_indices = @transform_9, window_bounds = array<i64: 128, 128>}, {pipeline_mode = #tpu.pipeline_mode<synchronous>, transform_indices = @transform_10, window_bounds = array<i64: 128, 1>}, {pipeline_mode = #tpu.pipeline_mode<synchronous>, transform_indices = @transform_11, window_bounds = array<i64: 1, 1>}]} {
    %c0_i32 = arith.constant 0 : i32
    %0 = arith.cmpi eq, %arg0, %c0_i32 : i32
    %1 = arith.extui %0 : i1 to i32
    %c0_i32_0 = arith.constant 0 : i32
    %2 = arith.cmpi ne, %1, %c0_i32_0 : i32
    scf.if %2 {
      %cst_50 = arith.constant 0.000000e+00 : f32
      %91 = vector.broadcast %cst_50 : f32 to vector<1x1xf32>
      %c0_51 = arith.constant 0 : index
      %c0_52 = arith.constant 0 : index
      %92 = vector.load %arg13[%c0_51, %c0_52] : memref<1x1xf32, #tpu.memory_space<vmem>>, vector<1x1xf32>
      tpu.vector_store %arg13[%c0_51, %c0_52], %91 {strides = array<i32>} : memref<1x1xf32, #tpu.memory_space<vmem>>, vector<1x1xf32>,
      %cst_53 = arith.constant 0.000000e+00 : f32
      %93 = vector.broadcast %cst_53 : f32 to vector<1x1xf32>
      %c0_54 = arith.constant 0 : index
      %c0_55 = arith.constant 0 : index
      %94 = vector.load %arg14[%c0_54, %c0_55] : memref<1x1xf32, #tpu.memory_space<vmem>>, vector<1x1xf32>
      tpu.vector_store %arg14[%c0_54, %c0_55], %93 {strides = array<i32>} : memref<1x1xf32, #tpu.memory_space<vmem>>, vector<1x1xf32>,
      %cst_56 = arith.constant 0.000000e+00 : f32
      %95 = vector.broadcast %cst_56 : f32 to vector<1x1xf32>
      %c0_57 = arith.constant 0 : index
      %c0_58 = arith.constant 0 : index
      %96 = vector.load %arg15[%c0_57, %c0_58] : memref<1x1xf32, #tpu.memory_space<vmem>>, vector<1x1xf32>
      tpu.vector_store %arg15[%c0_57, %c0_58], %95 {strides = array<i32>} : memref<1x1xf32, #tpu.memory_space<vmem>>, vector<1x1xf32>,
      %cst_59 = arith.constant 0.000000e+00 : f32
      %97 = vector.broadcast %cst_59 : f32 to vector<1x1xf32>
      %c0_60 = arith.constant 0 : index
      %c0_61 = arith.constant 0 : index
      %98 = vector.load %arg16[%c0_60, %c0_61] : memref<1x1xf32, #tpu.memory_space<vmem>>, vector<1x1xf32>
      tpu.vector_store %arg16[%c0_60, %c0_61], %97 {strides = array<i32>} : memref<1x1xf32, #tpu.memory_space<vmem>>, vector<1x1xf32>,
      %cst_62 = arith.constant 0.000000e+00 : f32
      %99 = vector.broadcast %cst_62 : f32 to vector<1x1xf32>
      %c0_63 = arith.constant 0 : index
      %c0_64 = arith.constant 0 : index
      %100 = vector.load %arg17[%c0_63, %c0_64] : memref<1x1xf32, #tpu.memory_space<vmem>>, vector<1x1xf32>
      tpu.vector_store %arg17[%c0_63, %c0_64], %99 {strides = array<i32>} : memref<1x1xf32, #tpu.memory_space<vmem>>, vector<1x1xf32>,
    } else {
    }
    %c0 = arith.constant 0 : index
    %c0_1 = arith.constant 0 : index
    %3 = vector.load %arg1[%c0, %c0_1] : memref<256x128xf32, #tpu.memory_space<vmem>>, vector<256x128xf32>
    %4 = arith.truncf %3 : vector<256x128xf32> to vector<256x128xbf16>
    %c0_2 = arith.constant 0 : index
    %c0_3 = arith.constant 0 : index
    %5 = vector.load %arg2[%c0_2, %c0_3] : memref<256x128xbf16, #tpu.memory_space<vmem>>, vector<256x128xbf16>
    %c0_4 = arith.constant 0 : index
    %c0_5 = arith.constant 0 : index
    %6 = vector.load %arg3[%c0_4, %c0_5] : memref<128x1xf32, #tpu.memory_space<vmem>>, vector<128x1xf32>
    %7 = arith.truncf %6 : vector<128x1xf32> to vector<128x1xbf16>
    %cst = arith.constant dense<0.000000e+00> : vector<256x1xf32>
    %8 = tpu.matmul %4, %7, %cst {dimension_numbers = #tpu.dot_dimension_numbers<[1], [0], [0], [1], [0, 0, 1, 1], [], []>} : vector<256x128xbf16>, vector<128x1xbf16>, vector<256x1xf32> -> vector<256x1xf32>
    %cst_6 = arith.constant dense<0.000000e+00> : vector<256x1xf32>
    %9 = tpu.matmul %5, %7, %cst_6 {dimension_numbers = #tpu.dot_dimension_numbers<[1], [0], [0], [1], [0, 0, 1, 1], [], []>} : vector<256x128xbf16>, vector<128x1xbf16>, vector<256x1xf32> -> vector<256x1xf32>
    %c0_7 = arith.constant 0 : index
    %c0_8 = arith.constant 0 : index
    %10 = vector.load %arg13[%c0_7, %c0_8] : memref<1x1xf32, #tpu.memory_space<vmem>>, vector<1x1xf32>
    %cst_9 = arith.constant 0.000000e+00 : f32
    %11 = vector.broadcast %cst_9 : f32 to vector<256x1xf32>
    %12 = arith.maximumf %8, %11 : vector<256x1xf32>
    %cst_10 = arith.constant 1.000000e+00 : f32
    %13 = vector.broadcast %cst_10 : f32 to vector<256x1xf32>
    %14 = arith.mulf %8, %13 : vector<256x1xf32>
    %15 = arith.subf %12, %14 : vector<256x1xf32>
    %16 = math.absf %8 : vector<256x1xf32>
    %cst_11 = arith.constant 0.000000e+00 : f32
    %17 = vector.broadcast %cst_11 : f32 to vector<256x1xf32>
    %18 = arith.subf %17, %16 : vector<256x1xf32>
    %19 = math.exp %18 : vector<256x1xf32>
    %20 = math.log1p %19 : vector<256x1xf32>
    %21 = arith.addf %15, %20 : vector<256x1xf32>
    %22 = vector.shape_cast %21 : vector<256x1xf32> to vector<1x256x1xf32>
    %cst_12 = arith.constant dense<0.000000e+00> : vector<1xf32>
    %23 = vector.multi_reduction <add>, %22, %cst_12 [1, 2] : vector<1x256x1xf32> to vector<1xf32>
    %24 = vector.shape_cast %23 : vector<1xf32> to vector<1x1x1xf32>
    %25 = vector.extract %24[0, 0, 0] : f32 from vector<1x1x1xf32>
    %26 = vector.broadcast %25 : f32 to vector<1x1xf32>
    %27 = arith.addf %10, %26 : vector<1x1xf32>
    %c0_13 = arith.constant 0 : index
    %c0_14 = arith.constant 0 : index
    %28 = vector.load %arg13[%c0_13, %c0_14] : memref<1x1xf32, #tpu.memory_space<vmem>>, vector<1x1xf32>
    tpu.vector_store %arg13[%c0_13, %c0_14], %27 {strides = array<i32>} : memref<1x1xf32, #tpu.memory_space<vmem>>, vector<1x1xf32>,
    %c0_15 = arith.constant 0 : index
    %c0_16 = arith.constant 0 : index
    %29 = vector.load %arg14[%c0_15, %c0_16] : memref<1x1xf32, #tpu.memory_space<vmem>>, vector<1x1xf32>
    %cst_17 = arith.constant 0.000000e+00 : f32
    %30 = vector.broadcast %cst_17 : f32 to vector<256x1xf32>
    %31 = arith.maximumf %9, %30 : vector<256x1xf32>
    %cst_18 = arith.constant 0.000000e+00 : f32
    %32 = vector.broadcast %cst_18 : f32 to vector<256x1xf32>
    %33 = arith.mulf %9, %32 : vector<256x1xf32>
    %34 = arith.subf %31, %33 : vector<256x1xf32>
    %35 = math.absf %9 : vector<256x1xf32>
    %cst_19 = arith.constant 0.000000e+00 : f32
    %36 = vector.broadcast %cst_19 : f32 to vector<256x1xf32>
    %37 = arith.subf %36, %35 : vector<256x1xf32>
    %38 = math.exp %37 : vector<256x1xf32>
    %39 = math.log1p %38 : vector<256x1xf32>
    %40 = arith.addf %34, %39 : vector<256x1xf32>
    %41 = vector.shape_cast %40 : vector<256x1xf32> to vector<1x256x1xf32>
    %cst_20 = arith.constant dense<0.000000e+00> : vector<1xf32>
    %42 = vector.multi_reduction <add>, %41, %cst_20 [1, 2] : vector<1x256x1xf32> to vector<1xf32>
    %43 = vector.shape_cast %42 : vector<1xf32> to vector<1x1x1xf32>
    %44 = vector.extract %43[0, 0, 0] : f32 from vector<1x1x1xf32>
    %45 = vector.broadcast %44 : f32 to vector<1x1xf32>
    %46 = arith.addf %29, %45 : vector<1x1xf32>
    %c0_21 = arith.constant 0 : index
    %c0_22 = arith.constant 0 : index
    %47 = vector.load %arg14[%c0_21, %c0_22] : memref<1x1xf32, #tpu.memory_space<vmem>>, vector<1x1xf32>
    tpu.vector_store %arg14[%c0_21, %c0_22], %46 {strides = array<i32>} : memref<1x1xf32, #tpu.memory_space<vmem>>, vector<1x1xf32>,
    %c0_23 = arith.constant 0 : index
    %c0_24 = arith.constant 0 : index
    %48 = vector.load %arg4[%c0_23, %c0_24] : memref<128x256xbf16, #tpu.memory_space<vmem>>, vector<128x256xbf16>
    %cst_25 = arith.constant dense<0.000000e+00> : vector<256x256xf32>
    %49 = tpu.matmul %4, %48, %cst_25 {dimension_numbers = #tpu.dot_dimension_numbers<[1], [0], [0], [1], [0, 0, 1, 1], [], []>} : vector<256x128xbf16>, vector<128x256xbf16>, vector<256x256xf32> -> vector<256x256xf32>
    %c0_26 = arith.constant 0 : index
    %c0_27 = arith.constant 0 : index
    %50 = vector.load %arg5[%c0_26, %c0_27] : memref<1x256xf32, #tpu.memory_space<vmem>>, vector<1x256xf32>
    %51 = vector.broadcast %50 : vector<1x256xf32> to vector<256x256xf32>
    %52 = arith.addf %49, %51 : vector<256x256xf32>
    %53 = vector.extract_strided_slice %52 {offsets = [0, 0], sizes = [256, 128], strides = [1, 1]} : vector<256x256xf32> to vector<256x128xf32>
    %54 = vector.extract_strided_slice %52 {offsets = [0, 128], sizes = [256, 128], strides = [1, 1]} : vector<256x256xf32> to vector<256x128xf32>
    %c0_28 = arith.constant 0 : index
    %c0_29 = arith.constant 0 : index
    %55 = vector.load %arg7[%c0_28, %c0_29] : memref<256x1xf32, #tpu.memory_space<vmem>>, vector<256x1xf32>
    %c0_30 = arith.constant 0 : index
    %c0_31 = arith.constant 0 : index
    %56 = vector.load %arg15[%c0_30, %c0_31] : memref<1x1xf32, #tpu.memory_space<vmem>>, vector<1x1xf32>
    %c0_32 = arith.constant 0 : index
    %c0_33 = arith.constant 0 : index
    %57 = vector.load %arg6[%c0_32, %c0_33] : memref<256x128xf32, #tpu.memory_space<vmem>>, vector<256x128xf32>
    %58 = arith.subf %53, %57 : vector<256x128xf32>
    %59 = arith.mulf %58, %58 : vector<256x128xf32>
    %60 = vector.broadcast %55 : vector<256x1xf32> to vector<256x128xf32>
    %61 = arith.mulf %59, %60 : vector<256x128xf32>
    %62 = vector.shape_cast %61 : vector<256x128xf32> to vector<1x256x128xf32>
    %cst_34 = arith.constant dense<0.000000e+00> : vector<1xf32>
    %63 = vector.multi_reduction <add>, %62, %cst_34 [1, 2] : vector<1x256x128xf32> to vector<1xf32>
    %64 = vector.shape_cast %63 : vector<1xf32> to vector<1x1x1xf32>
    %65 = vector.extract %64[0, 0, 0] : f32 from vector<1x1x1xf32>
    %66 = vector.broadcast %65 : f32 to vector<1x1xf32>
    %67 = arith.addf %56, %66 : vector<1x1xf32>
    %c0_35 = arith.constant 0 : index
    %c0_36 = arith.constant 0 : index
    %68 = vector.load %arg15[%c0_35, %c0_36] : memref<1x1xf32, #tpu.memory_space<vmem>>, vector<1x1xf32>
    tpu.vector_store %arg15[%c0_35, %c0_36], %67 {strides = array<i32>} : memref<1x1xf32, #tpu.memory_space<vmem>>, vector<1x1xf32>,
    %c0_37 = arith.constant 0 : index
    %c0_38 = arith.constant 0 : index
    %69 = vector.load %arg16[%c0_37, %c0_38] : memref<1x1xf32, #tpu.memory_space<vmem>>, vector<1x1xf32>
    %70 = vector.shape_cast %55 : vector<256x1xf32> to vector<1x256x1xf32>
    %cst_39 = arith.constant dense<0.000000e+00> : vector<1xf32>
    %71 = vector.multi_reduction <add>, %70, %cst_39 [1, 2] : vector<1x256x1xf32> to vector<1xf32>
    %72 = vector.shape_cast %71 : vector<1xf32> to vector<1x1x1xf32>
    %73 = vector.extract %72[0, 0, 0] : f32 from vector<1x1x1xf32>
    %74 = vector.broadcast %73 : f32 to vector<1x1xf32>
    %75 = arith.addf %69, %74 : vector<1x1xf32>
    %c0_40 = arith.constant 0 : index
    %c0_41 = arith.constant 0 : index
    %76 = vector.load %arg16[%c0_40, %c0_41] : memref<1x1xf32, #tpu.memory_space<vmem>>, vector<1x1xf32>
    tpu.vector_store %arg16[%c0_40, %c0_41], %75 {strides = array<i32>} : memref<1x1xf32, #tpu.memory_space<vmem>>, vector<1x1xf32>,
    %c0_42 = arith.constant 0 : index
    %c0_43 = arith.constant 0 : index
    %77 = vector.load %arg17[%c0_42, %c0_43] : memref<1x1xf32, #tpu.memory_space<vmem>>, vector<1x1xf32>
    %c0_44 = arith.constant 0 : index
    %c0_45 = arith.constant 0 : index
    %78 = vector.load %arg8[%c0_44, %c0_45] : memref<256x128xf32, #tpu.memory_space<vmem>>, vector<256x128xf32>
    %79 = arith.subf %54, %78 : vector<256x128xf32>
    %80 = arith.mulf %79, %79 : vector<256x128xf32>
    %81 = vector.shape_cast %80 : vector<256x128xf32> to vector<1x256x128xf32>
    %cst_46 = arith.constant dense<0.000000e+00> : vector<1xf32>
    %82 = vector.multi_reduction <add>, %81, %cst_46 [1, 2] : vector<1x256x128xf32> to vector<1xf32>
    %83 = vector.shape_cast %82 : vector<1xf32> to vector<1x1x1xf32>
    %84 = vector.extract %83[0, 0, 0] : f32 from vector<1x1x1xf32>
    %85 = vector.broadcast %84 : f32 to vector<1x1xf32>
    %86 = arith.addf %77, %85 : vector<1x1xf32>
    %c0_47 = arith.constant 0 : index
    %c0_48 = arith.constant 0 : index
    %87 = vector.load %arg17[%c0_47, %c0_48] : memref<1x1xf32, #tpu.memory_space<vmem>>, vector<1x1xf32>
    tpu.vector_store %arg17[%c0_47, %c0_48], %86 {strides = array<i32>} : memref<1x1xf32, #tpu.memory_space<vmem>>, vector<1x1xf32>,
    %c1_i32 = arith.constant 1 : i32
    %88 = arith.cmpi eq, %arg0, %c1_i32 : i32
    %89 = arith.extui %88 : i1 to i32
    %c0_i32_49 = arith.constant 0 : i32
    %90 = arith.cmpi ne, %89, %c0_i32_49 : i32
    scf.if %90 {
      %c0_50 = arith.constant 0 : index
      %c0_51 = arith.constant 0 : index
      %91 = vector.load %arg9[%c0_50, %c0_51] : memref<128x128xf32, #tpu.memory_space<vmem>>, vector<128x128xf32>
      %c0_52 = arith.constant 0 : index
      %c0_53 = arith.constant 0 : index
      %92 = vector.load %arg10[%c0_52, %c0_53] : memref<128x128xf32, #tpu.memory_space<vmem>>, vector<128x128xf32>
      %93 = arith.mulf %91, %92 : vector<128x128xf32>
      %cst_54 = arith.constant dense<0.000000e+00> : vector<128xf32>
      %94 = vector.multi_reduction <add>, %93, %cst_54 [1] : vector<128x128xf32> to vector<128xf32>
      %95 = vector.shape_cast %94 : vector<128xf32> to vector<128x1xf32>
      %c0_55 = arith.constant 0 : index
      %c0_56 = arith.constant 0 : index
      %96 = vector.load %arg11[%c0_55, %c0_56] : memref<128x1xf32, #tpu.memory_space<vmem>>, vector<128x1xf32>
      %cst_57 = arith.constant 0.000000e+00 : f32
      %97 = vector.broadcast %cst_57 : f32 to vector<128x1xf32>
      %98 = arith.maximumf %95, %97 : vector<128x1xf32>
      %99 = arith.mulf %95, %96 : vector<128x1xf32>
      %100 = arith.subf %98, %99 : vector<128x1xf32>
      %101 = math.absf %95 : vector<128x1xf32>
      %cst_58 = arith.constant 0.000000e+00 : f32
      %102 = vector.broadcast %cst_58 : f32 to vector<128x1xf32>
      %103 = arith.subf %102, %101 : vector<128x1xf32>
      %104 = math.exp %103 : vector<128x1xf32>
      %105 = math.log1p %104 : vector<128x1xf32>
      %106 = arith.addf %100, %105 : vector<128x1xf32>
      %107 = vector.shape_cast %106 : vector<128x1xf32> to vector<1x128x1xf32>
      %cst_59 = arith.constant dense<0.000000e+00> : vector<1xf32>
      %108 = vector.multi_reduction <add>, %107, %cst_59 [1, 2] : vector<1x128x1xf32> to vector<1xf32>
      %109 = vector.shape_cast %108 : vector<1xf32> to vector<1x1x1xf32>
      %110 = vector.extract %109[0, 0, 0] : f32 from vector<1x1x1xf32>
      %111 = vector.broadcast %110 : f32 to vector<1x1xf32>
      %cst_60 = arith.constant 1.280000e+02 : f32
      %112 = vector.broadcast %cst_60 : f32 to vector<1x1xf32>
      %113 = arith.divf %111, %112 : vector<1x1xf32>
      %c0_61 = arith.constant 0 : index
      %c0_62 = arith.constant 0 : index
      %114 = vector.load %arg13[%c0_61, %c0_62] : memref<1x1xf32, #tpu.memory_space<vmem>>, vector<1x1xf32>
      %c0_63 = arith.constant 0 : index
      %c0_64 = arith.constant 0 : index
      %115 = vector.load %arg14[%c0_63, %c0_64] : memref<1x1xf32, #tpu.memory_space<vmem>>, vector<1x1xf32>
      %116 = arith.addf %114, %115 : vector<1x1xf32>
      %cst_65 = arith.constant 5.120000e+02 : f32
      %117 = vector.broadcast %cst_65 : f32 to vector<1x1xf32>
      %118 = arith.divf %116, %117 : vector<1x1xf32>
      %c0_66 = arith.constant 0 : index
      %c0_67 = arith.constant 0 : index
      %119 = vector.load %arg15[%c0_66, %c0_67] : memref<1x1xf32, #tpu.memory_space<vmem>>, vector<1x1xf32>
      %c0_68 = arith.constant 0 : index
      %c0_69 = arith.constant 0 : index
      %120 = vector.load %arg16[%c0_68, %c0_69] : memref<1x1xf32, #tpu.memory_space<vmem>>, vector<1x1xf32>
      %cst_70 = arith.constant 9.600000e+01 : f32
      %121 = vector.broadcast %cst_70 : f32 to vector<1x1xf32>
      %122 = arith.mulf %120, %121 : vector<1x1xf32>
      %cst_71 = arith.constant 9.99999993E-9 : f32
      %123 = vector.broadcast %cst_71 : f32 to vector<1x1xf32>
      %124 = arith.addf %122, %123 : vector<1x1xf32>
      %125 = arith.divf %119, %124 : vector<1x1xf32>
      %c0_72 = arith.constant 0 : index
      %c0_73 = arith.constant 0 : index
      %126 = vector.load %arg17[%c0_72, %c0_73] : memref<1x1xf32, #tpu.memory_space<vmem>>, vector<1x1xf32>
      %cst_74 = arith.constant 8.192000e+03 : f32
      %127 = vector.broadcast %cst_74 : f32 to vector<1x1xf32>
      %128 = arith.divf %126, %127 : vector<1x1xf32>
      %129 = arith.addf %118, %125 : vector<1x1xf32>
      %130 = arith.addf %129, %128 : vector<1x1xf32>
      %131 = arith.addf %130, %113 : vector<1x1xf32>
      %c0_75 = arith.constant 0 : index
      %c0_76 = arith.constant 0 : index
      %132 = vector.load %arg12[%c0_75, %c0_76] : memref<1x1xf32, #tpu.memory_space<vmem>>, vector<1x1xf32>
      tpu.vector_store %arg12[%c0_75, %c0_76], %131 {strides = array<i32>} : memref<1x1xf32, #tpu.memory_space<vmem>>, vector<1x1xf32>,
    } else {
    }
    return
  }
  func.func @transform_0(%arg0: i32) -> (i32, i32) {
    %c0_i32 = arith.constant 0 : i32
    %c0_i32_0 = arith.constant 0 : i32
    return %arg0, %c0_i32 : i32, i32
  }
  func.func @transform_1(%arg0: i32) -> (i32, i32) {
    %c0_i32 = arith.constant 0 : i32
    %c0_i32_0 = arith.constant 0 : i32
    return %arg0, %c0_i32 : i32, i32
  }
  func.func @transform_2(%arg0: i32) -> (i32, i32) {
    %c0_i32 = arith.constant 0 : i32
    %c0_i32_0 = arith.constant 0 : i32
    %c0_i32_1 = arith.constant 0 : i32
    return %c0_i32, %c0_i32_0 : i32, i32
  }
  func.func @transform_3(%arg0: i32) -> (i32, i32) {
    %c0_i32 = arith.constant 0 : i32
    %c0_i32_0 = arith.constant 0 : i32
    %c0_i32_1 = arith.constant 0 : i32
    return %c0_i32, %c0_i32_0 : i32, i32
  }
  func.func @transform_4(%arg0: i32) -> (i32, i32) {
    %c0_i32 = arith.constant 0 : i32
    %c0_i32_0 = arith.constant 0 : i32
    %c0_i32_1 = arith.constant 0 : i32
    return %c0_i32, %c0_i32_0 : i32, i32
  }
  func.func @transform_5(%arg0: i32) -> (i32, i32) {
    %c0_i32 = arith.constant 0 : i32
    %c0_i32_0 = arith.constant 0 : i32
    return %arg0, %c0_i32 : i32, i32
  }
  func.func @transform_6(%arg0: i32) -> (i32, i32) {
    %c0_i32 = arith.constant 0 : i32
    %c0_i32_0 = arith.constant 0 : i32
    return %arg0, %c0_i32 : i32, i32
  }
  func.func @transform_7(%arg0: i32) -> (i32, i32) {
    %c0_i32 = arith.constant 0 : i32
    %c0_i32_0 = arith.constant 0 : i32
    return %arg0, %c0_i32 : i32, i32
  }
  func.func @transform_8(%arg0: i32) -> (i32, i32) {
    %c0_i32 = arith.constant 0 : i32
    %c0_i32_0 = arith.constant 0 : i32
    %c0_i32_1 = arith.constant 0 : i32
    return %c0_i32, %c0_i32_0 : i32, i32
  }
  func.func @transform_9(%arg0: i32) -> (i32, i32) {
    %c0_i32 = arith.constant 0 : i32
    %c0_i32_0 = arith.constant 0 : i32
    %c0_i32_1 = arith.constant 0 : i32
    return %c0_i32, %c0_i32_0 : i32, i32
  }
  func.func @transform_10(%arg0: i32) -> (i32, i32) {
    %c0_i32 = arith.constant 0 : i32
    %c0_i32_0 = arith.constant 0 : i32
    %c0_i32_1 = arith.constant 0 : i32
    return %c0_i32, %c0_i32_0 : i32, i32
  }
  func.func @transform_11(%arg0: i32) -> (i32, i32) {
    %c0_i32 = arith.constant 0 : i32
    %c0_i32_0 = arith.constant 0 : i32
    %c0_i32_1 = arith.constant 0 : i32
    return %c0_i32, %c0_i32_0 : i32, i32
  }
}

</mosaic_0001>

<bundles_post_ra>
// kernel: run.2
= control target key start
LH: loop header
LB: loop body
LE: loop exit
PB: predicated region body
PF: predicated region fallthrough
CT: control target
= control target key end

     0   :  { %s3318_s0 = inlined_call_operand.vmem [shape: bf16[512,512], index: 0, kind: input, shape index: {}]   ;;  %s3319_s1 = inlined_call_operand.vmem [shape: bf16[512,128], index: 1, kind: input, shape index: {}]   ;;  %s3320_s2 = inlined_call_operand.vmem [shape: bf16[512,128], index: 2, kind: input, shape index: {}]   ;;  %s3321_s3 = inlined_call_operand.vmem [shape: bf16[128,128], index: 3, kind: input, shape index: {}]   ;;  %s3322_s4 = inlined_call_operand.vmem [shape: f32[1,128], index: 4, kind: input, shape index: {}]   ;;  %s3323_s5 = inlined_call_operand.vmem [shape: f32[512,128], index: 5, kind: output, shape index: {0}]   ;;  %s3324_s6 = inlined_call_operand.vmem [shape: bf16[512,128], index: 6, kind: output, shape index: {1}]  }
   0x1   :  { %3325 = sst [smem:[#allocation4_spill]] %s3318_s0 }
   0x2   :  { %s2839_s21 = smov 0   ;;  %s2841_s22 = smov 0  }
   0x3   :  { %s2843_s23 = smov 0   ;;  %s2845_s24 = smov 0  }
   0x4   :  { %s2847_s25 = smov 0   ;;  %s2849_s26 = smov 0  }
   0x5   :  { %s2851_s27 = smov 0  }
   0x6 LB: > { %s26_s28 = sadd.s32 1, %s2793_s25  ;;  %s29_s29 = sadd.s32 1, %s2797_s26  ;;  %s2801_s27 = sphi %s2851_s27, %s17_s27   ;;  %s2797_s26 = sphi %s2849_s26, %s3332_s26   ;;  %s2793_s25 = sphi %s2847_s25, %s3331_s25   ;;  %s2789_s24 = sphi %s2845_s24, %s3330_s24   ;;  %s2785_s23 = sphi %s2843_s23, %s3329_s23   ;;  %s2781_s22 = sphi %s2841_s22, %s3328_s22   ;;  %s2777_s21 = sphi %s2839_s21, %s3327_s21  }
   0x7   : > { %p27_p0 = scmp.ge.s32.totalorder %s26_s28, 2  ;;  %p45_p1 = scmp.ne.s32.totalorder %s2781_s22, %s2777_s21 }
   0x8   : > { %p46_p2 = scmp.eq.s32.totalorder %s2801_s27, 0  ;;  %s38_s9 = sadd.s32 1, %s2781_s22 }
   0x9   : > { %s3334_s28 = smov (%p27_p0, %s26_s28), 0  ;;  %s3336_s29 = smov (!%p27_p0, %s29_s29), %s2797_s26 }
   0xa   : > { %p47_p3 = por %p46_p2, %p45_p1  ;;  %p31_p4 = scmp.ge.s32.totalorder %s3336_s29, 2 }
   0xb   : > { %s34_s30 = ssub.s32 %s2793_s25, %s3334_s28  ;;  %p2189_p6 = scmp.ge.s32.totalorder %s2801_s27, 4 }
   0xc   : > { %s3338_s29 = smov (%p31_p4, %s3336_s29), 0 }
   0xd   : > { %s33_s7 = ssub.s32 %s2797_s26, %s3338_s29  ;;  %223 = sbr.rel (%p2189_p6) target bundleno = 60 (0x3c), region = 24 }
   0xe   : > { %s35_s8 = sor.u32 %s34_s30, %s33_s7 }
   0xf   : > { %p36_p5 = scmp.eq.s32.totalorder %s35_s8, 0 }
  0x11   : > { %s2890_s10 = scalar_select %p36_p5, %s2781_s22, %s38_s9  }
  0x12   : > { %226 = sbr.rel (!%p47_p3) target bundleno = 60 (0x3c), region = 28  ;;  %s228_s11 = sand.u32 (%p47_p3), 1, %s2781_s22  }
  0x13   : > { %s2192_s12 = sshll.u32 (%p47_p3), %s2793_s25, 1  ;;  %s2190_s13 = sshll.u32 (%p47_p3), %s228_s11, 8 }
  0x14   : > { %s2497_s14 = sshll.u32 (%p47_p3), %s2797_s26, 7  ;;  %s3326_s0 = sld [smem:[#allocation4_spill]] (%p47_p3) }
  0x15   : > { %s234_s15 = sadd.s32 (%p47_p3), %s2497_s14, %s2192_s12  ;;  %s2904_s20 = scalar_lea.vmem (%p47_p3), [#allocation3], %s2190_s13 }
  0x16   : > { %s2194_s16 = sshll.u32 (%p47_p3), %s234_s15, 2 }
  0x1a   : > { %s2899_s19 = scalar_lea.vmem %s3326_s0, %s2194_s16 }
  0x1b   : > { %v327_v0 = vld [vmem:[%s2899_s19] sm:$0xff]  ;;  %v329_v1 = vld [vmem:[%s2899_s19 + $0x10] sm:$0xff] }
  0x1c   : > { %v331_v2 = vld [vmem:[%s2899_s19 + $0x20] sm:$0xff]  ;;  %328 = vst [vmem:[%s2904_s20] sm:$0xff] %v327_v0  ;;  %v333_v3 = vld [vmem:[%s2899_s19 + $0x30] sm:$0xff] }
  0x1d   : > { %330 = vst [vmem:[%s2904_s20 + $0x8] sm:$0xff] %v329_v1  ;;  %v335_v4 = vld [vmem:[%s2899_s19 + $0x40] sm:$0xff]  ;;  %v337_v5 = vld [vmem:[%s2899_s19 + $0x50] sm:$0xff] }
  0x1e   : > { %332 = vst [vmem:[%s2904_s20 + $0x10] sm:$0xff] %v331_v2  ;;  %v339_v6 = vld [vmem:[%s2899_s19 + $0x60] sm:$0xff]  ;;  %v341_v7 = vld [vmem:[%s2899_s19 + $0x70] sm:$0xff] }
  0x1f   : > { %334 = vst [vmem:[%s2904_s20 + $0x18] sm:$0xff] %v333_v3  ;;  %v343_v8 = vld [vmem:[%s2899_s19 + $0x80] sm:$0xff]  ;;  %v345_v9 = vld [vmem:[%s2899_s19 + $0x90] sm:$0xff] }
  0x20   : > { %336 = vst [vmem:[%s2904_s20 + $0x20] sm:$0xff] %v335_v4  ;;  %v347_v10 = vld [vmem:[%s2899_s19 + $0xa0] sm:$0xff]  ;;  %v349_v11 = vld [vmem:[%s2899_s19 + $0xb0] sm:$0xff] }
  0x21   : > { %338 = vst [vmem:[%s2904_s20 + $0x28] sm:$0xff] %v337_v5  ;;  %v351_v12 = vld [vmem:[%s2899_s19 + $0xc0] sm:$0xff]  ;;  %v353_v13 = vld [vmem:[%s2899_s19 + $0xd0] sm:$0xff] }
  0x22   : > { %340 = vst [vmem:[%s2904_s20 + $0x30] sm:$0xff] %v339_v6  ;;  %v355_v14 = vld [vmem:[%s2899_s19 + $0xe0] sm:$0xff]  ;;  %v357_v15 = vld [vmem:[%s2899_s19 + $0xf0] sm:$0xff] }
  0x23   : > { %342 = vst [vmem:[%s2904_s20 + $0x38] sm:$0xff] %v341_v7  ;;  %v359_v16 = vld [vmem:[%s2899_s19 + $0x100] sm:$0xff]  ;;  %v361_v17 = vld [vmem:[%s2899_s19 + $0x110] sm:$0xff] }
  0x24   : > { %344 = vst [vmem:[%s2904_s20 + $0x40] sm:$0xff] %v343_v8  ;;  %v363_v18 = vld [vmem:[%s2899_s19 + $0x120] sm:$0xff]  ;;  %v365_v19 = vld [vmem:[%s2899_s19 + $0x130] sm:$0xff] }
  0x25   : > { %346 = vst [vmem:[%s2904_s20 + $0x48] sm:$0xff] %v345_v9  ;;  %v367_v20 = vld [vmem:[%s2899_s19 + $0x140] sm:$0xff]  ;;  %v369_v21 = vld [vmem:[%s2899_s19 + $0x150] sm:$0xff] }
  0x26   : > { %348 = vst [vmem:[%s2904_s20 + $0x50] sm:$0xff] %v347_v10  ;;  %v371_v22 = vld [vmem:[%s2899_s19 + $0x160] sm:$0xff]  ;;  %v373_v23 = vld [vmem:[%s2899_s19 + $0x170] sm:$0xff] }
  0x27   : > { %350 = vst [vmem:[%s2904_s20 + $0x58] sm:$0xff] %v349_v11  ;;  %v375_v24 = vld [vmem:[%s2899_s19 + $0x180] sm:$0xff]  ;;  %v377_v25 = vld [vmem:[%s2899_s19 + $0x190] sm:$0xff] }
  0x28   : > { %352 = vst [vmem:[%s2904_s20 + $0x60] sm:$0xff] %v351_v12  ;;  %v379_v26 = vld [vmem:[%s2899_s19 + $0x1a0] sm:$0xff]  ;;  %v381_v27 = vld [vmem:[%s2899_s19 + $0x1b0] sm:$0xff] }
  0x29   : > { %354 = vst [vmem:[%s2904_s20 + $0x68] sm:$0xff] %v353_v13  ;;  %v383_v28 = vld [vmem:[%s2899_s19 + $0x1c0] sm:$0xff]  ;;  %v385_v29 = vld [vmem:[%s2899_s19 + $0x1d0] sm:$0xff] }
  0x2a   : > { %356 = vst [vmem:[%s2904_s20 + $0x70] sm:$0xff] %v355_v14  ;;  %v387_v30 = vld [vmem:[%s2899_s19 + $0x1e0] sm:$0xff]  ;;  %v389_v31 = vld [vmem:[%s2899_s19 + $0x1f0] sm:$0xff] }
  0x2b   : > { %358 = vst [vmem:[%s2904_s20 + $0x78] sm:$0xff] %v357_v15 }
  0x2c   : > { %360 = vst [vmem:[%s2904_s20 + $0x80] sm:$0xff] %v359_v16 }
  0x2d   : > { %362 = vst [vmem:[%s2904_s20 + $0x88] sm:$0xff] %v361_v17 }
  0x2e   : > { %364 = vst [vmem:[%s2904_s20 + $0x90] sm:$0xff] %v363_v18 }
  0x2f   : > { %366 = vst [vmem:[%s2904_s20 + $0x98] sm:$0xff] %v365_v19 }
  0x30   : > { %368 = vst [vmem:[%s2904_s20 + $0xa0] sm:$0xff] %v367_v20 }
  0x31   : > { %370 = vst [vmem:[%s2904_s20 + $0xa8] sm:$0xff] %v369_v21 }
  0x32   : > { %372 = vst [vmem:[%s2904_s20 + $0xb0] sm:$0xff] %v371_v22 }
  0x33   : > { %374 = vst [vmem:[%s2904_s20 + $0xb8] sm:$0xff] %v373_v23 }
  0x34   : > { %376 = vst [vmem:[%s2904_s20 + $0xc0] sm:$0xff] %v375_v24 }
  0x35   : > { %378 = vst [vmem:[%s2904_s20 + $0xc8] sm:$0xff] %v377_v25 }
  0x36   : > { %380 = vst [vmem:[%s2904_s20 + $0xd0] sm:$0xff] %v379_v26 }
  0x37   : > { %382 = vst [vmem:[%s2904_s20 + $0xd8] sm:$0xff] %v381_v27 }
  0x38   : > { %384 = vst [vmem:[%s2904_s20 + $0xe0] sm:$0xff] %v383_v28 }
  0x39   : > { %386 = vst [vmem:[%s2904_s20 + $0xe8] sm:$0xff] %v385_v29 }
  0x3a   : > { %388 = vst [vmem:[%s2904_s20 + $0xf0] sm:$0xff] %v387_v30 }
  0x3b   : > { %390 = vst [vmem:[%s2904_s20 + $0xf8] sm:$0xff] %v389_v31 }
  0x3c PF: > { %p2195_p7 = scmp.ge.s32.totalorder %s2801_s27, 1  ;;  %p413_p8 = scmp.lt.s32.totalorder %s2801_s27, 5 }
  0x3e   : > { %p414_p9 = pnand %p2195_p7, %p413_p8 }
  0x3f   : > { %s420_s30 = sand.u32 (!%p414_p9), 1, %s2777_s21   ;;  %s2197_s7 = sshll.u32 (!%p414_p9), %s2785_s23, 5 }
  0x40   : > { %417 = sbr.rel (%p414_p9) target bundleno = 856 (0x358), region = 74  ;;  %s2196_s8 = sshll.u32 (!%p414_p9), %s420_s30, 8 }
  0x41   : > { %p467_p10 = scmp.lt.s32.totalorder (!%p414_p9), %s2197_s7, 63  ;;  %s2201_s9 = sshll.u32 (!%p414_p9), %s2789_s24, 5 }
  0x42   : > { %p479_p11 = scmp.lt.s32.totalorder (!%p414_p9), %s2201_s9, 63  ;;  %s2992_s12 = scalar_lea.vmem (!%p414_p9), [#allocation3], %s2196_s8 }
  0x43   : > { %p2205_p12 = scmp.ne.s32.totalorder (!%p414_p9), %s2785_s23, 0 }
  0x45   : > { %s3340_s7 = smov (!%p467_p10, %s2197_s7), 63  ;;  %s3342_s9 = smov (!%p479_p11, %s2201_s9), 63 }
  0x46   : > { %s2198_s11 = sshll.u32 %s3340_s7, 2  ;;  %s2202_s18 = sshll.u32 %s3342_s9, 3 }
  0x47   : > { %s2975_s14 = scalar_lea.vmem %s3319_s1, %s2198_s11  ;;  %s2980_s17 = scalar_lea.vmem %s3320_s2, %s2198_s11 }
  0x48   : > { %s2204_s21 = sshll.u32 %s3342_s9, 2  ;;  %s2985_s24 = scalar_lea.vmem %s3323_s5, %s2202_s18 }
  0x49   : > { %s2990_s0 = scalar_lea.vmem %s3324_s6, %s2204_s21  ;;  %493 = sbr.rel (%p2205_p12) target bundleno = 143 (0x8f), region = 82 }
  0x4e   : > { %v2803_v32 = vmov 0.0  }
  0x4f   : > { %494 = vst [vmem:[#allocation2 + $0xb0] sm:$0xff] %v2803_v32 }
  0x50   : > { %495 = vst [vmem:[#allocation2 + $0x1b0] sm:$0xff] %v2803_v32 }
  0x51   : > { %496 = vst [vmem:[#allocation2 + $0xd8] sm:$0xff] %v2803_v32 }
  0x52   : > { %497 = vst [vmem:[#allocation2 + $0x18] sm:$0xff] %v2803_v32 }
  0x53   : > { %498 = vst [vmem:[#allocation2 + $0x50] sm:$0xff] %v2803_v32 }
  0x54   : > { %499 = vst [vmem:[#allocation2 + $0x168] sm:$0xff] %v2803_v32 }
  0x55   : > { %500 = vst [vmem:[#allocation2 + $0x130] sm:$0xff] %v2803_v32 }
  0x56   : > { %501 = vst [vmem:[#allocation2 + $0x48] sm:$0xff] %v2803_v32 }
  0x57   : > { %502 = vst [vmem:[#allocation2 + $0x180] sm:$0xff] %v2803_v32 }
  0x58   : > { %503 = vst [vmem:[#allocation2 + $0x110] sm:$0xff] %v2803_v32 }
  0x59   : > { %504 = vst [vmem:[#allocation2 + $0x118] sm:$0xff] %v2803_v32 }
  0x5a   : > { %505 = vst [vmem:[#allocation2 + $0x98] sm:$0xff] %v2803_v32 }
  0x5b   : > { %506 = vst [vmem:[#allocation2 + $0x120] sm:$0xff] %v2803_v32 }
  0x5c   : > { %507 = vst [vmem:[#allocation2 + $0x150] sm:$0xff] %v2803_v32 }
  0x5d   : > { %508 = vst [vmem:[#allocation2 + $0x108] sm:$0xff] %v2803_v32 }
  0x5e   : > { %509 = vst [vmem:[#allocation2 + $0x60] sm:$0xff] %v2803_v32 }
  0x5f   : > { %510 = vst [vmem:[#allocation2 + $0xe0] sm:$0xff] %v2803_v32 }
  0x60   : > { %511 = vst [vmem:[#allocation2 + $0x188] sm:$0xff] %v2803_v32 }
  0x61   : > { %512 = vst [vmem:[#allocation2 + $0x138] sm:$0xff] %v2803_v32 }
  0x62   : > { %513 = vst [vmem:[#allocation2 + $0x140] sm:$0xff] %v2803_v32 }
  0x63   : > { %514 = vst [vmem:[#allocation2 + $0x80] sm:$0xff] %v2803_v32 }
  0x64   : > { %515 = vst [vmem:[#allocation2 + $0x1a8] sm:$0xff] %v2803_v32 }
  0x65   : > { %516 = vst [vmem:[#allocation2 + $0x1b8] sm:$0xff] %v2803_v32 }
  0x66   : > { %517 = vst [vmem:[#allocation2 + $0x28] sm:$0xff] %v2803_v32 }
  0x67   : > { %518 = vst [vmem:[#allocation2 + $0x1e8] sm:$0xff] %v2803_v32 }
  0x68   : > { %519 = vst [vmem:[#allocation2 + $0xf8] sm:$0xff] %v2803_v32 }
  0x69   : > { %520 = vst [vmem:[#allocation2 + $0x160] sm:$0xff] %v2803_v32 }
  0x6a   : > { %521 = vst [vmem:[#allocation2 + $0x30] sm:$0xff] %v2803_v32 }
  0x6b   : > { %522 = vst [vmem:[#allocation2 + $0x1e0] sm:$0xff] %v2803_v32 }
  0x6c   : > { %523 = vst [vmem:[#allocation2] sm:$0xff] %v2803_v32 }
  0x6d   : > { %524 = vst [vmem:[#allocation2 + $0xf0] sm:$0xff] %v2803_v32 }
  0x6e   : > { %525 = vst [vmem:[#allocation2 + $0x8] sm:$0xff] %v2803_v32 }
  0x6f   : > { %526 = vst [vmem:[#allocation2 + $0x148] sm:$0xff] %v2803_v32 }
  0x70   : > { %527 = vst [vmem:[#allocation2 + $0x1d0] sm:$0xff] %v2803_v32 }
  0x71   : > { %528 = vst [vmem:[#allocation2 + $0x100] sm:$0xff] %v2803_v32 }
  0x72   : > { %529 = vst [vmem:[#allocation2 + $0xc8] sm:$0xff] %v2803_v32 }
  0x73   : > { %530 = vst [vmem:[#allocation2 + $0x40] sm:$0xff] %v2803_v32 }
  0x74   : > { %531 = vst [vmem:[#allocation2 + $0x1f8] sm:$0xff] %v2803_v32 }
  0x75   : > { %532 = vst [vmem:[#allocation2 + $0x20] sm:$0xff] %v2803_v32 }
  0x76   : > { %533 = vst [vmem:[#allocation2 + $0x128] sm:$0xff] %v2803_v32 }
  0x77   : > { %534 = vst [vmem:[#allocation2 + $0x1a0] sm:$0xff] %v2803_v32 }
  0x78   : > { %535 = vst [vmem:[#allocation2 + $0x1f0] sm:$0xff] %v2803_v32 }
  0x79   : > { %536 = vst [vmem:[#allocation2 + $0xe8] sm:$0xff] %v2803_v32 }
  0x7a   : > { %537 = vst [vmem:[#allocation2 + $0x78] sm:$0xff] %v2803_v32 }
  0x7b   : > { %538 = vst [vmem:[#allocation2 + $0x70] sm:$0xff] %v2803_v32 }
  0x7c   : > { %539 = vst [vmem:[#allocation2 + $0x90] sm:$0xff] %v2803_v32 }
  0x7d   : > { %540 = vst [vmem:[#allocation2 + $0x1d8] sm:$0xff] %v2803_v32 }
  0x7e   : > { %541 = vst [vmem:[#allocation2 + $0xd0] sm:$0xff] %v2803_v32 }
  0x7f   : > { %542 = vst [vmem:[#allocation2 + $0xb8] sm:$0xff] %v2803_v32 }
  0x80   : > { %543 = vst [vmem:[#allocation2 + $0x88] sm:$0xff] %v2803_v32 }
  0x81   : > { %544 = vst [vmem:[#allocation2 + $0xa8] sm:$0xff] %v2803_v32 }
  0x82   : > { %545 = vst [vmem:[#allocation2 + $0x1c8] sm:$0xff] %v2803_v32 }
  0x83   : > { %546 = vst [vmem:[#allocation2 + $0x170] sm:$0xff] %v2803_v32 }
  0x84   : > { %547 = vst [vmem:[#allocation2 + $0x178] sm:$0xff] %v2803_v32 }
  0x85   : > { %548 = vst [vmem:[#allocation2 + $0x68] sm:$0xff] %v2803_v32 }
  0x86   : > { %549 = vst [vmem:[#allocation2 + $0x190] sm:$0xff] %v2803_v32 }
  0x87   : > { %550 = vst [vmem:[#allocation2 + $0x198] sm:$0xff] %v2803_v32 }
  0x88   : > { %551 = vst [vmem:[#allocation2 + $0x38] sm:$0xff] %v2803_v32 }
  0x89   : > { %552 = vst [vmem:[#allocation2 + $0xc0] sm:$0xff] %v2803_v32 }
  0x8a   : > { %553 = vst [vmem:[#allocation2 + $0x1c0] sm:$0xff] %v2803_v32 }
  0x8b   : > { %554 = vst [vmem:[#allocation2 + $0x158] sm:$0xff] %v2803_v32 }
  0x8c   : > { %555 = vst [vmem:[#allocation2 + $0x10] sm:$0xff] %v2803_v32 }
  0x8d   : > { %556 = vst [vmem:[#allocation2 + $0x58] sm:$0xff] %v2803_v32 }
  0x8e   : > { %557 = vst [vmem:[#allocation2 + $0xa0] sm:$0xff] %v2803_v32 }
  0x8f PF: > { %v2537_v33 = vld [vmem:[%s2975_s14 + $0x38] sm:$0xff]  ;;  %v2536_v37 = vld [vmem:[%s2975_s14 + $0x30] sm:$0xff]  ;;  %v2535_v41 = vld [vmem:[%s2975_s14 + $0x28] sm:$0xff]  ;;  %p2462_p13 = scmp.ne.s32.totalorder %s2785_s23, 1 }
  0x90   : > { %v2545_v34 = vld [vmem:[%s2975_s14 + $0x78] sm:$0xff]  ;;  %910 = vmatpush.bf16.msra.mxu0 %v2537_v33  ;;  %v2544_v38 = vld [vmem:[%s2975_s14 + $0x70] sm:$0xff]  ;;  %v2543_v42 = vld [vmem:[%s2975_s14 + $0x68] sm:$0xff] }
  0x91   : > { %v2553_v35 = vld [vmem:[%s2980_s17 + $0x38] sm:$0xff]  ;;  %999 = vmatpush.bf16.msra.mxu1 %v2545_v34  ;;  %v2552_v39 = vld [vmem:[%s2980_s17 + $0x30] sm:$0xff]  ;;  %v2551_v43 = vld [vmem:[%s2980_s17 + $0x28] sm:$0xff] }
  0x92   : > { %v2561_v36 = vld [vmem:[%s2980_s17 + $0x78] sm:$0xff]  ;;  %1312 = vmatpush.bf16.msra.mxu2 %v2553_v35  ;;  %v2560_v40 = vld [vmem:[%s2980_s17 + $0x70] sm:$0xff]  ;;  %v2559_v44 = vld [vmem:[%s2980_s17 + $0x68] sm:$0xff] }
  0x93   : > { %1401 = vmatpush.bf16.msra.mxu3 %v2561_v36  ;;  %v2534_v45 = vld [vmem:[%s2975_s14 + $0x20] sm:$0xff]  ;;  %v2533_v49 = vld [vmem:[%s2975_s14 + $0x18] sm:$0xff]  ;;  %v2532_v53 = vld [vmem:[%s2975_s14 + $0x10] sm:$0xff] }
  0x94   : > { %911 = vmatpush.bf16.msra.mxu0 %v2536_v37  ;;  %v2542_v46 = vld [vmem:[%s2975_s14 + $0x60] sm:$0xff]  ;;  %v2541_v50 = vld [vmem:[%s2975_s14 + $0x58] sm:$0xff]  ;;  %v2540_v54 = vld [vmem:[%s2975_s14 + $0x50] sm:$0xff] }
  0x95   : > { %1000 = vmatpush.bf16.msra.mxu1 %v2544_v38  ;;  %v2550_v47 = vld [vmem:[%s2980_s17 + $0x20] sm:$0xff]  ;;  %v2549_v51 = vld [vmem:[%s2980_s17 + $0x18] sm:$0xff]  ;;  %v2548_v55 = vld [vmem:[%s2980_s17 + $0x10] sm:$0xff] }
  0x96   : > { %1313 = vmatpush.bf16.msra.mxu2 %v2552_v39  ;;  %v2558_v48 = vld [vmem:[%s2980_s17 + $0x60] sm:$0xff]  ;;  %v2557_v52 = vld [vmem:[%s2980_s17 + $0x58] sm:$0xff]  ;;  %v2556_v56 = vld [vmem:[%s2980_s17 + $0x50] sm:$0xff] }
  0x97   : > { %1402 = vmatpush.bf16.msra.mxu3 %v2560_v40  ;;  %v2531_v57 = vld [vmem:[%s2975_s14 + $0x8] sm:$0xff]  ;;  %v2530_v61 = vld [vmem:[%s2975_s14] sm:$0xff]  ;;  %v2216_v7 = vld [vmem:[%s2992_s12 + $0x10] sm:$0xf] }
  0x98   : > { %912 = vmatpush.bf16.msra.mxu0 %v2535_v41  ;;  %v2539_v58 = vld [vmem:[%s2975_s14 + $0x48] sm:$0xff]  ;;  %v2538_v62 = vld [vmem:[%s2975_s14 + $0x40] sm:$0xff]  ;;  %v2501_v8 = vld [vmem:[%s2992_s12 + $0x14] sm:$0xf0] }
  0x99   : > { %1001 = vmatpush.bf16.msra.mxu1 %v2543_v42  ;;  %v2547_v59 = vld [vmem:[%s2980_s17 + $0x8] sm:$0xff]  ;;  %v2208_v63 = vld [vmem:[%s2992_s12] sm:$0xf]  ;;  %v2498_v1 = vld [vmem:[%s2992_s12 + $0x4] sm:$0xf]  ;;  %v2217_v11 = vor.u32 %v2501_v8, %v2216_v7 }
  0x9a   : > { %1314 = vmatpush.bf16.msra.mxu2 %v2551_v43  ;;  %v2555_v60 = vld [vmem:[%s2980_s17 + $0x48] sm:$0xff]  ;;  %v2546_v3 = vld [vmem:[%s2980_s17] sm:$0xff]  ;;  %v2500_v9 = vld [vmem:[%s2992_s12 + $0x14] sm:$0xf] }
  0x9b   : > { %1403 = vmatpush.bf16.msra.mxu3 %v2559_v44  ;;  %v2499_v0 = vld [vmem:[%s2992_s12 + $0x4] sm:$0xf0]  ;;  %v2210_v2 = vld [vmem:[%s2992_s12 + $0x8] sm:$0xf0]  ;;  %v2554_v4 = vld [vmem:[%s2980_s17 + $0x40] sm:$0xff] }
  0x9c   : > { %913 = vmatpush.bf16.msra.mxu0 %v2534_v45  ;;  %v2209_v5 = vor.u32 %v2499_v0, %v2208_v63  ;;  %v2213_v6 = vor.u32 %v2498_v1, %v2210_v2  ;;  %v2218_v10 = vld [vmem:[%s2992_s12 + $0x18] sm:$0xf0]  ;;  %v2224_v13 = vld [vmem:[%s2992_s12 + $0x20] sm:$0xf]  ;;  %v2503_v14 = vld [vmem:[%s2992_s12 + $0x24] sm:$0xf0] }
  0x9d   : > { %1002 = vmatpush.bf16.msra.mxu1 %v2542_v46  ;;  %v2221_v12 = vor.u32 %v2500_v9, %v2218_v10  ;;  %v2502_v15 = vld [vmem:[%s2992_s12 + $0x24] sm:$0xf]  ;;  %v2226_v16 = vld [vmem:[%s2992_s12 + $0x28] sm:$0xf0]  ;;  %v2225_v17 = vor.u32 %v2503_v14, %v2224_v13  ;;  %v2232_v19 = vld [vmem:[%s2992_s12 + $0x30] sm:$0xf] }
  0x9e   : > { %1315 = vmatpush.bf16.msra.mxu2 %v2550_v47  ;;  %v2229_v18 = vor.u32 %v2502_v15, %v2226_v16  ;;  %v2505_v20 = vld [vmem:[%s2992_s12 + $0x34] sm:$0xf0]  ;;  %v2504_v21 = vld [vmem:[%s2992_s12 + $0x34] sm:$0xf]  ;;  %v2234_v22 = vld [vmem:[%s2992_s12 + $0x38] sm:$0xf0] }
  0x9f   : > { %1404 = vmatpush.bf16.msra.mxu3 %v2558_v48  ;;  %v2233_v23 = vor.u32 %v2505_v20, %v2232_v19  ;;  %v2237_v24 = vor.u32 %v2504_v21, %v2234_v22  ;;  %v2240_v25 = vld [vmem:[%s2992_s12 + $0x40] sm:$0xf]  ;;  %v2507_v26 = vld [vmem:[%s2992_s12 + $0x44] sm:$0xf0]  ;;  %v2506_v27 = vld [vmem:[%s2992_s12 + $0x44] sm:$0xf] }
  0xa0   : > { %914 = vmatpush.bf16.msra.mxu0 %v2533_v49  ;;  %v2242_v28 = vld [vmem:[%s2992_s12 + $0x48] sm:$0xf0]  ;;  %v2241_v29 = vor.u32 %v2507_v26, %v2240_v25  ;;  %v2248_v31 = vld [vmem:[%s2992_s12 + $0x50] sm:$0xf]  ;;  %v2509_v32 = vld [vmem:[%s2992_s12 + $0x54] sm:$0xf0] }
  0xa1   : > { %1003 = vmatpush.bf16.msra.mxu1 %v2541_v50  ;;  %v2245_v30 = vor.u32 %v2506_v27, %v2242_v28  ;;  %v2508_v33 = vld [vmem:[%s2992_s12 + $0x54] sm:$0xf]  ;;  %v2250_v34 = vld [vmem:[%s2992_s12 + $0x58] sm:$0xf0]  ;;  %v2249_v35 = vor.u32 %v2509_v32, %v2248_v31  ;;  %v2256_v37 = vld [vmem:[%s2992_s12 + $0x60] sm:$0xf] }
  0xa2   : > { %1316 = vmatpush.bf16.msra.mxu2 %v2549_v51  ;;  %v2253_v36 = vor.u32 %v2508_v33, %v2250_v34  ;;  %v2511_v38 = vld [vmem:[%s2992_s12 + $0x64] sm:$0xf0]  ;;  %v2510_v39 = vld [vmem:[%s2992_s12 + $0x64] sm:$0xf]  ;;  %v2258_v40 = vld [vmem:[%s2992_s12 + $0x68] sm:$0xf0] }
  0xa3   : > { %1405 = vmatpush.bf16.msra.mxu3 %v2557_v52  ;;  %v2257_v41 = vor.u32 %v2511_v38, %v2256_v37  ;;  %v2261_v42 = vor.u32 %v2510_v39, %v2258_v40  ;;  %v2264_v43 = vld [vmem:[%s2992_s12 + $0x70] sm:$0xf]  ;;  %v2513_v44 = vld [vmem:[%s2992_s12 + $0x74] sm:$0xf0]  ;;  %v2512_v45 = vld [vmem:[%s2992_s12 + $0x74] sm:$0xf] }
  0xa4   : > { %915 = vmatpush.bf16.msra.mxu0 %v2532_v53  ;;  %v2266_v46 = vld [vmem:[%s2992_s12 + $0x78] sm:$0xf0]  ;;  %v2265_v47 = vor.u32 %v2513_v44, %v2264_v43  ;;  %v2272_v49 = vld [vmem:[%s2992_s12 + $0x80] sm:$0xf]  ;;  %v2515_v50 = vld [vmem:[%s2992_s12 + $0x84] sm:$0xf0] }
  0xa5   : > { %1004 = vmatpush.bf16.msra.mxu1 %v2540_v54  ;;  %v2269_v48 = vor.u32 %v2512_v45, %v2266_v46  ;;  %v2514_v51 = vld [vmem:[%s2992_s12 + $0x84] sm:$0xf]  ;;  %v2274_v52 = vld [vmem:[%s2992_s12 + $0x88] sm:$0xf0]  ;;  %v2273_v53 = vor.u32 %v2515_v50, %v2272_v49  ;;  %v591_v1 = vld [vmem:[#allocation2 + $0x1b0] sm:$0xff] }
  0xa6   : > { %1317 = vmatpush.bf16.msra.mxu2 %v2548_v55  ;;  %v2277_v54 = vor.u32 %v2514_v51, %v2274_v52  ;;  %v2517_v7 = vld [vmem:[%s2992_s12 + $0x94] sm:$0xf0]  ;;  %v2516_v8 = vld [vmem:[%s2992_s12 + $0x94] sm:$0xf]  ;;  %v2282_v9 = vld [vmem:[%s2992_s12 + $0x98] sm:$0xf0] }
  0xa7   : > { %1406 = vmatpush.bf16.msra.mxu3 %v2556_v56  ;;  %v590_v56 = vld [vmem:[#allocation2 + $0xb0] sm:$0xff]  ;;  %v2285_v14 = vor.u32 %v2516_v8, %v2282_v9  ;;  %v593_v27 = vld [vmem:[#allocation2 + $0x18] sm:$0xff]  ;;  %v2288_v32 = vld [vmem:[%s2992_s12 + $0xa0] sm:$0xf] }
  0xa8   : > { %916 = vmatpush.bf16.msra.mxu0 %v2531_v57  ;;  %v2519_v33 = vld [vmem:[%s2992_s12 + $0xa4] sm:$0xf0]  ;;  %v2518_v34 = vld [vmem:[%s2992_s12 + $0xa4] sm:$0xf]  ;;  %v594_v43 = vld [vmem:[#allocation2 + $0x50] sm:$0xff] }
  0xa9   : > { %1005 = vmatpush.bf16.msra.mxu1 %v2539_v58  ;;  %v1155_v37 = vld [vmem:[#allocation2 + $0xc8] sm:$0xff]  ;;  %v2289_v39 = vor.u32 %v2519_v33, %v2288_v32  ;;  %v1156_v49 = vld [vmem:[#allocation2 + $0x40] sm:$0xff] }
  0xaa   : > { %1318 = vmatpush.bf16.msra.mxu2 %v2547_v59 }
  0xab   : > { %1407 = vmatpush.bf16.msra.mxu3 %v2555_v60 }
  0xac   : > { %917 = vmatpush.bf16.msra.mxu0 %v2530_v61  ;;  %v1152_v61 = vld [vmem:[#allocation2 + $0x148] sm:$0xff] }
  0xad   : > { %1006 = vmatpush.bf16.msra.mxu1 %v2538_v62 }
  0xae   : > { %1319 = vmatpush.bf16.msra.mxu2 %v2546_v3 }
  0xaf   : > { %1408 = vmatpush.bf16.msra.mxu3 %v2554_v4  ;;  %918 = vmatmul.bf16.vlgmr.msra.gmra.mxu0 %v2209_v5 }
  0xb0   : > { %1007 = vmatmul.bf16.vlgmr.msra.gmra.mxu1 %v2213_v6 }
  0xb1   : > { %1320 = vmatmul.bf16.vlgmr.msra.gmra.mxu2 %v2209_v5 }
  0xb2   : > { %1409 = vmatmul.bf16.vlgmr.msra.gmra.mxu3 %v2213_v6  ;;  %v2280_v6 = vld [vmem:[%s2992_s12 + $0x90] sm:$0xf] }
  0xb3   : > { %v2281_v13 = vor.u32 %v2517_v7, %v2280_v6 }
  0xbf   : > { %923 = vmatmul.bf16.gmra.mxu0 %v2217_v11 }
  0xc0   : > { %1012 = vmatmul.bf16.gmra.mxu1 %v2221_v12 }
  0xc1   : > { %1325 = vmatmul.bf16.gmra.mxu2 %v2217_v11  ;;  %v1153_v11 = vld [vmem:[#allocation2 + $0x1d0] sm:$0xff] }
  0xc2   : > { %1414 = vmatmul.bf16.gmra.mxu3 %v2221_v12 }
  0xcf   : > { %928 = vmatmul.bf16.gmra.mxu0 %v2225_v17 }
  0xd0   : > { %1017 = vmatmul.bf16.gmra.mxu1 %v2229_v18 }
  0xd1   : > { %1330 = vmatmul.bf16.gmra.mxu2 %v2225_v17  ;;  %v592_v17 = vld [vmem:[#allocation2 + $0xd8] sm:$0xff] }
  0xd2   : > { %1419 = vmatmul.bf16.gmra.mxu3 %v2229_v18 }
  0xdf   : > { %933 = vmatmul.bf16.gmra.mxu0 %v2233_v23 }
  0xe0   : > { %1022 = vmatmul.bf16.gmra.mxu1 %v2237_v24 }
  0xe1   : > { %1335 = vmatmul.bf16.gmra.mxu2 %v2233_v23  ;;  %v1154_v23 = vld [vmem:[#allocation2 + $0x100] sm:$0xff] }
  0xe2   : > { %1424 = vmatmul.bf16.gmra.mxu3 %v2237_v24 }
  0xef   : > { %938 = vmatmul.bf16.gmra.mxu0 %v2241_v29 }
  0xf0   : > { %1027 = vmatmul.bf16.gmra.mxu1 %v2245_v30 }
  0xf1   : > { %1340 = vmatmul.bf16.gmra.mxu2 %v2241_v29 }
  0xf2   : > { %1429 = vmatmul.bf16.gmra.mxu3 %v2245_v30 }
  0xff   : > { %943 = vmatmul.bf16.gmra.mxu0 %v2249_v35 }
 0x100   : > { %1032 = vmatmul.bf16.gmra.mxu1 %v2253_v36 }
 0x101   : > { %1345 = vmatmul.bf16.gmra.mxu2 %v2249_v35  ;;  %v2290_v35 = vld [vmem:[%s2992_s12 + $0xa8] sm:$0xf0] }
 0x102   : > { %1434 = vmatmul.bf16.gmra.mxu3 %v2253_v36  ;;  %v2293_v40 = vor.u32 %v2518_v34, %v2290_v35 }
 0x10f   : > { %948 = vmatmul.bf16.gmra.mxu0 %v2257_v41 }
 0x110   : > { %1037 = vmatmul.bf16.gmra.mxu1 %v2261_v42 }
 0x111   : > { %1350 = vmatmul.bf16.gmra.mxu2 %v2257_v41 }
 0x112   : > { %1439 = vmatmul.bf16.gmra.mxu3 %v2261_v42 }
 0x11f   : > { %953 = vmatmul.bf16.gmra.mxu0 %v2265_v47 }
 0x120   : > { %1042 = vmatmul.bf16.gmra.mxu1 %v2269_v48 }
 0x121   : > { %1355 = vmatmul.bf16.gmra.mxu2 %v2265_v47 }
 0x122   : > { %1444 = vmatmul.bf16.gmra.mxu3 %v2269_v48 }
 0x12c   : > { %v919_v55 = vpop.f32.mrf.mxu0 }
 0x12d   : > { %v1008_v57 = vpop.f32.mrf.mxu1 }
 0x12e   : > { %v1009_v58 = vadd.f32 %v1008_v57, %v919_v55 }
 0x12f   : > { %958 = vmatmul.bf16.gmra.mxu0 %v2273_v53 }
 0x130   : > { %v1088_v59 = vadd.f32 %v1009_v58, %v590_v56  ;;  %1047 = vmatmul.bf16.gmra.mxu1 %v2277_v54  ;;  %v2296_v58 = vld [vmem:[%s2992_s12 + $0xb0] sm:$0xf] }
 0x131   : > { %1360 = vmatmul.bf16.gmra.mxu2 %v2273_v53  ;;  %v595_v53 = vld [vmem:[#allocation2 + $0x168] sm:$0xff] }
 0x132   : > { %1449 = vmatmul.bf16.gmra.mxu3 %v2277_v54  ;;  %1120 = vst [vmem:[#allocation2 + $0xb0] sm:$0xff] %v1088_v59  ;;  %v2521_v59 = vld [vmem:[%s2992_s12 + $0xb4] sm:$0xf0] }
 0x134   : > { %v1321_v60 = vpop.f32.mrf.mxu2  ;;  %v921_v0 = vpop.f32.mrf.mxu0 }
 0x135   : > { %v1410_v62 = vpop.f32.mrf.mxu3  ;;  %v1010_v2 = vpop.f32.mrf.mxu1 }
 0x136   : > { %v1411_v63 = vadd.f32 %v1410_v62, %v1321_v60  ;;  %v1011_v3 = vadd.f32 %v1010_v2, %v921_v0  ;;  %v2520_v60 = vld [vmem:[%s2992_s12 + $0xb4] sm:$0xf] }
 0x138   : > { %v1490_v4 = vadd.f32 %v1411_v63, %v1152_v61  ;;  %v1089_v5 = vadd.f32 %v1011_v3, %v591_v1  ;;  %v2298_v61 = vld [vmem:[%s2992_s12 + $0xb8] sm:$0xf0]  ;;  %v2297_v1 = vor.u32 %v2521_v59, %v2296_v58 }
 0x139   : > { %v1157_v63 = vld [vmem:[#allocation2 + $0x1f8] sm:$0xff]  ;;  %v2301_v2 = vor.u32 %v2520_v60, %v2298_v61 }
 0x13a   : > { %1522 = vst [vmem:[#allocation2 + $0x148] sm:$0xff] %v1490_v4 }
 0x13b   : > { %1121 = vst [vmem:[#allocation2 + $0x1b0] sm:$0xff] %v1089_v5  ;;  %v596_v5 = vld [vmem:[#allocation2 + $0x130] sm:$0xff] }
 0x13c   : > { %v1323_v10 = vpop.f32.mrf.mxu2  ;;  %v924_v16 = vpop.f32.mrf.mxu0 }
 0x13d   : > { %v1412_v12 = vpop.f32.mrf.mxu3  ;;  %v1013_v18 = vpop.f32.mrf.mxu1 }
 0x13e   : > { %v1413_v15 = vadd.f32 %v1412_v12, %v1323_v10  ;;  %v1014_v19 = vadd.f32 %v1013_v18, %v924_v16 }
 0x13f   : > { %963 = vmatmul.bf16.gmra.mxu0 %v2281_v13 }
 0x140   : > { %v1491_v20 = vadd.f32 %v1413_v15, %v1153_v11  ;;  %v1090_v21 = vadd.f32 %v1014_v19, %v592_v17  ;;  %1052 = vmatmul.bf16.gmra.mxu1 %v2285_v14  ;;  %v1158_v11 = vld [vmem:[#allocation2 + $0x20] sm:$0xff]  ;;  %v597_v15 = vld [vmem:[#allocation2 + $0x48] sm:$0xff] }
 0x141   : > { %1365 = vmatmul.bf16.gmra.mxu2 %v2281_v13 }
 0x142   : > { %1523 = vst [vmem:[#allocation2 + $0x1d0] sm:$0xff] %v1491_v20  ;;  %1454 = vmatmul.bf16.gmra.mxu3 %v2285_v14  ;;  %v2304_v20 = vld [vmem:[%s2992_s12 + $0xc0] sm:$0xf] }
 0x143   : > { %1122 = vst [vmem:[#allocation2 + $0xd8] sm:$0xff] %v1090_v21  ;;  %v2523_v21 = vld [vmem:[%s2992_s12 + $0xc4] sm:$0xf0] }
 0x144   : > { %v1326_v22 = vpop.f32.mrf.mxu2  ;;  %v926_v26 = vpop.f32.mrf.mxu0 }
 0x145   : > { %v1415_v24 = vpop.f32.mrf.mxu3  ;;  %v1015_v28 = vpop.f32.mrf.mxu1 }
 0x146   : > { %v1416_v25 = vadd.f32 %v1415_v24, %v1326_v22  ;;  %v1016_v29 = vadd.f32 %v1015_v28, %v926_v26  ;;  %v2522_v22 = vld [vmem:[%s2992_s12 + $0xc4] sm:$0xf] }
 0x148   : > { %v1492_v30 = vadd.f32 %v1416_v25, %v1154_v23  ;;  %v1091_v31 = vadd.f32 %v1016_v29, %v593_v27  ;;  %v2306_v23 = vld [vmem:[%s2992_s12 + $0xc8] sm:$0xf0]  ;;  %v2305_v27 = vor.u32 %v2523_v21, %v2304_v20 }
 0x149   : > { %v1159_v25 = vld [vmem:[#allocation2 + $0x128] sm:$0xff]  ;;  %v2309_v28 = vor.u32 %v2522_v22, %v2306_v23 }
 0x14a   : > { %1524 = vst [vmem:[#allocation2 + $0x100] sm:$0xff] %v1492_v30 }
 0x14b   : > { %1123 = vst [vmem:[#allocation2 + $0x18] sm:$0xff] %v1091_v31  ;;  %v598_v31 = vld [vmem:[#allocation2 + $0x180] sm:$0xff] }
 0x14c   : > { %v1328_v36 = vpop.f32.mrf.mxu2  ;;  %v929_v42 = vpop.f32.mrf.mxu0 }
 0x14d   : > { %v1417_v38 = vpop.f32.mrf.mxu3  ;;  %v1018_v44 = vpop.f32.mrf.mxu1 }
 0x14e   : > { %v1418_v41 = vadd.f32 %v1417_v38, %v1328_v36  ;;  %v1019_v45 = vadd.f32 %v1018_v44, %v929_v42 }
 0x14f   : > { %968 = vmatmul.bf16.gmra.mxu0 %v2289_v39 }
 0x150   : > { %v1493_v46 = vadd.f32 %v1418_v41, %v1155_v37  ;;  %v1092_v47 = vadd.f32 %v1019_v45, %v594_v43  ;;  %1057 = vmatmul.bf16.gmra.mxu1 %v2293_v40  ;;  %v1160_v37 = vld [vmem:[#allocation2 + $0x1a0] sm:$0xff]  ;;  %v599_v41 = vld [vmem:[#allocation2 + $0x110] sm:$0xff] }
 0x151   : > { %1370 = vmatmul.bf16.gmra.mxu2 %v2289_v39 }
 0x152   : > { %1525 = vst [vmem:[#allocation2 + $0xc8] sm:$0xff] %v1493_v46  ;;  %1459 = vmatmul.bf16.gmra.mxu3 %v2293_v40  ;;  %v2312_v46 = vld [vmem:[%s2992_s12 + $0xd0] sm:$0xf] }
 0x153   : > { %1124 = vst [vmem:[#allocation2 + $0x50] sm:$0xff] %v1092_v47  ;;  %v2525_v47 = vld [vmem:[%s2992_s12 + $0xd4] sm:$0xf0] }
 0x154   : > { %v1331_v48 = vpop.f32.mrf.mxu2  ;;  %v931_v52 = vpop.f32.mrf.mxu0 }
 0x155   : > { %v1420_v50 = vpop.f32.mrf.mxu3  ;;  %v1020_v54 = vpop.f32.mrf.mxu1 }
 0x156   : > { %v1421_v51 = vadd.f32 %v1420_v50, %v1331_v48  ;;  %v1021_v55 = vadd.f32 %v1020_v54, %v931_v52  ;;  %v2524_v48 = vld [vmem:[%s2992_s12 + $0xd4] sm:$0xf] }
 0x158   : > { %v1494_v56 = vadd.f32 %v1421_v51, %v1156_v49  ;;  %v1093_v57 = vadd.f32 %v1021_v55, %v595_v53  ;;  %v2314_v49 = vld [vmem:[%s2992_s12 + $0xd8] sm:$0xf0]  ;;  %v1161_v51 = vld [vmem:[#allocation2 + $0x1f0] sm:$0xff]  ;;  %v2313_v53 = vor.u32 %v2525_v47, %v2312_v46 }
 0x159   : > { %v2317_v54 = vor.u32 %v2524_v48, %v2314_v49 }
 0x15a   : > { %1526 = vst [vmem:[#allocation2 + $0x40] sm:$0xff] %v1494_v56 }
 0x15b   : > { %1125 = vst [vmem:[#allocation2 + $0x168] sm:$0xff] %v1093_v57  ;;  %v600_v57 = vld [vmem:[#allocation2 + $0x118] sm:$0xff] }
 0x15c   : > { %v1333_v62 = vpop.f32.mrf.mxu2  ;;  %v934_v4 = vpop.f32.mrf.mxu0 }
 0x15d   : > { %v1422_v0 = vpop.f32.mrf.mxu3  ;;  %v1023_v6 = vpop.f32.mrf.mxu1 }
 0x15e   : > { %v1423_v3 = vadd.f32 %v1422_v0, %v1333_v62  ;;  %v1024_v7 = vadd.f32 %v1023_v6, %v934_v4 }
 0x15f   : > { %973 = vmatmul.bf16.gmra.mxu0 %v2297_v1 }
 0x160   : > { %v1495_v8 = vadd.f32 %v1423_v3, %v1157_v63  ;;  %v1094_v9 = vadd.f32 %v1024_v7, %v596_v5  ;;  %1062 = vmatmul.bf16.gmra.mxu1 %v2301_v2  ;;  %v1162_v63 = vld [vmem:[#allocation2 + $0xe8] sm:$0xff]  ;;  %v601_v3 = vld [vmem:[#allocation2 + $0x98] sm:$0xff] }
 0x161   : > { %1375 = vmatmul.bf16.gmra.mxu2 %v2297_v1 }
 0x162   : > { %1527 = vst [vmem:[#allocation2 + $0x1f8] sm:$0xff] %v1495_v8  ;;  %1464 = vmatmul.bf16.gmra.mxu3 %v2301_v2  ;;  %v2320_v8 = vld [vmem:[%s2992_s12 + $0xe0] sm:$0xf] }
 0x163   : > { %1126 = vst [vmem:[#allocation2 + $0x130] sm:$0xff] %v1094_v9  ;;  %v2527_v9 = vld [vmem:[%s2992_s12 + $0xe4] sm:$0xf0] }
 0x164   : > { %v1336_v10 = vpop.f32.mrf.mxu2  ;;  %v936_v14 = vpop.f32.mrf.mxu0 }
 0x165   : > { %v1425_v12 = vpop.f32.mrf.mxu3  ;;  %v1025_v16 = vpop.f32.mrf.mxu1 }
 0x166   : > { %v1426_v13 = vadd.f32 %v1425_v12, %v1336_v10  ;;  %v1026_v17 = vadd.f32 %v1025_v16, %v936_v14  ;;  %v2526_v10 = vld [vmem:[%s2992_s12 + $0xe4] sm:$0xf] }
 0x168   : > { %v1496_v18 = vadd.f32 %v1426_v13, %v1158_v11  ;;  %v1095_v19 = vadd.f32 %v1026_v17, %v597_v15  ;;  %v2322_v11 = vld [vmem:[%s2992_s12 + $0xe8] sm:$0xf0]  ;;  %v1163_v13 = vld [vmem:[#allocation2 + $0x78] sm:$0xff]  ;;  %v2321_v15 = vor.u32 %v2527_v9, %v2320_v8 }
 0x169   : > { %v2325_v16 = vor.u32 %v2526_v10, %v2322_v11  ;;  %v607_v11 = vld [vmem:[#allocation2 + $0x188] sm:$0xff] }
 0x16a   : > { %1528 = vst [vmem:[#allocation2 + $0x20] sm:$0xff] %v1496_v18 }
 0x16b   : > { %1127 = vst [vmem:[#allocation2 + $0x48] sm:$0xff] %v1095_v19  ;;  %v602_v19 = vld [vmem:[#allocation2 + $0x120] sm:$0xff] }
 0x16c   : > { %v1338_v24 = vpop.f32.mrf.mxu2  ;;  %v939_v30 = vpop.f32.mrf.mxu0 }
 0x16d   : > { %v1427_v26 = vpop.f32.mrf.mxu3  ;;  %v1028_v32 = vpop.f32.mrf.mxu1 }
 0x16e   : > { %v1428_v29 = vadd.f32 %v1427_v26, %v1338_v24  ;;  %v1029_v33 = vadd.f32 %v1028_v32, %v939_v30 }
 0x16f   : > { %978 = vmatmul.bf16.gmra.mxu0 %v2305_v27 }
 0x170   : > { %v1497_v34 = vadd.f32 %v1428_v29, %v1159_v25  ;;  %v1096_v35 = vadd.f32 %v1029_v33, %v598_v31  ;;  %1067 = vmatmul.bf16.gmra.mxu1 %v2309_v28  ;;  %v1164_v25 = vld [vmem:[#allocation2 + $0x70] sm:$0xff] }
 0x171   : > { %1380 = vmatmul.bf16.gmra.mxu2 %v2305_v27  ;;  %v603_v29 = vld [vmem:[#allocation2 + $0x150] sm:$0xff] }
 0x172   : > { %1529 = vst [vmem:[#allocation2 + $0x128] sm:$0xff] %v1497_v34  ;;  %1469 = vmatmul.bf16.gmra.mxu3 %v2309_v28  ;;  %v2328_v34 = vld [vmem:[%s2992_s12 + $0xf0] sm:$0xf] }
 0x173   : > { %1128 = vst [vmem:[#allocation2 + $0x180] sm:$0xff] %v1096_v35  ;;  %v2529_v35 = vld [vmem:[%s2992_s12 + $0xf4] sm:$0xf0] }
 0x174   : > { %v1341_v36 = vpop.f32.mrf.mxu2  ;;  %v941_v40 = vpop.f32.mrf.mxu0 }
 0x175   : > { %v1430_v38 = vpop.f32.mrf.mxu3  ;;  %v1030_v42 = vpop.f32.mrf.mxu1 }
 0x176   : > { %v1431_v39 = vadd.f32 %v1430_v38, %v1341_v36  ;;  %v1031_v43 = vadd.f32 %v1030_v42, %v941_v40  ;;  %v2528_v36 = vld [vmem:[%s2992_s12 + $0xf4] sm:$0xf] }
 0x178   : > { %v1498_v44 = vadd.f32 %v1431_v39, %v1160_v37  ;;  %v1097_v45 = vadd.f32 %v1031_v43, %v599_v41  ;;  %v2330_v37 = vld [vmem:[%s2992_s12 + $0xf8] sm:$0xf0]  ;;  %v1165_v39 = vld [vmem:[#allocation2 + $0x90] sm:$0xff]  ;;  %v2329_v41 = vor.u32 %v2529_v35, %v2328_v34 }
 0x179   : > { %v2333_v42 = vor.u32 %v2528_v36, %v2330_v37  ;;  %v1171_v37 = vld [vmem:[#allocation2 + $0x1c8] sm:$0xff] }
 0x17a   : > { %1530 = vst [vmem:[#allocation2 + $0x1a0] sm:$0xff] %v1498_v44 }
 0x17b   : > { %1129 = vst [vmem:[#allocation2 + $0x110] sm:$0xff] %v1097_v45  ;;  %v604_v45 = vld [vmem:[#allocation2 + $0x108] sm:$0xff] }
 0x17c   : > { %v1343_v50 = vpop.f32.mrf.mxu2  ;;  %v944_v56 = vpop.f32.mrf.mxu0 }
 0x17d   : > { %v1432_v52 = vpop.f32.mrf.mxu3  ;;  %v1033_v58 = vpop.f32.mrf.mxu1 }
 0x17e   : > { %v1433_v55 = vadd.f32 %v1432_v52, %v1343_v50  ;;  %v1034_v59 = vadd.f32 %v1033_v58, %v944_v56 }
 0x17f   : > { %983 = vmatmul.bf16.gmra.mxu0 %v2313_v53 }
 0x180   : > { %v1499_v60 = vadd.f32 %v1433_v55, %v1161_v51  ;;  %v1098_v61 = vadd.f32 %v1034_v59, %v600_v57  ;;  %1072 = vmatmul.bf16.gmra.mxu1 %v2317_v54  ;;  %v1166_v51 = vld [vmem:[#allocation2 + $0x1d8] sm:$0xff]  ;;  %v605_v55 = vld [vmem:[#allocation2 + $0x60] sm:$0xff] }
 0x181   : > { %1385 = vmatmul.bf16.gmra.mxu2 %v2313_v53 }
 0x182   : > { %1531 = vst [vmem:[#allocation2 + $0x1f0] sm:$0xff] %v1499_v60  ;;  %1474 = vmatmul.bf16.gmra.mxu3 %v2317_v54 }
 0x183   : > { %1130 = vst [vmem:[#allocation2 + $0x118] sm:$0xff] %v1098_v61  ;;  %v1167_v61 = vld [vmem:[#allocation2 + $0xd0] sm:$0xff] }
 0x184   : > { %v1346_v62 = vpop.f32.mrf.mxu2  ;;  %v946_v2 = vpop.f32.mrf.mxu0 }
 0x185   : > { %v1435_v0 = vpop.f32.mrf.mxu3  ;;  %v1035_v4 = vpop.f32.mrf.mxu1 }
 0x186   : > { %v1436_v1 = vadd.f32 %v1435_v0, %v1346_v62  ;;  %v1036_v5 = vadd.f32 %v1035_v4, %v946_v2 }
 0x188   : > { %v1500_v6 = vadd.f32 %v1436_v1, %v1162_v63  ;;  %v1099_v7 = vadd.f32 %v1036_v5, %v601_v3  ;;  %v606_v1 = vld [vmem:[#allocation2 + $0xe0] sm:$0xff] }
 0x18a   : > { %1532 = vst [vmem:[#allocation2 + $0xe8] sm:$0xff] %v1500_v6 }
 0x18b   : > { %1131 = vst [vmem:[#allocation2 + $0x98] sm:$0xff] %v1099_v7  ;;  %v1168_v7 = vld [vmem:[#allocation2 + $0xb8] sm:$0xff] }
 0x18c   : > { %v1348_v12 = vpop.f32.mrf.mxu2  ;;  %v949_v18 = vpop.f32.mrf.mxu0 }
 0x18d   : > { %v1437_v14 = vpop.f32.mrf.mxu3  ;;  %v1038_v20 = vpop.f32.mrf.mxu1 }
 0x18e   : > { %v1438_v17 = vadd.f32 %v1437_v14, %v1348_v12  ;;  %v1039_v21 = vadd.f32 %v1038_v20, %v949_v18 }
 0x18f   : > { %988 = vmatmul.bf16.gmra.mxu0 %v2321_v15 }
 0x190   : > { %v1501_v22 = vadd.f32 %v1438_v17, %v1163_v13  ;;  %v1100_v23 = vadd.f32 %v1039_v21, %v602_v19  ;;  %1077 = vmatmul.bf16.gmra.mxu1 %v2325_v16  ;;  %v1169_v17 = vld [vmem:[#allocation2 + $0x88] sm:$0xff]  ;;  %v608_v21 = vld [vmem:[#allocation2 + $0x138] sm:$0xff] }
 0x191   : > { %1390 = vmatmul.bf16.gmra.mxu2 %v2321_v15 }
 0x192   : > { %1533 = vst [vmem:[#allocation2 + $0x78] sm:$0xff] %v1501_v22  ;;  %1479 = vmatmul.bf16.gmra.mxu3 %v2325_v16 }
 0x193   : > { %1132 = vst [vmem:[#allocation2 + $0x120] sm:$0xff] %v1100_v23 }
 0x194   : > { %v1351_v24 = vpop.f32.mrf.mxu2  ;;  %v951_v28 = vpop.f32.mrf.mxu0 }
 0x195   : > { %v1440_v26 = vpop.f32.mrf.mxu3  ;;  %v1040_v30 = vpop.f32.mrf.mxu1 }
 0x196   : > { %v1441_v27 = vadd.f32 %v1440_v26, %v1351_v24  ;;  %v1041_v31 = vadd.f32 %v1040_v30, %v951_v28 }
 0x198   : > { %v1502_v32 = vadd.f32 %v1441_v27, %v1164_v25  ;;  %v1101_v33 = vadd.f32 %v1041_v31, %v603_v29  ;;  %v1170_v27 = vld [vmem:[#allocation2 + $0xa8] sm:$0xff]  ;;  %v609_v31 = vld [vmem:[#allocation2 + $0x140] sm:$0xff] }
 0x19a   : > { %1534 = vst [vmem:[#allocation2 + $0x70] sm:$0xff] %v1502_v32 }
 0x19b   : > { %1133 = vst [vmem:[#allocation2 + $0x150] sm:$0xff] %v1101_v33 }
 0x19c   : > { %v1353_v38 = vpop.f32.mrf.mxu2  ;;  %v954_v44 = vpop.f32.mrf.mxu0 }
 0x19d   : > { %v1442_v40 = vpop.f32.mrf.mxu3  ;;  %v1043_v46 = vpop.f32.mrf.mxu1 }
 0x19e   : > { %v1443_v43 = vadd.f32 %v1442_v40, %v1353_v38  ;;  %v1044_v47 = vadd.f32 %v1043_v46, %v954_v44 }
 0x19f   : > { %993 = vmatmul.bf16.gmra.mxu0 %v2329_v41 }
 0x1a0   : > { %v1503_v48 = vadd.f32 %v1443_v43, %v1165_v39  ;;  %v1102_v49 = vadd.f32 %v1044_v47, %v604_v45  ;;  %1082 = vmatmul.bf16.gmra.mxu1 %v2333_v42  ;;  %v1172_v47 = vld [vmem:[#allocation2 + $0x170] sm:$0xff] }
 0x1a1   : > { %1395 = vmatmul.bf16.gmra.mxu2 %v2329_v41  ;;  %v610_v41 = vld [vmem:[#allocation2 + $0x80] sm:$0xff] }
 0x1a2   : > { %1535 = vst [vmem:[#allocation2 + $0x90] sm:$0xff] %v1503_v48  ;;  %1484 = vmatmul.bf16.gmra.mxu3 %v2333_v42 }
 0x1a3   : > { %1134 = vst [vmem:[#allocation2 + $0x108] sm:$0xff] %v1102_v49 }
 0x1a4   : > { %v1356_v50 = vpop.f32.mrf.mxu2  ;;  %v956_v54 = vpop.f32.mrf.mxu0 }
 0x1a5   : > { %v1445_v52 = vpop.f32.mrf.mxu3  ;;  %v1045_v56 = vpop.f32.mrf.mxu1 }
 0x1a6   : > { %v1446_v53 = vadd.f32 %v1445_v52, %v1356_v50  ;;  %v1046_v57 = vadd.f32 %v1045_v56, %v956_v54 }
 0x1a8   : > { %v1504_v58 = vadd.f32 %v1446_v53, %v1166_v51  ;;  %v1103_v59 = vadd.f32 %v1046_v57, %v605_v55  ;;  %v611_v51 = vld [vmem:[#allocation2 + $0x1a8] sm:$0xff]  ;;  %v1173_v57 = vld [vmem:[#allocation2 + $0x178] sm:$0xff] }
 0x1aa   : > { %1536 = vst [vmem:[#allocation2 + $0x1d8] sm:$0xff] %v1504_v58 }
 0x1ab   : > { %1135 = vst [vmem:[#allocation2 + $0x60] sm:$0xff] %v1103_v59 }
 0x1ac   : > { %v1358_v60 = vpop.f32.mrf.mxu2  ;;  %v959_v0 = vpop.f32.mrf.mxu0 }
 0x1ad   : > { %v1447_v62 = vpop.f32.mrf.mxu3  ;;  %v1048_v2 = vpop.f32.mrf.mxu1 }
 0x1ae   : > { %v1448_v63 = vadd.f32 %v1447_v62, %v1358_v60  ;;  %v1049_v3 = vadd.f32 %v1048_v2, %v959_v0 }
 0x1b0   : > { %v1505_v4 = vadd.f32 %v1448_v63, %v1167_v61  ;;  %v1104_v5 = vadd.f32 %v1049_v3, %v606_v1  ;;  %v612_v61 = vld [vmem:[#allocation2 + $0x1b8] sm:$0xff]  ;;  %v1174_v3 = vld [vmem:[#allocation2 + $0x68] sm:$0xff] }
 0x1b2   : > { %1537 = vst [vmem:[#allocation2 + $0xd0] sm:$0xff] %v1505_v4 }
 0x1b3   : > { %1136 = vst [vmem:[#allocation2 + $0xe0] sm:$0xff] %v1104_v5 }
 0x1b4   : > { %v1361_v6 = vpop.f32.mrf.mxu2  ;;  %v961_v10 = vpop.f32.mrf.mxu0 }
 0x1b5   : > { %v1450_v8 = vpop.f32.mrf.mxu3  ;;  %v1050_v12 = vpop.f32.mrf.mxu1 }
 0x1b6   : > { %v1451_v9 = vadd.f32 %v1450_v8, %v1361_v6  ;;  %v1051_v13 = vadd.f32 %v1050_v12, %v961_v10 }
 0x1b8   : > { %v1506_v14 = vadd.f32 %v1451_v9, %v1168_v7  ;;  %v1105_v15 = vadd.f32 %v1051_v13, %v607_v11  ;;  %v613_v7 = vld [vmem:[#allocation2 + $0x28] sm:$0xff]  ;;  %v1175_v13 = vld [vmem:[#allocation2 + $0x190] sm:$0xff] }
 0x1ba   : > { %1538 = vst [vmem:[#allocation2 + $0xb8] sm:$0xff] %v1506_v14 }
 0x1bb   : > { %1137 = vst [vmem:[#allocation2 + $0x188] sm:$0xff] %v1105_v15 }
 0x1bc   : > { %v1363_v16 = vpop.f32.mrf.mxu2  ;;  %v964_v20 = vpop.f32.mrf.mxu0 }
 0x1bd   : > { %v1452_v18 = vpop.f32.mrf.mxu3  ;;  %v1053_v22 = vpop.f32.mrf.mxu1 }
 0x1be   : > { %v1453_v19 = vadd.f32 %v1452_v18, %v1363_v16  ;;  %v1054_v23 = vadd.f32 %v1053_v22, %v964_v20 }
 0x1c0   : > { %v1507_v24 = vadd.f32 %v1453_v19, %v1169_v17  ;;  %v1106_v25 = vadd.f32 %v1054_v23, %v608_v21  ;;  %v614_v17 = vld [vmem:[#allocation2 + $0x1e8] sm:$0xff]  ;;  %v1176_v23 = vld [vmem:[#allocation2 + $0x198] sm:$0xff] }
 0x1c2   : > { %1539 = vst [vmem:[#allocation2 + $0x88] sm:$0xff] %v1507_v24 }
 0x1c3   : > { %1138 = vst [vmem:[#allocation2 + $0x138] sm:$0xff] %v1106_v25 }
 0x1c4   : > { %v1366_v26 = vpop.f32.mrf.mxu2  ;;  %v966_v30 = vpop.f32.mrf.mxu0 }
 0x1c5   : > { %v1455_v28 = vpop.f32.mrf.mxu3  ;;  %v1055_v32 = vpop.f32.mrf.mxu1 }
 0x1c6   : > { %v1456_v29 = vadd.f32 %v1455_v28, %v1366_v26  ;;  %v1056_v33 = vadd.f32 %v1055_v32, %v966_v30 }
 0x1c8   : > { %v1508_v34 = vadd.f32 %v1456_v29, %v1170_v27  ;;  %v1107_v35 = vadd.f32 %v1056_v33, %v609_v31  ;;  %v615_v27 = vld [vmem:[#allocation2 + $0xf8] sm:$0xff] }
 0x1c9   : > { %v1177_v33 = vld [vmem:[#allocation2 + $0x38] sm:$0xff] }
 0x1ca   : > { %1540 = vst [vmem:[#allocation2 + $0xa8] sm:$0xff] %v1508_v34 }
 0x1cb   : > { %1139 = vst [vmem:[#allocation2 + $0x140] sm:$0xff] %v1107_v35 }
 0x1cc   : > { %v1368_v36 = vpop.f32.mrf.mxu2  ;;  %v969_v40 = vpop.f32.mrf.mxu0 }
 0x1cd   : > { %v1457_v38 = vpop.f32.mrf.mxu3  ;;  %v1058_v42 = vpop.f32.mrf.mxu1 }
 0x1ce   : > { %v1458_v39 = vadd.f32 %v1457_v38, %v1368_v36  ;;  %v1059_v43 = vadd.f32 %v1058_v42, %v969_v40 }
 0x1d0   : > { %v1509_v44 = vadd.f32 %v1458_v39, %v1171_v37  ;;  %v1108_v45 = vadd.f32 %v1059_v43, %v610_v41  ;;  %v616_v37 = vld [vmem:[#allocation2 + $0x160] sm:$0xff] }
 0x1d1   : > { %v1178_v43 = vld [vmem:[#allocation2 + $0xc0] sm:$0xff] }
 0x1d2   : > { %1541 = vst [vmem:[#allocation2 + $0x1c8] sm:$0xff] %v1509_v44 }
 0x1d3   : > { %1140 = vst [vmem:[#allocation2 + $0x80] sm:$0xff] %v1108_v45 }
 0x1d4   : > { %v1371_v46 = vpop.f32.mrf.mxu2  ;;  %v971_v50 = vpop.f32.mrf.mxu0 }
 0x1d5   : > { %v1460_v48 = vpop.f32.mrf.mxu3  ;;  %v1060_v52 = vpop.f32.mrf.mxu1 }
 0x1d6   : > { %v1461_v49 = vadd.f32 %v1460_v48, %v1371_v46  ;;  %v1061_v53 = vadd.f32 %v1060_v52, %v971_v50 }
 0x1d8   : > { %v1510_v54 = vadd.f32 %v1461_v49, %v1172_v47  ;;  %v1109_v55 = vadd.f32 %v1061_v53, %v611_v51  ;;  %v617_v47 = vld [vmem:[#allocation2 + $0x30] sm:$0xff]  ;;  %v1179_v53 = vld [vmem:[#allocation2 + $0x1c0] sm:$0xff] }
 0x1da   : > { %1542 = vst [vmem:[#allocation2 + $0x170] sm:$0xff] %v1510_v54 }
 0x1db   : > { %1141 = vst [vmem:[#allocation2 + $0x1a8] sm:$0xff] %v1109_v55 }
 0x1dc   : > { %v1373_v56 = vpop.f32.mrf.mxu2  ;;  %v974_v60 = vpop.f32.mrf.mxu0 }
 0x1dd   : > { %v1462_v58 = vpop.f32.mrf.mxu3  ;;  %v1063_v62 = vpop.f32.mrf.mxu1 }
 0x1de   : > { %v1463_v59 = vadd.f32 %v1462_v58, %v1373_v56  ;;  %v1064_v63 = vadd.f32 %v1063_v62, %v974_v60 }
 0x1e0   : > { %v1511_v0 = vadd.f32 %v1463_v59, %v1173_v57  ;;  %v1110_v1 = vadd.f32 %v1064_v63, %v612_v61  ;;  %v618_v57 = vld [vmem:[#allocation2 + $0x1e0] sm:$0xff]  ;;  %v1180_v63 = vld [vmem:[#allocation2 + $0x158] sm:$0xff] }
 0x1e2   : > { %1543 = vst [vmem:[#allocation2 + $0x178] sm:$0xff] %v1511_v0 }
 0x1e3   : > { %1142 = vst [vmem:[#allocation2 + $0x1b8] sm:$0xff] %v1110_v1 }
 0x1e4   : > { %v1376_v2 = vpop.f32.mrf.mxu2  ;;  %v976_v6 = vpop.f32.mrf.mxu0 }
 0x1e5   : > { %v1465_v4 = vpop.f32.mrf.mxu3  ;;  %v1065_v8 = vpop.f32.mrf.mxu1 }
 0x1e6   : > { %v1466_v5 = vadd.f32 %v1465_v4, %v1376_v2  ;;  %v1066_v9 = vadd.f32 %v1065_v8, %v976_v6 }
 0x1e8   : > { %v1512_v10 = vadd.f32 %v1466_v5, %v1174_v3  ;;  %v1111_v11 = vadd.f32 %v1066_v9, %v613_v7  ;;  %v619_v3 = vld [vmem:[#allocation2] sm:$0xff]  ;;  %v1181_v9 = vld [vmem:[#allocation2 + $0x10] sm:$0xff] }
 0x1ea   : > { %1544 = vst [vmem:[#allocation2 + $0x68] sm:$0xff] %v1512_v10 }
 0x1eb   : > { %1143 = vst [vmem:[#allocation2 + $0x28] sm:$0xff] %v1111_v11 }
 0x1ec   : > { %v1378_v12 = vpop.f32.mrf.mxu2  ;;  %v979_v16 = vpop.f32.mrf.mxu0 }
 0x1ed   : > { %v1467_v14 = vpop.f32.mrf.mxu3  ;;  %v1068_v18 = vpop.f32.mrf.mxu1 }
 0x1ee   : > { %v1468_v15 = vadd.f32 %v1467_v14, %v1378_v12  ;;  %v1069_v19 = vadd.f32 %v1068_v18, %v979_v16 }
 0x1f0   : > { %v1513_v20 = vadd.f32 %v1468_v15, %v1175_v13  ;;  %v1112_v21 = vadd.f32 %v1069_v19, %v614_v17  ;;  %v620_v13 = vld [vmem:[#allocation2 + $0xf0] sm:$0xff]  ;;  %v1182_v19 = vld [vmem:[#allocation2 + $0x58] sm:$0xff] }
 0x1f2   : > { %1545 = vst [vmem:[#allocation2 + $0x190] sm:$0xff] %v1513_v20 }
 0x1f3   : > { %1144 = vst [vmem:[#allocation2 + $0x1e8] sm:$0xff] %v1112_v21 }
 0x1f4   : > { %v1381_v22 = vpop.f32.mrf.mxu2  ;;  %v981_v26 = vpop.f32.mrf.mxu0 }
 0x1f5   : > { %v1470_v24 = vpop.f32.mrf.mxu3  ;;  %v1070_v28 = vpop.f32.mrf.mxu1 }
 0x1f6   : > { %v1471_v25 = vadd.f32 %v1470_v24, %v1381_v22  ;;  %v1071_v29 = vadd.f32 %v1070_v28, %v981_v26 }
 0x1f8   : > { %v1514_v30 = vadd.f32 %v1471_v25, %v1176_v23  ;;  %v1113_v31 = vadd.f32 %v1071_v29, %v615_v27  ;;  %v621_v23 = vld [vmem:[#allocation2 + $0x8] sm:$0xff]  ;;  %v1183_v29 = vld [vmem:[#allocation2 + $0xa0] sm:$0xff] }
 0x1fa   : > { %1546 = vst [vmem:[#allocation2 + $0x198] sm:$0xff] %v1514_v30 }
 0x1fb   : > { %1145 = vst [vmem:[#allocation2 + $0xf8] sm:$0xff] %v1113_v31 }
 0x1fc   : > { %v1383_v32 = vpop.f32.mrf.mxu2  ;;  %v984_v36 = vpop.f32.mrf.mxu0 }
 0x1fd   : > { %v1472_v34 = vpop.f32.mrf.mxu3  ;;  %v1073_v38 = vpop.f32.mrf.mxu1 }
 0x1fe   : > { %v1473_v35 = vadd.f32 %v1472_v34, %v1383_v32  ;;  %v1074_v39 = vadd.f32 %v1073_v38, %v984_v36 }
 0x200   : > { %v1515_v40 = vadd.f32 %v1473_v35, %v1177_v33  ;;  %v1114_v41 = vadd.f32 %v1074_v39, %v616_v37 }
 0x202   : > { %1547 = vst [vmem:[#allocation2 + $0x38] sm:$0xff] %v1515_v40 }
 0x203   : > { %1146 = vst [vmem:[#allocation2 + $0x160] sm:$0xff] %v1114_v41 }
 0x204   : > { %v1386_v42 = vpop.f32.mrf.mxu2  ;;  %v986_v46 = vpop.f32.mrf.mxu0 }
 0x205   : > { %v1475_v44 = vpop.f32.mrf.mxu3  ;;  %v1075_v48 = vpop.f32.mrf.mxu1 }
 0x206   : > { %v1476_v45 = vadd.f32 %v1475_v44, %v1386_v42  ;;  %v1076_v49 = vadd.f32 %v1075_v48, %v986_v46 }
 0x208   : > { %v1516_v50 = vadd.f32 %v1476_v45, %v1178_v43  ;;  %v1115_v51 = vadd.f32 %v1076_v49, %v617_v47 }
 0x20a   : > { %1548 = vst [vmem:[#allocation2 + $0xc0] sm:$0xff] %v1516_v50 }
 0x20b   : > { %1147 = vst [vmem:[#allocation2 + $0x30] sm:$0xff] %v1115_v51 }
 0x20c   : > { %v1388_v52 = vpop.f32.mrf.mxu2  ;;  %v989_v56 = vpop.f32.mrf.mxu0 }
 0x20d   : > { %v1477_v54 = vpop.f32.mrf.mxu3  ;;  %v1078_v58 = vpop.f32.mrf.mxu1 }
 0x20e   : > { %v1478_v55 = vadd.f32 %v1477_v54, %v1388_v52  ;;  %v1079_v59 = vadd.f32 %v1078_v58, %v989_v56 }
 0x210   : > { %v1517_v60 = vadd.f32 %v1478_v55, %v1179_v53  ;;  %v1116_v61 = vadd.f32 %v1079_v59, %v618_v57 }
 0x212   : > { %1549 = vst [vmem:[#allocation2 + $0x1c0] sm:$0xff] %v1517_v60 }
 0x213   : > { %1148 = vst [vmem:[#allocation2 + $0x1e0] sm:$0xff] %v1116_v61 }
 0x214   : > { %v1391_v62 = vpop.f32.mrf.mxu2  ;;  %v991_v2 = vpop.f32.mrf.mxu0 }
 0x215   : > { %v1480_v0 = vpop.f32.mrf.mxu3  ;;  %v1080_v4 = vpop.f32.mrf.mxu1 }
 0x216   : > { %v1481_v1 = vadd.f32 %v1480_v0, %v1391_v62  ;;  %v1081_v5 = vadd.f32 %v1080_v4, %v991_v2 }
 0x218   : > { %v1518_v6 = vadd.f32 %v1481_v1, %v1180_v63  ;;  %v1117_v7 = vadd.f32 %v1081_v5, %v619_v3 }
 0x21a   : > { %1550 = vst [vmem:[#allocation2 + $0x158] sm:$0xff] %v1518_v6 }
 0x21b   : > { %1149 = vst [vmem:[#allocation2] sm:$0xff] %v1117_v7 }
 0x21c   : > { %v1393_v8 = vpop.f32.mrf.mxu2  ;;  %v994_v12 = vpop.f32.mrf.mxu0 }
 0x21d   : > { %v1482_v10 = vpop.f32.mrf.mxu3  ;;  %v1083_v14 = vpop.f32.mrf.mxu1 }
 0x21e   : > { %v1483_v11 = vadd.f32 %v1482_v10, %v1393_v8  ;;  %v1084_v15 = vadd.f32 %v1083_v14, %v994_v12 }
 0x220   : > { %v1519_v16 = vadd.f32 %v1483_v11, %v1181_v9  ;;  %v1118_v17 = vadd.f32 %v1084_v15, %v620_v13 }
 0x222   : > { %1551 = vst [vmem:[#allocation2 + $0x10] sm:$0xff] %v1519_v16 }
 0x223   : > { %1150 = vst [vmem:[#allocation2 + $0xf0] sm:$0xff] %v1118_v17 }
 0x224   : > { %v1396_v18 = vpop.f32.mrf.mxu2  ;;  %v996_v22 = vpop.f32.mrf.mxu0 }
 0x225   : > { %v1485_v20 = vpop.f32.mrf.mxu3  ;;  %v1085_v24 = vpop.f32.mrf.mxu1 }
 0x226   : > { %v1486_v21 = vadd.f32 %v1485_v20, %v1396_v18  ;;  %v1086_v25 = vadd.f32 %v1085_v24, %v996_v22 }
 0x228   : > { %v1520_v26 = vadd.f32 %v1486_v21, %v1182_v19  ;;  %v1119_v27 = vadd.f32 %v1086_v25, %v621_v23 }
 0x22a   : > { %1552 = vst [vmem:[#allocation2 + $0x58] sm:$0xff] %v1520_v26 }
 0x22b   : > { %1151 = vst [vmem:[#allocation2 + $0x8] sm:$0xff] %v1119_v27 }
 0x22c   : > { %v1398_v28 = vpop.f32.mrf.mxu2 }
 0x22d   : > { %v1487_v30 = vpop.f32.mrf.mxu3 }
 0x22e   : > { %v1488_v31 = vadd.f32 %v1487_v30, %v1398_v28  ;;  %1557 = sbr.rel (%p2462_p13) target bundleno = 856 (0x358), region = 86 }
 0x230   : > { %v1521_v32 = vadd.f32 %v1488_v31, %v1183_v29 }
 0x232   : > { %1553 = vst [vmem:[#allocation2 + $0xa0] sm:$0xff] %v1521_v32 }
 0x233   : > { %v2569_v33 = vld [vmem:[%s3321_s3 + $0x38] sm:$0xff]  ;;  %v2568_v34 = vld [vmem:[%s3321_s3 + $0x30] sm:$0xff]  ;;  %v2567_v35 = vld [vmem:[%s3321_s3 + $0x28] sm:$0xff] }
 0x234   : > { %1722 = vmatpush.bf16.msra.mxu0 %v2569_v33  ;;  %2665 = vmatpush.bf16.msra.mxu1 %v2569_v33  ;;  %v2566_v36 = vld [vmem:[%s3321_s3 + $0x20] sm:$0xff]  ;;  %v2565_v37 = vld [vmem:[%s3321_s3 + $0x18] sm:$0xff]  ;;  %v2564_v38 = vld [vmem:[%s3321_s3 + $0x10] sm:$0xff] }
 0x235   : > { %2666 = vmatpush.bf16.msra.mxu2 %v2569_v33  ;;  %2667 = vmatpush.bf16.msra.mxu3 %v2569_v33  ;;  %v2563_v39 = vld [vmem:[%s3321_s3 + $0x8] sm:$0xff]  ;;  %v2562_v40 = vld [vmem:[%s3321_s3] sm:$0xff]  ;;  %v1558_v41 = vld [vmem:[#allocation2 + $0xb0] sm:$0xff] }
 0x236   : > { %v1559_v42 = vld [vmem:[#allocation2 + $0x1b0] sm:$0xff]  ;;  %v1574_v43 = vld [vmem:[#allocation2 + $0xe0] sm:$0xff]  ;;  %v1575_v44 = vld [vmem:[#allocation2 + $0x188] sm:$0xff] }
 0x237   : > { %v1590_v45 = vld [vmem:[#allocation2 + $0x148] sm:$0xff]  ;;  %v1591_v46 = vld [vmem:[#allocation2 + $0x1d0] sm:$0xff]  ;;  %v1606_v47 = vld [vmem:[#allocation2 + $0xb8] sm:$0xff]  ;;  %v1622_v49 = vpack.c.bf16 %v1559_v42, %v1558_v41  ;;  %v1630_v50 = vpack.c.bf16 %v1575_v44, %v1574_v43 }
 0x238   : > { %1723 = vmatpush.bf16.msra.mxu0 %v2568_v34  ;;  %2668 = vmatpush.bf16.msra.mxu1 %v2568_v34  ;;  %v1607_v48 = vld [vmem:[#allocation2 + $0x88] sm:$0xff]  ;;  %v1638_v51 = vpack.c.bf16 %v1591_v46, %v1590_v45  ;;  %v1560_v53 = vld [vmem:[#allocation2 + $0xd8] sm:$0xff]  ;;  %v1577_v56 = vld [vmem:[#allocation2 + $0x140] sm:$0xff] }
 0x239   : > { %2669 = vmatpush.bf16.msra.mxu2 %v2568_v34  ;;  %2670 = vmatpush.bf16.msra.mxu3 %v2568_v34  ;;  %v1646_v52 = vpack.c.bf16 %v1607_v48, %v1606_v47  ;;  %v1561_v54 = vld [vmem:[#allocation2 + $0x18] sm:$0xff]  ;;  %v1592_v57 = vld [vmem:[#allocation2 + $0x100] sm:$0xff]  ;;  %v1593_v58 = vld [vmem:[#allocation2 + $0xc8] sm:$0xff] }
 0x23a   : > { %v1576_v55 = vld [vmem:[#allocation2 + $0x138] sm:$0xff]  ;;  %v1608_v59 = vld [vmem:[#allocation2 + $0xa8] sm:$0xff]  ;;  %v1623_v61 = vpack.c.bf16 %v1561_v54, %v1560_v53  ;;  %v1639_v63 = vpack.c.bf16 %v1593_v58, %v1592_v57  ;;  %v1562_v1 = vld [vmem:[#allocation2 + $0x50] sm:$0xff] }
 0x23b   : > { %v1609_v60 = vld [vmem:[#allocation2 + $0x1c8] sm:$0xff]  ;;  %v1631_v62 = vpack.c.bf16 %v1577_v56, %v1576_v55  ;;  %v1578_v3 = vld [vmem:[#allocation2 + $0x80] sm:$0xff]  ;;  %v1595_v6 = vld [vmem:[#allocation2 + $0x1f8] sm:$0xff] }
 0x23c   : > { %1724 = vmatpush.bf16.msra.mxu0 %v2567_v35  ;;  %2671 = vmatpush.bf16.msra.mxu1 %v2567_v35  ;;  %v1647_v0 = vpack.c.bf16 %v1609_v60, %v1608_v59  ;;  %v1563_v2 = vld [vmem:[#allocation2 + $0x168] sm:$0xff]  ;;  %v1594_v5 = vld [vmem:[#allocation2 + $0x40] sm:$0xff]  ;;  %v1610_v7 = vld [vmem:[#allocation2 + $0x170] sm:$0xff] }
 0x23d   : > { %2672 = vmatpush.bf16.msra.mxu2 %v2567_v35  ;;  %2673 = vmatpush.bf16.msra.mxu3 %v2567_v35  ;;  %v1579_v4 = vld [vmem:[#allocation2 + $0x1a8] sm:$0xff]  ;;  %v1611_v8 = vld [vmem:[#allocation2 + $0x178] sm:$0xff]  ;;  %v1624_v9 = vpack.c.bf16 %v1563_v2, %v1562_v1  ;;  %v1640_v11 = vpack.c.bf16 %v1595_v6, %v1594_v5  ;;  %v1564_v13 = vld [vmem:[#allocation2 + $0x130] sm:$0xff] }
 0x23e   : > { %v1632_v10 = vpack.c.bf16 %v1579_v4, %v1578_v3  ;;  %v1648_v12 = vpack.c.bf16 %v1611_v8, %v1610_v7  ;;  %v1565_v14 = vld [vmem:[#allocation2 + $0x48] sm:$0xff]  ;;  %v1580_v15 = vld [vmem:[#allocation2 + $0x1b8] sm:$0xff]  ;;  %v1596_v17 = vld [vmem:[#allocation2 + $0x20] sm:$0xff] }
 0x23f   : > { %v1581_v16 = vld [vmem:[#allocation2 + $0x28] sm:$0xff]  ;;  %v1613_v20 = vld [vmem:[#allocation2 + $0x190] sm:$0xff]  ;;  %v1625_v21 = vpack.c.bf16 %v1565_v14, %v1564_v13  ;;  %v1566_v25 = vld [vmem:[#allocation2 + $0x180] sm:$0xff] }
 0x240   : > { %1725 = vmatpush.bf16.msra.mxu0 %v2566_v36  ;;  %2674 = vmatpush.bf16.msra.mxu1 %v2566_v36  ;;  %v1597_v18 = vld [vmem:[#allocation2 + $0x128] sm:$0xff]  ;;  %v1633_v22 = vpack.c.bf16 %v1581_v16, %v1580_v15  ;;  %v1567_v26 = vld [vmem:[#allocation2 + $0x110] sm:$0xff]  ;;  %v1583_v28 = vld [vmem:[#allocation2 + $0xf8] sm:$0xff] }
 0x241   : > { %2675 = vmatpush.bf16.msra.mxu2 %v2566_v36  ;;  %2676 = vmatpush.bf16.msra.mxu3 %v2566_v36  ;;  %v1612_v19 = vld [vmem:[#allocation2 + $0x68] sm:$0xff]  ;;  %v1641_v23 = vpack.c.bf16 %v1597_v18, %v1596_v17  ;;  %v1598_v29 = vld [vmem:[#allocation2 + $0x1a0] sm:$0xff]  ;;  %v1599_v30 = vld [vmem:[#allocation2 + $0x1f0] sm:$0xff]  ;;  %v1626_v33 = vpack.c.bf16 %v1567_v26, %v1566_v25 }
 0x242   : > { %v1649_v24 = vpack.c.bf16 %v1613_v20, %v1612_v19  ;;  %v1582_v27 = vld [vmem:[#allocation2 + $0x1e8] sm:$0xff]  ;;  %v1614_v31 = vld [vmem:[#allocation2 + $0x198] sm:$0xff]  ;;  %v1642_v35 = vpack.c.bf16 %v1599_v30, %v1598_v29  ;;  %v1616_v43 = vld [vmem:[#allocation2 + $0xc0] sm:$0xff] }
 0x243   : > { %v1615_v32 = vld [vmem:[#allocation2 + $0x38] sm:$0xff]  ;;  %v1634_v34 = vpack.c.bf16 %v1583_v28, %v1582_v27  ;;  %v1600_v41 = vld [vmem:[#allocation2 + $0xe8] sm:$0xff]  ;;  %v1617_v44 = vld [vmem:[#allocation2 + $0x1c0] sm:$0xff] }
 0x244   : > { %1726 = vmatpush.bf16.msra.mxu0 %v2565_v37  ;;  %2677 = vmatpush.bf16.msra.mxu1 %v2565_v37  ;;  %v1650_v36 = vpack.c.bf16 %v1615_v32, %v1614_v31  ;;  %v1601_v42 = vld [vmem:[#allocation2 + $0x78] sm:$0xff]  ;;  %v1651_v48 = vpack.c.bf16 %v1617_v44, %v1616_v43  ;;  %v1602_v53 = vld [vmem:[#allocation2 + $0x70] sm:$0xff]  ;;  %v1621_v4 = vld [vmem:[#allocation2 + $0xa0] sm:$0xff] }
 0x245   : > { %2678 = vmatpush.bf16.msra.mxu2 %v2565_v37  ;;  %2679 = vmatpush.bf16.msra.mxu3 %v2565_v37  ;;  %v1568_v37 = vld [vmem:[#allocation2 + $0x118] sm:$0xff]  ;;  %v1643_v47 = vpack.c.bf16 %v1601_v42, %v1600_v41  ;;  %v1603_v54 = vld [vmem:[#allocation2 + $0x90] sm:$0xff] }
 0x246   : > { %v1618_v55 = vld [vmem:[#allocation2 + $0x158] sm:$0xff]  ;;  %v1619_v56 = vld [vmem:[#allocation2 + $0x10] sm:$0xff]  ;;  %v1644_v59 = vpack.c.bf16 %v1603_v54, %v1602_v53 }
 0x247   : > { %v1652_v60 = vpack.c.bf16 %v1619_v56, %v1618_v55  ;;  %v1604_v1 = vld [vmem:[#allocation2 + $0x1d8] sm:$0xff]  ;;  %v1605_v2 = vld [vmem:[#allocation2 + $0xd0] sm:$0xff] }
 0x248   : > { %1727 = vmatpush.bf16.msra.mxu0 %v2564_v38  ;;  %2680 = vmatpush.bf16.msra.mxu1 %v2564_v38  ;;  %v1620_v3 = vld [vmem:[#allocation2 + $0x58] sm:$0xff]  ;;  %v1645_v7 = vpack.c.bf16 %v1605_v2, %v1604_v1 }
 0x249   : > { %2681 = vmatpush.bf16.msra.mxu2 %v2564_v38  ;;  %2682 = vmatpush.bf16.msra.mxu3 %v2564_v38  ;;  %v1569_v38 = vld [vmem:[#allocation2 + $0x98] sm:$0xff]  ;;  %v1653_v8 = vpack.c.bf16 %v1621_v4, %v1620_v3 }
 0x24a   : > { %v1627_v45 = vpack.c.bf16 %v1569_v38, %v1568_v37 }
 0x24c   : > { %1728 = vmatpush.bf16.msra.mxu0 %v2563_v39  ;;  %2683 = vmatpush.bf16.msra.mxu1 %v2563_v39 }
 0x24d   : > { %2684 = vmatpush.bf16.msra.mxu2 %v2563_v39  ;;  %2685 = vmatpush.bf16.msra.mxu3 %v2563_v39  ;;  %v1584_v39 = vld [vmem:[#allocation2 + $0x160] sm:$0xff] }
 0x250   : > { %1729 = vmatpush.bf16.msra.mxu0 %v2562_v40  ;;  %2686 = vmatpush.bf16.msra.mxu1 %v2562_v40 }
 0x251   : > { %2687 = vmatpush.bf16.msra.mxu2 %v2562_v40  ;;  %2688 = vmatpush.bf16.msra.mxu3 %v2562_v40  ;;  %v1585_v40 = vld [vmem:[#allocation2 + $0x30] sm:$0xff] }
 0x252   : > { %v1635_v46 = vpack.c.bf16 %v1585_v40, %v1584_v39 }
 0x253   : > { %1730 = vmatmul.bf16.vlgmr.msra.gmra.mxu0 %v1622_v49  ;;  %1770 = vmatmul.bf16.vlgmr.msra.gmra.mxu1 %v1630_v50  ;;  %v1570_v49 = vld [vmem:[#allocation2 + $0x120] sm:$0xff]  ;;  %v1571_v50 = vld [vmem:[#allocation2 + $0x150] sm:$0xff] }
 0x254   : > { %1810 = vmatmul.bf16.vlgmr.msra.gmra.mxu2 %v1638_v51  ;;  %1850 = vmatmul.bf16.vlgmr.msra.gmra.mxu3 %v1646_v52  ;;  %v1586_v51 = vld [vmem:[#allocation2 + $0x1e0] sm:$0xff]  ;;  %v1628_v57 = vpack.c.bf16 %v1571_v50, %v1570_v49 }
 0x255   : > { %v1587_v52 = vld [vmem:[#allocation2] sm:$0xff] }
 0x256   : > { %v1636_v58 = vpack.c.bf16 %v1587_v52, %v1586_v51 }
 0x263   : > { %1735 = vmatmul.bf16.gmra.mxu0 %v1623_v61  ;;  %1775 = vmatmul.bf16.gmra.mxu1 %v1631_v62  ;;  %v1572_v61 = vld [vmem:[#allocation2 + $0x108] sm:$0xff]  ;;  %v1573_v62 = vld [vmem:[#allocation2 + $0x60] sm:$0xff] }
 0x264   : > { %1815 = vmatmul.bf16.gmra.mxu2 %v1639_v63  ;;  %1855 = vmatmul.bf16.gmra.mxu3 %v1647_v0  ;;  %v1588_v63 = vld [vmem:[#allocation2 + $0xf0] sm:$0xff]  ;;  %v1589_v0 = vld [vmem:[#allocation2 + $0x8] sm:$0xff]  ;;  %v1629_v5 = vpack.c.bf16 %v1573_v62, %v1572_v61 }
 0x265   : > { %v1637_v6 = vpack.c.bf16 %v1589_v0, %v1588_v63 }
 0x273   : > { %1740 = vmatmul.bf16.gmra.mxu0 %v1624_v9  ;;  %1780 = vmatmul.bf16.gmra.mxu1 %v1632_v10  ;;  %v3183_v9 = vld [vmem:[%s3322_s4] ss:$0 sm:$0xff] }
 0x274   : > { %1820 = vmatmul.bf16.gmra.mxu2 %v1640_v11  ;;  %1860 = vmatmul.bf16.gmra.mxu3 %v1648_v12 }
 0x283   : > { %1745 = vmatmul.bf16.gmra.mxu0 %v1625_v21  ;;  %1785 = vmatmul.bf16.gmra.mxu1 %v1633_v22 }
 0x284   : > { %1825 = vmatmul.bf16.gmra.mxu2 %v1641_v23  ;;  %1865 = vmatmul.bf16.gmra.mxu3 %v1649_v24 }
 0x293   : > { %1750 = vmatmul.bf16.gmra.mxu0 %v1626_v33  ;;  %1790 = vmatmul.bf16.gmra.mxu1 %v1634_v34 }
 0x294   : > { %1830 = vmatmul.bf16.gmra.mxu2 %v1642_v35  ;;  %1870 = vmatmul.bf16.gmra.mxu3 %v1650_v36 }
 0x2a3   : > { %1755 = vmatmul.bf16.gmra.mxu0 %v1627_v45  ;;  %1795 = vmatmul.bf16.gmra.mxu1 %v1635_v46 }
 0x2a4   : > { %1835 = vmatmul.bf16.gmra.mxu2 %v1643_v47  ;;  %1875 = vmatmul.bf16.gmra.mxu3 %v1651_v48 }
 0x2b3   : > { %1760 = vmatmul.bf16.gmra.mxu0 %v1628_v57  ;;  %1800 = vmatmul.bf16.gmra.mxu1 %v1636_v58 }
 0x2b4   : > { %1840 = vmatmul.bf16.gmra.mxu2 %v1644_v59  ;;  %1880 = vmatmul.bf16.gmra.mxu3 %v1652_v60 }
 0x2c3   : > { %1765 = vmatmul.bf16.gmra.mxu0 %v1629_v5  ;;  %1805 = vmatmul.bf16.gmra.mxu1 %v1637_v6 }
 0x2c4   : > { %1845 = vmatmul.bf16.gmra.mxu2 %v1645_v7  ;;  %1885 = vmatmul.bf16.gmra.mxu3 %v1653_v8 }
 0x2d0   : > { %v1731_v10 = vpop.f32.mrf.mxu0  ;;  %v1771_v11 = vpop.f32.mrf.mxu1 }
 0x2d1   : > { %v1732_v12 = vadd.f32 %v3183_v9, %v1731_v10  ;;  %v1772_v13 = vadd.f32 %v3183_v9, %v1771_v11 }
 0x2d3   : > { %v1891_v14 = vmax.f32 %v1732_v12, 0.0  ;;  %v1907_v15 = vmax.f32 %v1772_v13, 0.0 }
 0x2d5   : > { %1955 = vst [vmem:[%s2985_s24] sm:$0xff] %v1891_v14 }
 0x2d6   : > { %1971 = vst [vmem:[%s2985_s24 + $0x80] sm:$0xff] %v1907_v15 }
 0x2d7   : > { %v1811_v16 = vpop.f32.mrf.mxu2  ;;  %v1851_v17 = vpop.f32.mrf.mxu3 }
 0x2d8   : > { %v1733_v18 = vpop.f32.mrf.mxu0  ;;  %v1773_v19 = vpop.f32.mrf.mxu1  ;;  %v1812_v24 = vadd.f32 %v3183_v9, %v1811_v16  ;;  %v1852_v25 = vadd.f32 %v3183_v9, %v1851_v17 }
 0x2d9   : > { %v1734_v20 = vadd.f32 %v3183_v9, %v1733_v18  ;;  %v1774_v21 = vadd.f32 %v3183_v9, %v1773_v19 }
 0x2da   : > { %v1923_v34 = vmax.f32 %v1812_v24, 0.0  ;;  %v1939_v35 = vmax.f32 %v1852_v25, 0.0 }
 0x2db   : > { %v1892_v22 = vmax.f32 %v1734_v20, 0.0  ;;  %v1908_v23 = vmax.f32 %v1774_v21, 0.0 }
 0x2dd   : > { %1956 = vst [vmem:[%s2985_s24 + $0x8] sm:$0xff] %v1892_v22 }
 0x2de   : > { %1972 = vst [vmem:[%s2985_s24 + $0x88] sm:$0xff] %v1908_v23 }
 0x2df   : > { %v1813_v26 = vpop.f32.mrf.mxu2  ;;  %v1853_v27 = vpop.f32.mrf.mxu3 }
 0x2e0   : > { %v1814_v28 = vadd.f32 %v3183_v9, %v1813_v26  ;;  %v1854_v29 = vadd.f32 %v3183_v9, %v1853_v27  ;;  %v1736_v30 = vpop.f32.mrf.mxu0  ;;  %v1776_v31 = vpop.f32.mrf.mxu1 }
 0x2e1   : > { %v1737_v32 = vadd.f32 %v3183_v9, %v1736_v30  ;;  %v1777_v33 = vadd.f32 %v3183_v9, %v1776_v31 }
 0x2e2   : > { %v1924_v36 = vmax.f32 %v1814_v28, 0.0  ;;  %v1940_v37 = vmax.f32 %v1854_v29, 0.0 }
 0x2e3   : > { %v1893_v38 = vmax.f32 %v1737_v32, 0.0  ;;  %v1909_v41 = vmax.f32 %v1777_v33, 0.0 }
 0x2e4   : > { %v2573_v39 = vpack.c.bf16 %v1924_v36, %v1923_v34  ;;  %v2613_v40 = vpack.c.bf16 %v1940_v37, %v1939_v35 }
 0x2e5   : > { %1957 = vst [vmem:[%s2985_s24 + $0x10] sm:$0xff] %v1893_v38 }
 0x2e6   : > { %2574 = vst [vmem:[%s2990_s0] sm:$0xff] %v2573_v39  }
 0x2e7   : > { %2657 = vst [vmem:[%s2990_s0 + $0x40] sm:$0xff] %v2613_v40   ;;  %v1816_v42 = vpop.f32.mrf.mxu2  ;;  %v1856_v43 = vpop.f32.mrf.mxu3 }
 0x2e8   : > { %1973 = vst [vmem:[%s2985_s24 + $0x90] sm:$0xff] %v1909_v41  ;;  %v1738_v44 = vpop.f32.mrf.mxu0  ;;  %v1778_v45 = vpop.f32.mrf.mxu1  ;;  %v1817_v50 = vadd.f32 %v3183_v9, %v1816_v42  ;;  %v1857_v51 = vadd.f32 %v3183_v9, %v1856_v43 }
 0x2e9   : > { %v1739_v46 = vadd.f32 %v3183_v9, %v1738_v44  ;;  %v1779_v47 = vadd.f32 %v3183_v9, %v1778_v45 }
 0x2ea   : > { %v1925_v60 = vmax.f32 %v1817_v50, 0.0  ;;  %v1941_v61 = vmax.f32 %v1857_v51, 0.0 }
 0x2eb   : > { %v1894_v48 = vmax.f32 %v1739_v46, 0.0  ;;  %v1910_v49 = vmax.f32 %v1779_v47, 0.0 }
 0x2ed   : > { %1958 = vst [vmem:[%s2985_s24 + $0x18] sm:$0xff] %v1894_v48 }
 0x2ee   : > { %1974 = vst [vmem:[%s2985_s24 + $0x98] sm:$0xff] %v1910_v49 }
 0x2ef   : > { %v1818_v52 = vpop.f32.mrf.mxu2  ;;  %v1858_v53 = vpop.f32.mrf.mxu3 }
 0x2f0   : > { %v1819_v54 = vadd.f32 %v3183_v9, %v1818_v52  ;;  %v1859_v55 = vadd.f32 %v3183_v9, %v1858_v53  ;;  %v1741_v56 = vpop.f32.mrf.mxu0  ;;  %v1781_v57 = vpop.f32.mrf.mxu1 }
 0x2f1   : > { %v1742_v58 = vadd.f32 %v3183_v9, %v1741_v56  ;;  %v1782_v59 = vadd.f32 %v3183_v9, %v1781_v57 }
 0x2f2   : > { %v1926_v62 = vmax.f32 %v1819_v54, 0.0  ;;  %v1942_v63 = vmax.f32 %v1859_v55, 0.0 }
 0x2f3   : > { %v1895_v0 = vmax.f32 %v1742_v58, 0.0  ;;  %v1911_v3 = vmax.f32 %v1782_v59, 0.0 }
 0x2f4   : > { %v2578_v1 = vpack.c.bf16 %v1926_v62, %v1925_v60  ;;  %v2618_v2 = vpack.c.bf16 %v1942_v63, %v1941_v61 }
 0x2f5   : > { %1959 = vst [vmem:[%s2985_s24 + $0x20] sm:$0xff] %v1895_v0 }
 0x2f6   : > { %2650 = vst [vmem:[%s2990_s0 + $0x8] sm:$0xff] %v2578_v1  }
 0x2f7   : > { %2658 = vst [vmem:[%s2990_s0 + $0x48] sm:$0xff] %v2618_v2   ;;  %v1821_v4 = vpop.f32.mrf.mxu2  ;;  %v1861_v5 = vpop.f32.mrf.mxu3 }
 0x2f8   : > { %1975 = vst [vmem:[%s2985_s24 + $0xa0] sm:$0xff] %v1911_v3  ;;  %v1743_v6 = vpop.f32.mrf.mxu0  ;;  %v1783_v7 = vpop.f32.mrf.mxu1  ;;  %v1822_v13 = vadd.f32 %v3183_v9, %v1821_v4  ;;  %v1862_v14 = vadd.f32 %v3183_v9, %v1861_v5 }
 0x2f9   : > { %v1744_v8 = vadd.f32 %v3183_v9, %v1743_v6  ;;  %v1784_v10 = vadd.f32 %v3183_v9, %v1783_v7 }
 0x2fa   : > { %v1927_v23 = vmax.f32 %v1822_v13, 0.0  ;;  %v1943_v24 = vmax.f32 %v1862_v14, 0.0 }
 0x2fb   : > { %v1896_v11 = vmax.f32 %v1744_v8, 0.0  ;;  %v1912_v12 = vmax.f32 %v1784_v10, 0.0 }
 0x2fd   : > { %1960 = vst [vmem:[%s2985_s24 + $0x28] sm:$0xff] %v1896_v11 }
 0x2fe   : > { %1976 = vst [vmem:[%s2985_s24 + $0xa8] sm:$0xff] %v1912_v12 }
 0x2ff   : > { %v1823_v15 = vpop.f32.mrf.mxu2  ;;  %v1863_v16 = vpop.f32.mrf.mxu3 }
 0x300   : > { %v1824_v17 = vadd.f32 %v3183_v9, %v1823_v15  ;;  %v1864_v18 = vadd.f32 %v3183_v9, %v1863_v16  ;;  %v1746_v19 = vpop.f32.mrf.mxu0  ;;  %v1786_v20 = vpop.f32.mrf.mxu1 }
 0x301   : > { %v1747_v21 = vadd.f32 %v3183_v9, %v1746_v19  ;;  %v1787_v22 = vadd.f32 %v3183_v9, %v1786_v20 }
 0x302   : > { %v1928_v25 = vmax.f32 %v1824_v17, 0.0  ;;  %v1944_v26 = vmax.f32 %v1864_v18, 0.0 }
 0x303   : > { %v1897_v27 = vmax.f32 %v1747_v21, 0.0  ;;  %v1913_v30 = vmax.f32 %v1787_v22, 0.0 }
 0x304   : > { %v2583_v28 = vpack.c.bf16 %v1928_v25, %v1927_v23  ;;  %v2623_v29 = vpack.c.bf16 %v1944_v26, %v1943_v24 }
 0x305   : > { %1961 = vst [vmem:[%s2985_s24 + $0x30] sm:$0xff] %v1897_v27 }
 0x306   : > { %2651 = vst [vmem:[%s2990_s0 + $0x10] sm:$0xff] %v2583_v28  }
 0x307   : > { %2659 = vst [vmem:[%s2990_s0 + $0x50] sm:$0xff] %v2623_v29   ;;  %v1826_v31 = vpop.f32.mrf.mxu2  ;;  %v1866_v32 = vpop.f32.mrf.mxu3 }
 0x308   : > { %1977 = vst [vmem:[%s2985_s24 + $0xb0] sm:$0xff] %v1913_v30  ;;  %v1748_v33 = vpop.f32.mrf.mxu0  ;;  %v1788_v34 = vpop.f32.mrf.mxu1  ;;  %v1827_v39 = vadd.f32 %v3183_v9, %v1826_v31  ;;  %v1867_v40 = vadd.f32 %v3183_v9, %v1866_v32 }
 0x309   : > { %v1749_v35 = vadd.f32 %v3183_v9, %v1748_v33  ;;  %v1789_v36 = vadd.f32 %v3183_v9, %v1788_v34 }
 0x30a   : > { %v1929_v49 = vmax.f32 %v1827_v39, 0.0  ;;  %v1945_v50 = vmax.f32 %v1867_v40, 0.0 }
 0x30b   : > { %v1898_v37 = vmax.f32 %v1749_v35, 0.0  ;;  %v1914_v38 = vmax.f32 %v1789_v36, 0.0 }
 0x30d   : > { %1962 = vst [vmem:[%s2985_s24 + $0x38] sm:$0xff] %v1898_v37 }
 0x30e   : > { %1978 = vst [vmem:[%s2985_s24 + $0xb8] sm:$0xff] %v1914_v38 }
 0x30f   : > { %v1828_v41 = vpop.f32.mrf.mxu2  ;;  %v1868_v42 = vpop.f32.mrf.mxu3 }
 0x310   : > { %v1829_v43 = vadd.f32 %v3183_v9, %v1828_v41  ;;  %v1869_v44 = vadd.f32 %v3183_v9, %v1868_v42  ;;  %v1751_v45 = vpop.f32.mrf.mxu0  ;;  %v1791_v46 = vpop.f32.mrf.mxu1 }
 0x311   : > { %v1752_v47 = vadd.f32 %v3183_v9, %v1751_v45  ;;  %v1792_v48 = vadd.f32 %v3183_v9, %v1791_v46 }
 0x312   : > { %v1930_v51 = vmax.f32 %v1829_v43, 0.0  ;;  %v1946_v52 = vmax.f32 %v1869_v44, 0.0 }
 0x313   : > { %v1899_v53 = vmax.f32 %v1752_v47, 0.0  ;;  %v1915_v56 = vmax.f32 %v1792_v48, 0.0 }
 0x314   : > { %v2588_v54 = vpack.c.bf16 %v1930_v51, %v1929_v49  ;;  %v2628_v55 = vpack.c.bf16 %v1946_v52, %v1945_v50 }
 0x315   : > { %1963 = vst [vmem:[%s2985_s24 + $0x40] sm:$0xff] %v1899_v53 }
 0x316   : > { %2652 = vst [vmem:[%s2990_s0 + $0x18] sm:$0xff] %v2588_v54  }
 0x317   : > { %2660 = vst [vmem:[%s2990_s0 + $0x58] sm:$0xff] %v2628_v55   ;;  %v1831_v57 = vpop.f32.mrf.mxu2  ;;  %v1871_v58 = vpop.f32.mrf.mxu3 }
 0x318   : > { %1979 = vst [vmem:[%s2985_s24 + $0xc0] sm:$0xff] %v1915_v56  ;;  %v1753_v59 = vpop.f32.mrf.mxu0  ;;  %v1793_v60 = vpop.f32.mrf.mxu1  ;;  %v1832_v1 = vadd.f32 %v3183_v9, %v1831_v57  ;;  %v1872_v2 = vadd.f32 %v3183_v9, %v1871_v58 }
 0x319   : > { %v1754_v61 = vadd.f32 %v3183_v9, %v1753_v59  ;;  %v1794_v62 = vadd.f32 %v3183_v9, %v1793_v60 }
 0x31a   : > { %v1931_v12 = vmax.f32 %v1832_v1, 0.0  ;;  %v1947_v13 = vmax.f32 %v1872_v2, 0.0 }
 0x31b   : > { %v1900_v63 = vmax.f32 %v1754_v61, 0.0  ;;  %v1916_v0 = vmax.f32 %v1794_v62, 0.0 }
 0x31d   : > { %1964 = vst [vmem:[%s2985_s24 + $0x48] sm:$0xff] %v1900_v63 }
 0x31e   : > { %1980 = vst [vmem:[%s2985_s24 + $0xc8] sm:$0xff] %v1916_v0 }
 0x31f   : > { %v1833_v3 = vpop.f32.mrf.mxu2  ;;  %v1873_v4 = vpop.f32.mrf.mxu3 }
 0x320   : > { %v1834_v5 = vadd.f32 %v3183_v9, %v1833_v3  ;;  %v1874_v6 = vadd.f32 %v3183_v9, %v1873_v4  ;;  %v1756_v7 = vpop.f32.mrf.mxu0  ;;  %v1796_v8 = vpop.f32.mrf.mxu1 }
 0x321   : > { %v1757_v10 = vadd.f32 %v3183_v9, %v1756_v7  ;;  %v1797_v11 = vadd.f32 %v3183_v9, %v1796_v8 }
 0x322   : > { %v1932_v14 = vmax.f32 %v1834_v5, 0.0  ;;  %v1948_v15 = vmax.f32 %v1874_v6, 0.0 }
 0x323   : > { %v1901_v16 = vmax.f32 %v1757_v10, 0.0  ;;  %v1917_v19 = vmax.f32 %v1797_v11, 0.0 }
 0x324   : > { %v2593_v17 = vpack.c.bf16 %v1932_v14, %v1931_v12  ;;  %v2633_v18 = vpack.c.bf16 %v1948_v15, %v1947_v13 }
 0x325   : > { %1965 = vst [vmem:[%s2985_s24 + $0x50] sm:$0xff] %v1901_v16 }
 0x326   : > { %2653 = vst [vmem:[%s2990_s0 + $0x20] sm:$0xff] %v2593_v17  }
 0x327   : > { %2661 = vst [vmem:[%s2990_s0 + $0x60] sm:$0xff] %v2633_v18   ;;  %v1836_v20 = vpop.f32.mrf.mxu2  ;;  %v1876_v21 = vpop.f32.mrf.mxu3 }
 0x328   : > { %1981 = vst [vmem:[%s2985_s24 + $0xd0] sm:$0xff] %v1917_v19  ;;  %v1758_v22 = vpop.f32.mrf.mxu0  ;;  %v1798_v23 = vpop.f32.mrf.mxu1  ;;  %v1837_v28 = vadd.f32 %v3183_v9, %v1836_v20  ;;  %v1877_v29 = vadd.f32 %v3183_v9, %v1876_v21 }
 0x329   : > { %v1759_v24 = vadd.f32 %v3183_v9, %v1758_v22  ;;  %v1799_v25 = vadd.f32 %v3183_v9, %v1798_v23 }
 0x32a   : > { %v1933_v38 = vmax.f32 %v1837_v28, 0.0  ;;  %v1949_v39 = vmax.f32 %v1877_v29, 0.0 }
 0x32b   : > { %v1902_v26 = vmax.f32 %v1759_v24, 0.0  ;;  %v1918_v27 = vmax.f32 %v1799_v25, 0.0 }
 0x32d   : > { %1966 = vst [vmem:[%s2985_s24 + $0x58] sm:$0xff] %v1902_v26 }
 0x32e   : > { %1982 = vst [vmem:[%s2985_s24 + $0xd8] sm:$0xff] %v1918_v27 }
 0x32f   : > { %v1838_v30 = vpop.f32.mrf.mxu2  ;;  %v1878_v31 = vpop.f32.mrf.mxu3 }
 0x330   : > { %v1839_v32 = vadd.f32 %v3183_v9, %v1838_v30  ;;  %v1879_v33 = vadd.f32 %v3183_v9, %v1878_v31  ;;  %v1761_v34 = vpop.f32.mrf.mxu0  ;;  %v1801_v35 = vpop.f32.mrf.mxu1 }
 0x331   : > { %v1762_v36 = vadd.f32 %v3183_v9, %v1761_v34  ;;  %v1802_v37 = vadd.f32 %v3183_v9, %v1801_v35 }
 0x332   : > { %v1934_v40 = vmax.f32 %v1839_v32, 0.0  ;;  %v1950_v41 = vmax.f32 %v1879_v33, 0.0 }
 0x333   : > { %v1903_v42 = vmax.f32 %v1762_v36, 0.0  ;;  %v1919_v45 = vmax.f32 %v1802_v37, 0.0 }
 0x334   : > { %v2598_v43 = vpack.c.bf16 %v1934_v40, %v1933_v38  ;;  %v2638_v44 = vpack.c.bf16 %v1950_v41, %v1949_v39 }
 0x335   : > { %1967 = vst [vmem:[%s2985_s24 + $0x60] sm:$0xff] %v1903_v42 }
 0x336   : > { %2654 = vst [vmem:[%s2990_s0 + $0x28] sm:$0xff] %v2598_v43  }
 0x337   : > { %2662 = vst [vmem:[%s2990_s0 + $0x68] sm:$0xff] %v2638_v44   ;;  %v1841_v46 = vpop.f32.mrf.mxu2  ;;  %v1881_v47 = vpop.f32.mrf.mxu3 }
 0x338   : > { %1983 = vst [vmem:[%s2985_s24 + $0xe0] sm:$0xff] %v1919_v45  ;;  %v1763_v48 = vpop.f32.mrf.mxu0  ;;  %v1803_v49 = vpop.f32.mrf.mxu1  ;;  %v1842_v54 = vadd.f32 %v3183_v9, %v1841_v46  ;;  %v1882_v55 = vadd.f32 %v3183_v9, %v1881_v47 }
 0x339   : > { %v1764_v50 = vadd.f32 %v3183_v9, %v1763_v48  ;;  %v1804_v51 = vadd.f32 %v3183_v9, %v1803_v49 }
 0x33a   : > { %v1935_v0 = vmax.f32 %v1842_v54, 0.0  ;;  %v1951_v1 = vmax.f32 %v1882_v55, 0.0 }
 0x33b   : > { %v1904_v52 = vmax.f32 %v1764_v50, 0.0  ;;  %v1920_v53 = vmax.f32 %v1804_v51, 0.0 }
 0x33d   : > { %1968 = vst [vmem:[%s2985_s24 + $0x68] sm:$0xff] %v1904_v52 }
 0x33e   : > { %1984 = vst [vmem:[%s2985_s24 + $0xe8] sm:$0xff] %v1920_v53 }
 0x33f   : > { %v1843_v56 = vpop.f32.mrf.mxu2  ;;  %v1883_v57 = vpop.f32.mrf.mxu3 }
 0x340   : > { %v1844_v58 = vadd.f32 %v3183_v9, %v1843_v56  ;;  %v1884_v59 = vadd.f32 %v3183_v9, %v1883_v57  ;;  %v1766_v60 = vpop.f32.mrf.mxu0  ;;  %v1806_v61 = vpop.f32.mrf.mxu1 }
 0x341   : > { %v1767_v62 = vadd.f32 %v3183_v9, %v1766_v60  ;;  %v1807_v63 = vadd.f32 %v3183_v9, %v1806_v61 }
 0x342   : > { %v1936_v2 = vmax.f32 %v1844_v58, 0.0  ;;  %v1952_v3 = vmax.f32 %v1884_v59, 0.0 }
 0x343   : > { %v1905_v4 = vmax.f32 %v1767_v62, 0.0  ;;  %v1921_v7 = vmax.f32 %v1807_v63, 0.0 }
 0x344   : > { %v2603_v5 = vpack.c.bf16 %v1936_v2, %v1935_v0  ;;  %v2643_v6 = vpack.c.bf16 %v1952_v3, %v1951_v1 }
 0x345   : > { %1969 = vst [vmem:[%s2985_s24 + $0x70] sm:$0xff] %v1905_v4 }
 0x346   : > { %2655 = vst [vmem:[%s2990_s0 + $0x30] sm:$0xff] %v2603_v5  }
 0x347   : > { %2663 = vst [vmem:[%s2990_s0 + $0x70] sm:$0xff] %v2643_v6   ;;  %v1846_v8 = vpop.f32.mrf.mxu2  ;;  %v1886_v10 = vpop.f32.mrf.mxu3 }
 0x348   : > { %1985 = vst [vmem:[%s2985_s24 + $0xf0] sm:$0xff] %v1921_v7  ;;  %v1768_v11 = vpop.f32.mrf.mxu0  ;;  %v1808_v12 = vpop.f32.mrf.mxu1  ;;  %v1847_v17 = vadd.f32 %v3183_v9, %v1846_v8  ;;  %v1887_v18 = vadd.f32 %v3183_v9, %v1886_v10 }
 0x349   : > { %v1769_v13 = vadd.f32 %v3183_v9, %v1768_v11  ;;  %v1809_v14 = vadd.f32 %v3183_v9, %v1808_v12 }
 0x34a   : > { %v1937_v23 = vmax.f32 %v1847_v17, 0.0  ;;  %v1953_v24 = vmax.f32 %v1887_v18, 0.0 }
 0x34b   : > { %v1906_v15 = vmax.f32 %v1769_v13, 0.0  ;;  %v1922_v16 = vmax.f32 %v1809_v14, 0.0 }
 0x34d   : > { %1970 = vst [vmem:[%s2985_s24 + $0x78] sm:$0xff] %v1906_v15 }
 0x34e   : > { %1986 = vst [vmem:[%s2985_s24 + $0xf8] sm:$0xff] %v1922_v16 }
 0x34f   : > { %v1848_v19 = vpop.f32.mrf.mxu2  ;;  %v1888_v20 = vpop.f32.mrf.mxu3 }
 0x350   : > { %v1849_v21 = vadd.f32 %v3183_v9, %v1848_v19  ;;  %v1889_v22 = vadd.f32 %v3183_v9, %v1888_v20 }
 0x352   : > { %v1938_v25 = vmax.f32 %v1849_v21, 0.0  ;;  %v1954_v26 = vmax.f32 %v1889_v22, 0.0 }
 0x354   : > { %v2608_v27 = vpack.c.bf16 %v1938_v25, %v1937_v23  ;;  %v2648_v28 = vpack.c.bf16 %v1954_v26, %v1953_v24 }
 0x356   : > { %2656 = vst [vmem:[%s2990_s0 + $0x38] sm:$0xff] %v2608_v27  }
 0x357   : > { %2664 = vst [vmem:[%s2990_s0 + $0x78] sm:$0xff] %v2648_v28  }
 0x358 PF: > { %s17_s27 = sadd.s32 1, %s2801_s27   ;;  %s3327_s21 = smov %s2781_s22 }
 0x359   : > { %p14_p0 = scmp.ge.s32.totalorder %s17_s27, 6   ;;  %s3328_s22 = smov %s2890_s10 }
 0x35a   : > { %s3329_s23 = smov %s2793_s25  ;;  %s3330_s24 = smov %s2797_s26 }
 0x35b   : > { %s3331_s25 = smov %s3334_s28  ;;  %s3332_s26 = smov %s3338_s29 }
 0x35c   :  { %16 = sbr.rel (!%p14_p0) target bundleno = 6 (0x6), region = 139 }

// kernel: run.3
= control target key start
LH: loop header
LB: loop body
LE: loop exit
PB: predicated region body
PF: predicated region fallthrough
CT: control target
= control target key end

     0   :  { %16 = vsyncpa [#allocation8], 0  ;;  %s4133_s17 = smov 0   ;;  %s6047_s0 = inlined_call_operand.vmem [shape: f32[512,128], index: 0, kind: input, shape index: {}]   ;;  %s6048_s1 = inlined_call_operand.vmem [shape: bf16[512,128], index: 1, kind: input, shape index: {}]   ;;  %s6049_s2 = inlined_call_operand.vmem [shape: f32[128,1], index: 2, kind: input, shape index: {}]   ;;  %s6050_s3 = inlined_call_operand.vmem [shape: bf16[128,256], index: 3, kind: input, shape index: {}]   ;;  %s6051_s4 = inlined_call_operand.vmem [shape: f32[1,256], index: 4, kind: input, shape index: {}]   ;;  %s6052_s5 = inlined_call_operand.vmem [shape: f32[512,128], index: 5, kind: input, shape index: {}]   ;;  %s6053_s6 = inlined_call_operand.vmem [shape: f32[512,1], index: 6, kind: input, shape index: {}]   ;;  %s6054_s7 = inlined_call_operand.vmem [shape: f32[512,128], index: 7, kind: input, shape index: {}]   ;;  %s6055_s8 = inlined_call_operand.vmem [shape: f32[128,128], index: 8, kind: input, shape index: {}]   ;;  %s6056_s9 = inlined_call_operand.vmem [shape: f32[128,128], index: 9, kind: input, shape index: {}]   ;;  %s6057_s10 = inlined_call_operand.vmem [shape: f32[128,1], index: 10, kind: input, shape index: {}]   ;;  %s6058_s11 = inlined_call_operand.hbm [shape: f32[1,1], index: 11, kind: output, shape index: {}]  }
   0x1 LB: > { %s4139_s18 = sadd.s32 4294967295, %s4065_s17   ;;  %p3484_p0 = scmp.ge.s32.totalorder %s4065_s17, 1  ;;  %s4065_s17 = sphi %s4133_s17, %s22_s17  }
   0x2   : > { %p378_p1 = scmp.lt.s32.totalorder %s4065_s17, 3 }
   0x4   : > { %p379_p2 = pnand %p3484_p0, %p378_p1 }
   0x5   : > { %s3485_s19 = sshll.u32 (!%p379_p2), %s4139_s18, 5  ;;  %p3495_p4 = scmp.ne.s32.totalorder (!%p379_p2), %s4139_s18, 0 }
   0x6   : > { %382 = sbr.rel (%p379_p2) target bundleno = 1160 (0x488), region = 64  ;;  %p434_p3 = scmp.lt.s32.totalorder (!%p379_p2), %s3485_s19, 63 }
   0xb   : > { %s6164_s19 = smov (!%p434_p3, %s3485_s19), 63  ;;  %466 = sbr.rel (%p3495_p4) target bundleno = 22 (0x16), region = 68 }
   0xc   : > { %s3486_s20 = sshll.u32 %s6164_s19, 3  ;;  %s3488_s21 = sshll.u32 %s6164_s19, 2 }
   0xd   : > { %s4147_s24 = scalar_lea.vmem %s6047_s0, %s3486_s20  ;;  %s4152_s27 = scalar_lea.vmem %s6048_s1, %s3488_s21 }
   0xe   : > { %s4157_s30 = scalar_lea.vmem %s6052_s5, %s3486_s20  ;;  %s4162_s14 = scalar_lea.vmem %s6053_s6, %s3486_s20 }
   0xf   : > { %s4167_s19 = scalar_lea.vmem %s6054_s7, %s3486_s20 }
  0x10   : > { %vm467_vm0 = vcmask 0   ;;  %v4067_v0 = vmov 0.0  }
  0x11   : > { %468 = vst.msk [vmem:[#allocation2] sm:$0x1] %vm467_vm0, %v4067_v0 }
  0x12   : > { %469 = vst.msk [vmem:[#allocation3] sm:$0x1] %vm467_vm0, %v4067_v0 }
  0x13   : > { %470 = vst.msk [vmem:[#allocation4] sm:$0x1] %vm467_vm0, %v4067_v0 }
  0x14   : > { %471 = vst.msk [vmem:[#allocation5] sm:$0x1] %vm467_vm0, %v4067_v0 }
  0x15   : > { %472 = vst.msk [vmem:[#allocation6] sm:$0x1] %vm467_vm0, %v4067_v0 }
  0x16 PF: > { %v567_v1 = vld [vmem:[%s6049_s2 + $0x70] sm:$0xff]  ;;  %v568_v2 = vld [vmem:[%s6049_s2 + $0x78] sm:$0xff]  ;;  %v565_v10 = vld [vmem:[%s6049_s2 + $0x60] sm:$0xff]  ;;  %vm1364_vm1 = vcmask 7168   ;;  %p3624_p5 = scmp.ne.s32.totalorder %s4139_s18, 1 }
  0x17   : > { %v3618_v3 = vld [vmem:[%s6050_s3 + $0x70] sm:$0xf]  ;;  %v576_v4 = vpack.c.bf16 %v568_v2, %v567_v1  ;;  %v3660_v5 = vld [vmem:[%s6050_s3 + $0x74] sm:$0xf0]  ;;  %v3659_v6 = vld [vmem:[%s6050_s3 + $0x74] sm:$0xf] }
  0x18   : > { %v3620_v7 = vld [vmem:[%s6050_s3 + $0x78] sm:$0xf0]  ;;  %v3619_v8 = vor.u32 %v3660_v5, %v3618_v3  ;;  %v566_v11 = vld [vmem:[%s6049_s2 + $0x68] sm:$0xff]  ;;  %v3610_v12 = vld [vmem:[%s6050_s3 + $0x60] sm:$0xf] }
  0x19   : > { %v3623_v9 = vor.u32 %v3659_v6, %v3620_v7  ;;  %577 = vmatpush.bf16.msra.mxu0 %v576_v4  ;;  %762 = vmatpush.bf16.msra.mxu1 %v576_v4  ;;  %v575_v13 = vpack.c.bf16 %v566_v11, %v565_v10  ;;  %v3658_v14 = vld [vmem:[%s6050_s3 + $0x64] sm:$0xf0]  ;;  %v3657_v15 = vld [vmem:[%s6050_s3 + $0x64] sm:$0xf]  ;;  %v3612_v16 = vld [vmem:[%s6050_s3 + $0x68] sm:$0xf0] }
  0x1a   : > { %2163 = vmatpush.bf16.msra.mxu2 %v3619_v8  ;;  %v3611_v17 = vor.u32 %v3658_v14, %v3610_v12  ;;  %v3615_v18 = vor.u32 %v3657_v15, %v3612_v16  ;;  %v563_v19 = vld [vmem:[%s6049_s2 + $0x50] sm:$0xff]  ;;  %v564_v20 = vld [vmem:[%s6049_s2 + $0x58] sm:$0xff]  ;;  %v561_v28 = vld [vmem:[%s6049_s2 + $0x40] sm:$0xff]  ;;  %v4068_v14 = vmov 0  }
  0x1b   : > { %2252 = vmatpush.bf16.msra.mxu3 %v3623_v9  ;;  %v3602_v21 = vld [vmem:[%s6050_s3 + $0x50] sm:$0xf]  ;;  %v3656_v22 = vld [vmem:[%s6050_s3 + $0x54] sm:$0xf0]  ;;  %v3655_v23 = vld [vmem:[%s6050_s3 + $0x54] sm:$0xf]  ;;  %v574_v25 = vpack.c.bf16 %v564_v20, %v563_v19  ;;  %3693 = vset.pattern.permute.xlu1 %v4068_v14 }
  0x1c   : > { %v3604_v24 = vld [vmem:[%s6050_s3 + $0x58] sm:$0xf0]  ;;  %v3603_v26 = vor.u32 %v3656_v22, %v3602_v21  ;;  %v562_v29 = vld [vmem:[%s6049_s2 + $0x48] sm:$0xff]  ;;  %v3594_v30 = vld [vmem:[%s6050_s3 + $0x40] sm:$0xf]  ;;  %3695 = vset.pattern.permute.xlu0 %v4068_v14  ;;  %3694 = vset.pattern.permute.xlu2 %v4068_v14 }
  0x1d   : > { %578 = vmatpush.bf16.msra.mxu0 %v575_v13  ;;  %763 = vmatpush.bf16.msra.mxu1 %v575_v13  ;;  %v3607_v27 = vor.u32 %v3655_v23, %v3604_v24  ;;  %v3654_v31 = vld [vmem:[%s6050_s3 + $0x44] sm:$0xf0]  ;;  %v3653_v32 = vld [vmem:[%s6050_s3 + $0x44] sm:$0xf]  ;;  %v3596_v33 = vld [vmem:[%s6050_s3 + $0x48] sm:$0xf0]  ;;  %v573_v34 = vpack.c.bf16 %v562_v29, %v561_v28 }
  0x1e   : > { %2164 = vmatpush.bf16.msra.mxu2 %v3611_v17  ;;  %v3595_v35 = vor.u32 %v3654_v31, %v3594_v30  ;;  %v3599_v36 = vor.u32 %v3653_v32, %v3596_v33  ;;  %v559_v37 = vld [vmem:[%s6049_s2 + $0x30] sm:$0xff]  ;;  %v560_v38 = vld [vmem:[%s6049_s2 + $0x38] sm:$0xff]  ;;  %v557_v46 = vld [vmem:[%s6049_s2 + $0x20] sm:$0xff] }
  0x1f   : > { %2253 = vmatpush.bf16.msra.mxu3 %v3615_v18  ;;  %v3586_v39 = vld [vmem:[%s6050_s3 + $0x30] sm:$0xf]  ;;  %v3652_v40 = vld [vmem:[%s6050_s3 + $0x34] sm:$0xf0]  ;;  %v3651_v41 = vld [vmem:[%s6050_s3 + $0x34] sm:$0xf]  ;;  %v572_v43 = vpack.c.bf16 %v560_v38, %v559_v37 }
  0x20   : > { %v3588_v42 = vld [vmem:[%s6050_s3 + $0x38] sm:$0xf0]  ;;  %v3587_v44 = vor.u32 %v3652_v40, %v3586_v39  ;;  %v558_v47 = vld [vmem:[%s6049_s2 + $0x28] sm:$0xff]  ;;  %v3578_v48 = vld [vmem:[%s6050_s3 + $0x20] sm:$0xf] }
  0x21   : > { %579 = vmatpush.bf16.msra.mxu0 %v574_v25  ;;  %764 = vmatpush.bf16.msra.mxu1 %v574_v25  ;;  %v3591_v45 = vor.u32 %v3651_v41, %v3588_v42  ;;  %v3650_v49 = vld [vmem:[%s6050_s3 + $0x24] sm:$0xf0]  ;;  %v3649_v50 = vld [vmem:[%s6050_s3 + $0x24] sm:$0xf]  ;;  %v3580_v51 = vld [vmem:[%s6050_s3 + $0x28] sm:$0xf0]  ;;  %v571_v52 = vpack.c.bf16 %v558_v47, %v557_v46 }
  0x22   : > { %2165 = vmatpush.bf16.msra.mxu2 %v3603_v26  ;;  %v3579_v53 = vor.u32 %v3650_v49, %v3578_v48  ;;  %v3583_v54 = vor.u32 %v3649_v50, %v3580_v51  ;;  %v555_v55 = vld [vmem:[%s6049_s2 + $0x10] sm:$0xff]  ;;  %v556_v56 = vld [vmem:[%s6049_s2 + $0x18] sm:$0xff]  ;;  %v553_v0 = vld [vmem:[%s6049_s2] sm:$0xff] }
  0x23   : > { %2254 = vmatpush.bf16.msra.mxu3 %v3607_v27  ;;  %v3570_v57 = vld [vmem:[%s6050_s3 + $0x10] sm:$0xf]  ;;  %v3648_v58 = vld [vmem:[%s6050_s3 + $0x14] sm:$0xf0]  ;;  %v3647_v59 = vld [vmem:[%s6050_s3 + $0x14] sm:$0xf]  ;;  %v570_v61 = vpack.c.bf16 %v556_v56, %v555_v55 }
  0x24   : > { %v3572_v60 = vld [vmem:[%s6050_s3 + $0x18] sm:$0xf0]  ;;  %v3571_v62 = vor.u32 %v3648_v58, %v3570_v57  ;;  %v554_v1 = vld [vmem:[%s6049_s2 + $0x8] sm:$0xff]  ;;  %v3562_v2 = vld [vmem:[%s6050_s3] sm:$0xf] }
  0x25   : > { %580 = vmatpush.bf16.msra.mxu0 %v573_v34  ;;  %765 = vmatpush.bf16.msra.mxu1 %v573_v34  ;;  %v3575_v63 = vor.u32 %v3647_v59, %v3572_v60  ;;  %v3646_v3 = vld [vmem:[%s6050_s3 + $0x4] sm:$0xf0]  ;;  %v3645_v4 = vld [vmem:[%s6050_s3 + $0x4] sm:$0xf]  ;;  %v3564_v5 = vld [vmem:[%s6050_s3 + $0x8] sm:$0xf0]  ;;  %v569_v6 = vpack.c.bf16 %v554_v1, %v553_v0 }
  0x26   : > { %2166 = vmatpush.bf16.msra.mxu2 %v3595_v35  ;;  %v473_v7 = vld [vmem:[%s4147_s24] sm:$0xff]  ;;  %v474_v8 = vld [vmem:[%s4147_s24 + $0x8] sm:$0xff]  ;;  %v3563_v9 = vor.u32 %v3646_v3, %v3562_v2  ;;  %v3567_v10 = vor.u32 %v3645_v4, %v3564_v5  ;;  %v475_v15 = vld [vmem:[%s4147_s24 + $0x10] sm:$0xff] }
  0x27   : > { %2255 = vmatpush.bf16.msra.mxu3 %v3599_v36  ;;  %v505_v11 = vpack.c.bf16 %v474_v8, %v473_v7  ;;  %v3629_v12 = vld [vmem:[%s4152_s27] sm:$0xff]  ;;  %v476_v16 = vld [vmem:[%s4147_s24 + $0x18] sm:$0xff]  ;;  %v3630_v18 = vld [vmem:[%s4152_s27 + $0x8] sm:$0xff] }
  0x28   : > { %v2341_v13 = vld [vmem:[%s4162_s14] sm:$0xff]  ;;  %v506_v17 = vpack.c.bf16 %v476_v16, %v475_v15  ;;  %v2342_v20 = vld [vmem:[%s4162_s14 + $0x8] sm:$0xff]  ;;  %v3631_v28 = vld [vmem:[%s4152_s27 + $0x10] sm:$0xff] }
  0x29   : > { %581 = vmatpush.bf16.msra.mxu0 %v572_v43  ;;  %766 = vmatpush.bf16.msra.mxu1 %v572_v43  ;;  %v2706_v19 = vsel %vm1364_vm1, %v2341_v13, 0.0  ;;  %v2345_v21 = vld [vmem:[%s4162_s14 + $0x20] sm:$0xff]  ;;  %v2707_v22 = vsel %vm1364_vm1, %v2342_v20, 0.0  ;;  %v2346_v24 = vld [vmem:[%s4162_s14 + $0x28] sm:$0xff]  ;;  %v2343_v29 = vld [vmem:[%s4162_s14 + $0x10] sm:$0xff] }
  0x2a   : > { %2167 = vmatpush.bf16.msra.mxu2 %v3587_v44  ;;  %2472 = vperm.xlu1 %3693, %v2341_v13   ;;  %v2708_v23 = vadd.f32 %v2707_v22, %v2706_v19  ;;  %v477_v25 = vld [vmem:[%s4147_s24 + $0x20] sm:$0xff]  ;;  %v478_v26 = vld [vmem:[%s4147_s24 + $0x28] sm:$0xff]  ;;  %v2348_v30 = vld [vmem:[%s4162_s14 + $0x38] sm:$0xff]  ;;  %v2709_v31 = vsel %vm1364_vm1, %v2343_v29, 0.0  ;;  %v2713_v39 = vsel %vm1364_vm1, %v2345_v21, 0.0  ;;  %v2715_v42 = vsel %vm1364_vm1, %v2346_v24, 0.0 }
  0x2b   : > { %2256 = vmatpush.bf16.msra.mxu3 %v3591_v45  ;;  %2492 = vperm.xlu0 %3695, %v2345_v21   ;;  %v507_v27 = vpack.c.bf16 %v478_v26, %v477_v25  ;;  %v479_v33 = vld [vmem:[%s4147_s24 + $0x30] sm:$0xff]  ;;  %v480_v34 = vld [vmem:[%s4147_s24 + $0x38] sm:$0xff]  ;;  %v2350_v38 = vld [vmem:[%s4162_s14 + $0x48] sm:$0xff] }
  0x2c   : > { %2482 = vperm.xlu2 %3694, %v2343_v29   ;;  %v2710_v32 = vadd.f32 %v2709_v31, %v2708_v23  ;;  %v508_v35 = vpack.c.bf16 %v480_v34, %v479_v33  ;;  %v3632_v36 = vld [vmem:[%s4152_s27 + $0x18] sm:$0xff]  ;;  %v2347_v44 = vld [vmem:[%s4162_s14 + $0x30] sm:$0xff]  ;;  %v481_v47 = vld [vmem:[%s4147_s24 + $0x40] sm:$0xff] }
  0x2d   : > { %582 = vmatpush.bf16.msra.mxu0 %v571_v52  ;;  %767 = vmatpush.bf16.msra.mxu1 %v571_v52  ;;  %v2344_v37 = vld [vmem:[%s4162_s14 + $0x18] sm:$0xff]  ;;  %v2717_v45 = vsel %vm1364_vm1, %v2347_v44, 0.0  ;;  %v482_v48 = vld [vmem:[%s4147_s24 + $0x48] sm:$0xff]  ;;  %v3633_v51 = vld [vmem:[%s4152_s27 + $0x20] sm:$0xff]  ;;  %v2719_v52 = vsel %vm1364_vm1, %v2348_v30, 0.0 }
  0x2e   : > { %2168 = vmatpush.bf16.msra.mxu2 %v3579_v53  ;;  %v2711_v40 = vsel %vm1364_vm1, %v2344_v37, 0.0  ;;  %v509_v50 = vpack.c.bf16 %v482_v48, %v481_v47  ;;  %v2349_v53 = vld [vmem:[%s4162_s14 + $0x40] sm:$0xff]  ;;  %v4348_v55 = vld [vmem:[%s4162_s14 + $0x58] sm:$0xff]  ;;  %v483_v58 = vld [vmem:[%s4147_s24 + $0x50] sm:$0xff] }
  0x2f   : > { %2257 = vmatpush.bf16.msra.mxu3 %v3583_v54  ;;  %v2712_v41 = vadd.f32 %v2711_v40, %v2710_v32  ;;  %v2721_v56 = vsel %vm1364_vm1, %v2349_v53, 0.0  ;;  %v484_v59 = vld [vmem:[%s4147_s24 + $0x58] sm:$0xff]  ;;  %v3635_v1 = vld [vmem:[%s4152_s27 + $0x30] sm:$0xff]  ;;  %v2354_v3 = vld [vmem:[%s4162_s14 + $0x68] sm:$0xff] }
  0x30   : > { %v510_v60 = vpack.c.bf16 %v484_v59, %v483_v58  ;;  %v2351_v2 = vld [vmem:[%s4162_s14 + $0x50] sm:$0xff]  ;;  %v488_v5 = vld [vmem:[%s4147_s24 + $0x78] sm:$0xff]  ;;  %v4379_v23 = vld [vmem:[%s4162_s14 + $0x80] sm:$0xff] }
  0x31   : > { %583 = vmatpush.bf16.msra.mxu0 %v570_v61  ;;  %768 = vmatpush.bf16.msra.mxu1 %v570_v61  ;;  %v2714_v43 = vadd.f32 %v2713_v39, %v2712_v41  ;;  %v3634_v61 = vld [vmem:[%s4152_s27 + $0x28] sm:$0xff]  ;;  %v487_v4 = vld [vmem:[%s4147_s24 + $0x70] sm:$0xff]  ;;  %v3636_v7 = vld [vmem:[%s4152_s27 + $0x38] sm:$0xff]  ;;  %v2725_v14 = vsel %vm1364_vm1, %v2351_v2, 0.0  ;;  %v4394_v39 = vsel %vm1364_vm1, %v2354_v3, 0.0 }
  0x32   : > { %2169 = vmatpush.bf16.msra.mxu2 %v3571_v62  ;;  %2477 = vperm.xlu1 %3693, %v2342_v20   ;;  %v485_v62 = vld [vmem:[%s4147_s24 + $0x60] sm:$0xff]  ;;  %v4364_v8 = vld [vmem:[%s4162_s14 + $0x78] sm:$0xff]  ;;  %v491_v32 = vld [vmem:[%s4147_s24 + $0x90] sm:$0xff] }
  0x33   : > { %2258 = vmatpush.bf16.msra.mxu3 %v3575_v63  ;;  %v2716_v46 = vadd.f32 %v2715_v42, %v2714_v43  ;;  %v486_v63 = vld [vmem:[%s4147_s24 + $0x68] sm:$0xff]  ;;  %2547 = vperm.xlu0 %3695, %v4364_v8   ;;  %v492_v33 = vld [vmem:[%s4147_s24 + $0x98] sm:$0xff]  ;;  %v4397_v42 = vld [vmem:[%s4162_s14 + $0x70] sm:$0xff] }
  0x34   : > { %2487 = vperm.xlu2 %3694, %v2344_v37   ;;  %v511_v0 = vpack.c.bf16 %v486_v63, %v485_v62  ;;  %v514_v41 = vpack.c.bf16 %v492_v33, %v491_v32  ;;  %v3638_v62 = vld [vmem:[%s4152_s27 + $0x48] sm:$0xff] }
  0x35   : > { %584 = vmatpush.bf16.msra.mxu0 %v569_v6  ;;  %769 = vmatpush.bf16.msra.mxu1 %v569_v6  ;;  %v2718_v49 = vadd.f32 %v2717_v45, %v2716_v46  ;;  %v512_v6 = vpack.c.bf16 %v488_v5, %v487_v4  ;;  %v493_v4 = vld [vmem:[%s4147_s24 + $0xa0] sm:$0xff]  ;;  %v494_v5 = vld [vmem:[%s4147_s24 + $0xa8] sm:$0xff] }
  0x36   : > { %2170 = vmatpush.bf16.msra.mxu2 %v3563_v9  ;;  %v4367_v9 = vld [vmem:[%s4162_s14 + $0x60] sm:$0xff] }
  0x37   : > { %2259 = vmatpush.bf16.msra.mxu3 %v3567_v10  ;;  %v2720_v54 = vadd.f32 %v2719_v52, %v2718_v49  ;;  %v2723_v10 = vsel %vm1364_vm1, %v2350_v38, 0.0  ;;  %v2729_v32 = vsel %vm1364_vm1, %v4367_v9, 0.0 }
  0x38   : > { %585 = vmatmul.bf16.vlgmr.msra.gmra.mxu0 %v505_v11  ;;  %770 = vmatmul.bf16.vlgmr.msra.gmra.mxu1 %v3629_v12  ;;  %v490_v12 = vld [vmem:[%s4147_s24 + $0x88] sm:$0xff] }
  0x39   : > { %2171 = vmatmul.bf16.vlgmr.msra.gmra.mxu2 %v505_v11  ;;  %v2722_v57 = vadd.f32 %v2721_v56, %v2720_v54 }
  0x3a   : > { %2260 = vmatmul.bf16.vlgmr.msra.gmra.mxu3 %v505_v11  ;;  %2497 = vperm.xlu1 %3693, %v2346_v24   ;;  %v489_v11 = vld [vmem:[%s4147_s24 + $0x80] sm:$0xff] }
  0x3b   : > { %v2724_v13 = vadd.f32 %v2723_v10, %v2722_v57  ;;  %v513_v16 = vpack.c.bf16 %v490_v12, %v489_v11 }
  0x3c   : > { %2502 = vperm.xlu2 %3694, %v2347_v44  }
  0x3d   : > { %v4375_v15 = vadd.f32 %v2725_v14, %v2724_v13  ;;  %v2783_v14 = vld [vmem:[%s4167_s19 + $0x8] sm:$0xff] }
  0x42   : > { %2507 = vperm.xlu1 %3693, %v2348_v30  }
  0x44   : > { %2512 = vperm.xlu2 %3694, %v2349_v53  }
  0x48   : > { %590 = vmatmul.bf16.gmra.mxu0 %v506_v17  ;;  %775 = vmatmul.bf16.gmra.mxu1 %v3630_v18 }
  0x49   : > { %2176 = vmatmul.bf16.gmra.mxu2 %v506_v17 }
  0x4a   : > { %2265 = vmatmul.bf16.gmra.mxu3 %v506_v17  ;;  %2517 = vperm.xlu1 %3693, %v2350_v38   ;;  %v3637_v17 = vld [vmem:[%s4152_s27 + $0x40] sm:$0xff]  ;;  %v2727_v38 = vsel %vm1364_vm1, %v4348_v55, 0.0 }
  0x4c   : > { %2522 = vperm.xlu2 %3694, %v2351_v2  }
  0x52   : > { %2527 = vperm.xlu1 %3693, %v4348_v55  }
  0x54   : > { %2532 = vperm.xlu2 %3694, %v4367_v9  }
  0x58   : > { %595 = vmatmul.bf16.gmra.mxu0 %v507_v27  ;;  %780 = vmatmul.bf16.gmra.mxu1 %v3631_v28 }
  0x59   : > { %2181 = vmatmul.bf16.gmra.mxu2 %v507_v27 }
  0x5a   : > { %2270 = vmatmul.bf16.gmra.mxu3 %v507_v27  ;;  %2537 = vperm.xlu1 %3693, %v2354_v3   ;;  %v2077_v27 = vld [vmem:[%s6051_s4] sm:$0x3] }
  0x5b   : > { %v4385_v29 = vperm.slane %v2077_v27, 1  ;;  %v4389_v34 = vperm.slane %v2077_v27, 0 }
  0x5c   : > { %2542 = vperm.xlu2 %3694, %v4397_v42  }
  0x62   : > { %2552 = vperm.xlu1 %3693, %v4379_v23  }
  0x68   : > { %600 = vmatmul.bf16.gmra.mxu0 %v508_v35  ;;  %785 = vmatmul.bf16.gmra.mxu1 %v3632_v36 }
  0x69   : > { %2186 = vmatmul.bf16.gmra.mxu2 %v508_v35 }
  0x6a   : > { %2275 = vmatmul.bf16.gmra.mxu3 %v508_v35 }
  0x78   : > { %605 = vmatmul.bf16.gmra.mxu0 %v509_v50  ;;  %790 = vmatmul.bf16.gmra.mxu1 %v3633_v51 }
  0x79   : > { %2191 = vmatmul.bf16.gmra.mxu2 %v509_v50 }
  0x7a   : > { %2280 = vmatmul.bf16.gmra.mxu3 %v509_v50  ;;  %v2782_v50 = vld [vmem:[%s4167_s19] sm:$0xff] }
  0x88   : > { %610 = vmatmul.bf16.gmra.mxu0 %v510_v60  ;;  %795 = vmatmul.bf16.gmra.mxu1 %v3634_v61  ;;  %v2374_v61 = vld [vmem:[%s4157_s30] sm:$0xff] }
  0x89   : > { %2196 = vmatmul.bf16.gmra.mxu2 %v510_v60 }
  0x8a   : > { %2285 = vmatmul.bf16.gmra.mxu3 %v510_v60 }
  0x98   : > { %615 = vmatmul.bf16.gmra.mxu0 %v511_v0  ;;  %800 = vmatmul.bf16.gmra.mxu1 %v3635_v1 }
  0x99   : > { %2201 = vmatmul.bf16.gmra.mxu2 %v511_v0 }
  0x9a   : > { %2290 = vmatmul.bf16.gmra.mxu3 %v511_v0 }
  0xa8   : > { %620 = vmatmul.bf16.gmra.mxu0 %v512_v6  ;;  %805 = vmatmul.bf16.gmra.mxu1 %v3636_v7 }
  0xa9   : > { %2206 = vmatmul.bf16.gmra.mxu2 %v512_v6 }
  0xaa   : > { %2295 = vmatmul.bf16.gmra.mxu3 %v512_v6 }
  0xb5   : > { %v586_v18 = vpop.f32.mrf.mxu0  ;;  %v771_v19 = vpop.f32.mrf.mxu1 }
  0xb6   : > { %v916_v20 = vand.u32 2147483647, %v586_v18  ;;  %v1538_v21 = vand.u32 2147483647, %v771_v19  ;;  %v852_v43 = vmax.f32 %v586_v18, 0.0  ;;  %v1442_v44 = vmax.f32 %v771_v19, 0.0 }
  0xb7   : > { %v1474_v48 = vmul.f32 0.0, %v771_v19 }
  0xb8   : > { %v948_v22 = vsub.f32 0.0, %v916_v20  ;;  %625 = vmatmul.bf16.gmra.mxu0 %v513_v16  ;;  %810 = vmatmul.bf16.gmra.mxu1 %v3637_v17  ;;  %v1570_v24 = vsub.f32 0.0, %v1538_v21  ;;  %v4405_v63 = vsub.f32 %v852_v43, %v586_v18  ;;  %v4419_v20 = vpack.c.bf16 %v494_v5, %v493_v4 }
  0xb9   : > { %2211 = vmatmul.bf16.gmra.mxu2 %v513_v16  ;;  %v4409_v6 = vsub.f32 %v1442_v44, %v1474_v48 }
  0xba   : > { %2300 = vmatmul.bf16.gmra.mxu3 %v513_v16  ;;  %v980_v25 = vmul.f32 1.442695, %v948_v22  ;;  %v1602_v26 = vmul.f32 1.442695, %v1570_v24 }
  0xbc   : > { %3696 = vpow2.f32 %v980_v25  ;;  %v2172_v36 = vpop.f32.mrf.mxu2 }
  0xbd   : > { %v2261_v28 = vpop.f32.mrf.mxu3  ;;  %3698 = vpow2.f32 %v1602_v26  ;;  %v588_v30 = vpop.f32.mrf.mxu0  ;;  %v2173_v49 = vadd.f32 %v2172_v36, %v4389_v34 }
  0xbe   : > { %v773_v31 = vpop.f32.mrf.mxu1  ;;  %v917_v35 = vand.u32 2147483647, %v588_v30  ;;  %v2262_v45 = vadd.f32 %v2261_v28, %v4385_v29  ;;  %v853_v51 = vmax.f32 %v588_v30, 0.0 }
  0xbf   : > { %v1539_v37 = vand.u32 2147483647, %v773_v31  ;;  %v1443_v55 = vmax.f32 %v773_v31, 0.0  ;;  %v1475_v56 = vmul.f32 0.0, %v773_v31  ;;  %v4412_v12 = vsub.f32 %v2173_v49, %v2374_v61 }
  0xc0   : > { %v949_v40 = vsub.f32 0.0, %v917_v35  ;;  %v2814_v1 = vsub.f32 %v2262_v45, %v2782_v50  ;;  %v4414_v13 = vsub.f32 %v853_v51, %v588_v30  ;;  %v2728_v31 = vadd.f32 %v2727_v38, %v4375_v15 }
  0xc1   : > { %v1571_v46 = vsub.f32 0.0, %v1539_v37  ;;  %v4417_v19 = vsub.f32 %v1443_v55, %v1475_v56 }
  0xc2   : > { %v3697_v47 = vpop.eup %3696  ;;  %v982_v52 = vmul.f32 1.442695, %v949_v40  ;;  %v2846_v22 = vmul.f32 %v2814_v1, %v2814_v1 }
  0xc3   : > { %v3699_v53 = vpop.eup %3698  ;;  %v1044_v54 = vadd.f32 1.0, %v3697_v47  ;;  %v1604_v57 = vmul.f32 1.442695, %v1571_v46  ;;  %v1047_v58 = vmul.f32 -0.5, %v3697_v47  ;;  %v1050_v0 = vand.u32 2147483647, %v3697_v47 }
  0xc4   : > { %v1666_v59 = vadd.f32 1.0, %v3699_v53  ;;  %v1669_v60 = vmul.f32 -0.5, %v3699_v53  ;;  %3700 = vpow2.f32 %v982_v52  ;;  %v1672_v7 = vand.u32 2147483647, %v3699_v53  ;;  %v2174_v24 = vpop.f32.mrf.mxu2 }
  0xc5   : > { %3702 = vlog2.f32 %v1044_v54  ;;  %v2263_v2 = vpop.f32.mrf.mxu3  ;;  %v591_v3 = vpop.f32.mrf.mxu0  ;;  %v1048_v17 = vadd.f32 1.0, %v1047_v58  ;;  %vm4421_vm2 = vcmp.lt.f32.partialorder %v1050_v0, 0.0004427343  ;;  %v4432_v46 = vadd.f32 %v2729_v32, %v2728_v31 }
  0xc6   : > { %3704 = vlog2.f32 %v1666_v59  ;;  %v2264_v10 = vadd.f32 %v2263_v2, %v4385_v29  ;;  %v776_v11 = vpop.f32.mrf.mxu1  ;;  %v918_v16 = vand.u32 2147483647, %v591_v3  ;;  %v1670_v18 = vadd.f32 1.0, %v1669_v60  ;;  %v2784_v60 = vld [vmem:[%s4167_s19 + $0x10] sm:$0xff] }
  0xc7   : > { %3706 = vpow2.f32 %v1604_v57  ;;  %v1540_v26 = vand.u32 2147483647, %v776_v11  ;;  %vm4425_vm3 = vcmp.lt.f32.partialorder %v1672_v7, 0.0004427343  ;;  %v854_v37 = vmax.f32 %v591_v3, 0.0  ;;  %v4450_v2 = vld [vmem:[%s4162_s14 + $0x90] sm:$0xff] }
  0xc8   : > { %630 = vmatmul.bf16.gmra.mxu0 %v514_v41  ;;  %815 = vmatmul.bf16.gmra.mxu1 %v3638_v62  ;;  %v950_v25 = vsub.f32 0.0, %v918_v16  ;;  %v2815_v30 = vsub.f32 %v2264_v10, %v2783_v14  ;;  %v1049_v45 = vmul.f32 %v3697_v47, %v1048_v17  ;;  %v1444_v50 = vmax.f32 %v776_v11, 0.0 }
  0xc9   : > { %2216 = vmatmul.bf16.gmra.mxu2 %v514_v41  ;;  %v1572_v15 = vsub.f32 0.0, %v1540_v26  ;;  %v1476_v52 = vmul.f32 0.0, %v776_v11  ;;  %v4435_v55 = vadd.f32 %v2174_v24, %v4389_v34  ;;  %v4437_v56 = vsub.f32 %v854_v37, %v591_v3  ;;  %2562 = vperm.xlu0 %3695, %v4450_v2   ;;  %v2376_v24 = vld [vmem:[%s4157_s30 + $0x10] sm:$0xff] }
  0xca   : > { %2305 = vmatmul.bf16.gmra.mxu3 %v514_v41  ;;  %v3701_v27 = vpop.eup %3700  ;;  %v984_v40 = vmul.f32 1.442695, %v950_v25  ;;  %v1671_v41 = vmul.f32 %v3699_v53, %v1670_v18  ;;  %v2847_v9 = vmul.f32 %v2815_v30, %v2815_v30  ;;  %v4443_v58 = vsel %vm1364_vm1, %v4364_v8, 0.0  ;;  %v3639_v26 = vld [vmem:[%s4152_s27 + $0x50] sm:$0xff] }
  0xcb   : > { %v3703_v33 = vpop.eup %3702  ;;  %v1053_v35 = vadd.f32 1.0, %v3701_v27  ;;  %v1056_v36 = vmul.f32 -0.5, %v3701_v27  ;;  %v1059_v57 = vand.u32 2147483647, %v3701_v27  ;;  %v1606_v0 = vmul.f32 1.442695, %v1572_v15 }
  0xcc   : > { %v3705_v43 = vpop.eup %3704  ;;  %v1046_v44 = vmul.f32 0.6931472, %v3703_v33  ;;  %v2878_v4 = vadd.f32 %v2847_v9, %v2846_v22  ;;  %v4452_v5 = vsub.f32 %v1444_v50, %v1476_v52  ;;  %v2177_v16 = vpop.f32.mrf.mxu2 }
  0xcd   : > { %v3707_v48 = vpop.eup %3706  ;;  %v1668_v49 = vmul.f32 0.6931472, %v3705_v43  ;;  %3708 = vlog2.f32 %v1053_v35  ;;  %v1057_v54 = vadd.f32 1.0, %v1056_v36  ;;  %v593_v47 = vpop.f32.mrf.mxu0  ;;  %v2178_v22 = vadd.f32 %v2177_v16, %v4389_v34  ;;  %v2785_v16 = vld [vmem:[%s4167_s19 + $0x18] sm:$0xff] }
  0xce   : > { %v1675_v38 = vadd.f32 1.0, %v3707_v48  ;;  %v1678_v51 = vmul.f32 -0.5, %v3707_v48  ;;  %3710 = vpow2.f32 %v984_v40  ;;  %v1052_v53 = vsel %vm4421_vm2, %v1049_v45, %v1046_v44  ;;  %v2266_v59 = vpop.f32.mrf.mxu3  ;;  %v4454_v8 = vpop.f32.mrf.mxu1 }
  0xcf   : > { %v1674_v61 = vsel %vm4425_vm3, %v1671_v41, %v1668_v49  ;;  %v1681_v62 = vand.u32 2147483647, %v3707_v48  ;;  %v2267_v1 = vadd.f32 %v2266_v59, %v4385_v29  ;;  %v919_v7 = vand.u32 2147483647, %v593_v47 }
  0xd0   : > { %3712 = vlog2.f32 %v1675_v38  ;;  %v1679_v3 = vadd.f32 1.0, %v1678_v51  ;;  %v1332_v11 = vadd.f32 %v1052_v53, %v4405_v63  ;;  %v1058_v14 = vmul.f32 %v3701_v27, %v1057_v54 }
  0xd1   : > { %3714 = vpow2.f32 %v1606_v0  ;;  %v2816_v17 = vsub.f32 %v2267_v1, %v2784_v60  ;;  %v1954_v18 = vadd.f32 %v1674_v61, %v4409_v6  ;;  %v951_v25 = vsub.f32 0.0, %v919_v7 }
  0xd2   : > { %vm4462_vm4 = vcmp.lt.f32.partialorder %v1059_v57, 0.0004427343  ;;  %vm4466_vm5 = vcmp.lt.f32.partialorder %v1681_v62, 0.0004427343  ;;  %v1541_v27 = vand.u32 2147483647, %v4454_v8  ;;  %v1680_v33 = vmul.f32 %v3707_v48, %v1679_v3 }
  0xd3   : > { %v3709_v10 = vpop.eup %3708  ;;  %v2848_v63 = vmul.f32 %v2816_v17, %v2816_v17  ;;  %v855_v36 = vmax.f32 %v593_v47, 0.0  ;;  %v986_v44 = vmul.f32 1.442695, %v951_v25  ;;  %v1365_v45 = vsel %vm1364_vm1, %v1332_v11, 0.0 }
  0xd4   : > { %v1055_v21 = vmul.f32 0.6931472, %v3709_v10  ;;  %v3711_v28 = vpop.eup %3710  ;;  %v1986_v41 = vsel %vm1364_vm1, %v1954_v18, 0.0  ;;  %v4477_v49 = vsub.f32 %v2178_v22, %v2376_v24  ;;  %v1573_v38 = vsub.f32 0.0, %v1541_v27 }
  0xd5   : > { %v1062_v35 = vadd.f32 1.0, %v3711_v28  ;;  %v1065_v40 = vmul.f32 -0.5, %v3711_v28  ;;  %v4473_v43 = vadd.f32 %v2878_v4, %v2848_v63  ;;  %v4483_v51 = vpop.f32.mrf.mxu0  ;;  %v4488_v54 = vsub.f32 %v855_v36, %v593_v47  ;;  %v2179_v4 = vpop.f32.mrf.mxu2 }
  0xd6   : > { %v3713_v32 = vpop.eup %3712  ;;  %v1061_v6 = vsel %vm4462_vm4, %v1058_v14, %v1055_v21  ;;  %v1445_v53 = vmax.f32 %v4454_v8, 0.0  ;;  %v1068_v57 = vand.u32 2147483647, %v3711_v28  ;;  %v1608_v60 = vmul.f32 1.442695, %v1573_v38  ;;  %v2268_v7 = vpop.f32.mrf.mxu3  ;;  %v3640_v38 = vld [vmem:[%s4152_s27 + $0x58] sm:$0xff] }
  0xd7   : > { %v1677_v37 = vmul.f32 0.6931472, %v3713_v32  ;;  %3716 = vlog2.f32 %v1062_v35  ;;  %v3715_v50 = vpop.eup %3714  ;;  %v1333_v48 = vadd.f32 %v1061_v6, %v4414_v13  ;;  %v1066_v13 = vadd.f32 1.0, %v1065_v40 }
  0xd8   : > { %635 = vmatmul.bf16.gmra.mxu0 %v4419_v20  ;;  %820 = vmatmul.bf16.gmra.mxu1 %v3639_v26  ;;  %3718 = vpow2.f32 %v986_v44  ;;  %v1684_v52 = vadd.f32 1.0, %v3715_v50  ;;  %v1687_v59 = vmul.f32 -0.5, %v3715_v50  ;;  %v1477_v62 = vmul.f32 0.0, %v4454_v8 }
  0xd9   : > { %v1683_v15 = vsel %vm4466_vm5, %v1680_v33, %v1677_v37  ;;  %2221 = vmatmul.bf16.gmra.mxu2 %v4419_v20  ;;  %v920_v0 = vand.u32 2147483647, %v4483_v51  ;;  %v1366_v47 = vsel %vm1364_vm1, %v1333_v48, 0.0  ;;  %v1690_v11 = vand.u32 2147483647, %v3715_v50 }
  0xda   : > { %2310 = vmatmul.bf16.gmra.mxu3 %v4419_v20  ;;  %v1955_v9 = vadd.f32 %v1683_v15, %v4417_v19  ;;  %3720 = vlog2.f32 %v1684_v52  ;;  %v4494_v20 = vpop.f32.mrf.mxu1  ;;  %v4497_v19 = vld [vmem:[%s4162_s14 + $0x98] sm:$0xff]  ;;  %v1688_v1 = vadd.f32 1.0, %v1687_v59  ;;  %v4502_v14 = vadd.f32 %v2179_v4, %v4389_v34 }
  0xdb   : > { %3722 = vpow2.f32 %v1608_v60  ;;  %2567 = vperm.xlu1 %3693, %v4497_v19   ;;  %v2269_v8 = vadd.f32 %v2268_v7, %v4385_v29  ;;  %v952_v17 = vsub.f32 0.0, %v920_v0  ;;  %v1067_v22 = vmul.f32 %v3711_v28, %v1066_v13 }
  0xdc   : > { %v1987_v61 = vsel %vm1364_vm1, %v1955_v9, 0.0  ;;  %vm1069_vm6 = vcmp.lt.f32.partialorder %v1068_v57, 0.0004427343  ;;  %v1542_v24 = vand.u32 2147483647, %v4494_v20  ;;  %v1367_v25 = vadd.f32 %v1366_v47, %v1365_v45 }
  0xdd   : > { %v1988_v3 = vadd.f32 %v1987_v61, %v1986_v41  ;;  %v3717_v10 = vpop.eup %3716  ;;  %v1689_v26 = vmul.f32 %v3715_v50, %v1688_v1  ;;  %v856_v31 = vmax.f32 %v4483_v51, 0.0  ;;  %v988_v32 = vmul.f32 1.442695, %v952_v17 }
  0xde   : > { %v3719_v18 = vpop.eup %3718  ;;  %v1064_v21 = vmul.f32 0.6931472, %v3717_v10  ;;  %v1574_v6 = vsub.f32 0.0, %v1542_v24  ;;  %vm4509_vm7 = vcmp.lt.f32.partialorder %v1690_v11, 0.0004427343  ;;  %v2817_v28 = vsub.f32 %v2269_v8, %v2785_v16  ;;  %v2271_v10 = vpop.f32.mrf.mxu3 }
  0xdf   : > { %v1071_v30 = vadd.f32 1.0, %v3719_v18  ;;  %v1074_v27 = vmul.f32 -0.5, %v3719_v18  ;;  %v1446_v44 = vmax.f32 %v4494_v20, 0.0  ;;  %v1478_v15 = vmul.f32 0.0, %v4494_v20  ;;  %v2473_v24 = vpop.permute.xlu1 %2472 }
  0xe0   : > { %v1070_v63 = vsel %vm1069_vm6, %v1067_v22, %v1064_v21  ;;  %v3721_v33 = vpop.eup %3720  ;;  %v1610_v45 = vmul.f32 1.442695, %v1574_v6  ;;  %v1077_v57 = vand.u32 2147483647, %v3719_v18  ;;  %v2732_v59 = vadd.f32 %v4394_v39, %v4432_v46 }
  0xe1   : > { %v1334_v35 = vadd.f32 %v1070_v63, %v4437_v56  ;;  %3724 = vlog2.f32 %v1071_v30  ;;  %v3723_v37 = vpop.eup %3722  ;;  %v1686_v40 = vmul.f32 0.6931472, %v3721_v33  ;;  %v1075_v52 = vadd.f32 1.0, %v1074_v27  ;;  %v4553_v30 = vld [vmem:[%s4162_s14 + $0x88] sm:$0xff]  ;;  %v2182_v27 = vpop.f32.mrf.mxu2 }
  0xe2   : > { %3726 = vpow2.f32 %v988_v32  ;;  %v1693_v50 = vadd.f32 1.0, %v3723_v37  ;;  %v1696_v48 = vmul.f32 -0.5, %v3723_v37  ;;  %v1509_v60 = vsub.f32 %v1445_v53, %v1477_v62  ;;  %v4535_v53 = vld [vmem:[%s4162_s14 + $0xb0] sm:$0xff]  ;;  %2557 = vperm.xlu2 %3694, %v4553_v30  }
  0xe3   : > { %v1368_v41 = vsel %vm1364_vm1, %v1334_v35, 0.0  ;;  %v1692_v9 = vsel %vm4509_vm7, %v1689_v26, %v1686_v40  ;;  %3728 = vpow2.f32 %v1610_v45  ;;  %v2849_v61 = vmul.f32 %v2817_v28, %v2817_v28  ;;  %2582 = vperm.xlu1 %3693, %v4535_v53   ;;  %v2786_v26 = vld [vmem:[%s4167_s19 + $0x20] sm:$0xff]  ;;  %v2483_v35 = vpop.permute.xlu2 %2482  ;;  %v4569_v45 = vpop.f32.mrf.mxu1 }
  0xe4   : > { %v4517_v56 = vadd.f32 %v1368_v41, %v1367_v25  ;;  %v1956_v13 = vadd.f32 %v1692_v9, %v4452_v5  ;;  %3730 = vlog2.f32 %v1693_v50  ;;  %v4525_v0 = vsub.f32 %v856_v31, %v4483_v51 }
  0xe5   : > { %v2733_v20 = vsel %vm1364_vm1, %v4397_v42, 0.0  ;;  %v1697_v4 = vadd.f32 1.0, %v1696_v48  ;;  %v1699_v7 = vand.u32 2147483647, %v3723_v37  ;;  %v1076_v46 = vmul.f32 %v3719_v18, %v1075_v52 }
  0xe6   : > { %v1989_v1 = vsel %vm1364_vm1, %v1956_v13, 0.0  ;;  %v2734_v5 = vadd.f32 %v2733_v20, %v2732_v59  ;;  %v4532_v51 = vsub.f32 %v1446_v44, %v1478_v15  ;;  %vm4537_vm8 = vcmp.lt.f32.partialorder %v1077_v57, 0.0004427343  ;;  %v2378_v44 = vld [vmem:[%s4157_s30 + $0x20] sm:$0xff]  ;;  %v2377_v20 = vld [vmem:[%s4157_s30 + $0x18] sm:$0xff] }
  0xe7   : > { %v3725_v47 = vpop.eup %3724  ;;  %v4530_v8 = vadd.f32 %v1989_v1, %v1988_v3  ;;  %v2438_v3 = vmul.f32 %v4412_v12, %v4412_v12  ;;  %v2880_v21 = vadd.f32 %v4473_v43, %v2849_v61  ;;  %v2272_v25 = vadd.f32 %v2271_v10, %v4385_v29  ;;  %v4561_v43 = vpop.f32.mrf.mxu0  ;;  %v2375_v61 = vld [vmem:[%s4157_s30 + $0x8] sm:$0xff] }
  0xe8   : > { %825 = vmatmul.bf16.gmra.mxu1 %v3640_v38  ;;  %v3727_v11 = vpop.eup %3726  ;;  %v1073_v39 = vmul.f32 0.6931472, %v3725_v47  ;;  %v4542_v16 = vadd.f32 %v4443_v58, %v2734_v5  ;;  %v1698_v31 = vmul.f32 %v3723_v37, %v1697_v4  ;;  %vm4555_vm9 = vcmp.lt.f32.partialorder %v1699_v7, 0.0004427343  ;;  %v2273_v10 = vpop.f32.mrf.mxu3 }
  0xe9   : > { %v1080_v62 = vadd.f32 1.0, %v3727_v11  ;;  %v3729_v17 = vpop.eup %3728  ;;  %v1083_v22 = vmul.f32 -0.5, %v3727_v11  ;;  %v2440_v63 = vmul.f32 %v4477_v49, %v4477_v49  ;;  %v2183_v36 = vadd.f32 %v2182_v27, %v4389_v34 }
  0xea   : > { %v1079_v18 = vsel %vm4537_vm8, %v1076_v46, %v1073_v39  ;;  %v3731_v58 = vpop.eup %3730  ;;  %v1702_v6 = vadd.f32 1.0, %v3729_v17  ;;  %v1705_v33 = vmul.f32 -0.5, %v3729_v17  ;;  %v1086_v37 = vand.u32 2147483647, %v3727_v11  ;;  %v4588_v39 = vld [vmem:[%s4162_s14 + $0xc8] sm:$0xff] }
  0xeb   : > { %3732 = vlog2.f32 %v1080_v62  ;;  %v1695_v32 = vmul.f32 0.6931472, %v3731_v58  ;;  %v1335_v28 = vadd.f32 %v1079_v18, %v4488_v54  ;;  %v4566_v40 = vmul.f32 %v2473_v24, %v2438_v3  ;;  %2597 = vperm.xlu1 %3693, %v4588_v39   ;;  %v2478_v58 = vpop.permute.xlu1 %2477 }
  0xec   : > { %v2818_v49 = vsub.f32 %v2272_v25, %v2786_v26  ;;  %v1084_v50 = vadd.f32 1.0, %v1083_v22  ;;  %3734 = vlog2.f32 %v1702_v6  ;;  %v1708_v48 = vand.u32 2147483647, %v3729_v17 }
  0xed   : > { %v1701_v41 = vsel %vm4555_vm9, %v1698_v31, %v1695_v32  ;;  %v1706_v15 = vadd.f32 1.0, %v1705_v33  ;;  %v4573_v38 = vmul.f32 %v2483_v35, %v2440_v63  ;;  %v921_v9 = vand.u32 2147483647, %v4561_v43  ;;  %v2488_v32 = vpop.permute.xlu2 %2487  ;;  %v2787_v33 = vld [vmem:[%s4167_s19 + $0x28] sm:$0xff] }
  0xee   : > { %v2850_v54 = vmul.f32 %v2818_v49, %v2818_v49  ;;  %v1957_v52 = vadd.f32 %v1701_v41, %v1509_v60  ;;  %v2410_v13 = vsub.f32 %v2183_v36, %v2378_v44  ;;  %v857_v57 = vmax.f32 %v4561_v43, 0.0 }
  0xef   : > { %v1543_v59 = vand.u32 2147483647, %v4569_v45  ;;  %v1370_v1 = vsel %vm1364_vm1, %v1335_v28, 0.0  ;;  %vm4581_vm10 = vcmp.lt.f32.partialorder %v1086_v37, 0.0004427343  ;;  %v953_v5 = vsub.f32 0.0, %v921_v9  ;;  %v4602_v27 = vpop.f32.mrf.mxu0  ;;  %v2184_v28 = vpop.f32.mrf.mxu2 }
  0xf0   : > { %v4585_v7 = vadd.f32 %v2880_v21, %v2850_v54  ;;  %v1085_v46 = vmul.f32 %v3727_v11, %v1084_v50  ;;  %vm4590_vm11 = vcmp.lt.f32.partialorder %v1708_v48, 0.0004427343  ;;  %v1707_v3 = vmul.f32 %v3729_v17, %v1706_v15  ;;  %v2493_v50 = vpop.permute.xlu0 %2492  ;;  %v4616_v48 = vld [vmem:[%s4162_s14 + $0xa8] sm:$0xff]  ;;  %v3641_v15 = vld [vmem:[%s4152_s27 + $0x60] sm:$0xff] }
  0xf1   : > { %v3733_v47 = vpop.eup %3732  ;;  %v1575_v62 = vsub.f32 0.0, %v1543_v59  ;;  %v990_v18 = vmul.f32 1.442695, %v953_v5  ;;  %v2407_v22 = vsub.f32 %v4435_v55, %v2375_v61  ;;  %v2409_v21 = vsub.f32 %v4502_v14, %v2377_v20  ;;  %v786_v61 = vpop.f32.mrf.mxu1  ;;  %2577 = vperm.xlu0 %3695, %v4616_v48  }
  0xf2   : > { %v1082_v60 = vmul.f32 0.6931472, %v3733_v47  ;;  %v3735_v24 = vpop.eup %3734  ;;  %v1991_v25 = vsel %vm1364_vm1, %v1957_v52, 0.0  ;;  %v2274_v31 = vadd.f32 %v2273_v10, %v4385_v29  ;;  %v1371_v55 = vadd.f32 %v1370_v1, %v4517_v56 }
  0xf3   : > { %v1612_v26 = vmul.f32 1.442695, %v1575_v62  ;;  %v1704_v63 = vmul.f32 0.6931472, %v3735_v24  ;;  %3736 = vpow2.f32 %v990_v18  ;;  %v2439_v17 = vmul.f32 %v2407_v22, %v2407_v22  ;;  %v495_v62 = vld [vmem:[%s4147_s24 + $0xb0] sm:$0xff]  ;;  %v2276_v24 = vpop.f32.mrf.mxu3 }
  0xf4   : > { %v1088_v11 = vsel %vm4581_vm10, %v1085_v46, %v1082_v60  ;;  %v1447_v14 = vmax.f32 %v4569_v45, 0.0  ;;  %v2441_v6 = vmul.f32 %v2409_v21, %v2409_v21  ;;  %v2442_v37 = vmul.f32 %v2410_v13, %v2410_v13  ;;  %v2379_v21 = vld [vmem:[%s4157_s30 + $0x28] sm:$0xff] }
  0xf5   : > { %v1336_v12 = vadd.f32 %v1088_v11, %v4525_v0  ;;  %3738 = vpow2.f32 %v1612_v26  ;;  %v1710_v0 = vsel %vm4590_vm11, %v1707_v3, %v1704_v63  ;;  %v2631_v36 = vmul.f32 %v2478_v58, %v2439_v17  ;;  %v2788_v17 = vld [vmem:[%s4167_s19 + $0x30] sm:$0xff] }
  0xf6   : > { %v1958_v56 = vadd.f32 %v1710_v0, %v4532_v51  ;;  %v1992_v49 = vadd.f32 %v1991_v25, %v4530_v8  ;;  %v1479_v41 = vmul.f32 0.0, %v4569_v45  ;;  %v2633_v9 = vmul.f32 %v2488_v32, %v2441_v6 }
  0xf7   : > { %v1372_v35 = vsel %vm1364_vm1, %v1336_v12, 0.0  ;;  %v2662_v54 = vadd.f32 %v2631_v36, %v4566_v40  ;;  %v2819_v52 = vsub.f32 %v2274_v31, %v2787_v33  ;;  %v922_v59 = vand.u32 2147483647, %v4602_v27  ;;  %v4654_v58 = vpop.f32.mrf.mxu0  ;;  %v2187_v33 = vpop.f32.mrf.mxu2 }
  0xf8   : > { %v4610_v44 = vadd.f32 %v1372_v35, %v1371_v55  ;;  %v4624_v51 = vsel %vm1364_vm1, %v4379_v23, 0.0  ;;  %v1993_v8 = vsel %vm1364_vm1, %v1958_v56, 0.0  ;;  %v4628_v45 = vsub.f32 %v857_v57, %v4561_v43  ;;  %830 = vmatmul.bf16.gmra.mxu1 %v3641_v15  ;;  %v4659_v55 = vld [vmem:[%s4162_s14 + $0xe0] sm:$0xff] }
  0xf9   : > { %v4632_v13 = vsel %vm1364_vm1, %v4450_v2, 0.0  ;;  %v4634_v40 = vpop.eup %3736  ;;  %v4636_v20 = vadd.f32 %v1993_v8, %v1992_v49  ;;  %v2663_v47 = vadd.f32 %v2662_v54, %v4573_v38  ;;  %v2634_v23 = vmul.f32 %v2493_v50, %v2442_v37  ;;  %v496_v38 = vld [vmem:[%s4147_s24 + $0xb8] sm:$0xff]  ;;  %2612 = vperm.xlu1 %3693, %v4659_v55   ;;  %v4675_v50 = vpop.f32.mrf.mxu1  ;;  %v2380_v8 = vld [vmem:[%s4157_s30 + $0x30] sm:$0xff] }
  0xfa   : > { %v954_v1 = vsub.f32 0.0, %v922_v59  ;;  %v1089_v43 = vadd.f32 1.0, %v4634_v40  ;;  %v4642_v57 = vsub.f32 %v1447_v14, %v1479_v41  ;;  %v2185_v2 = vadd.f32 %v2184_v28, %v4389_v34 }
  0xfb   : > { %v4639_v4 = vpop.eup %3738  ;;  %v1544_v5 = vand.u32 2147483647, %v786_v61  ;;  %v2664_v60 = vadd.f32 %v2663_v47, %v2633_v9  ;;  %v2851_v46 = vmul.f32 %v2819_v52, %v2819_v52  ;;  %v858_v42 = vmax.f32 %v4602_v27, 0.0 }
  0xfc   : > { %v1711_v10 = vadd.f32 1.0, %v4639_v4  ;;  %3740 = vlog2.f32 %v1089_v43  ;;  %v992_v3 = vmul.f32 1.442695, %v954_v1  ;;  %v1448_v18 = vmax.f32 %v786_v61, 0.0  ;;  %v2498_v43 = vpop.permute.xlu1 %2497 }
  0xfd   : > { %v1480_v22 = vmul.f32 0.0, %v786_v61  ;;  %v1092_v25 = vmul.f32 -0.5, %v4634_v40  ;;  %v1714_v11 = vmul.f32 -0.5, %v4639_v4  ;;  %v4652_v26 = vadd.f32 %v2664_v60, %v2634_v23 }
  0xfe   : > { %3742 = vlog2.f32 %v1711_v10  ;;  %v1095_v31 = vand.u32 2147483647, %v4634_v40  ;;  %v1576_v12 = vsub.f32 0.0, %v1544_v5  ;;  %v516_v63 = vpack.c.bf16 %v496_v38, %v495_v62 }
  0xff   : > { %3744 = vpow2.f32 %v992_v3  ;;  %v1717_v14 = vand.u32 2147483647, %v4639_v4  ;;  %v4664_v32 = vsel %vm1364_vm1, %v4497_v19, 0.0  ;;  %v2411_v6 = vsub.f32 %v2185_v2, %v2379_v21  ;;  %v2372_v21 = vld [vmem:[%s4162_s14 + $0xf8] sm:$0xff] }
 0x100   : > { %v2277_v35 = vadd.f32 %v2276_v24, %v4385_v29  ;;  %v2882_v0 = vadd.f32 %v4585_v7, %v2851_v46  ;;  %v4670_v36 = vsub.f32 %v858_v42, %v4602_v27  ;;  %v1614_v28 = vmul.f32 1.442695, %v1576_v12  ;;  %640 = vmatmul.bf16.gmra.mxu0 %v516_v63  ;;  %2226 = vmatmul.bf16.gmra.mxu2 %v516_v63  ;;  %v2789_v7 = vld [vmem:[%s4167_s19 + $0x38] sm:$0xff] }
 0x101   : > { %v923_v37 = vand.u32 2147483647, %v4654_v58  ;;  %v1093_v56 = vadd.f32 1.0, %v1092_v25  ;;  %v1715_v19 = vadd.f32 1.0, %v1714_v11  ;;  %v4673_v49 = vsub.f32 %v1448_v18, %v1480_v22  ;;  %2315 = vmatmul.bf16.gmra.mxu3 %v516_v63  ;;  %2627 = vperm.xlu1 %3693, %v2372_v21   ;;  %v4742_v21 = vpop.f32.mrf.mxu1 }
 0x102   : > { %v2820_v41 = vsub.f32 %v2277_v35, %v2788_v17  ;;  %v3741_v15 = vpop.eup %3740  ;;  %vm4677_vm12 = vcmp.lt.f32.partialorder %v1095_v31, 0.0004427343  ;;  %3746 = vpow2.f32 %v1614_v28  ;;  %v2188_v27 = vadd.f32 %v2187_v33, %v4389_v34  ;;  %v2278_v17 = vpop.f32.mrf.mxu3  ;;  %v4715_v28 = vld [vmem:[%s4162_s14 + $0xa0] sm:$0xff] }
 0x103   : > { %v955_v54 = vsub.f32 0.0, %v923_v37  ;;  %v1091_v52 = vmul.f32 0.6931472, %v3741_v15  ;;  %vm4682_vm13 = vcmp.lt.f32.partialorder %v1717_v14, 0.0004427343  ;;  %v2443_v61 = vmul.f32 %v2411_v6, %v2411_v6  ;;  %2572 = vperm.xlu2 %3694, %v4715_v28  }
 0x104   : > { %v3743_v9 = vpop.eup %3742  ;;  %v2852_v47 = vmul.f32 %v2820_v41, %v2820_v41  ;;  %v1545_v5 = vand.u32 2147483647, %v4675_v50  ;;  %v2738_v10 = vadd.f32 %v4624_v51, %v4542_v16  ;;  %v1094_v60 = vmul.f32 %v4634_v40, %v1093_v56 }
 0x105   : > { %v3745_v23 = vpop.eup %3744  ;;  %v1713_v1 = vmul.f32 0.6931472, %v3743_v9  ;;  %v994_v2 = vmul.f32 1.442695, %v955_v54  ;;  %v1716_v46 = vmul.f32 %v4639_v4, %v1715_v19  ;;  %v859_v62 = vmax.f32 %v4654_v58, 0.0 }
 0x106   : > { %v1098_v42 = vadd.f32 1.0, %v3745_v23  ;;  %v1101_v38 = vmul.f32 -0.5, %v3745_v23  ;;  %v2412_v3 = vsub.f32 %v2188_v27, %v2380_v8  ;;  %v4693_v18 = vadd.f32 %v2882_v0, %v2852_v47  ;;  %v2503_v0 = vpop.permute.xlu2 %2502 }
 0x107   : > { %v4697_v22 = vsel %vm1364_vm1, %v4535_v53, 0.0  ;;  %v1097_v24 = vsel %vm4677_vm12, %v1094_v60, %v1091_v52  ;;  %v2635_v16 = vmul.f32 %v2498_v43, %v2443_v61  ;;  %v1449_v51 = vmax.f32 %v4675_v50, 0.0 }
 0x108   : > { %3748 = vlog2.f32 %v1098_v42  ;;  %v3747_v40 = vpop.eup %3746  ;;  %v1719_v4 = vsel %vm4682_vm13, %v1716_v46, %v1713_v1  ;;  %v1577_v25 = vsub.f32 0.0, %v1545_v5  ;;  %v2739_v53 = vsel %vm1364_vm1, %v4553_v30, 0.0  ;;  %v3642_v42 = vld [vmem:[%s4152_s27 + $0x68] sm:$0xff] }
 0x109   : > { %3750 = vpow2.f32 %v994_v2  ;;  %v1104_v11 = vand.u32 2147483647, %v3745_v23  ;;  %v1720_v31 = vadd.f32 1.0, %v3747_v40  ;;  %v4708_v12 = vsub.f32 %v859_v62, %v4654_v58  ;;  %v606_v58 = vpop.f32.mrf.mxu0  ;;  %835 = vmatmul.bf16.gmra.mxu1 %v3642_v42 }
 0x10a   : > { %v4711_v63 = vmul.f32 0.0, %v4675_v50  ;;  %v1337_v14 = vadd.f32 %v1097_v24, %v4628_v45  ;;  %v1102_v6 = vadd.f32 1.0, %v1101_v38  ;;  %v1723_v33 = vmul.f32 -0.5, %v3747_v40  ;;  %v2189_v45 = vpop.f32.mrf.mxu2 }
 0x10b   : > { %v1616_v35 = vmul.f32 1.442695, %v1577_v25  ;;  %v1959_v30 = vadd.f32 %v1719_v4, %v4642_v57  ;;  %3752 = vlog2.f32 %v1720_v31  ;;  %v2740_v37 = vadd.f32 %v2739_v53, %v2738_v10  ;;  %v497_v31 = vld [vmem:[%s4147_s24 + $0xc0] sm:$0xff] }
 0x10c   : > { %v2444_v56 = vmul.f32 %v2412_v3, %v2412_v3  ;;  %v1724_v19 = vadd.f32 1.0, %v1723_v33  ;;  %v2666_v41 = vadd.f32 %v4652_v26, %v2635_v16  ;;  %v2279_v15 = vadd.f32 %v2278_v17, %v4385_v29  ;;  %v498_v17 = vld [vmem:[%s4147_s24 + $0xc8] sm:$0xff]  ;;  %v4787_v3 = vpop.f32.mrf.mxu1 }
 0x10d   : > { %3754 = vpow2.f32 %v1616_v35  ;;  %vm4722_vm14 = vcmp.lt.f32.partialorder %v1104_v11, 0.0004427343  ;;  %v1726_v57 = vand.u32 2147483647, %v3747_v40  ;;  %v4727_v9 = vadd.f32 %v4632_v13, %v2740_v37  ;;  %v2381_v35 = vld [vmem:[%s4157_s30 + $0x38] sm:$0xff] }
 0x10e   : > { %v3749_v27 = vpop.eup %3748  ;;  %v2636_v52 = vmul.f32 %v2503_v0, %v2444_v56  ;;  %v1374_v61 = vsel %vm1364_vm1, %v1337_v14, 0.0  ;;  %v1103_v8 = vmul.f32 %v3745_v23, %v1102_v6  ;;  %v924_v47 = vand.u32 2147483647, %v606_v58  ;;  %v2281_v56 = vpop.f32.mrf.mxu3 }
 0x10f   : > { %v3751_v59 = vpop.eup %3750  ;;  %v1100_v26 = vmul.f32 0.6931472, %v3749_v27  ;;  %v1995_v1 = vsel %vm1364_vm1, %v1959_v30, 0.0  ;;  %v2821_v5 = vsub.f32 %v2279_v15, %v2789_v7  ;;  %v1725_v60 = vmul.f32 %v3747_v40, %v1724_v19 }
 0x110   : > { %v1107_v43 = vadd.f32 1.0, %v3751_v59  ;;  %v4731_v2 = vadd.f32 %v2666_v41, %v2636_v52  ;;  %v1110_v46 = vmul.f32 -0.5, %v3751_v59  ;;  %v956_v13 = vsub.f32 0.0, %v924_v47  ;;  %v2790_v47 = vld [vmem:[%s4167_s19 + $0x40] sm:$0xff] }
 0x111   : > { %v1106_v10 = vsel %vm4722_vm14, %v1103_v8, %v1100_v26  ;;  %v3753_v62 = vpop.eup %3752  ;;  %v1375_v23 = vadd.f32 %v1374_v61, %v4610_v44  ;;  %vm4738_vm15 = vcmp.lt.f32.partialorder %v1726_v57, 0.0004427343  ;;  %v2190_v40 = vadd.f32 %v2189_v45, %v4389_v34  ;;  %v4775_v52 = vpop.f32.mrf.mxu0 }
 0x112   : > { %v1338_v38 = vadd.f32 %v1106_v10, %v4670_v36  ;;  %3756 = vlog2.f32 %v1107_v43  ;;  %v1722_v16 = vmul.f32 0.6931472, %v3753_v62  ;;  %v860_v4 = vmax.f32 %v606_v58, 0.0  ;;  %v2192_v7 = vpop.f32.mrf.mxu2 }
 0x113   : > { %v4744_v24 = vpop.eup %3754  ;;  %v996_v25 = vmul.f32 1.442695, %v956_v13  ;;  %v1113_v53 = vand.u32 2147483647, %v3751_v59  ;;  %v2853_v11 = vmul.f32 %v2821_v5, %v2821_v5  ;;  %v1111_v33 = vadd.f32 1.0, %v1110_v46 }
 0x114   : > { %v1376_v36 = vsel %vm1364_vm1, %v1338_v38, 0.0  ;;  %v1729_v44 = vadd.f32 1.0, %v4744_v24  ;;  %v1728_v6 = vsel %vm4738_vm15, %v1725_v60, %v1722_v16  ;;  %v4760_v30 = vsub.f32 %v1449_v51, %v4711_v63  ;;  %v2382_v60 = vld [vmem:[%s4157_s30 + $0x40] sm:$0xff]  ;;  %v2508_v38 = vpop.permute.xlu1 %2507 }
 0x115   : > { %v4751_v14 = vadd.f32 %v1376_v36, %v1375_v23  ;;  %3758 = vpow2.f32 %v996_v25  ;;  %v1960_v0 = vadd.f32 %v1728_v6, %v4673_v49  ;;  %v1732_v37 = vmul.f32 -0.5, %v4744_v24  ;;  %v4790_v16 = vld [vmem:[%s4162_s14 + $0xc0] sm:$0xff] }
 0x116   : > { %3760 = vlog2.f32 %v1729_v44  ;;  %v1996_v19 = vadd.f32 %v1995_v1, %v4636_v20  ;;  %v4764_v41 = vsub.f32 %v860_v4, %v606_v58  ;;  %v1546_v45 = vand.u32 2147483647, %v4742_v21  ;;  %2592 = vperm.xlu0 %3695, %v4790_v16   ;;  %v4796_v44 = vld [vmem:[%s4162_s14 + $0xb8] sm:$0xff] }
 0x117   : > { %v517_v15 = vpack.c.bf16 %v498_v17, %v497_v31  ;;  %v1997_v49 = vsel %vm1364_vm1, %v1960_v0, 0.0  ;;  %vm4768_vm0 = vcmp.lt.f32.partialorder %v1113_v53, 0.0004427343  ;;  %v2884_v51 = vadd.f32 %v4693_v18, %v2853_v11  ;;  %2587 = vperm.xlu2 %3694, %v4796_v44   ;;  %v2283_v0 = vpop.f32.mrf.mxu3 }
 0x118   : > { %v3757_v27 = vpop.eup %3756  ;;  %v2413_v63 = vsub.f32 %v2190_v40, %v2381_v35  ;;  %v4773_v54 = vadd.f32 %v1997_v49, %v1996_v19  ;;  %v1112_v58 = vmul.f32 %v3751_v59, %v1111_v33  ;;  %v1578_v57 = vsub.f32 0.0, %v1546_v45  ;;  %v2513_v49 = vpop.permute.xlu2 %2512 }
 0x119   : > { %v1109_v20 = vmul.f32 0.6931472, %v3757_v27  ;;  %645 = vmatmul.bf16.gmra.mxu0 %v517_v15  ;;  %2231 = vmatmul.bf16.gmra.mxu2 %v517_v15  ;;  %v1733_v61 = vadd.f32 1.0, %v1732_v37  ;;  %v1450_v26 = vmax.f32 %v4742_v21, 0.0  ;;  %v2193_v8 = vadd.f32 %v2192_v7, %v4389_v34 }
 0x11a   : > { %2320 = vmatmul.bf16.gmra.mxu3 %v517_v15  ;;  %v2282_v18 = vadd.f32 %v2281_v56, %v4385_v29  ;;  %v1735_v43 = vand.u32 2147483647, %v4744_v24  ;;  %v1618_v5 = vmul.f32 1.442695, %v1578_v57  ;;  %v2445_v10 = vmul.f32 %v2413_v63, %v2413_v63  ;;  %v2791_v57 = vld [vmem:[%s4167_s19 + $0x48] sm:$0xff] }
 0x11b   : > { %v3759_v1 = vpop.eup %3758  ;;  %v1115_v59 = vsel %vm4768_vm0, %v1112_v58, %v1109_v20  ;;  %v925_v23 = vand.u32 2147483647, %v4775_v52  ;;  %v1482_v4 = vmul.f32 0.0, %v4742_v21  ;;  %v1734_v36 = vmul.f32 %v4744_v24, %v1733_v61 }
 0x11c   : > { %v3761_v46 = vpop.eup %3760  ;;  %v1339_v13 = vadd.f32 %v1115_v59, %v4708_v12  ;;  %v1116_v42 = vadd.f32 1.0, %v3759_v1  ;;  %v1119_v62 = vmul.f32 -0.5, %v3759_v1  ;;  %3762 = vpow2.f32 %v1618_v5  ;;  %v611_v5 = vpop.f32.mrf.mxu0 }
 0x11d   : > { %v1731_v40 = vmul.f32 0.6931472, %v3761_v46  ;;  %v2822_v25 = vsub.f32 %v2282_v18, %v2790_v47  ;;  %v1122_v12 = vand.u32 2147483647, %v3759_v1  ;;  %v2414_v53 = vsub.f32 %v2193_v8, %v2382_v60  ;;  %v4827_v46 = vpop.f32.mrf.mxu1 }
 0x11e   : > { %3764 = vlog2.f32 %v1116_v42  ;;  %v1378_v11 = vsel %vm1364_vm1, %v1339_v13, 0.0  ;;  %vm4799_vm2 = vcmp.lt.f32.partialorder %v1735_v43, 0.0004427343  ;;  %v2637_v17 = vmul.f32 %v2508_v38, %v2445_v10  ;;  %v2194_v10 = vpop.f32.mrf.mxu2 }
 0x11f   : > { %v2854_v6 = vmul.f32 %v2822_v25, %v2822_v25  ;;  %v1737_v21 = vsel %vm4799_vm2, %v1734_v36, %v1731_v40  ;;  %v1120_v33 = vadd.f32 1.0, %v1119_v62  ;;  %v4808_v24 = vsel %vm1364_vm1, %v4616_v48, 0.0  ;;  %v3643_v40 = vld [vmem:[%s4152_s27 + $0x70] sm:$0xff] }
 0x120   : > { %v957_v35 = vsub.f32 0.0, %v925_v23  ;;  %v4810_v37 = vsub.f32 %v1450_v26, %v1482_v4  ;;  %v861_v19 = vmax.f32 %v4775_v52, 0.0  ;;  %v1547_v45 = vand.u32 2147483647, %v4787_v3  ;;  %840 = vmatmul.bf16.gmra.mxu1 %v3643_v40 }
 0x121   : > { %v2885_v56 = vadd.f32 %v2884_v51, %v2854_v6  ;;  %vm4814_vm3 = vcmp.lt.f32.partialorder %v1122_v12, 0.0004427343  ;;  %v1379_v7 = vadd.f32 %v1378_v11, %v4751_v14  ;;  %v2446_v48 = vmul.f32 %v2414_v53, %v2414_v53 }
 0x122   : > { %v998_v27 = vmul.f32 1.442695, %v957_v35  ;;  %v3763_v50 = vpop.eup %3762  ;;  %v1961_v63 = vadd.f32 %v1737_v21, %v4760_v30  ;;  %v2668_v20 = vadd.f32 %v4731_v2, %v2637_v17  ;;  %v1579_v58 = vsub.f32 0.0, %v1547_v45 }
 0x123   : > { %v2284_v51 = vadd.f32 %v2283_v0, %v4385_v29  ;;  %v1121_v26 = vmul.f32 %v3759_v1, %v1120_v33  ;;  %v1738_v8 = vadd.f32 1.0, %v3763_v50  ;;  %v1741_v18 = vmul.f32 -0.5, %v3763_v50  ;;  %v4852_v0 = vld [vmem:[%s4162_s14 + $0xd0] sm:$0xff] }
 0x124   : > { %v3765_v61 = vpop.eup %3764  ;;  %3766 = vpow2.f32 %v998_v27  ;;  %v1744_v59 = vand.u32 2147483647, %v3763_v50  ;;  %v1620_v14 = vmul.f32 1.442695, %v1579_v58  ;;  %v2638_v43 = vmul.f32 %v2513_v49, %v2446_v48  ;;  %2602 = vperm.xlu2 %3694, %v4852_v0   ;;  %v500_v58 = vld [vmem:[%s4147_s24 + $0xd8] sm:$0xff] }
 0x125   : > { %v1118_v47 = vmul.f32 0.6931472, %v3765_v61  ;;  %3768 = vlog2.f32 %v1738_v8  ;;  %v4824_v30 = vsub.f32 %v861_v19, %v4775_v52  ;;  %v1451_v2 = vmax.f32 %v4787_v3, 0.0 }
 0x126   : > { %v2823_v60 = vsub.f32 %v2284_v51, %v2791_v57  ;;  %v1742_v13 = vadd.f32 1.0, %v1741_v18  ;;  %3770 = vpow2.f32 %v1620_v14  ;;  %v4831_v42 = vadd.f32 %v2668_v20, %v2638_v43  ;;  %v499_v20 = vld [vmem:[%s4147_s24 + $0xd0] sm:$0xff] }
 0x127   : > { %v1124_v1 = vsel %vm4814_vm3, %v1121_v26, %v1118_v47  ;;  %v1483_v38 = vmul.f32 0.0, %v4787_v3  ;;  %v926_v23 = vand.u32 2147483647, %v611_v5  ;;  %v1999_v4 = vsel %vm1364_vm1, %v1961_v63, 0.0  ;;  %v2286_v26 = vpop.f32.mrf.mxu3  ;;  %v2518_v47 = vpop.permute.xlu1 %2517 }
 0x128   : > { %v1340_v62 = vadd.f32 %v1124_v1, %v4764_v41  ;;  %v2855_v52 = vmul.f32 %v2823_v60, %v2823_v60  ;;  %vm4837_vm4 = vcmp.lt.f32.partialorder %v1744_v59, 0.0004427343  ;;  %v2195_v36 = vadd.f32 %v2194_v10, %v4389_v34  ;;  %v2383_v41 = vld [vmem:[%s4157_s30 + $0x48] sm:$0xff]  ;;  %v4867_v59 = vpop.f32.mrf.mxu0  ;;  %v2792_v10 = vld [vmem:[%s4167_s19 + $0x50] sm:$0xff] }
 0x129   : > { %v1548_v12 = vand.u32 2147483647, %v4827_v46  ;;  %v958_v3 = vsub.f32 0.0, %v926_v23  ;;  %v2744_v17 = vadd.f32 %v4664_v32, %v4727_v9  ;;  %v1743_v21 = vmul.f32 %v3763_v50, %v1742_v13 }
 0x12a   : > { %v3767_v53 = vpop.eup %3766  ;;  %v1380_v11 = vsel %vm1364_vm1, %v1340_v62, 0.0  ;;  %v4845_v31 = vadd.f32 %v2885_v56, %v2855_v52  ;;  %v862_v35 = vmax.f32 %v611_v5, 0.0  ;;  %v2745_v56 = vsel %vm1364_vm1, %v4715_v28, 0.0  ;;  %v2197_v62 = vpop.f32.mrf.mxu2 }
 0x12b   : > { %v4849_v6 = vadd.f32 %v1380_v11, %v1379_v7  ;;  %v1125_v33 = vadd.f32 1.0, %v3767_v53  ;;  %v3769_v19 = vpop.eup %3768  ;;  %v1128_v45 = vmul.f32 -0.5, %v3767_v53  ;;  %v1000_v15 = vmul.f32 1.442695, %v958_v3 }
 0x12c   : > { %v1580_v27 = vsub.f32 0.0, %v1548_v12  ;;  %v3771_v32 = vpop.eup %3770  ;;  %v1740_v9 = vmul.f32 0.6931472, %v3769_v19  ;;  %v2000_v7 = vadd.f32 %v1999_v4, %v4773_v54  ;;  %v2415_v49 = vsub.f32 %v2195_v36, %v2383_v41 }
 0x12d   : > { %3772 = vlog2.f32 %v1125_v33  ;;  %v4858_v48 = vsub.f32 %v1451_v2, %v1483_v38  ;;  %v1747_v50 = vadd.f32 1.0, %v3771_v32  ;;  %v1750_v63 = vmul.f32 -0.5, %v3771_v32 }
 0x12e   : > { %3774 = vpow2.f32 %v1000_v15  ;;  %v1746_v51 = vsel %vm4837_vm4, %v1743_v21, %v1740_v9  ;;  %v1131_v28 = vand.u32 2147483647, %v3767_v53  ;;  %v1622_v57 = vmul.f32 1.442695, %v1580_v27  ;;  %v2370_v21 = vld [vmem:[%s4162_s14 + $0xe8] sm:$0xff]  ;;  %v2384_v15 = vld [vmem:[%s4157_s30 + $0x50] sm:$0xff] }
 0x12f   : > { %v2746_v61 = vadd.f32 %v2745_v56, %v2744_v17  ;;  %v1962_v8 = vadd.f32 %v1746_v51, %v4810_v37  ;;  %v1129_v54 = vadd.f32 1.0, %v1128_v45  ;;  %3776 = vlog2.f32 %v1747_v50  ;;  %2617 = vperm.xlu2 %3694, %v2370_v21   ;;  %v4890_v51 = vpop.f32.mrf.mxu1 }
 0x130   : > { %v4865_v18 = vsub.f32 %v862_v35, %v611_v5  ;;  %3778 = vpow2.f32 %v1622_v57  ;;  %v518_v43 = vpack.c.bf16 %v500_v58, %v499_v20  ;;  %v2447_v2 = vmul.f32 %v2415_v49, %v2415_v49 }
 0x131   : > { %v2748_v14 = vadd.f32 %v4808_v24, %v2746_v61  ;;  %v2001_v60 = vsel %vm1364_vm1, %v1962_v8, 0.0  ;;  %v1751_v1 = vadd.f32 1.0, %v1750_v63  ;;  %v1452_v13 = vmax.f32 %v4827_v46, 0.0 }
 0x132   : > { %v2287_v37 = vadd.f32 %v2286_v26, %v4385_v29  ;;  %v2002_v5 = vadd.f32 %v2001_v60, %v2000_v7  ;;  %vm4874_vm5 = vcmp.lt.f32.partialorder %v1131_v28, 0.0004427343  ;;  %650 = vmatmul.bf16.gmra.mxu0 %v518_v43  ;;  %2236 = vmatmul.bf16.gmra.mxu2 %v518_v43  ;;  %v2639_v24 = vmul.f32 %v2518_v47, %v2447_v2  ;;  %v2288_v2 = vpop.f32.mrf.mxu3 }
 0x133   : > { %v3773_v38 = vpop.eup %3772  ;;  %v927_v23 = vand.u32 2147483647, %v4867_v59  ;;  %v1130_v25 = vmul.f32 %v3767_v53, %v1129_v54  ;;  %v1753_v36 = vand.u32 2147483647, %v3771_v32  ;;  %2325 = vmatmul.bf16.gmra.mxu3 %v518_v43  ;;  %v2198_v17 = vadd.f32 %v2197_v62, %v4389_v34 }
 0x134   : > { %v3775_v40 = vpop.eup %3774  ;;  %v1127_v4 = vmul.f32 0.6931472, %v3773_v38  ;;  %v2824_v12 = vsub.f32 %v2287_v37, %v2792_v10  ;;  %v4880_v3 = vadd.f32 %v4831_v42, %v2639_v24  ;;  %v1752_v19 = vmul.f32 %v3771_v32, %v1751_v1  ;;  %v2523_v37 = vpop.permute.xlu2 %2522 }
 0x135   : > { %v1134_v11 = vadd.f32 1.0, %v3775_v40  ;;  %v1137_v41 = vmul.f32 -0.5, %v3775_v40  ;;  %v3777_v33 = vpop.eup %3776  ;;  %v1140_v45 = vand.u32 2147483647, %v3775_v40  ;;  %v959_v7 = vsub.f32 0.0, %v927_v23 }
 0x136   : > { %v1133_v35 = vsel %vm4874_vm5, %v1130_v25, %v1127_v4  ;;  %v2856_v27 = vmul.f32 %v2824_v12, %v2824_v12  ;;  %v3779_v53 = vpop.eup %3778  ;;  %v1749_v9 = vmul.f32 0.6931472, %v3777_v33  ;;  %vm1754_vm6 = vcmp.lt.f32.partialorder %v1753_v36, 0.0004427343 }
 0x137   : > { %v1341_v56 = vadd.f32 %v1133_v35, %v4824_v30  ;;  %3780 = vlog2.f32 %v1134_v11  ;;  %v1138_v42 = vadd.f32 1.0, %v1137_v41  ;;  %v1756_v49 = vadd.f32 1.0, %v3779_v53  ;;  %v4918_v41 = vld [vmem:[%s4162_s14 + $0xd8] sm:$0xff]  ;;  %v502_v30 = vld [vmem:[%s4147_s24 + $0xe8] sm:$0xff] }
 0x138   : > { %v1759_v50 = vmul.f32 -0.5, %v3779_v53  ;;  %v1755_v20 = vsel %vm1754_vm6, %v1752_v19, %v1749_v9  ;;  %v2416_v58 = vsub.f32 %v2198_v17, %v2384_v15  ;;  %v2887_v32 = vadd.f32 %v4845_v31, %v2856_v27  ;;  %2607 = vperm.xlu0 %3695, %v4918_v41   ;;  %v3644_v27 = vld [vmem:[%s4152_s27 + $0x78] sm:$0xff]  ;;  %v4933_v9 = vpop.f32.mrf.mxu1 }
 0x139   : > { %v1382_v63 = vsel %vm1364_vm1, %v1341_v56, 0.0  ;;  %v1963_v57 = vadd.f32 %v1755_v20, %v4858_v48  ;;  %vm4894_vm7 = vcmp.lt.f32.partialorder %v1140_v45, 0.0004427343  ;;  %3782 = vlog2.f32 %v1756_v49  ;;  %v4902_v48 = vpop.f32.mrf.mxu0  ;;  %845 = vmatmul.bf16.gmra.mxu1 %v3644_v27 }
 0x13a   : > { %v1383_v28 = vadd.f32 %v1382_v63, %v4849_v6  ;;  %v1484_v61 = vmul.f32 0.0, %v4827_v46  ;;  %v1760_v26 = vadd.f32 1.0, %v1759_v50  ;;  %v1762_v8 = vand.u32 2147483647, %v3779_v53 }
 0x13b   : > { %v1002_v54 = vmul.f32 1.442695, %v959_v7  ;;  %v2003_v47 = vsel %vm1364_vm1, %v1963_v57, 0.0  ;;  %v1139_v31 = vmul.f32 %v3775_v40, %v1138_v42  ;;  %v1549_v43 = vand.u32 2147483647, %v4890_v51  ;;  %v2793_v40 = vld [vmem:[%s4167_s19 + $0x58] sm:$0xff] }
 0x13c   : > { %v2750_v6 = vadd.f32 %v4697_v22, %v2748_v14  ;;  %v2004_v60 = vadd.f32 %v2003_v47, %v2002_v5  ;;  %v2753_v1 = vsel %vm1364_vm1, %v4790_v16, 0.0  ;;  %v2751_v62 = vsel %vm1364_vm1, %v4796_v44, 0.0  ;;  %v2199_v5 = vpop.f32.mrf.mxu2  ;;  %v501_v57 = vld [vmem:[%s4147_s24 + $0xe0] sm:$0xff] }
 0x13d   : > { %v3781_v10 = vpop.eup %3780  ;;  %3784 = vpow2.f32 %v1002_v54  ;;  %v1581_v52 = vsub.f32 0.0, %v1549_v43  ;;  %v2448_v23 = vmul.f32 %v2416_v58, %v2416_v58  ;;  %v1761_v22 = vmul.f32 %v3779_v53, %v1760_v26 }
 0x13e   : > { %v1136_v38 = vmul.f32 0.6931472, %v3781_v10  ;;  %v2752_v24 = vadd.f32 %v2751_v62, %v2750_v6  ;;  %vm4909_vm8 = vcmp.lt.f32.partialorder %v1762_v8, 0.0004427343  ;;  %v2289_v4 = vadd.f32 %v2288_v2, %v4385_v29  ;;  %v2291_v6 = vpop.f32.mrf.mxu3 }
 0x13f   : > { %v928_v16 = vand.u32 2147483647, %v4902_v48  ;;  %v3783_v25 = vpop.eup %3782  ;;  %v1624_v36 = vmul.f32 1.442695, %v1581_v52  ;;  %v2640_v11 = vmul.f32 %v2523_v37, %v2448_v23  ;;  %v1516_v21 = vsub.f32 %v1452_v13, %v1484_v61  ;;  %v2385_v13 = vld [vmem:[%s4157_s30 + $0x58] sm:$0xff]  ;;  %v2528_v37 = vpop.permute.xlu1 %2527 }
 0x140   : > { %v1142_v44 = vsel %vm4894_vm7, %v1139_v31, %v1136_v38  ;;  %v2754_v12 = vadd.f32 %v2753_v1, %v2752_v24  ;;  %v1758_v33 = vmul.f32 0.6931472, %v3783_v25  ;;  %v2825_v35 = vsub.f32 %v2289_v4, %v2793_v40  ;;  %v2794_v40 = vld [vmem:[%s4167_s19 + $0x60] sm:$0xff] }
 0x141   : > { %v1342_v17 = vadd.f32 %v1142_v44, %v4865_v18  ;;  %3786 = vpow2.f32 %v1624_v36  ;;  %v4925_v19 = vadd.f32 %v4880_v3, %v2640_v11  ;;  %v2200_v45 = vadd.f32 %v2199_v5, %v4389_v34  ;;  %v2371_v44 = vld [vmem:[%s4162_s14 + $0xf0] sm:$0xff] }
 0x142   : > { %v960_v15 = vsub.f32 0.0, %v928_v16  ;;  %v1764_v46 = vsel %vm4909_vm8, %v1761_v22, %v1758_v33  ;;  %v2857_v56 = vmul.f32 %v2825_v35, %v2825_v35  ;;  %v2755_v50 = vsel %vm1364_vm1, %v4588_v39, 0.0  ;;  %v4955_v22 = vpop.f32.mrf.mxu0  ;;  %2622 = vperm.xlu0 %3695, %v2371_v44  }
 0x143   : > { %v3785_v53 = vpop.eup %3784  ;;  %v1384_v18 = vsel %vm1364_vm1, %v1342_v17, 0.0  ;;  %v1964_v3 = vadd.f32 %v1764_v46, %v1516_v21  ;;  %v863_v63 = vmax.f32 %v4867_v59, 0.0  ;;  %v2417_v26 = vsub.f32 %v2200_v45, %v2385_v13  ;;  %v2386_v45 = vld [vmem:[%s4157_s30 + $0x60] sm:$0xff]  ;;  %v4965_v46 = vpop.f32.mrf.mxu1 }
 0x144   : > { %v4935_v7 = vadd.f32 %v1384_v18, %v1383_v28  ;;  %v1143_v42 = vadd.f32 1.0, %v3785_v53  ;;  %v1146_v49 = vmul.f32 -0.5, %v3785_v53  ;;  %v4940_v20 = vadd.f32 %v2887_v32, %v2857_v56 }
 0x145   : > { %v1004_v58 = vmul.f32 1.442695, %v960_v15  ;;  %v2005_v61 = vsel %vm1364_vm1, %v1964_v3, 0.0  ;;  %v1550_v28 = vand.u32 2147483647, %v4933_v9  ;;  %v1453_v54 = vmax.f32 %v4890_v51, 0.0 }
 0x146   : > { %3788 = vlog2.f32 %v1143_v42  ;;  %v4946_v8 = vadd.f32 %v2005_v61, %v2004_v60  ;;  %v1147_v39 = vadd.f32 1.0, %v1146_v49  ;;  %v519_v32 = vpack.c.bf16 %v502_v30, %v501_v57  ;;  %v2202_v60 = vpop.f32.mrf.mxu2 }
 0x147   : > { %3790 = vpow2.f32 %v1004_v58  ;;  %v3787_v47 = vpop.eup %3786  ;;  %v1582_v31 = vsub.f32 0.0, %v1550_v28  ;;  %v2756_v43 = vadd.f32 %v2755_v50, %v2754_v12  ;;  %v895_v2 = vsub.f32 %v863_v63, %v4867_v59 }
 0x148   : > { %v1765_v10 = vadd.f32 1.0, %v3787_v47  ;;  %v1768_v1 = vmul.f32 -0.5, %v3787_v47  ;;  %v2757_v62 = vsel %vm1364_vm1, %v4852_v0, 0.0  ;;  %v1149_v38 = vand.u32 2147483647, %v3785_v53  ;;  %655 = vmatmul.bf16.gmra.mxu0 %v519_v32  ;;  %2241 = vmatmul.bf16.gmra.mxu2 %v519_v32 }
 0x149   : > { %v1626_v52 = vmul.f32 1.442695, %v1582_v31  ;;  %v4952_v24 = vadd.f32 %v2757_v62, %v2756_v43  ;;  %v2449_v23 = vmul.f32 %v2417_v26, %v2417_v26  ;;  %v1485_v59 = vmul.f32 0.0, %v4890_v51  ;;  %2330 = vmatmul.bf16.gmra.mxu3 %v519_v32 }
 0x14a   : > { %3792 = vlog2.f32 %v1765_v10  ;;  %v864_v14 = vmax.f32 %v4902_v48, 0.0  ;;  %v2292_v0 = vadd.f32 %v2291_v6, %v4385_v29  ;;  %v1148_v4 = vmul.f32 %v3785_v53, %v1147_v39 }
 0x14b   : > { %3794 = vpow2.f32 %v1626_v52  ;;  %v2641_v16 = vmul.f32 %v2528_v37, %v2449_v23  ;;  %v2203_v25 = vadd.f32 %v2202_v60, %v4389_v34  ;;  %v1769_v11 = vadd.f32 1.0, %v1768_v1  ;;  %v4977_v52 = vpop.f32.mrf.mxu0 }
 0x14c   : > { %v3789_v5 = vpop.eup %3788  ;;  %v2826_v17 = vsub.f32 %v2292_v0, %v2794_v40  ;;  %v929_v51 = vand.u32 2147483647, %v4955_v22  ;;  %vm1150_vm9 = vcmp.lt.f32.partialorder %v1149_v38, 0.0004427343  ;;  %v1771_v27 = vand.u32 2147483647, %v3787_v47 }
 0x14d   : > { %v3791_v36 = vpop.eup %3790  ;;  %v1145_v12 = vmul.f32 0.6931472, %v3789_v5  ;;  %v2672_v35 = vadd.f32 %v4925_v19, %v2641_v16  ;;  %v1517_v56 = vsub.f32 %v1453_v54, %v1485_v59  ;;  %v896_v3 = vsub.f32 %v864_v14, %v4902_v48  ;;  %v2795_v38 = vld [vmem:[%s4167_s19 + $0x68] sm:$0xff] }
 0x14e   : > { %v1152_v21 = vadd.f32 1.0, %v3791_v36  ;;  %v1155_v33 = vmul.f32 -0.5, %v3791_v36  ;;  %v2858_v53 = vmul.f32 %v2826_v17, %v2826_v17  ;;  %v961_v18 = vsub.f32 0.0, %v929_v51  ;;  %v2204_v60 = vpop.f32.mrf.mxu2 }
 0x14f   : > { %v1151_v15 = vsel %vm1150_vm9, %v1148_v4, %v1145_v12  ;;  %v1770_v49 = vmul.f32 %v3787_v47, %v1769_v11  ;;  %v2418_v50 = vsub.f32 %v2203_v25, %v2386_v45  ;;  %v1551_v26 = vand.u32 2147483647, %v4965_v46 }
 0x150   : > { %v1343_v13 = vadd.f32 %v1151_v15, %v895_v2  ;;  %3796 = vlog2.f32 %v1152_v21  ;;  %v3793_v42 = vpop.eup %3792  ;;  %v4969_v63 = vadd.f32 %v4940_v20, %v2858_v53  ;;  %v1006_v58 = vmul.f32 1.442695, %v961_v18  ;;  %v2293_v20 = vpop.f32.mrf.mxu3  ;;  %v2387_v18 = vld [vmem:[%s4157_s30 + $0x68] sm:$0xff] }
 0x151   : > { %v3795_v19 = vpop.eup %3794  ;;  %v1767_v30 = vmul.f32 0.6931472, %v3793_v42  ;;  %v1156_v61 = vadd.f32 1.0, %v1155_v33  ;;  %vm1772_vm10 = vcmp.lt.f32.partialorder %v1771_v27, 0.0004427343  ;;  %v1583_v31 = vsub.f32 0.0, %v1551_v26  ;;  %v2533_v2 = vpop.permute.xlu2 %2532 }
 0x152   : > { %v1386_v57 = vsel %vm1364_vm1, %v1343_v13, 0.0  ;;  %v1774_v54 = vadd.f32 1.0, %v3795_v19  ;;  %v1777_v48 = vmul.f32 -0.5, %v3795_v19  ;;  %v1158_v47 = vand.u32 2147483647, %v3791_v36 }
 0x153   : > { %v1387_v28 = vadd.f32 %v1386_v57, %v4935_v7  ;;  %v1773_v39 = vsel %vm1772_vm10, %v1770_v49, %v1767_v30  ;;  %3798 = vpow2.f32 %v1006_v58  ;;  %v1454_v43 = vmax.f32 %v4933_v9, 0.0 }
 0x154   : > { %v1965_v32 = vadd.f32 %v1773_v39, %v1517_v56  ;;  %v1486_v6 = vmul.f32 0.0, %v4933_v9  ;;  %3800 = vlog2.f32 %v1774_v54  ;;  %v1157_v1 = vmul.f32 %v3791_v36, %v1156_v61  ;;  %v504_v54 = vld [vmem:[%s4147_s24 + $0xf8] sm:$0xff] }
 0x155   : > { %v1778_v62 = vadd.f32 1.0, %v1777_v48  ;;  %v1628_v7 = vmul.f32 1.442695, %v1583_v31  ;;  %v2450_v37 = vmul.f32 %v2418_v50, %v2418_v50  ;;  %v1780_v59 = vand.u32 2147483647, %v3795_v19 }
 0x156   : > { %v3797_v10 = vpop.eup %3796  ;;  %v2007_v23 = vsel %vm1364_vm1, %v1965_v32, 0.0  ;;  %v2294_v14 = vadd.f32 %v2293_v20, %v4385_v29  ;;  %vm1159_vm11 = vcmp.lt.f32.partialorder %v1158_v47, 0.0004427343  ;;  %v865_v4 = vmax.f32 %v4955_v22, 0.0  ;;  %v2207_v47 = vpop.f32.mrf.mxu2 }
 0x157   : > { %v1154_v40 = vmul.f32 0.6931472, %v3797_v10  ;;  %v2008_v0 = vadd.f32 %v2007_v23, %v4946_v8  ;;  %3802 = vpow2.f32 %v1628_v7  ;;  %v2642_v9 = vmul.f32 %v2533_v2, %v2450_v37  ;;  %v2796_v23 = vld [vmem:[%s4167_s19 + $0x70] sm:$0xff] }
 0x158   : > { %v2827_v16 = vsub.f32 %v2294_v14, %v2795_v38  ;;  %v930_v25 = vand.u32 2147483647, %v4977_v52  ;;  %v2761_v36 = vsel %vm1364_vm1, %v4659_v55, 0.0  ;;  %v1779_v11 = vmul.f32 %v3795_v19, %v1778_v62  ;;  %v2296_v32 = vpop.f32.mrf.mxu3  ;;  %v5013_v62 = vpop.f32.mrf.mxu0  ;;  %v2388_v14 = vld [vmem:[%s4157_s30 + $0x70] sm:$0xff] }
 0x159   : > { %v1160_v5 = vsel %vm1159_vm11, %v1157_v1, %v1154_v40  ;;  %v3799_v44 = vpop.eup %3798  ;;  %v4986_v17 = vadd.f32 %v2672_v35, %v2642_v9  ;;  %vm4988_vm12 = vcmp.lt.f32.partialorder %v1780_v59, 0.0004427343  ;;  %v2205_v33 = vadd.f32 %v2204_v60, %v4389_v34  ;;  %v2538_v1 = vpop.permute.xlu1 %2537 }
 0x15a   : > { %v1344_v12 = vadd.f32 %v1160_v5, %v896_v3  ;;  %v3801_v51 = vpop.eup %3800  ;;  %v1161_v21 = vadd.f32 1.0, %v3799_v44  ;;  %v2859_v45 = vmul.f32 %v2827_v16, %v2827_v16  ;;  %v1164_v53 = vmul.f32 -0.5, %v3799_v44  ;;  %v4998_v3 = vpop.f32.mrf.mxu1 }
 0x15b   : > { %v1776_v27 = vmul.f32 0.6931472, %v3801_v51  ;;  %v962_v55 = vsub.f32 0.0, %v930_v25  ;;  %v1518_v35 = vsub.f32 %v1454_v43, %v1486_v6  ;;  %v897_v56 = vsub.f32 %v865_v4, %v4955_v22 }
 0x15c   : > { %v1388_v15 = vsel %vm1364_vm1, %v1344_v12, 0.0  ;;  %3804 = vlog2.f32 %v1161_v21  ;;  %v1455_v50 = vmax.f32 %v4965_v46, 0.0  ;;  %v5004_v58 = vadd.f32 %v4969_v63, %v2859_v45 }
 0x15d   : > { %v4995_v13 = vadd.f32 %v1388_v15, %v1387_v28  ;;  %v3803_v42 = vpop.eup %3802  ;;  %v1782_v49 = vsel %vm4988_vm12, %v1779_v11, %v1776_v27  ;;  %v1008_v19 = vmul.f32 1.442695, %v962_v55  ;;  %v2419_v26 = vsub.f32 %v2205_v33, %v2387_v18  ;;  %v503_v28 = vld [vmem:[%s4147_s24 + $0xf0] sm:$0xff] }
 0x15e   : > { %v1966_v57 = vadd.f32 %v1782_v49, %v1518_v35  ;;  %v1783_v30 = vadd.f32 1.0, %v3803_v42  ;;  %v1786_v61 = vmul.f32 -0.5, %v3803_v42  ;;  %v1165_v22 = vadd.f32 1.0, %v1164_v53 }
 0x15f   : > { %3806 = vpow2.f32 %v1008_v19  ;;  %v1552_v48 = vand.u32 2147483647, %v4998_v3  ;;  %v2759_v39 = vsel %vm1364_vm1, %v4918_v41, 0.0  ;;  %v1167_v63 = vand.u32 2147483647, %v3799_v44 }
 0x160   : > { %v2009_v31 = vsel %vm1364_vm1, %v1966_v57, 0.0  ;;  %3808 = vlog2.f32 %v1783_v30  ;;  %v2760_v20 = vadd.f32 %v2759_v39, %v4952_v24  ;;  %v1787_v6 = vadd.f32 1.0, %v1786_v61  ;;  %v2298_v30 = vpop.f32.mrf.mxu3 }
 0x161   : > { %v2010_v43 = vadd.f32 %v2009_v31, %v2008_v0  ;;  %v1584_v2 = vsub.f32 0.0, %v1552_v48  ;;  %v520_v10 = vpack.c.bf16 %v504_v54, %v503_v28  ;;  %v1487_v41 = vmul.f32 0.0, %v4965_v46  ;;  %v2209_v54 = vpop.f32.mrf.mxu2 }
 0x162   : > { %v3805_v7 = vpop.eup %3804  ;;  %v5016_v37 = vadd.f32 %v2761_v36, %v2760_v20  ;;  %v2451_v60 = vmul.f32 %v2419_v26, %v2419_v26  ;;  %v2208_v38 = vadd.f32 %v2207_v47, %v4389_v34  ;;  %v1166_v24 = vmul.f32 %v3799_v44, %v1165_v22  ;;  %v5024_v27 = vpop.f32.mrf.mxu1 }
 0x163   : > { %v1163_v40 = vmul.f32 0.6931472, %v3805_v7  ;;  %v1630_v59 = vmul.f32 1.442695, %v1584_v2  ;;  %660 = vmatmul.bf16.gmra.mxu0 %v520_v10  ;;  %2246 = vmatmul.bf16.gmra.mxu2 %v520_v10  ;;  %v2297_v0 = vadd.f32 %v2296_v32, %v4385_v29  ;;  %vm1168_vm13 = vcmp.lt.f32.partialorder %v1167_v63, 0.0004427343  ;;  %v5036_v20 = vpop.f32.mrf.mxu0 }
 0x164   : > { %v1789_v9 = vand.u32 2147483647, %v3803_v42  ;;  %2335 = vmatmul.bf16.gmra.mxu3 %v520_v10  ;;  %v2643_v5 = vmul.f32 %v2538_v1, %v2451_v60  ;;  %v931_v46 = vand.u32 2147483647, %v5013_v62  ;;  %v1788_v25 = vmul.f32 %v3803_v42, %v1787_v6  ;;  %v2797_v1 = vld [vmem:[%s4167_s19 + $0x78] sm:$0xff] }
 0x165   : > { %v3807_v4 = vpop.eup %3806  ;;  %v1169_v16 = vsel %vm1168_vm13, %v1166_v24, %v1163_v40  ;;  %3810 = vpow2.f32 %v1630_v59  ;;  %v2828_v36 = vsub.f32 %v2297_v0, %v2796_v23  ;;  %v2420_v8 = vsub.f32 %v2208_v38, %v2388_v14  ;;  %v2389_v38 = vld [vmem:[%s4157_s30 + $0x78] sm:$0xff] }
 0x166   : > { %v3809_v12 = vpop.eup %3808  ;;  %v1345_v11 = vadd.f32 %v1169_v16, %v897_v56  ;;  %v1170_v44 = vadd.f32 1.0, %v3807_v4  ;;  %v1173_v51 = vmul.f32 -0.5, %v3807_v4  ;;  %v2674_v33 = vadd.f32 %v4986_v17, %v2643_v5  ;;  %v2543_v17 = vpop.permute.xlu2 %2542 }
 0x167   : > { %v1785_v21 = vmul.f32 0.6931472, %v3809_v12  ;;  %v2860_v45 = vmul.f32 %v2828_v36, %v2828_v36  ;;  %v963_v15 = vsub.f32 0.0, %v931_v46  ;;  %v1519_v18 = vsub.f32 %v1455_v50, %v1487_v41 }
 0x168   : > { %v1390_v53 = vsel %vm1364_vm1, %v1345_v11, 0.0  ;;  %vm1790_vm14 = vcmp.lt.f32.partialorder %v1789_v9, 0.0004427343  ;;  %3812 = vlog2.f32 %v1170_v44  ;;  %v1174_v19 = vadd.f32 1.0, %v1173_v51 }
 0x169   : > { %v1391_v55 = vadd.f32 %v1390_v53, %v4995_v13  ;;  %v1791_v35 = vsel %vm1790_vm14, %v1788_v25, %v1785_v21  ;;  %v2891_v56 = vadd.f32 %v5004_v58, %v2860_v45  ;;  %v1010_v42 = vmul.f32 1.442695, %v963_v15  ;;  %v2301_v21 = vpop.f32.mrf.mxu3 }
 0x16a   : > { %v1967_v49 = vadd.f32 %v1791_v35, %v1519_v18  ;;  %v1553_v57 = vand.u32 2147483647, %v5024_v27  ;;  %v866_v26 = vmax.f32 %v4977_v52, 0.0  ;;  %v1456_v28 = vmax.f32 %v4998_v3, 0.0  ;;  %v5045_v16 = vpop.f32.mrf.mxu1  ;;  %v2212_v18 = vpop.f32.mrf.mxu2 }
 0x16b   : > { %v3811_v61 = vpop.eup %3810  ;;  %3814 = vpow2.f32 %v1010_v42  ;;  %v2452_v50 = vmul.f32 %v2420_v8, %v2420_v8  ;;  %v1176_v22 = vand.u32 2147483647, %v3807_v4  ;;  %v1488_v47 = vmul.f32 0.0, %v4998_v3 }
 0x16c   : > { %v2011_v13 = vsel %vm1364_vm1, %v1967_v49, 0.0  ;;  %v1792_v58 = vadd.f32 1.0, %v3811_v61  ;;  %v1795_v48 = vmul.f32 -0.5, %v3811_v61  ;;  %v1585_v31 = vsub.f32 0.0, %v1553_v57 }
 0x16d   : > { %v5033_v39 = vadd.f32 %v2011_v13, %v2010_v43  ;;  %v2644_v63 = vmul.f32 %v2543_v17, %v2452_v50  ;;  %v1175_v6 = vmul.f32 %v3807_v4, %v1174_v19  ;;  %v2210_v10 = vadd.f32 %v2209_v54, %v4389_v34  ;;  %v2548_v19 = vpop.permute.xlu0 %2547  ;;  %v2798_v17 = vld [vmem:[%s4167_s19 + $0x80] sm:$0xff] }
 0x16e   : > { %v3813_v32 = vpop.eup %3812  ;;  %3816 = vlog2.f32 %v1792_v58  ;;  %v1796_v2 = vadd.f32 1.0, %v1795_v48  ;;  %v1632_v41 = vmul.f32 1.442695, %v1585_v31  ;;  %v2299_v43 = vadd.f32 %v2298_v30, %v4385_v29  ;;  %v5060_v48 = vpop.f32.mrf.mxu0 }
 0x16f   : > { %v1172_v7 = vmul.f32 0.6931472, %v3813_v32  ;;  %v2675_v60 = vadd.f32 %v2674_v33, %v2644_v63  ;;  %v898_v23 = vsub.f32 %v866_v26, %v4977_v52  ;;  %vm1177_vm15 = vcmp.lt.f32.partialorder %v1176_v22, 0.0004427343 }
 0x170   : > { %v1798_v3 = vand.u32 2147483647, %v3811_v61  ;;  %v932_v40 = vand.u32 2147483647, %v5036_v20  ;;  %v867_v14 = vmax.f32 %v5013_v62, 0.0  ;;  %3818 = vpow2.f32 %v1632_v41 }
 0x171   : > { %v3815_v24 = vpop.eup %3814  ;;  %v1178_v59 = vsel %vm1177_vm15, %v1175_v6, %v1172_v7  ;;  %v2829_v0 = vsub.f32 %v2299_v43, %v2797_v1  ;;  %v2421_v4 = vsub.f32 %v2210_v10, %v2389_v38  ;;  %v1797_v25 = vmul.f32 %v3811_v61, %v1796_v2  ;;  %v2390_v1 = vld [vmem:[%s4157_s30 + $0x80] sm:$0xff] }
 0x172   : > { %v1346_v9 = vadd.f32 %v1178_v59, %v898_v23  ;;  %v1179_v5 = vadd.f32 1.0, %v3815_v24  ;;  %v1182_v46 = vmul.f32 -0.5, %v3815_v24  ;;  %v1457_v36 = vmax.f32 %v5024_v27, 0.0  ;;  %v5067_v43 = vpop.f32.mrf.mxu1 }
 0x173   : > { %v2861_v52 = vmul.f32 %v2829_v0, %v2829_v0  ;;  %v964_v12 = vsub.f32 0.0, %v932_v40  ;;  %vm5049_vm0 = vcmp.lt.f32.partialorder %v1798_v3, 0.0004427343  ;;  %v1489_v8 = vmul.f32 0.0, %v5024_v27 }
 0x174   : > { %v3817_v11 = vpop.eup %3816  ;;  %v1392_v44 = vsel %vm1364_vm1, %v1346_v9, 0.0  ;;  %3820 = vlog2.f32 %v1179_v5  ;;  %v1520_v35 = vsub.f32 %v1456_v28, %v1488_v47  ;;  %v1183_v42 = vadd.f32 1.0, %v1182_v46 }
 0x175   : > { %v1393_v33 = vadd.f32 %v1392_v44, %v1391_v55  ;;  %v1794_v45 = vmul.f32 0.6931472, %v3817_v11  ;;  %v2892_v15 = vadd.f32 %v2891_v56, %v2861_v52  ;;  %v1012_v53 = vmul.f32 1.442695, %v964_v12 }
 0x176   : > { %v1554_v49 = vand.u32 2147483647, %v5045_v16  ;;  %v2453_v57 = vmul.f32 %v2421_v4, %v2421_v4  ;;  %v3819_v30 = vpop.eup %3818  ;;  %v899_v26 = vsub.f32 %v867_v14, %v5013_v62  ;;  %v2302_v27 = vadd.f32 %v2301_v21, %v4385_v29  ;;  %v2214_v4 = vpop.f32.mrf.mxu2 }
 0x177   : > { %v1800_v61 = vsel %vm5049_vm0, %v1797_v25, %v1794_v45  ;;  %3822 = vpow2.f32 %v1012_v53  ;;  %v1185_v56 = vand.u32 2147483647, %v3815_v24  ;;  %v1801_v50 = vadd.f32 1.0, %v3819_v30  ;;  %v2303_v25 = vpop.f32.mrf.mxu3  ;;  %v2553_v45 = vpop.permute.xlu1 %2552 }
 0x178   : > { %v1968_v55 = vadd.f32 %v1800_v61, %v1520_v35  ;;  %v1804_v28 = vmul.f32 -0.5, %v3819_v30  ;;  %v1521_v54 = vsub.f32 %v1457_v36, %v1489_v8  ;;  %v1586_v13 = vsub.f32 0.0, %v1554_v49  ;;  %v2799_v35 = vld [vmem:[%s4167_s19 + $0x88] sm:$0xff] }
 0x179   : > { %v2645_v22 = vmul.f32 %v2548_v19, %v2453_v57  ;;  %v2830_v58 = vsub.f32 %v2302_v27, %v2798_v17  ;;  %v1184_v63 = vmul.f32 %v3815_v24, %v1183_v42  ;;  %3824 = vlog2.f32 %v1801_v50  ;;  %v2391_v17 = vld [vmem:[%s4157_s30 + $0x88] sm:$0xff]  ;;  %v5078_v50 = vpop.f32.mrf.mxu0 }
 0x17a   : > { %v3821_v47 = vpop.eup %3820  ;;  %v2013_v31 = vsel %vm1364_vm1, %v1968_v55, 0.0  ;;  %v2213_v62 = vadd.f32 %v2212_v18, %v4389_v34  ;;  %v1634_v2 = vmul.f32 1.442695, %v1586_v13  ;;  %vm1186_vm2 = vcmp.lt.f32.partialorder %v1185_v56, 0.0004427343 }
 0x17b   : > { %v2014_v32 = vadd.f32 %v2013_v31, %v5033_v39  ;;  %v1181_v6 = vmul.f32 0.6931472, %v3821_v47  ;;  %v2676_v10 = vadd.f32 %v2675_v60, %v2645_v22  ;;  %v1805_v7 = vadd.f32 1.0, %v1804_v28  ;;  %v5081_v47 = vpop.f32.mrf.mxu1 }
 0x17c   : > { %v2862_v41 = vmul.f32 %v2830_v58, %v2830_v58  ;;  %v933_v38 = vand.u32 2147483647, %v5060_v48  ;;  %v1807_v40 = vand.u32 2147483647, %v3819_v30  ;;  %v868_v24 = vmax.f32 %v5036_v20, 0.0 }
 0x17d   : > { %v3823_v23 = vpop.eup %3822  ;;  %v1187_v3 = vsel %vm1186_vm2, %v1184_v63, %v1181_v6  ;;  %3826 = vpow2.f32 %v1634_v2  ;;  %v2422_v0 = vsub.f32 %v2213_v62, %v2390_v1  ;;  %v1458_v60 = vmax.f32 %v5045_v16, 0.0 }
 0x17e   : > { %v1347_v59 = vadd.f32 %v1187_v3, %v899_v26  ;;  %v1188_v14 = vadd.f32 1.0, %v3823_v23  ;;  %v1191_v39 = vmul.f32 -0.5, %v3823_v23  ;;  %v2893_v9 = vadd.f32 %v2892_v15, %v2862_v41 }
 0x17f   : > { %v965_v5 = vsub.f32 0.0, %v933_v38  ;;  %v1555_v46 = vand.u32 2147483647, %v5067_v43  ;;  %v3825_v36 = vpop.eup %3824  ;;  %v1806_v12 = vmul.f32 %v3819_v30, %v1805_v7  ;;  %vm1808_vm3 = vcmp.lt.f32.partialorder %v1807_v40, 0.0004427343 }
 0x180   : > { %v1394_v52 = vsel %vm1364_vm1, %v1347_v59, 0.0  ;;  %3828 = vlog2.f32 %v1188_v14  ;;  %v1192_v11 = vadd.f32 1.0, %v1191_v39  ;;  %v1803_v51 = vmul.f32 0.6931472, %v3825_v36  ;;  %v2217_v36 = vpop.f32.mrf.mxu2 }
 0x181   : > { %v1395_v44 = vadd.f32 %v1394_v52, %v1393_v33  ;;  %v1014_v8 = vmul.f32 1.442695, %v965_v5  ;;  %v1587_v21 = vsub.f32 0.0, %v1555_v46  ;;  %v2454_v15 = vmul.f32 %v2422_v0, %v2422_v0 }
 0x182   : > { %v2215_v53 = vadd.f32 %v2214_v4, %v4389_v34  ;;  %v2304_v18 = vadd.f32 %v2303_v25, %v4385_v29  ;;  %v1809_v49 = vsel %vm1808_vm3, %v1806_v12, %v1803_v51  ;;  %v1490_v19 = vmul.f32 0.0, %v5045_v16  ;;  %v2558_v25 = vpop.permute.xlu2 %2557 }
 0x183   : > { %v3827_v42 = vpop.eup %3826  ;;  %3830 = vpow2.f32 %v1014_v8  ;;  %v1636_v57 = vmul.f32 1.442695, %v1587_v21  ;;  %v1969_v30 = vadd.f32 %v1809_v49, %v1521_v54  ;;  %v1194_v33 = vand.u32 2147483647, %v3823_v23  ;;  %v5101_v49 = vpop.f32.mrf.mxu0 }
 0x184   : > { %v1810_v61 = vadd.f32 1.0, %v3827_v42  ;;  %v1813_v26 = vmul.f32 -0.5, %v3827_v42  ;;  %v1193_v27 = vmul.f32 %v3823_v23, %v1192_v11  ;;  %v2646_v55 = vmul.f32 %v2553_v45, %v2454_v15 }
 0x185   : > { %3832 = vpow2.f32 %v1636_v57  ;;  %v2831_v56 = vsub.f32 %v2304_v18, %v2799_v35  ;;  %v2015_v13 = vsel %vm1364_vm1, %v1969_v30, 0.0  ;;  %v2423_v58 = vsub.f32 %v2215_v53, %v2391_v17  ;;  %v2306_v53 = vpop.f32.mrf.mxu3  ;;  %v2800_v17 = vld [vmem:[%s4167_s19 + $0x90] sm:$0xff] }
 0x186   : > { %v3829_v28 = vpop.eup %3828  ;;  %3834 = vlog2.f32 %v1810_v61  ;;  %v1814_v22 = vadd.f32 1.0, %v1813_v26  ;;  %v2016_v31 = vadd.f32 %v2015_v13, %v2014_v32  ;;  %v2677_v54 = vadd.f32 %v2676_v10, %v2646_v55 }
 0x187   : > { %v1190_v63 = vmul.f32 0.6931472, %v3829_v28  ;;  %v2863_v62 = vmul.f32 %v2831_v56, %v2831_v56  ;;  %v900_v6 = vsub.f32 %v868_v24, %v5036_v20  ;;  %vm1195_vm4 = vcmp.lt.f32.partialorder %v1194_v33, 0.0004427343  ;;  %v5111_v56 = vpop.f32.mrf.mxu1 }
 0x188   : > { %v1816_v2 = vand.u32 2147483647, %v3827_v42  ;;  %v934_v1 = vand.u32 2147483647, %v5078_v50  ;;  %v869_v38 = vmax.f32 %v5060_v48, 0.0  ;;  %v1815_v59 = vmul.f32 %v3827_v42, %v1814_v22  ;;  %v2392_v42 = vld [vmem:[%s4157_s30 + $0x90] sm:$0xff] }
 0x189   : > { %v3831_v7 = vpop.eup %3830  ;;  %v1196_v41 = vsel %vm1195_vm4, %v1193_v27, %v1190_v63  ;;  %v5086_v23 = vadd.f32 %v2893_v9, %v2863_v62  ;;  %v1556_v3 = vand.u32 2147483647, %v5081_v47  ;;  %v1459_v10 = vmax.f32 %v5067_v43, 0.0 }
 0x18a   : > { %v1348_v40 = vadd.f32 %v1196_v41, %v900_v6  ;;  %v1197_v32 = vadd.f32 1.0, %v3831_v7  ;;  %v1200_v39 = vmul.f32 -0.5, %v3831_v7  ;;  %v966_v20 = vsub.f32 0.0, %v934_v1 }
 0x18b   : > { %v3833_v14 = vpop.eup %3832  ;;  %v1588_v24 = vsub.f32 0.0, %v1556_v3  ;;  %v2455_v0 = vmul.f32 %v2423_v58, %v2423_v58  ;;  %vm5091_vm5 = vcmp.lt.f32.partialorder %v1816_v2, 0.0004427343  ;;  %v1491_v9 = vmul.f32 0.0, %v5067_v43 }
 0x18c   : > { %v3835_v5 = vpop.eup %3834  ;;  %v1396_v46 = vsel %vm1364_vm1, %v1348_v40, 0.0  ;;  %3836 = vlog2.f32 %v1197_v32  ;;  %v1819_v11 = vadd.f32 1.0, %v3833_v14  ;;  %v1822_v51 = vmul.f32 -0.5, %v3833_v14 }
 0x18d   : > { %v1397_v52 = vadd.f32 %v1396_v46, %v1395_v44  ;;  %v1812_v12 = vmul.f32 0.6931472, %v3835_v5  ;;  %v1522_v8 = vsub.f32 %v1458_v60, %v1490_v19  ;;  %v1203_v21 = vand.u32 2147483647, %v3831_v7 }
 0x18e   : > { %v1016_v45 = vmul.f32 1.442695, %v966_v20  ;;  %v1638_v15 = vmul.f32 1.442695, %v1588_v24  ;;  %v1201_v35 = vadd.f32 1.0, %v1200_v39  ;;  %3838 = vlog2.f32 %v1819_v11 }
 0x18f   : > { %v1818_v18 = vsel %vm5091_vm5, %v1815_v59, %v1812_v12  ;;  %v2647_v43 = vmul.f32 %v2558_v25, %v2455_v0  ;;  %v1825_v57 = vand.u32 2147483647, %v3833_v14  ;;  %v2218_v16 = vadd.f32 %v2217_v36, %v4389_v34  ;;  %v2219_v59 = vpop.f32.mrf.mxu2  ;;  %v2563_v25 = vpop.permute.xlu0 %2562 }
 0x190   : > { %v1970_v44 = vadd.f32 %v1818_v18, %v1522_v8  ;;  %3840 = vpow2.f32 %v1016_v45  ;;  %v1823_v60 = vadd.f32 1.0, %v1822_v51  ;;  %v2307_v30 = vadd.f32 %v2306_v53, %v4385_v29  ;;  %v2308_v51 = vpop.f32.mrf.mxu3 }
 0x191   : > { %3842 = vpow2.f32 %v1638_v15  ;;  %v5105_v19 = vadd.f32 %v2677_v54, %v2647_v43  ;;  %v901_v26 = vsub.f32 %v869_v38, %v5060_v48  ;;  %v2424_v27 = vsub.f32 %v2218_v16, %v2392_v42  ;;  %v5129_v15 = vpop.f32.mrf.mxu0  ;;  %v2801_v43 = vld [vmem:[%s4167_s19 + $0x98] sm:$0xff]  ;;  %v5132_v42 = vpop.f32.mrf.mxu1 }
 0x192   : > { %v3837_v33 = vpop.eup %3836  ;;  %v2017_v61 = vsel %vm1364_vm1, %v1970_v44, 0.0  ;;  %v935_v55 = vand.u32 2147483647, %v5101_v49  ;;  %v1202_v22 = vmul.f32 %v3831_v7, %v1201_v35  ;;  %v2832_v58 = vsub.f32 %v2307_v30, %v2800_v17 }
 0x193   : > { %v2018_v28 = vadd.f32 %v2017_v61, %v2016_v31  ;;  %v1199_v13 = vmul.f32 0.6931472, %v3837_v33  ;;  %vm1204_vm6 = vcmp.lt.f32.partialorder %v1203_v21, 0.0004427343  ;;  %v1523_v63 = vsub.f32 %v1459_v10, %v1491_v9 }
 0x194   : > { %v870_v54 = vmax.f32 %v5078_v50, 0.0  ;;  %v967_v62 = vsub.f32 0.0, %v935_v55  ;;  %v3839_v6 = vpop.eup %3838  ;;  %v1824_v1 = vmul.f32 %v3833_v14, %v1823_v60  ;;  %vm5114_vm7 = vcmp.lt.f32.partialorder %v1825_v57, 0.0004427343 }
 0x195   : > { %v1205_v2 = vsel %vm1204_vm6, %v1202_v22, %v1199_v13  ;;  %v2864_v48 = vmul.f32 %v2832_v58, %v2832_v58  ;;  %v1821_v40 = vmul.f32 0.6931472, %v3839_v6  ;;  %v1557_v31 = vand.u32 2147483647, %v5111_v56 }
 0x196   : > { %v3841_v38 = vpop.eup %3840  ;;  %v1349_v3 = vadd.f32 %v1205_v2, %v901_v26  ;;  %v2456_v7 = vmul.f32 %v2424_v27, %v2424_v27  ;;  %v1018_v24 = vmul.f32 1.442695, %v967_v62  ;;  %v2220_v36 = vadd.f32 %v2219_v59, %v4389_v34 }
 0x197   : > { %v3843_v32 = vpop.eup %3842  ;;  %v1206_v10 = vadd.f32 1.0, %v3841_v38  ;;  %v1209_v39 = vmul.f32 -0.5, %v3841_v38  ;;  %v2895_v20 = vadd.f32 %v5086_v23, %v2864_v48  ;;  %v1827_v0 = vsel %vm5114_vm7, %v1824_v1, %v1821_v40  ;;  %v2393_v23 = vld [vmem:[%s4157_s30 + $0x98] sm:$0xff] }
 0x198   : > { %v1398_v14 = vsel %vm1364_vm1, %v1349_v3, 0.0  ;;  %v1828_v5 = vadd.f32 1.0, %v3843_v32  ;;  %v1831_v46 = vmul.f32 -0.5, %v3843_v32  ;;  %v1971_v9 = vadd.f32 %v1827_v0, %v1523_v63  ;;  %v2311_v0 = vpop.f32.mrf.mxu3 }
 0x199   : > { %v5123_v4 = vadd.f32 %v1398_v14, %v1397_v52  ;;  %3844 = vlog2.f32 %v1206_v10  ;;  %v902_v12 = vsub.f32 %v870_v54, %v5078_v50  ;;  %v1212_v11 = vand.u32 2147483647, %v3841_v38 }
 0x19a   : > { %3846 = vlog2.f32 %v1828_v5  ;;  %v2019_v8 = vsel %vm1364_vm1, %v1971_v9, 0.0  ;;  %v1832_v21 = vadd.f32 1.0, %v1831_v46  ;;  %v1589_v45 = vsub.f32 0.0, %v1557_v31 }
 0x19b   : > { %3848 = vpow2.f32 %v1018_v24  ;;  %v2020_v52 = vadd.f32 %v2019_v8, %v2018_v28  ;;  %v1210_v53 = vadd.f32 1.0, %v1209_v39  ;;  %v1834_v18 = vand.u32 2147483647, %v3843_v32  ;;  %v5159_v8 = vpop.f32.mrf.mxu1 }
 0x19c   : > { %v2648_v35 = vmul.f32 %v2563_v25, %v2456_v7  ;;  %v1460_v50 = vmax.f32 %v5081_v47, 0.0  ;;  %v1640_v44 = vmul.f32 1.442695, %v1589_v45  ;;  %v2425_v57 = vsub.f32 %v2220_v36, %v2393_v23  ;;  %v2222_v25 = vpop.f32.mrf.mxu2  ;;  %v5154_v36 = vpop.f32.mrf.mxu0 }
 0x19d   : > { %v2309_v16 = vadd.f32 %v2308_v51, %v4385_v29  ;;  %vm5136_vm8 = vcmp.lt.f32.partialorder %v1212_v11, 0.0004427343  ;;  %v1492_v60 = vmul.f32 0.0, %v5081_v47  ;;  %v936_v33 = vand.u32 2147483647, %v5129_v15  ;;  %v2802_v51 = vld [vmem:[%s4167_s19 + $0xa0] sm:$0xff] }
 0x19e   : > { %v2679_v30 = vadd.f32 %v5105_v19, %v2648_v35  ;;  %v1833_v26 = vmul.f32 %v3843_v32, %v1832_v21  ;;  %3850 = vpow2.f32 %v1640_v44  ;;  %v1558_v55 = vand.u32 2147483647, %v5132_v42  ;;  %v2568_v32 = vpop.permute.xlu1 %2567 }
 0x19f   : > { %v3845_v61 = vpop.eup %3844  ;;  %v2833_v27 = vsub.f32 %v2309_v16, %v2801_v43  ;;  %v1211_v22 = vmul.f32 %v3841_v38, %v1210_v53  ;;  %vm1835_vm9 = vcmp.lt.f32.partialorder %v1834_v18, 0.0004427343  ;;  %v968_v58 = vsub.f32 0.0, %v936_v33 }
 0x1a0   : > { %v3847_v28 = vpop.eup %3846  ;;  %v1208_v13 = vmul.f32 0.6931472, %v3845_v61  ;;  %v1590_v6 = vsub.f32 0.0, %v1558_v55  ;;  %v2457_v47 = vmul.f32 %v2425_v57, %v2425_v57  ;;  %v1524_v2 = vsub.f32 %v1460_v50, %v1492_v60  ;;  %v2394_v50 = vld [vmem:[%s4157_s30 + $0xa0] sm:$0xff] }
 0x1a1   : > { %v3849_v63 = vpop.eup %3848  ;;  %v1830_v54 = vmul.f32 0.6931472, %v3847_v28  ;;  %v2865_v62 = vmul.f32 %v2833_v27, %v2833_v27  ;;  %v1020_v31 = vmul.f32 1.442695, %v968_v58  ;;  %v871_v38 = vmax.f32 %v5101_v49, 0.0 }
 0x1a2   : > { %v1214_v19 = vsel %vm5136_vm8, %v1211_v22, %v1208_v13  ;;  %v1215_v1 = vadd.f32 1.0, %v3849_v63  ;;  %v1218_v41 = vmul.f32 -0.5, %v3849_v63  ;;  %v1461_v59 = vmax.f32 %v5111_v56, 0.0 }
 0x1a3   : > { %v1350_v48 = vadd.f32 %v1214_v19, %v902_v12  ;;  %v1836_v3 = vsel %vm1835_vm9, %v1833_v26, %v1830_v54  ;;  %v5146_v40 = vadd.f32 %v2895_v20, %v2865_v62  ;;  %v1642_v24 = vmul.f32 1.442695, %v1590_v6 }
 0x1a4   : > { %v1972_v7 = vadd.f32 %v1836_v3, %v1524_v2  ;;  %3852 = vlog2.f32 %v1215_v1  ;;  %v3851_v10 = vpop.eup %3850  ;;  %v2649_v14 = vmul.f32 %v2568_v32, %v2457_v47  ;;  %v1493_v46 = vmul.f32 0.0, %v5111_v56 }
 0x1a5   : > { %v1400_v39 = vsel %vm1364_vm1, %v1350_v48, 0.0  ;;  %3854 = vpow2.f32 %v1020_v31  ;;  %v1837_v9 = vadd.f32 1.0, %v3851_v10  ;;  %v1219_v11 = vadd.f32 1.0, %v1218_v41 }
 0x1a6   : > { %v1401_v5 = vadd.f32 %v1400_v39, %v5123_v4  ;;  %v2021_v20 = vsel %vm1364_vm1, %v1972_v7, 0.0  ;;  %v1840_v23 = vmul.f32 -0.5, %v3851_v10  ;;  %3856 = vpow2.f32 %v1642_v24 }
 0x1a7   : > { %v5156_v12 = vadd.f32 %v2021_v20, %v2020_v52  ;;  %v1221_v21 = vand.u32 2147483647, %v3849_v63  ;;  %3858 = vlog2.f32 %v1837_v9  ;;  %v5161_v4 = vadd.f32 %v2679_v30, %v2649_v14 }
 0x1a8   : > { %v2312_v45 = vadd.f32 %v2311_v0, %v4385_v29  ;;  %v903_v56 = vsub.f32 %v871_v38, %v5101_v49  ;;  %v2223_v53 = vadd.f32 %v2222_v25, %v4389_v34  ;;  %v937_v52 = vand.u32 2147483647, %v5154_v36  ;;  %v2573_v38 = vpop.permute.xlu2 %2572 }
 0x1a9   : > { %v1525_v35 = vsub.f32 %v1461_v59, %v1493_v46  ;;  %v1843_v43 = vand.u32 2147483647, %v3851_v10  ;;  %v1559_v57 = vand.u32 2147483647, %v5159_v8  ;;  %v1220_v60 = vmul.f32 %v3849_v63, %v1219_v11  ;;  %v5180_v59 = vpop.f32.mrf.mxu0 }
 0x1aa   : > { %v3853_v18 = vpop.eup %3852  ;;  %v2834_v44 = vsub.f32 %v2312_v45, %v2802_v51  ;;  %v1841_v30 = vadd.f32 1.0, %v1840_v23  ;;  %v969_v33 = vsub.f32 0.0, %v937_v52  ;;  %vm1222_vm10 = vcmp.lt.f32.partialorder %v1221_v21, 0.0004427343 }
 0x1ab   : > { %v3855_v16 = vpop.eup %3854  ;;  %v1217_v17 = vmul.f32 0.6931472, %v3853_v18  ;;  %v872_v61 = vmax.f32 %v5129_v15, 0.0  ;;  %v2426_v13 = vsub.f32 %v2223_v53, %v2394_v50  ;;  %vm5170_vm11 = vcmp.lt.f32.partialorder %v1843_v43, 0.0004427343 }
 0x1ac   : > { %v1224_v49 = vadd.f32 1.0, %v3855_v16  ;;  %v2866_v26 = vmul.f32 %v2834_v44, %v2834_v44  ;;  %v3857_v27 = vpop.eup %3856  ;;  %v1227_v28 = vmul.f32 -0.5, %v3855_v16  ;;  %v1022_v22 = vmul.f32 1.442695, %v969_v33  ;;  %v2313_v33 = vpop.f32.mrf.mxu3 }
 0x1ad   : > { %v1223_v55 = vsel %vm1222_vm10, %v1220_v60, %v1217_v17  ;;  %v3859_v58 = vpop.eup %3858  ;;  %v1591_v63 = vsub.f32 0.0, %v1559_v57  ;;  %v1842_v47 = vmul.f32 %v3851_v10, %v1841_v30  ;;  %v1846_v19 = vadd.f32 1.0, %v3857_v27  ;;  %v5197_v57 = vpop.f32.mrf.mxu1 }
 0x1ae   : > { %v1351_v54 = vadd.f32 %v1223_v55, %v903_v56  ;;  %3860 = vlog2.f32 %v1224_v49  ;;  %v1839_v6 = vmul.f32 0.6931472, %v3859_v58  ;;  %v1849_v2 = vmul.f32 -0.5, %v3857_v27 }
 0x1af   : > { %v1230_v41 = vand.u32 2147483647, %v3855_v16  ;;  %v5176_v48 = vadd.f32 %v5146_v40, %v2866_v26  ;;  %3862 = vpow2.f32 %v1022_v22  ;;  %v1228_v7 = vadd.f32 1.0, %v1227_v28 }
 0x1b0   : > { %v1402_v1 = vsel %vm1364_vm1, %v1351_v54, 0.0  ;;  %v1845_v31 = vsel %vm5170_vm11, %v1842_v47, %v1839_v6  ;;  %3864 = vlog2.f32 %v1846_v19  ;;  %v1850_v10 = vadd.f32 1.0, %v1849_v2 }
 0x1b1   : > { %v1403_v3 = vadd.f32 %v1402_v1, %v1401_v5  ;;  %v1973_v32 = vadd.f32 %v1845_v31, %v1525_v35  ;;  %v1644_v39 = vmul.f32 1.442695, %v1591_v63  ;;  %v2458_v24 = vmul.f32 %v2426_v13, %v2426_v13  ;;  %v5204_v22 = vpop.f32.mrf.mxu0 }
 0x1b2   : > { %v1462_v14 = vmax.f32 %v5132_v42, 0.0  ;;  %v1494_v0 = vmul.f32 0.0, %v5132_v42  ;;  %v1852_v40 = vand.u32 2147483647, %v3857_v27  ;;  %v938_v9 = vand.u32 2147483647, %v5180_v59  ;;  %v5191_v42 = vpop.f32.mrf.mxu2 }
 0x1b3   : > { %v2023_v5 = vsel %vm1364_vm1, %v1973_v32, 0.0  ;;  %3866 = vpow2.f32 %v1644_v39  ;;  %v2650_v46 = vmul.f32 %v2573_v38, %v2458_v24  ;;  %v904_v11 = vsub.f32 %v872_v61, %v5129_v15 }
 0x1b4   : > { %v3861_v20 = vpop.eup %3860  ;;  %v2024_v25 = vadd.f32 %v2023_v5, %v5156_v12  ;;  %v1229_v51 = vmul.f32 %v3855_v16, %v1228_v7  ;;  %vm1231_vm12 = vcmp.lt.f32.partialorder %v1230_v41, 0.0004427343  ;;  %v1851_v45 = vmul.f32 %v3857_v27, %v1850_v10 }
 0x1b5   : > { %v1226_v23 = vmul.f32 0.6931472, %v3861_v20  ;;  %v3863_v21 = vpop.eup %3862  ;;  %v5189_v56 = vadd.f32 %v5161_v4, %v2650_v46  ;;  %v970_v53 = vsub.f32 0.0, %v938_v9  ;;  %vm5193_vm13 = vcmp.lt.f32.partialorder %v1852_v40, 0.0004427343  ;;  %v5221_v46 = vpop.f32.mrf.mxu3 }
 0x1b6   : > { %v3865_v52 = vpop.eup %3864  ;;  %v1233_v12 = vadd.f32 1.0, %v3863_v21  ;;  %v1236_v50 = vmul.f32 -0.5, %v3863_v21  ;;  %v1526_v16 = vsub.f32 %v1462_v14, %v1494_v0  ;;  %v873_v30 = vmax.f32 %v5154_v36, 0.0  ;;  %v5219_v14 = vpop.f32.mrf.mxu1 }
 0x1b7   : > { %v1232_v18 = vsel %vm1231_vm12, %v1229_v51, %v1226_v23  ;;  %v1848_v15 = vmul.f32 0.6931472, %v3865_v52  ;;  %v1024_v44 = vmul.f32 1.442695, %v970_v53  ;;  %v1239_v26 = vand.u32 2147483647, %v3863_v21 }
 0x1b8   : > { %v1352_v43 = vadd.f32 %v1232_v18, %v904_v11  ;;  %3868 = vlog2.f32 %v1233_v12  ;;  %v1237_v55 = vadd.f32 1.0, %v1236_v50  ;;  %v1560_v13 = vand.u32 2147483647, %v5197_v57 }
 0x1b9   : > { %v3867_v4 = vpop.eup %3866  ;;  %v1854_v60 = vsel %vm5193_vm13, %v1851_v45, %v1848_v15  ;;  %3870 = vpow2.f32 %v1024_v44  ;;  %v905_v6 = vsub.f32 %v873_v30, %v5154_v36  ;;  %vm5208_vm14 = vcmp.lt.f32.partialorder %v1239_v26, 0.0004427343  ;;  %v5225_v45 = vpop.f32.mrf.mxu0 }
 0x1ba   : > { %v1404_v17 = vsel %vm1364_vm1, %v1352_v43, 0.0  ;;  %v1974_v49 = vadd.f32 %v1854_v60, %v1526_v16  ;;  %v1855_v27 = vadd.f32 1.0, %v3867_v4  ;;  %v1858_v28 = vmul.f32 -0.5, %v3867_v4  ;;  %v5214_v38 = vpop.f32.mrf.mxu2 }
 0x1bb   : > { %v1405_v61 = vadd.f32 %v1404_v17, %v1403_v3  ;;  %v1592_v62 = vsub.f32 0.0, %v1560_v13  ;;  %v1463_v19 = vmax.f32 %v5159_v8, 0.0  ;;  %v1495_v2 = vmul.f32 0.0, %v5159_v8 }
 0x1bc   : > { %v2025_v58 = vsel %vm1364_vm1, %v1974_v49, 0.0  ;;  %3872 = vlog2.f32 %v1855_v27  ;;  %v1238_v3 = vmul.f32 %v3863_v21, %v1237_v55  ;;  %v1859_v31 = vadd.f32 1.0, %v1858_v28  ;;  %v2395_v49 = vld [vmem:[%s4157_s30 + $0xa8] sm:$0xff] }
 0x1bd   : > { %v2026_v54 = vadd.f32 %v2025_v58, %v2024_v25  ;;  %v1646_v7 = vmul.f32 1.442695, %v1592_v62  ;;  %v1861_v32 = vand.u32 2147483647, %v3867_v4  ;;  %v939_v36 = vand.u32 2147483647, %v5204_v22 }
 0x1be   : > { %v3869_v63 = vpop.eup %3868  ;;  %v1860_v20 = vmul.f32 %v3867_v4, %v1859_v31  ;;  %v1527_v25 = vsub.f32 %v1463_v19, %v1495_v2  ;;  %v874_v21 = vmax.f32 %v5180_v59, 0.0  ;;  %v1561_v35 = vand.u32 2147483647, %v5219_v14  ;;  %v2803_v4 = vld [vmem:[%s4167_s19 + $0xa8] sm:$0xff]  ;;  %v5240_v62 = vpop.f32.mrf.mxu1 }
 0x1bf   : > { %v3871_v1 = vpop.eup %3870  ;;  %v1235_v41 = vmul.f32 0.6931472, %v3869_v63  ;;  %3874 = vpow2.f32 %v1646_v7  ;;  %vm1862_vm15 = vcmp.lt.f32.partialorder %v1861_v32, 0.0004427343  ;;  %v971_v11 = vsub.f32 0.0, %v939_v36  ;;  %v5243_v2 = vpop.f32.mrf.mxu3 }
 0x1c0   : > { %v1242_v10 = vadd.f32 1.0, %v3871_v1  ;;  %v1245_v39 = vmul.f32 -0.5, %v3871_v1  ;;  %v1248_v52 = vand.u32 2147483647, %v3871_v1  ;;  %v2225_v43 = vadd.f32 %v5191_v42, %v4389_v34 }
 0x1c1   : > { %v1241_v24 = vsel %vm5208_vm14, %v1238_v3, %v1235_v41  ;;  %v1026_v18 = vmul.f32 1.442695, %v971_v11  ;;  %v2314_v15 = vadd.f32 %v2313_v33, %v4385_v29  ;;  %v940_v30 = vand.u32 2147483647, %v5225_v45  ;;  %v3953_v11 = vld [vmem:[%s4162_s14 + $0xf0] sm:$0xff] }
 0x1c2   : > { %v3873_v0 = vpop.eup %3872  ;;  %v1353_v8 = vadd.f32 %v1241_v24, %v905_v6  ;;  %3876 = vlog2.f32 %v1242_v10  ;;  %v1246_v5 = vadd.f32 1.0, %v1245_v39  ;;  %v1593_v27 = vsub.f32 0.0, %v1561_v35  ;;  %v5237_v55 = vpop.f32.mrf.mxu2 }
 0x1c3   : > { %v1857_v40 = vmul.f32 0.6931472, %v3873_v0  ;;  %3878 = vpow2.f32 %v1026_v18  ;;  %v906_v42 = vsub.f32 %v874_v21, %v5180_v59  ;;  %vm1249_vm0 = vcmp.lt.f32.partialorder %v1248_v52, 0.0004427343 }
 0x1c4   : > { %v1406_v9 = vsel %vm1364_vm1, %v1353_v8, 0.0  ;;  %v1247_v50 = vmul.f32 %v3871_v1, %v1246_v5  ;;  %v2835_v33 = vsub.f32 %v2314_v15, %v2803_v4  ;;  %v1648_v58 = vmul.f32 1.442695, %v1593_v27  ;;  %v5254_v8 = vpop.f32.mrf.mxu0 }
 0x1c5   : > { %v1407_v23 = vadd.f32 %v1406_v9, %v1405_v61  ;;  %v1863_v51 = vsel %vm1862_vm15, %v1860_v20, %v1857_v40  ;;  %v3875_v12 = vpop.eup %3874  ;;  %v2427_v63 = vsub.f32 %v2225_v43, %v2395_v49  ;;  %v972_v47 = vsub.f32 0.0, %v940_v30  ;;  %v2578_v40 = vpop.permute.xlu0 %2577  ;;  %v3952_v9 = vld [vmem:[%s4162_s14 + $0xe8] sm:$0xff] }
 0x1c6   : > { %v1975_v53 = vadd.f32 %v1863_v51, %v1527_v25  ;;  %v1864_v17 = vadd.f32 1.0, %v3875_v12  ;;  %v1867_v60 = vmul.f32 -0.5, %v3875_v12  ;;  %v1464_v19 = vmax.f32 %v5197_v57, 0.0 }
 0x1c7   : > { %v1496_v59 = vmul.f32 0.0, %v5197_v57  ;;  %v1028_v41 = vmul.f32 1.442695, %v972_v47  ;;  %v1562_v3 = vand.u32 2147483647, %v5240_v62  ;;  %v2867_v7 = vmul.f32 %v2835_v33, %v2835_v33 }
 0x1c8   : > { %v3877_v44 = vpop.eup %3876  ;;  %v2027_v16 = vsel %vm1364_vm1, %v1975_v53, 0.0  ;;  %3880 = vlog2.f32 %v1864_v17  ;;  %v1868_v13 = vadd.f32 1.0, %v1867_v60  ;;  %v2459_v24 = vmul.f32 %v2427_v63, %v2427_v63 }
 0x1c9   : > { %v5234_v61 = vadd.f32 %v2027_v16, %v2026_v54  ;;  %v1244_v26 = vmul.f32 0.6931472, %v3877_v44  ;;  %v1870_v54 = vand.u32 2147483647, %v3875_v12  ;;  %3882 = vpow2.f32 %v1648_v58  ;;  %v3879_v31 = vpop.eup %3878  ;;  %v2396_v44 = vld [vmem:[%s4157_s30 + $0xb0] sm:$0xff] }
 0x1ca   : > { %v1869_v10 = vmul.f32 %v3875_v12, %v1868_v13  ;;  %v1251_v0 = vadd.f32 1.0, %v3879_v31  ;;  %3884 = vpow2.f32 %v1028_v41  ;;  %v1254_v20 = vmul.f32 -0.5, %v3879_v31  ;;  %v5268_v35 = vpop.f32.mrf.mxu2  ;;  %v5282_v13 = vpop.f32.mrf.mxu1 }
 0x1cb   : > { %v1250_v28 = vsel %vm1249_vm0, %v1247_v50, %v1244_v26  ;;  %vm5250_vm2 = vcmp.lt.f32.partialorder %v1870_v54, 0.0004427343  ;;  %v1594_v5 = vsub.f32 0.0, %v1562_v3  ;;  %v5258_v25 = vsel %vm1364_vm1, %v3952_v9, 0.0 }
 0x1cc   : > { %v1354_v6 = vadd.f32 %v1250_v28, %v906_v42  ;;  %v1528_v51 = vsub.f32 %v1464_v19, %v1496_v59  ;;  %3886 = vlog2.f32 %v1251_v0  ;;  %v2228_v52 = vadd.f32 %v5214_v38, %v4389_v34  ;;  %v2321_v28 = vpop.f32.mrf.mxu3 }
 0x1cd   : > { %v1650_v18 = vmul.f32 1.442695, %v1594_v5  ;;  %v941_v12 = vand.u32 2147483647, %v5254_v8  ;;  %v5272_v43 = vadd.f32 %v5176_v48, %v2867_v7  ;;  %v5274_v50 = vmul.f32 %v2578_v40, %v2459_v24 }
 0x1ce   : > { %v1408_v1 = vsel %vm1364_vm1, %v1354_v6, 0.0  ;;  %v3881_v39 = vpop.eup %3880  ;;  %v875_v4 = vmax.f32 %v5204_v22, 0.0  ;;  %v1255_v17 = vadd.f32 1.0, %v1254_v20  ;;  %v1257_v49 = vand.u32 2147483647, %v3879_v31  ;;  %v2397_v20 = vld [vmem:[%s4157_s30 + $0xb8] sm:$0xff] }
 0x1cf   : > { %v5248_v32 = vadd.f32 %v1408_v1, %v1407_v23  ;;  %v1866_v57 = vmul.f32 0.6931472, %v3881_v39  ;;  %v5262_v23 = vsel %vm1364_vm1, %v3953_v11, 0.0  ;;  %v3883_v21 = vpop.eup %3882  ;;  %3888 = vpow2.f32 %v1650_v18 }
 0x1d0   : > { %v1873_v16 = vadd.f32 1.0, %v3883_v21  ;;  %v1876_v60 = vmul.f32 -0.5, %v3883_v21  ;;  %v3885_v30 = vpop.eup %3884  ;;  %v973_v26 = vsub.f32 0.0, %v941_v12  ;;  %v2428_v48 = vsub.f32 %v2228_v52, %v2396_v44  ;;  %v2805_v52 = vld [vmem:[%s4167_s19 + $0xb8] sm:$0xff] }
 0x1d1   : > { %v1872_v53 = vsel %vm5250_vm2, %v1869_v10, %v1866_v57  ;;  %v2317_v42 = vadd.f32 %v5221_v46, %v4385_v29  ;;  %v1260_v33 = vadd.f32 1.0, %v3885_v30  ;;  %v1465_v63 = vmax.f32 %v5219_v14, 0.0  ;;  %v2804_v10 = vld [vmem:[%s4167_s19 + $0xb0] sm:$0xff] }
 0x1d2   : > { %v1976_v15 = vadd.f32 %v1872_v53, %v1528_v51  ;;  %3890 = vlog2.f32 %v1873_v16  ;;  %v3887_v58 = vpop.eup %3886  ;;  %v1497_v6 = vmul.f32 0.0, %v5219_v14  ;;  %v1263_v54 = vmul.f32 -0.5, %v3885_v30  ;;  %v2234_v11 = vpop.f32.mrf.mxu2 }
 0x1d3   : > { %v1030_v47 = vmul.f32 1.442695, %v973_v26  ;;  %v1253_v19 = vmul.f32 0.6931472, %v3887_v58  ;;  %v1256_v1 = vmul.f32 %v3879_v31, %v1255_v17  ;;  %v1877_v59 = vadd.f32 1.0, %v1876_v60  ;;  %v5301_v16 = vpop.f32.mrf.mxu0 }
 0x1d4   : > { %v2029_v38 = vsel %vm1364_vm1, %v1976_v15, 0.0  ;;  %3892 = vlog2.f32 %v1260_v33  ;;  %vm1258_vm3 = vcmp.lt.f32.partialorder %v1257_v49, 0.0004427343  ;;  %v1879_v46 = vand.u32 2147483647, %v3883_v21 }
 0x1d5   : > { %v2030_v27 = vadd.f32 %v2029_v38, %v5234_v61  ;;  %v907_v61 = vsub.f32 %v875_v4, %v5204_v22  ;;  %v1563_v41 = vand.u32 2147483647, %v5282_v13  ;;  %v5288_v3 = vpop.eup %3888  ;;  %v2460_v7 = vmul.f32 %v2428_v48, %v2428_v48 }
 0x1d6   : > { %v1259_v39 = vsel %vm1258_vm3, %v1256_v1, %v1253_v19  ;;  %v2230_v14 = vadd.f32 %v5237_v55, %v4389_v34  ;;  %3894 = vpow2.f32 %v1030_v47  ;;  %v2319_v22 = vadd.f32 %v5243_v2, %v4385_v29 }
 0x1d7   : > { %v1355_v36 = vadd.f32 %v1259_v39, %v907_v61  ;;  %v876_v24 = vmax.f32 %v5225_v45, 0.0  ;;  %v1264_v0 = vadd.f32 1.0, %v1263_v54  ;;  %v1878_v40 = vmul.f32 %v3883_v21, %v1877_v59  ;;  %v2398_v54 = vld [vmem:[%s4157_s30 + $0xc0] sm:$0xff] }
 0x1d8   : > { %v3891_v31 = vpop.eup %3890  ;;  %v1266_v5 = vand.u32 2147483647, %v3885_v30  ;;  %v1595_v9 = vsub.f32 0.0, %v1563_v41  ;;  %v2836_v51 = vsub.f32 %v2317_v42, %v2804_v10  ;;  %v1529_v55 = vsub.f32 %v1465_v63, %v1497_v6  ;;  %v2806_v59 = vld [vmem:[%s4167_s19 + $0xc0] sm:$0xff] }
 0x1d9   : > { %v1875_v57 = vmul.f32 0.6931472, %v3891_v31  ;;  %v1410_v53 = vsel %vm1364_vm1, %v1355_v36, 0.0  ;;  %vm1880_vm4 = vcmp.lt.f32.partialorder %v1879_v46, 0.0004427343  ;;  %v1882_v2 = vadd.f32 1.0, %v5288_v3  ;;  %v5320_v46 = vpop.f32.mrf.mxu1 }
 0x1da   : > { %v3893_v18 = vpop.eup %3892  ;;  %v1411_v12 = vadd.f32 %v1410_v53, %v5248_v32  ;;  %v1652_v44 = vmul.f32 1.442695, %v1595_v9  ;;  %v2429_v4 = vsub.f32 %v2230_v14, %v2397_v20  ;;  %v1265_v60 = vmul.f32 %v3885_v30, %v1264_v0  ;;  %v5306_v32 = vpop.f32.mrf.mxu3 }
 0x1db   : > { %v1881_v15 = vsel %vm1880_vm4, %v1878_v40, %v1875_v57  ;;  %v1262_v17 = vmul.f32 0.6931472, %v3893_v18  ;;  %v2837_v49 = vsub.f32 %v2319_v22, %v2805_v52  ;;  %v908_v26 = vsub.f32 %v876_v24, %v5225_v45  ;;  %v2583_v30 = vpop.permute.xlu1 %2582  ;;  %v5331_v24 = vpop.f32.mrf.mxu2 }
 0x1dc   : > { %v1977_v21 = vadd.f32 %v1881_v15, %v1529_v55  ;;  %v5303_v38 = vpop.eup %3894  ;;  %vm1267_vm5 = vcmp.lt.f32.partialorder %v1266_v5, 0.0004427343  ;;  %3896 = vpow2.f32 %v1652_v44  ;;  %v2233_v33 = vadd.f32 %v5268_v35, %v4389_v34  ;;  %v2588_v0 = vpop.permute.xlu2 %2587  ;;  %v2399_v5 = vld [vmem:[%s4157_s30 + $0xc8] sm:$0xff] }
 0x1dd   : > { %v1268_v42 = vsel %vm1267_vm5, %v1265_v60, %v1262_v17  ;;  %v2322_v58 = vadd.f32 %v2321_v28, %v4385_v29  ;;  %3898 = vlog2.f32 %v1882_v2  ;;  %v1885_v45 = vmul.f32 -0.5, %v5288_v3  ;;  %v5339_v52 = vpop.f32.mrf.mxu0 }
 0x1de   : > { %v2031_v48 = vsel %vm1364_vm1, %v1977_v21, 0.0  ;;  %v1356_v6 = vadd.f32 %v1268_v42, %v908_v26  ;;  %v2682_v47 = vadd.f32 %v5189_v56, %v5274_v50  ;;  %v2652_v19 = vmul.f32 %v2583_v30, %v2460_v7  ;;  %v2593_v21 = vpop.permute.xlu0 %2592 }
 0x1df   : > { %v5312_v63 = vadd.f32 %v2031_v48, %v2030_v27  ;;  %v2868_v1 = vmul.f32 %v2836_v51, %v2836_v51  ;;  %v1269_v61 = vadd.f32 1.0, %v5303_v38  ;;  %v2461_v35 = vmul.f32 %v2429_v4, %v2429_v4 }
 0x1e0   : > { %v2869_v28 = vmul.f32 %v2837_v49, %v2837_v49  ;;  %v1412_v27 = vsel %vm1364_vm1, %v1356_v6, 0.0  ;;  %v942_v41 = vand.u32 2147483647, %v5301_v16  ;;  %v1466_v39 = vmax.f32 %v5240_v62, 0.0 }
 0x1e1   : > { %v5324_v10 = vadd.f32 %v1412_v27, %v1411_v12  ;;  %v1498_v56 = vmul.f32 0.0, %v5240_v62  ;;  %v2430_v50 = vsub.f32 %v2233_v33, %v2398_v54  ;;  %v1886_v14 = vadd.f32 1.0, %v1885_v45  ;;  %v5353_v45 = vpop.f32.mrf.mxu1 }
 0x1e2   : > { %v5328_v7 = vpop.eup %3896  ;;  %v2838_v31 = vsub.f32 %v2322_v58, %v2806_v59  ;;  %v877_v36 = vmax.f32 %v5254_v8, 0.0  ;;  %v974_v22 = vsub.f32 0.0, %v942_v41  ;;  %v2899_v57 = vadd.f32 %v5272_v43, %v2868_v1  ;;  %v2326_v4 = vpop.f32.mrf.mxu3 }
 0x1e3   : > { %3900 = vlog2.f32 %v1269_v61  ;;  %v1891_v40 = vadd.f32 1.0, %v5328_v7  ;;  %v2235_v20 = vadd.f32 %v2234_v11, %v4389_v34  ;;  %v3899_v62 = vpop.eup %3898  ;;  %v2653_v9 = vmul.f32 %v2588_v0, %v2461_v35 }
 0x1e4   : > { %v1888_v51 = vand.u32 2147483647, %v5288_v3  ;;  %v1032_v53 = vmul.f32 1.442695, %v974_v22  ;;  %v1564_v55 = vand.u32 2147483647, %v5320_v46  ;;  %v2900_v18 = vadd.f32 %v2899_v57, %v2869_v28 }
 0x1e5   : > { %v1530_v12 = vsub.f32 %v1466_v39, %v1498_v56  ;;  %v1272_v15 = vmul.f32 -0.5, %v5303_v38  ;;  %v2462_v43 = vmul.f32 %v2430_v50, %v2430_v50  ;;  %v1887_v2 = vmul.f32 %v5288_v3, %v1886_v14  ;;  %v5367_v50 = vpop.f32.mrf.mxu2 }
 0x1e6   : > { %v2870_v44 = vmul.f32 %v2838_v31, %v2838_v31  ;;  %v5344_v11 = vsub.f32 %v877_v36, %v5254_v8  ;;  %3902 = vpow2.f32 %v1032_v53  ;;  %v1884_v17 = vmul.f32 0.6931472, %v3899_v62 }
 0x1e7   : > { %3904 = vlog2.f32 %v1891_v40  ;;  %v2431_v60 = vsub.f32 %v2235_v20, %v2399_v5  ;;  %v1596_v49 = vsub.f32 0.0, %v1564_v55  ;;  %vm5346_vm6 = vcmp.lt.f32.partialorder %v1888_v51, 0.0004427343  ;;  %v5374_v20 = vpop.f32.mrf.mxu0  ;;  %v2598_v5 = vpop.permute.xlu1 %2597 }
 0x1e8   : > { %v1467_v48 = vmax.f32 %v5282_v13, 0.0  ;;  %v2683_v42 = vadd.f32 %v2682_v47, %v2652_v19  ;;  %v943_v3 = vand.u32 2147483647, %v5339_v52  ;;  %v1273_v8 = vadd.f32 1.0, %v1272_v15 }
 0x1e9   : > { %v3901_v33 = vpop.eup %3900  ;;  %v1499_v58 = vmul.f32 0.0, %v5282_v13  ;;  %v2654_v30 = vmul.f32 %v2593_v21, %v2462_v43  ;;  %v1654_v6 = vmul.f32 1.442695, %v1596_v49  ;;  %v5355_v54 = vadd.f32 %v2900_v18, %v2870_v44  ;;  %v2807_v13 = vld [vmem:[%s4167_s19 + $0xc8] sm:$0xff]  ;;  %v2400_v44 = vld [vmem:[%s4157_s30 + $0xd0] sm:$0xff] }
 0x1ea   : > { %v1894_v1 = vmul.f32 -0.5, %v5328_v7  ;;  %v2684_v59 = vadd.f32 %v2683_v42, %v2653_v9  ;;  %v975_v61 = vsub.f32 0.0, %v943_v3  ;;  %v1890_v47 = vsel %vm5346_vm6, %v1887_v2, %v1884_v17  ;;  %v2328_v43 = vpop.f32.mrf.mxu3 }
 0x1eb   : > { %v1275_v19 = vand.u32 2147483647, %v5303_v38  ;;  %v2463_v35 = vmul.f32 %v2431_v60, %v2431_v60  ;;  %v2324_v28 = vadd.f32 %v5306_v32, %v4385_v29  ;;  %v1271_v41 = vmul.f32 0.6931472, %v3901_v33  ;;  %v2808_v33 = vld [vmem:[%s4167_s19 + $0xd0] sm:$0xff] }
 0x1ec   : > { %v5364_v27 = vpop.eup %3902  ;;  %3906 = vpow2.f32 %v1654_v6  ;;  %v1034_v39 = vmul.f32 1.442695, %v975_v61  ;;  %v1565_v56 = vand.u32 2147483647, %v5353_v45  ;;  %v1274_v31 = vmul.f32 %v5303_v38, %v1273_v8 }
 0x1ed   : > { %v3905_v14 = vpop.eup %3904  ;;  %v1531_v36 = vsub.f32 %v1467_v48, %v1499_v58  ;;  %v5370_v22 = vadd.f32 %v2684_v59, %v2654_v30  ;;  %v878_v0 = vmax.f32 %v5301_v16, 0.0  ;;  %v1895_v57 = vadd.f32 1.0, %v1894_v1 }
 0x1ee   : > { %v1278_v32 = vadd.f32 1.0, %v5364_v27  ;;  %3908 = vpow2.f32 %v1034_v39  ;;  %v1597_v40 = vsub.f32 0.0, %v1565_v56  ;;  %v1978_v62 = vadd.f32 %v1890_v47, %v1530_v12 }
 0x1ef   : > { %vm5376_vm7 = vcmp.lt.f32.partialorder %v1275_v19, 0.0004427343  ;;  %v1897_v38 = vand.u32 2147483647, %v5328_v7  ;;  %v2839_v51 = vsub.f32 %v2324_v28, %v2807_v13  ;;  %v1893_v55 = vmul.f32 0.6931472, %v3905_v14  ;;  %v5417_v19 = vpop.f32.mrf.mxu1  ;;  %v5453_v42 = vpop.f32.mrf.mxu0 }
 0x1f0   : > { %v1277_v53 = vsel %vm5376_vm7, %v1274_v31, %v1271_v41  ;;  %v5383_v18 = vmul.f32 %v2598_v5, %v2463_v35  ;;  %v2238_v15 = vadd.f32 %v5331_v24, %v4389_v34  ;;  %v5388_v12 = vsub.f32 %v878_v0, %v5301_v16  ;;  %v5419_v35 = vpop.f32.mrf.mxu2 }
 0x1f1   : > { %v1468_v2 = vmax.f32 %v5320_v46, 0.0  ;;  %v1656_v21 = vmul.f32 1.442695, %v1597_v40  ;;  %v944_v17 = vand.u32 2147483647, %v5374_v20  ;;  %v1896_v49 = vmul.f32 %v5328_v7, %v1895_v57 }
 0x1f2   : > { %v5393_v60 = vpop.eup %3906  ;;  %3910 = vlog2.f32 %v1278_v32  ;;  %v1500_v26 = vmul.f32 0.0, %v5320_v46  ;;  %v2327_v24 = vadd.f32 %v2326_v4, %v4385_v29  ;;  %v2033_v48 = vsel %vm1364_vm1, %v1978_v62, 0.0 }
 0x1f3   : > { %v1357_v16 = vadd.f32 %v1277_v53, %v5344_v11  ;;  %vm5400_vm8 = vcmp.lt.f32.partialorder %v1897_v38, 0.0004427343  ;;  %v2871_v3 = vmul.f32 %v2839_v51, %v2839_v51  ;;  %v1281_v58 = vmul.f32 -0.5, %v5364_v27 }
 0x1f4   : > { %v5405_v8 = vpop.eup %3908  ;;  %v1899_v7 = vsel %vm5400_vm8, %v1896_v49, %v1893_v55  ;;  %v2432_v46 = vsub.f32 %v2238_v15, %v2400_v44  ;;  %v879_v4 = vmax.f32 %v5339_v52, 0.0  ;;  %v1900_v30 = vadd.f32 1.0, %v5393_v60 }
 0x1f5   : > { %v1287_v11 = vadd.f32 1.0, %v5405_v8  ;;  %3912 = vpow2.f32 %v1656_v21  ;;  %v976_v6 = vsub.f32 0.0, %v944_v17  ;;  %v5413_v1 = vsub.f32 %v1468_v2, %v1500_v26  ;;  %v2401_v2 = vld [vmem:[%s4157_s30 + $0xd8] sm:$0xff] }
 0x1f6   : > { %v2840_v59 = vsub.f32 %v2327_v24, %v2808_v33  ;;  %v1469_v61 = vmax.f32 %v5353_v45, 0.0  ;;  %v1501_v47 = vmul.f32 0.0, %v5353_v45  ;;  %v2034_v28 = vadd.f32 %v2033_v48, %v5312_v63  ;;  %v2809_v45 = vld [vmem:[%s4167_s19 + $0xd8] sm:$0xff] }
 0x1f7   : > { %v1414_v13 = vsel %vm1364_vm1, %v1357_v16, 0.0  ;;  %v2902_v41 = vadd.f32 %v5355_v54, %v2871_v3  ;;  %v2329_v39 = vadd.f32 %v2328_v43, %v4385_v29  ;;  %v1979_v14 = vadd.f32 %v1899_v7, %v1531_v36  ;;  %v2331_v36 = vpop.f32.mrf.mxu3  ;;  %v5502_v24 = vpop.f32.mrf.mxu0 }
 0x1f8   : > { %v3911_v56 = vpop.eup %3910  ;;  %v2464_v31 = vmul.f32 %v2432_v46, %v2432_v46  ;;  %v5426_v0 = vsub.f32 %v879_v4, %v5339_v52  ;;  %3914 = vlog2.f32 %v1287_v11  ;;  %v1282_v57 = vadd.f32 1.0, %v1281_v58  ;;  %v2603_v52 = vpop.permute.xlu2 %2602 }
 0x1f9   : > { %3916 = vlog2.f32 %v1900_v30  ;;  %v1903_v32 = vmul.f32 -0.5, %v5393_v60  ;;  %v1036_v63 = vmul.f32 1.442695, %v976_v6  ;;  %v5431_v40 = vadd.f32 %v1414_v13, %v5324_v10  ;;  %v5467_v6 = vpop.f32.mrf.mxu1 }
 0x1fa   : > { %v1284_v54 = vand.u32 2147483647, %v5364_v27  ;;  %v2872_v5 = vmul.f32 %v2840_v59, %v2840_v59  ;;  %v5434_v62 = vsub.f32 %v1469_v61, %v1501_v47  ;;  %v1280_v38 = vmul.f32 0.6931472, %v3911_v56  ;;  %v2244_v59 = vpop.f32.mrf.mxu2 }
 0x1fb   : > { %v5436_v9 = vpop.eup %3912  ;;  %v1290_v51 = vmul.f32 -0.5, %v5405_v8  ;;  %v2240_v53 = vadd.f32 %v5367_v50, %v4389_v34  ;;  %v2841_v55 = vsub.f32 %v2329_v39, %v2809_v45  ;;  %v2035_v15 = vsel %vm1364_vm1, %v1979_v14, 0.0 }
 0x1fc   : > { %v1906_v10 = vand.u32 2147483647, %v5393_v60  ;;  %v2656_v43 = vmul.f32 %v2603_v52, %v2464_v31  ;;  %v880_v44 = vmax.f32 %v5374_v20, 0.0  ;;  %v1283_v21 = vmul.f32 %v5364_v27, %v1282_v57  ;;  %v2608_v57 = vpop.permute.xlu0 %2607  ;;  %v2402_v52 = vld [vmem:[%s4157_s30 + $0xe0] sm:$0xff] }
 0x1fd   : > { %v1904_v17 = vadd.f32 1.0, %v1903_v32  ;;  %3918 = vpow2.f32 %v1036_v63  ;;  %v1566_v49 = vand.u32 2147483647, %v5417_v19  ;;  %vm5447_vm9 = vcmp.lt.f32.partialorder %v1284_v54, 0.0004427343 }
 0x1fe   : > { %v3915_v26 = vpop.eup %3914  ;;  %v2903_v50 = vadd.f32 %v2902_v41, %v2872_v5  ;;  %v1293_v48 = vand.u32 2147483647, %v5405_v8  ;;  %v1909_v16 = vadd.f32 1.0, %v5436_v9  ;;  %v1286_v27 = vsel %vm5447_vm9, %v1283_v21, %v1280_v38 }
 0x1ff   : > { %v3917_v3 = vpop.eup %3916  ;;  %v1291_v33 = vadd.f32 1.0, %v1290_v51  ;;  %v2433_v7 = vsub.f32 %v2240_v53, %v2401_v2  ;;  %v2873_v58 = vmul.f32 %v2841_v55, %v2841_v55  ;;  %v5457_v46 = vadd.f32 %v2035_v15, %v2034_v28  ;;  %v2333_v54 = vpop.f32.mrf.mxu3 }
 0x200   : > { %vm5459_vm10 = vcmp.lt.f32.partialorder %v1906_v10, 0.0004427343  ;;  %v5464_v30 = vsub.f32 %v880_v44, %v5374_v20  ;;  %v1470_v11 = vmax.f32 %v5417_v19, 0.0  ;;  %v1905_v61 = vmul.f32 %v5393_v60, %v1904_v17 }
 0x201   : > { %v1289_v47 = vmul.f32 0.6931472, %v3915_v26  ;;  %v1502_v13 = vmul.f32 0.0, %v5417_v19  ;;  %v1598_v41 = vsub.f32 0.0, %v1566_v49  ;;  %v1358_v28 = vadd.f32 %v1286_v27, %v5388_v12 }
 0x202   : > { %v1902_v39 = vmul.f32 0.6931472, %v3917_v3  ;;  %vm5472_vm11 = vcmp.lt.f32.partialorder %v1293_v48, 0.0004427343  ;;  %3920 = vlog2.f32 %v1909_v16  ;;  %v1292_v14 = vmul.f32 %v5405_v8, %v1291_v33  ;;  %v2812_v3 = vld [vmem:[%s4167_s19 + $0xf0] sm:$0xff] }
 0x203   : > { %v5476_v20 = vpop.eup %3918  ;;  %v5479_v31 = vadd.f32 %v2903_v50, %v2873_v58  ;;  %v2465_v60 = vmul.f32 %v2433_v7, %v2433_v7  ;;  %v945_v45 = vand.u32 2147483647, %v5453_v42  ;;  %v1912_v19 = vmul.f32 -0.5, %v5436_v9 }
 0x204   : > { %v1915_v12 = vand.u32 2147483647, %v5436_v9  ;;  %v2686_v32 = vadd.f32 %v5370_v22, %v5383_v18  ;;  %v2243_v63 = vadd.f32 %v5419_v35, %v4389_v34  ;;  %v1295_v8 = vsel %vm5472_vm11, %v1292_v14, %v1289_v47  ;;  %v2810_v18 = vld [vmem:[%s4167_s19 + $0xe0] sm:$0xff]  ;;  %v2403_v14 = vld [vmem:[%s4157_s30 + $0xe8] sm:$0xff] }
 0x205   : > { %v1658_v5 = vmul.f32 1.442695, %v1598_v41  ;;  %v2332_v38 = vadd.f32 %v2331_v36, %v4385_v29  ;;  %v977_v51 = vsub.f32 0.0, %v945_v45  ;;  %v1416_v53 = vsel %vm1364_vm1, %v1358_v28, 0.0 }
 0x206   : > { %v1908_v55 = vsel %vm5459_vm10, %v1905_v61, %v1902_v39  ;;  %v1296_v15 = vadd.f32 1.0, %v5476_v20  ;;  %v1299_v22 = vmul.f32 -0.5, %v5476_v20  ;;  %v5498_v35 = vsub.f32 %v1470_v11, %v1502_v13 }
 0x207   : > { %v2657_v10 = vmul.f32 %v2608_v57, %v2465_v60  ;;  %v1038_v2 = vmul.f32 1.442695, %v977_v51  ;;  %v1567_v44 = vand.u32 2147483647, %v5467_v6  ;;  %v1359_v36 = vadd.f32 %v1295_v8, %v5426_v0  ;;  %v5511_v0 = vpop.f32.mrf.mxu1  ;;  %v2336_v45 = vpop.f32.mrf.mxu3  ;;  %v2404_v8 = vld [vmem:[%s4157_s30 + $0xf0] sm:$0xff] }
 0x208   : > { %v3921_v21 = vpop.eup %3920  ;;  %v1913_v17 = vadd.f32 1.0, %v1912_v19  ;;  %v2687_v49 = vadd.f32 %v2686_v32, %v2656_v43  ;;  %v2434_v26 = vsub.f32 %v2243_v63, %v2402_v52  ;;  %v1417_v50 = vadd.f32 %v1416_v53, %v5431_v40  ;;  %v2247_v43 = vpop.f32.mrf.mxu2 }
 0x209   : > { %v1980_v48 = vadd.f32 %v1908_v55, %v5413_v1  ;;  %3922 = vpow2.f32 %v1658_v5  ;;  %v2842_v16 = vsub.f32 %v2332_v38, %v2810_v18  ;;  %vm5506_vm12 = vcmp.lt.f32.partialorder %v1915_v12, 0.0004427343  ;;  %v2613_v12 = vpop.permute.xlu1 %2612  ;;  %v2811_v18 = vld [vmem:[%s4167_s19 + $0xe8] sm:$0xff] }
 0x20a   : > { %3924 = vlog2.f32 %v1296_v15  ;;  %v1300_v27 = vadd.f32 1.0, %v1299_v22  ;;  %v1302_v33 = vand.u32 2147483647, %v5476_v20  ;;  %v1911_v7 = vmul.f32 0.6931472, %v3921_v21 }
 0x20b   : > { %3926 = vpow2.f32 %v1038_v2  ;;  %v1599_v58 = vsub.f32 0.0, %v1567_v44  ;;  %v946_v40 = vand.u32 2147483647, %v5502_v24  ;;  %v1418_v1 = vsel %vm1364_vm1, %v1359_v36, 0.0 }
 0x20c   : > { %v1914_v4 = vmul.f32 %v5436_v9, %v1913_v17  ;;  %v2688_v11 = vadd.f32 %v2687_v49, %v2657_v10  ;;  %v2466_v61 = vmul.f32 %v2434_v26, %v2434_v26  ;;  %v5517_v47 = vsel %vm1364_vm1, %v1980_v48, 0.0  ;;  %v5548_v49 = vpop.f32.mrf.mxu0 }
 0x20d   : > { %v2874_v13 = vmul.f32 %v2842_v16, %v2842_v16  ;;  %v2245_v41 = vadd.f32 %v2244_v59, %v4389_v34  ;;  %v978_v28 = vsub.f32 0.0, %v946_v40  ;;  %v5521_v39 = vmul.f32 %v5476_v20, %v1300_v27 }
 0x20e   : > { %v881_v56 = vmax.f32 %v5453_v42, 0.0  ;;  %v1568_v60 = vand.u32 2147483647, %v5511_v0  ;;  %v2248_v9 = vadd.f32 %v2247_v43, %v4389_v34  ;;  %v5527_v57 = vadd.f32 %v1418_v1, %v1417_v50 }
 0x20f   : > { %v3923_v19 = vpop.eup %3922  ;;  %v1917_v59 = vsel %vm5506_vm12, %v1914_v4, %v1911_v7  ;;  %vm5531_vm13 = vcmp.lt.f32.partialorder %v1302_v33, 0.0004427343  ;;  %v1660_v20 = vmul.f32 1.442695, %v1599_v58  ;;  %v1040_v63 = vmul.f32 1.442695, %v978_v28 }
 0x210   : > { %v3925_v5 = vpop.eup %3924  ;;  %v2658_v52 = vmul.f32 %v2613_v12, %v2466_v61  ;;  %v1471_v38 = vmax.f32 %v5467_v6, 0.0  ;;  %v1503_v51 = vmul.f32 0.0, %v5467_v6  ;;  %v2334_v53 = vadd.f32 %v2333_v54, %v4385_v29 }
 0x211   : > { %v5539_v55 = vpop.eup %3926  ;;  %v1921_v15 = vmul.f32 -0.5, %v3923_v19  ;;  %v2435_v22 = vsub.f32 %v2245_v41, %v2403_v14  ;;  %3928 = vpow2.f32 %v1040_v63  ;;  %v1600_v10 = vsub.f32 0.0, %v1568_v60  ;;  %v2405_v41 = vld [vmem:[%s4157_s30 + $0xf8] sm:$0xff]  ;;  %v2338_v60 = vpop.f32.mrf.mxu3 }
 0x212   : > { %v1981_v2 = vadd.f32 %v1917_v59, %v5434_v62  ;;  %v2905_v44 = vadd.f32 %v5479_v31, %v2874_v13  ;;  %v5545_v21 = vsub.f32 %v881_v56, %v5453_v42  ;;  %v2436_v36 = vsub.f32 %v2248_v9, %v2404_v8  ;;  %v5552_v62 = vpop.f32.mrf.mxu1  ;;  %v2249_v31 = vpop.f32.mrf.mxu2 }
 0x213   : > { %v1918_v17 = vadd.f32 1.0, %v3923_v19  ;;  %3930 = vpow2.f32 %v1660_v20  ;;  %v1662_v6 = vmul.f32 1.442695, %v1600_v10  ;;  %v2337_v54 = vadd.f32 %v2336_v45, %v4385_v29 }
 0x214   : > { %v1298_v26 = vmul.f32 0.6931472, %v3925_v5  ;;  %v1924_v50 = vand.u32 2147483647, %v3923_v19  ;;  %v1305_v48 = vadd.f32 1.0, %v5539_v55  ;;  %v2843_v16 = vsub.f32 %v2334_v53, %v2811_v18  ;;  %v2813_v5 = vld [vmem:[%s4167_s19 + $0xf8] sm:$0xff] }
 0x215   : > { %v1922_v42 = vadd.f32 1.0, %v1921_v15  ;;  %v2689_v27 = vadd.f32 %v2688_v11, %v2658_v52  ;;  %v5554_v33 = vsub.f32 %v1471_v38, %v1503_v51  ;;  %v2467_v43 = vmul.f32 %v2435_v22, %v2435_v22  ;;  %v2618_v11 = vpop.permute.xlu2 %2617 }
 0x216   : > { %v5557_v7 = vsel %vm1364_vm1, %v1981_v2, 0.0  ;;  %3932 = vpow2.f32 %v1662_v6  ;;  %v2468_v58 = vmul.f32 %v2436_v36, %v2436_v36  ;;  %v947_v40 = vand.u32 2147483647, %v5548_v49  ;;  %v2628_v36 = vpop.permute.xlu1 %2627 }
 0x217   : > { %v5560_v1 = vpop.eup %3928  ;;  %3934 = vlog2.f32 %v1918_v17  ;;  %v2844_v4 = vsub.f32 %v2337_v54, %v2812_v3  ;;  %v1569_v61 = vand.u32 2147483647, %v5552_v62  ;;  %v2250_v13 = vadd.f32 %v2249_v31, %v4389_v34  ;;  %v2623_v34 = vpop.permute.xlu0 %2622 }
 0x218   : > { %v1304_v28 = vsel %vm5531_vm13, %v5521_v39, %v1298_v26  ;;  %3936 = vlog2.f32 %v1305_v48  ;;  %v2875_v56 = vmul.f32 %v2843_v16, %v2843_v16  ;;  %v1314_v14 = vadd.f32 1.0, %v5560_v1 }
 0x219   : > { %v5569_v9 = vpop.eup %3930  ;;  %v5571_v45 = vmul.f32 %v3923_v19, %v1922_v42  ;;  %vm5573_vm14 = vcmp.lt.f32.partialorder %v1924_v50, 0.0004427343  ;;  %v2659_v59 = vmul.f32 %v2618_v11, %v2467_v43  ;;  %v979_v20 = vsub.f32 0.0, %v947_v40 }
 0x21a   : > { %v1601_v63 = vsub.f32 0.0, %v1569_v61  ;;  %v1308_v39 = vmul.f32 -0.5, %v5539_v55  ;;  %3938 = vlog2.f32 %v1314_v14  ;;  %v2660_v32 = vmul.f32 %v2623_v34, %v2468_v58 }
 0x21b   : > { %v2437_v8 = vsub.f32 %v2250_v13, %v2405_v41  ;;  %v2876_v52 = vmul.f32 %v2844_v4, %v2844_v4  ;;  %v1042_v38 = vmul.f32 1.442695, %v979_v20  ;;  %v2339_v19 = vadd.f32 %v2338_v60, %v4385_v29 }
 0x21c   : > { %v1664_v51 = vmul.f32 1.442695, %v1601_v63  ;;  %v5580_v53 = vpop.eup %3932  ;;  %v1927_v15 = vadd.f32 1.0, %v5569_v9  ;;  %v2906_v22 = vadd.f32 %v2905_v44, %v2875_v56  ;;  %v882_v18 = vmax.f32 %v5502_v24, 0.0 }
 0x21d   : > { %v2469_v10 = vmul.f32 %v2437_v8, %v2437_v8  ;;  %v3935_v2 = vpop.eup %3934  ;;  %v1317_v17 = vmul.f32 -0.5, %v5560_v1  ;;  %3940 = vpow2.f32 %v1042_v38  ;;  %v2845_v6 = vsub.f32 %v2339_v19, %v2813_v5 }
 0x21e   : > { %v2690_v54 = vadd.f32 %v2689_v27, %v2659_v59  ;;  %v3937_v26 = vpop.eup %3936  ;;  %v1360_v50 = vadd.f32 %v1304_v28, %v5464_v30  ;;  %v1309_v48 = vadd.f32 1.0, %v1308_v39  ;;  %3942 = vpow2.f32 %v1664_v51 }
 0x21f   : > { %v2661_v29 = vmul.f32 %v2628_v36, %v2469_v10  ;;  %v2877_v16 = vmul.f32 %v2845_v6, %v2845_v6  ;;  %v2907_v3 = vadd.f32 %v2906_v22, %v2876_v52  ;;  %v1936_v44 = vadd.f32 1.0, %v5580_v53 }
 0x220   : > { %v2691_v31 = vadd.f32 %v2690_v54, %v2660_v32  ;;  %v3939_v42 = vpop.eup %3938  ;;  %v1920_v43 = vmul.f32 0.6931472, %v3935_v2  ;;  %v1311_v58 = vand.u32 2147483647, %v5539_v55  ;;  %3944 = vlog2.f32 %v1927_v15 }
 0x221   : > { %v914_v40 = vsub.f32 %v882_v18, %v5502_v24  ;;  %v1307_v4 = vmul.f32 0.6931472, %v3937_v26  ;;  %v1318_v27 = vadd.f32 1.0, %v1317_v17  ;;  %v2908_v61 = vadd.f32 %v2907_v3, %v2877_v16 }
 0x222   : > { %v2692_v13 = vadd.f32 %v2691_v31, %v2661_v29  ;;  %v1930_v30 = vmul.f32 -0.5, %v5569_v9  ;;  %v1320_v41 = vand.u32 2147483647, %v5560_v1  ;;  %v1472_v11 = vmax.f32 %v5511_v0, 0.0 }
 0x223   : > { %3946 = vlog2.f32 %v1936_v44  ;;  %v3941_v28 = vpop.eup %3940  ;;  %v1310_v56 = vmul.f32 %v5539_v55, %v1309_v48  ;;  %v1316_v14 = vmul.f32 0.6931472, %v3939_v42  ;;  %2909 = vadd.xlane.f32.xlu1 %v2908_v61  ;;  %v1939_v60 = vmul.f32 -0.5, %v5580_v53 }
 0x224   : > { %2693 = vadd.xlane.f32.xlu2 %v2692_v13  ;;  %v2764_v24 = vadd.f32 %v5258_v25, %v5016_v37  ;;  %v3943_v34 = vpop.eup %3942  ;;  %v1926_v59 = vsel %vm5573_vm14, %v5571_v45, %v1920_v43  ;;  %vm5599_vm15 = vcmp.lt.f32.partialorder %v1311_v58, 0.0004427343  ;;  %v883_v63 = vmax.f32 %v5548_v49, 0.0 }
 0x225   : > { %v1323_v55 = vadd.f32 1.0, %v3941_v28  ;;  %v1313_v39 = vsel %vm5599_vm15, %v1310_v56, %v1307_v4  ;;  %v1319_v32 = vmul.f32 %v5560_v1, %v1318_v27  ;;  %v1326_v8 = vmul.f32 -0.5, %v3941_v28 }
 0x226   : > { %v1945_v5 = vadd.f32 1.0, %v3943_v34  ;;  %v3945_v37 = vpop.eup %3944  ;;  %v1931_v25 = vadd.f32 1.0, %v1930_v30  ;;  %v1933_v52 = vand.u32 2147483647, %v5569_v9  ;;  %vm5608_vm0 = vcmp.lt.f32.partialorder %v1320_v41, 0.0004427343 }
 0x227   : > { %3948 = vlog2.f32 %v1323_v55  ;;  %v1322_v12 = vsel %vm5608_vm0, %v1319_v32, %v1316_v14  ;;  %v1940_v38 = vadd.f32 1.0, %v1939_v60  ;;  %v1948_v51 = vmul.f32 -0.5, %v3943_v34 }
 0x228   : > { %3950 = vlog2.f32 %v1945_v5  ;;  %v1361_v1 = vadd.f32 %v1313_v39, %v5545_v21  ;;  %v1504_v15 = vmul.f32 0.0, %v5511_v0  ;;  %v1942_v22 = vand.u32 2147483647, %v5580_v53 }
 0x229   : > { %v3947_v19 = vpop.eup %3946  ;;  %v2766_v18 = vadd.f32 %v5262_v23, %v2764_v24  ;;  %v1420_v10 = vsel %vm1364_vm1, %v1360_v50, 0.0  ;;  %v1982_v2 = vadd.f32 %v1926_v59, %v5498_v35  ;;  %v1929_v36 = vmul.f32 0.6931472, %v3945_v37 }
 0x22a   : > { %v1327_v17 = vadd.f32 1.0, %v1326_v8  ;;  %vm5620_vm2 = vcmp.lt.f32.partialorder %v1933_v52, 0.0004427343  ;;  %v1362_v54 = vadd.f32 %v1322_v12, %v914_v40  ;;  %v915_v26 = vsub.f32 %v883_v63, %v5548_v49  ;;  %v3954_v8 = vld [vmem:[%s4162_s14 + $0xf8] sm:$0xff] }
 0x22b   : > { %v1329_v21 = vand.u32 2147483647, %v3941_v28  ;;  %v1932_v48 = vmul.f32 %v5569_v9, %v1931_v25  ;;  %v1938_v29 = vmul.f32 0.6931472, %v3947_v19  ;;  %v1941_v16 = vmul.f32 %v5580_v53, %v1940_v38 }
 0x22c   : > { %v1949_v23 = vadd.f32 1.0, %v1948_v51  ;;  %v1473_v50 = vmax.f32 %v5552_v62, 0.0  ;;  %v1422_v35 = vsel %vm1364_vm1, %v1361_v1, 0.0  ;;  %vm5629_vm3 = vcmp.lt.f32.partialorder %v1942_v22, 0.0004427343 }
 0x22d   : > { %v3949_v3 = vpop.eup %3948  ;;  %v1951_v44 = vand.u32 2147483647, %v3943_v34  ;;  %v1935_v49 = vsel %vm5620_vm2, %v1932_v48, %v1929_v36  ;;  %v1328_v9 = vmul.f32 %v3941_v28, %v1327_v17  ;;  %v1421_v58 = vadd.f32 %v1420_v10, %v5527_v57 }
 0x22e   : > { %v3951_v42 = vpop.eup %3950  ;;  %v1325_v43 = vmul.f32 0.6931472, %v3949_v3  ;;  %vm1330_vm4 = vcmp.lt.f32.partialorder %v1329_v21, 0.0004427343  ;;  %v1505_v53 = vmul.f32 0.0, %v5552_v62  ;;  %v1424_v40 = vsel %vm1364_vm1, %v1362_v54, 0.0 }
 0x22f   : > { %v1947_v4 = vmul.f32 0.6931472, %v3951_v42  ;;  %v1423_v61 = vadd.f32 %v1422_v35, %v1421_v58  ;;  %v1944_v13 = vsel %vm5629_vm3, %v1941_v16, %v1938_v29  ;;  %v1950_v30 = vmul.f32 %v3943_v34, %v1949_v23 }
 0x230   : > { %v1331_v27 = vsel %vm1330_vm4, %v1328_v9, %v1325_v43  ;;  %v1983_v41 = vadd.f32 %v1935_v49, %v5554_v33  ;;  %v1536_v56 = vsub.f32 %v1472_v11, %v1504_v15  ;;  %vm1952_vm5 = vcmp.lt.f32.partialorder %v1951_v44, 0.0004427343 }
 0x231   : > { %v1363_v28 = vadd.f32 %v1331_v27, %v915_v26  ;;  %v2038_v57 = vadd.f32 %v5517_v47, %v5457_v46  ;;  %v1425_v62 = vadd.f32 %v1424_v40, %v1423_v61  ;;  %v1953_v14 = vsel %vm1952_vm5, %v1950_v30, %v1947_v4  ;;  %v851_v40 = vld [vmem:[#allocation2] sm:$0x1]  ;;  %v1441_v61 = vld [vmem:[#allocation3] sm:$0x1] }
 0x232   : > { %v1537_v60 = vsub.f32 %v1473_v50, %v1505_v53  ;;  %v1984_v59 = vadd.f32 %v1944_v13, %v1536_v56  ;;  %v2041_v20 = vsel %vm1364_vm1, %v1982_v2, 0.0  ;;  %v2043_v0 = vsel %vm1364_vm1, %v1983_v41, 0.0  ;;  %v2373_v13 = vld [vmem:[#allocation4] sm:$0x1] }
 0x233   : > { %v1426_v24 = vsel %vm1364_vm1, %v1363_v28, 0.0  ;;  %v2040_v33 = vadd.f32 %v5557_v7, %v2038_v57  ;;  %v2767_v5 = vsel %vm1364_vm1, %v3954_v8, 0.0  ;;  %vm1439_vm6 = vcmask 0   ;;  %v2705_v57 = vld [vmem:[#allocation5] sm:$0x1] }
 0x234   : > { %v1427_v34 = vadd.f32 %v1426_v24, %v1425_v62  ;;  %v1985_v63 = vadd.f32 %v1953_v14, %v1537_v60  ;;  %v2045_v55 = vsel %vm1364_vm1, %v1984_v59, 0.0  ;;  %v2768_v37 = vadd.f32 %v2767_v5, %v2766_v18  ;;  %v2781_v62 = vld [vmem:[#allocation6] sm:$0x1] }
 0x235   : > { %v2042_v11 = vadd.f32 %v2041_v20, %v2040_v33 }
 0x236   : > { %1428 = vadd.xlane.f32.xlu0 %v1427_v34  ;;  %v2047_v47 = vsel %vm1364_vm1, %v1985_v63, 0.0 }
 0x237   : > { %v2044_v46 = vadd.f32 %v2043_v0, %v2042_v11 }
 0x239   : > { %v2046_v39 = vadd.f32 %v2045_v55, %v2044_v46 }
 0x23b   : > { %v2048_v32 = vadd.f32 %v2047_v47, %v2046_v39 }
 0x23e   : > { %2049 = vadd.xlane.f32.xlu0 %v2048_v32 }
 0x246   : > { %2769 = vadd.xlane.f32.xlu0 %v2768_v37 }
 0x296   : > { %v2910_v51 = vpop.xlane.xlu1 %2909 }
 0x297   : > { %v2694_v25 = vpop.xlane.xlu2 %2693  ;;  %v2911_v15 = vrot.slane %v2910_v51, 4 }
 0x298   : > { %v2695_v7 = vrot.slane %v2694_v25, 4 }
 0x299   : > { %v2912_v54 = vadd.f32 %v2911_v15, %v2910_v51 }
 0x29a   : > { %v2696_v38 = vadd.f32 %v2695_v7, %v2694_v25 }
 0x29b   : > { %v2913_v48 = vrot.slane %v2912_v54, 2 }
 0x29c   : > { %v2697_v22 = vrot.slane %v2696_v38, 2 }
 0x29d   : > { %v2914_v31 = vadd.f32 %v2913_v48, %v2912_v54 }
 0x29e   : > { %v2698_v26 = vadd.f32 %v2697_v22, %v2696_v38 }
 0x29f   : > { %v2915_v43 = vrot.slane %v2914_v31, 1 }
 0x2a0   : > { %v2699_v16 = vrot.slane %v2698_v26, 1 }
 0x2a1   : > { %v2916_v53 = vadd.f32 %v2915_v43, %v2914_v31 }
 0x2a2   : > { %v2700_v44 = vadd.f32 %v2699_v16, %v2698_v26 }
 0x2a9   : > { %v1429_v52 = vpop.xlane.xlu0 %1428 }
 0x2aa   : > { %v1430_v45 = vrot.slane %v1429_v52, 4 }
 0x2ac   : > { %v1431_v12 = vadd.f32 %v1430_v45, %v1429_v52 }
 0x2ae   : > { %v1432_v19 = vrot.slane %v1431_v12, 2 }
 0x2b0   : > { %v1433_v1 = vadd.f32 %v1432_v19, %v1431_v12 }
 0x2b1   : > { %v2050_v10 = vpop.xlane.xlu0 %2049 }
 0x2b2   : > { %v2051_v2 = vrot.slane %v2050_v10, 4  ;;  %v1434_v36 = vrot.slane %v1433_v1, 1 }
 0x2b4   : > { %v2052_v17 = vadd.f32 %v2051_v2, %v2050_v10  ;;  %v1435_v6 = vadd.f32 %v1434_v36, %v1433_v1 }
 0x2b6   : > { %v2053_v18 = vrot.slane %v2052_v17, 2  ;;  %3661 = vpush %v1435_v6 }
 0x2b8   : > { %v2054_v21 = vadd.f32 %v2053_v18, %v2052_v17 }
 0x2b9   : > { %v2770_v29 = vpop.xlane.xlu0 %2769 }
 0x2ba   : > { %v2771_v23 = vrot.slane %v2770_v29, 4  ;;  %v2055_v3 = vrot.slane %v2054_v21, 1 }
 0x2bc   : > { %v2772_v50 = vadd.f32 %v2771_v23, %v2770_v29  ;;  %v2056_v35 = vadd.f32 %v2055_v3, %v2054_v21 }
 0x2be   : > { %v2773_v42 = vrot.slane %v2772_v50, 2  ;;  %3663 = vpush %v2056_v35 }
 0x2bf   : > { %3665 = vpush %v2700_v44 }
 0x2c0   : > { %v2774_v49 = vadd.f32 %v2773_v42, %v2772_v50 }
 0x2c2   : > { %v2775_v9 = vrot.slane %v2774_v49, 1 }
 0x2c4   : > { %v2776_v58 = vadd.f32 %v2775_v9, %v2774_v49 }
 0x2c6   : > { %3667 = vpush %v2776_v58 }
 0x2c7   : > { %3669 = vpush %v2916_v53 }
 0x2e7   : > { %s3662_s24 = spop %3661 }
 0x2e8   : > { %v1437_v4 = vstv %s3662_s24 }
 0x2e9   : > { %v1438_v27 = vadd.f32 %v1437_v4, %v851_v40 }
 0x2eb   : > { %1440 = vst.msk [vmem:[#allocation2] sm:$0x1] %vm1439_vm6, %v1438_v27 }
 0x2ef   : > { %s3664_s27 = spop %3663 }
 0x2f0   : > { %v2058_v30 = vstv %s3664_s27  ;;  %s3666_s30 = spop %3665 }
 0x2f1   : > { %v2059_v41 = vadd.f32 %v2058_v30, %v1441_v61  ;;  %v2702_v56 = vstv %s3666_s30 }
 0x2f2   : > { %v2703_v28 = vadd.f32 %v2702_v56, %v2373_v13 }
 0x2f3   : > { %2060 = vst.msk [vmem:[#allocation3] sm:$0x1] %vm1439_vm6, %v2059_v41 }
 0x2f4   : > { %2704 = vst.msk [vmem:[#allocation4] sm:$0x1] %vm1439_vm6, %v2703_v28 }
 0x2f7   : > { %s3668_s14 = spop %3667 }
 0x2f8   : > { %v2778_v14 = vstv %s3668_s14  ;;  %s3670_s19 = spop %3669  ;;  %2924 = sbr.rel (%p3624_p5) target bundleno = 1155 (0x483), region = 72 }
 0x2f9   : > { %v2779_v60 = vadd.f32 %v2778_v14, %v2705_v57  ;;  %v2918_v24 = vstv %s3670_s19 }
 0x2fa   : > { %v2919_v59 = vadd.f32 %v2918_v24, %v2781_v62 }
 0x2fb   : > { %2780 = vst.msk [vmem:[#allocation5] sm:$0x1] %vm1439_vm6, %v2779_v60 }
 0x2fc   : > { %2920 = vst.msk [vmem:[#allocation6] sm:$0x1] %vm1439_vm6, %v2919_v59 }
 0x2fd   : > { %v2929_v20 = vld [vmem:[%s6055_s8 + $0x20] sm:$0xff]  ;;  %v2927_v33 = vld [vmem:[%s6055_s8 + $0x10] sm:$0xff]  ;;  %v2930_v39 = vld [vmem:[%s6055_s8 + $0x28] sm:$0xff] }
 0x2fe   : > { %v2945_v34 = vld [vmem:[%s6056_s9 + $0x20] sm:$0xff]  ;;  %v2943_v0 = vld [vmem:[%s6056_s9 + $0x10] sm:$0xff]  ;;  %v2946_v32 = vld [vmem:[%s6056_s9 + $0x28] sm:$0xff] }
 0x2ff   : > { %v2961_v63 = vmul.f32 %v2945_v34, %v2929_v20  ;;  %v2925_v11 = vld [vmem:[%s6055_s8] sm:$0xff]  ;;  %v2959_v46 = vmul.f32 %v2943_v0, %v2927_v33  ;;  %v2928_v8 = vld [vmem:[%s6055_s8 + $0x18] sm:$0xff]  ;;  %v2926_v37 = vld [vmem:[%s6055_s8 + $0x8] sm:$0xff]  ;;  %v2962_v7 = vmul.f32 %v2946_v32, %v2930_v39 }
 0x300   : > { %v2941_v55 = vld [vmem:[%s6056_s9] sm:$0xff]  ;;  %v2944_v5 = vld [vmem:[%s6056_s9 + $0x18] sm:$0xff]  ;;  %v2942_v25 = vld [vmem:[%s6056_s9 + $0x8] sm:$0xff] }
 0x301   : > { %v2957_v47 = vmul.f32 %v2941_v55, %v2925_v11  ;;  %2981 = vadd.xlane.f32.xlu2 %v2961_v63  ;;  %2977 = vadd.xlane.f32.xlu1 %v2959_v46  ;;  %v2960_v52 = vmul.f32 %v2944_v5, %v2928_v8  ;;  %v2958_v45 = vmul.f32 %v2942_v25, %v2926_v37  ;;  %v2933_v12 = vld [vmem:[%s6055_s8 + $0x40] sm:$0xff]  ;;  %v2932_v51 = vld [vmem:[%s6055_s8 + $0x38] sm:$0xff]  ;;  %v2931_v1 = vld [vmem:[%s6055_s8 + $0x30] sm:$0xff] }
 0x302   : > { %v2949_v38 = vld [vmem:[%s6056_s9 + $0x40] sm:$0xff]  ;;  %v2948_v19 = vld [vmem:[%s6056_s9 + $0x38] sm:$0xff]  ;;  %v2947_v15 = vld [vmem:[%s6056_s9 + $0x30] sm:$0xff] }
 0x303   : > { %2973 = vadd.xlane.f32.xlu0 %v2957_v47  ;;  %v2965_v22 = vmul.f32 %v2949_v38, %v2933_v12  ;;  %v2964_v10 = vmul.f32 %v2948_v19, %v2932_v51  ;;  %v2963_v2 = vmul.f32 %v2947_v15, %v2931_v1  ;;  %v2936_v36 = vld [vmem:[%s6055_s8 + $0x58] sm:$0xff]  ;;  %v2935_v6 = vld [vmem:[%s6055_s8 + $0x50] sm:$0xff]  ;;  %v2934_v26 = vld [vmem:[%s6055_s8 + $0x48] sm:$0xff] }
 0x304   : > { %v2952_v17 = vld [vmem:[%s6056_s9 + $0x58] sm:$0xff]  ;;  %v2951_v54 = vld [vmem:[%s6056_s9 + $0x50] sm:$0xff]  ;;  %v2950_v18 = vld [vmem:[%s6056_s9 + $0x48] sm:$0xff] }
 0x305   : > { %v2968_v21 = vmul.f32 %v2952_v17, %v2936_v36  ;;  %v2967_v48 = vmul.f32 %v2951_v54, %v2935_v6  ;;  %v2966_v29 = vmul.f32 %v2950_v18, %v2934_v26  ;;  %v2939_v16 = vld [vmem:[%s6055_s8 + $0x70] sm:$0xff]  ;;  %v2938_v3 = vld [vmem:[%s6055_s8 + $0x68] sm:$0xff]  ;;  %v2937_v35 = vld [vmem:[%s6055_s8 + $0x60] sm:$0xff] }
 0x306   : > { %v2955_v23 = vld [vmem:[%s6056_s9 + $0x70] sm:$0xff]  ;;  %v2954_v50 = vld [vmem:[%s6056_s9 + $0x68] sm:$0xff]  ;;  %v2953_v31 = vld [vmem:[%s6056_s9 + $0x60] sm:$0xff] }
 0x307   : > { %v2971_v44 = vmul.f32 %v2955_v23, %v2939_v16  ;;  %v2970_v42 = vmul.f32 %v2954_v50, %v2938_v3  ;;  %v2969_v49 = vmul.f32 %v2953_v31, %v2937_v35  ;;  %v2940_v43 = vld [vmem:[%s6055_s8 + $0x78] sm:$0xff]  ;;  %v3009_v11 = vld [vmem:[%s6057_s10 + $0x20] sm:$0xff]  ;;  %v3007_v39 = vld [vmem:[%s6057_s10 + $0x10] sm:$0xff] }
 0x308   : > { %v2956_v9 = vld [vmem:[%s6056_s9 + $0x78] sm:$0xff]  ;;  %v3005_v5 = vld [vmem:[%s6057_s10] sm:$0xff] }
 0x309   : > { %2983 = vadd.xlane.f32.xlu2 %v2962_v7  ;;  %2979 = vadd.xlane.f32.xlu1 %v2960_v52  ;;  %v2972_v58 = vmul.f32 %v2956_v9, %v2940_v43 }
 0x30b   : > { %2975 = vadd.xlane.f32.xlu0 %v2958_v45  ;;  %v3010_v45 = vld [vmem:[%s6057_s10 + $0x28] sm:$0xff] }
 0x311   : > { %2989 = vadd.xlane.f32.xlu2 %v2965_v22  ;;  %2987 = vadd.xlane.f32.xlu1 %v2964_v10  ;;  %v3008_v10 = vld [vmem:[%s6057_s10 + $0x18] sm:$0xff] }
 0x313   : > { %2985 = vadd.xlane.f32.xlu0 %v2963_v2  ;;  %v3006_v2 = vld [vmem:[%s6057_s10 + $0x8] sm:$0xff] }
 0x319   : > { %2995 = vadd.xlane.f32.xlu2 %v2968_v21  ;;  %2993 = vadd.xlane.f32.xlu1 %v2967_v48 }
 0x31b   : > { %2991 = vadd.xlane.f32.xlu0 %v2966_v29 }
 0x321   : > { %3001 = vadd.xlane.f32.xlu2 %v2971_v44  ;;  %2999 = vadd.xlane.f32.xlu1 %v2970_v42 }
 0x323   : > { %2997 = vadd.xlane.f32.xlu0 %v2969_v49 }
 0x32b   : > { %3003 = vadd.xlane.f32.xlu0 %v2972_v58 }
 0x374   : > { %v5755_v53 = vpop.xlane.xlu2 %2981  ;;  %v5758_v4 = vpop.xlane.xlu1 %2977 }
 0x375   : > { %v3073_v40 = vand.u32 2147483647, %v5755_v53  ;;  %v3071_v61 = vand.u32 2147483647, %v5758_v4  ;;  %v3025_v37 = vmax.f32 %v5755_v53, 0.0  ;;  %v3041_v25 = vmul.f32 %v3009_v11, %v5755_v53 }
 0x376   : > { %v5760_v27 = vpop.xlane.xlu0 %2973  ;;  %v3023_v7 = vmax.f32 %v5758_v4, 0.0  ;;  %v3039_v38 = vmul.f32 %v3007_v39, %v5758_v4  ;;  %v3012_v39 = vld [vmem:[%s6057_s10 + $0x38] sm:$0xff] }
 0x377   : > { %v3089_v13 = vsub.f32 0.0, %v3073_v40  ;;  %v3069_v30 = vand.u32 2147483647, %v5760_v27  ;;  %v3087_v41 = vsub.f32 0.0, %v3071_v61  ;;  %v3021_v1 = vmax.f32 %v5760_v27, 0.0 }
 0x378   : > { %v3037_v15 = vmul.f32 %v3005_v5, %v5760_v27  ;;  %v5811_v42 = vsub.f32 %v3025_v37, %v3041_v25  ;;  %v3055_v49 = vsub.f32 %v3023_v7, %v3039_v38 }
 0x379   : > { %v3109_v56 = vmul.f32 1.442695, %v3089_v13  ;;  %v3085_v28 = vsub.f32 0.0, %v3069_v30  ;;  %v3105_v57 = vmul.f32 1.442695, %v3087_v41 }
 0x37a   : > { %v5813_v53 = vsub.f32 %v3021_v1, %v3037_v15 }
 0x37b   : > { %v3101_v62 = vmul.f32 1.442695, %v3085_v28  ;;  %3955 = vpow2.f32 %v3105_v57 }
 0x37c   : > { %v2984_v14 = vpop.xlane.xlu2 %2983  ;;  %3957 = vpow2.f32 %v3109_v56  ;;  %v2980_v24 = vpop.xlane.xlu1 %2979  ;;  %v3013_v56 = vld [vmem:[%s6057_s10 + $0x40] sm:$0xff] }
 0x37d   : > { %v3074_v60 = vand.u32 2147483647, %v2984_v14  ;;  %3959 = vpow2.f32 %v3101_v62  ;;  %v3072_v20 = vand.u32 2147483647, %v2980_v24  ;;  %v3026_v17 = vmax.f32 %v2984_v14, 0.0 }
 0x37e   : > { %v2976_v59 = vpop.xlane.xlu0 %2975  ;;  %v3042_v6 = vmul.f32 %v3010_v45, %v2984_v14  ;;  %v3024_v18 = vmax.f32 %v2980_v24, 0.0  ;;  %v3040_v48 = vmul.f32 %v3008_v10, %v2980_v24 }
 0x37f   : > { %v3090_v34 = vsub.f32 0.0, %v3074_v60  ;;  %v3070_v33 = vand.u32 2147483647, %v2976_v59  ;;  %v3088_v63 = vsub.f32 0.0, %v3072_v20  ;;  %v3022_v29 = vmax.f32 %v2976_v59, 0.0 }
 0x380   : > { %v3038_v16 = vmul.f32 %v3006_v2, %v2976_v59  ;;  %v5815_v40 = vsub.f32 %v3026_v17, %v3042_v6  ;;  %v5817_v4 = vsub.f32 %v3024_v18, %v3040_v48 }
 0x381   : > { %v5764_v0 = vpop.eup %3955  ;;  %v3111_v55 = vmul.f32 1.442695, %v3090_v34  ;;  %v3086_v46 = vsub.f32 0.0, %v3070_v33  ;;  %v3107_v32 = vmul.f32 1.442695, %v3088_v63 }
 0x382   : > { %v5769_v47 = vpop.eup %3957  ;;  %v3151_v52 = vadd.f32 1.0, %v5764_v0  ;;  %v3154_v26 = vmul.f32 -0.5, %v5764_v0  ;;  %v3157_v31 = vand.u32 2147483647, %v5764_v0  ;;  %v5819_v27 = vsub.f32 %v3022_v29, %v3038_v16 }
 0x383   : > { %v5774_v8 = vpop.eup %3959  ;;  %v3169_v12 = vadd.f32 1.0, %v5769_v47  ;;  %3961 = vpow2.f32 %v3111_v55  ;;  %v3103_v51 = vmul.f32 1.442695, %v3086_v46  ;;  %v3172_v36 = vmul.f32 -0.5, %v5769_v47 }
 0x384   : > { %v5788_v19 = vpop.xlane.xlu1 %2987  ;;  %v3133_v22 = vadd.f32 1.0, %v5774_v8  ;;  %3963 = vpow2.f32 %v3107_v32  ;;  %v5800_v54 = vpop.xlane.xlu2 %2989  ;;  %v3136_v23 = vmul.f32 -0.5, %v5774_v8  ;;  %v3155_v43 = vadd.f32 1.0, %v3154_v26 }
 0x385   : > { %3965 = vpow2.f32 %v3103_v51  ;;  %v3076_v21 = vand.u32 2147483647, %v5788_v19  ;;  %v3077_v3 = vand.u32 2147483647, %v5800_v54  ;;  %v3173_v35 = vadd.f32 1.0, %v3172_v36 }
 0x386   : > { %3967 = vlog2.f32 %v3151_v52  ;;  %v3175_v13 = vand.u32 2147483647, %v5769_v47  ;;  %v3137_v30 = vadd.f32 1.0, %v3136_v23  ;;  %vm5827_vm7 = vcmp.lt.f32.partialorder %v3157_v31, 0.0004427343  ;;  %v5834_v11 = vpop.xlane.xlu0 %2985 }
 0x387   : > { %3969 = vlog2.f32 %v3169_v12  ;;  %v3092_v9 = vsub.f32 0.0, %v3076_v21  ;;  %v3093_v28 = vsub.f32 0.0, %v3077_v3  ;;  %v3174_v62 = vmul.f32 %v5769_v47, %v3173_v35 }
 0x388   : > { %3971 = vlog2.f32 %v3133_v22  ;;  %v3156_v20 = vmul.f32 %v5764_v0, %v3155_v43  ;;  %v3139_v34 = vand.u32 2147483647, %v5774_v8  ;;  %v3029_v46 = vmax.f32 %v5800_v54, 0.0 }
 0x389   : > { %v5806_v50 = vpop.eup %3961  ;;  %v3115_v63 = vmul.f32 1.442695, %v3092_v9  ;;  %v3045_v47 = vmul.f32 %v3013_v56, %v5800_v54  ;;  %v3138_v32 = vmul.f32 %v5774_v8, %v3137_v30  ;;  %v3117_v5 = vmul.f32 1.442695, %v3093_v28 }
 0x38a   : > { %v5809_v44 = vpop.eup %3963  ;;  %v3178_v60 = vadd.f32 1.0, %v5806_v50  ;;  %v3181_v0 = vmul.f32 -0.5, %v5806_v50  ;;  %v3075_v7 = vand.u32 2147483647, %v5834_v11  ;;  %v3028_v12 = vmax.f32 %v5788_v19, 0.0 }
 0x38b   : > { %v3966_v58 = vpop.eup %3965  ;;  %v3160_v41 = vadd.f32 1.0, %v5809_v44  ;;  %v3044_v38 = vmul.f32 %v3012_v39, %v5788_v19  ;;  %v3163_v51 = vmul.f32 -0.5, %v5809_v44  ;;  %vm5851_vm8 = vcmp.lt.f32.partialorder %v3175_v13, 0.0004427343 }
 0x38c   : > { %v3968_v61 = vpop.eup %3967  ;;  %v3142_v24 = vadd.f32 1.0, %v3966_v58  ;;  %v3145_v33 = vmul.f32 -0.5, %v3966_v58  ;;  %v5844_v52 = vpop.xlane.xlu2 %2995  ;;  %v3148_v1 = vand.u32 2147483647, %v3966_v58  ;;  %v3091_v15 = vsub.f32 0.0, %v3075_v7 }
 0x38d   : > { %v3970_v57 = vpop.eup %3969  ;;  %v3153_v55 = vmul.f32 0.6931472, %v3968_v61  ;;  %vm5855_vm9 = vcmp.lt.f32.partialorder %v3139_v34, 0.0004427343  ;;  %v3184_v2 = vand.u32 2147483647, %v5806_v50  ;;  %v5864_v54 = vsub.f32 %v3029_v46, %v3045_v47  ;;  %v5866_v26 = vpop.xlane.xlu1 %2993 }
 0x38e   : > { %v3972_v59 = vpop.eup %3971  ;;  %3973 = vlog2.f32 %v3142_v24  ;;  %v3171_v37 = vmul.f32 0.6931472, %v3970_v57  ;;  %v3146_v45 = vadd.f32 1.0, %v3145_v33  ;;  %v3182_v6 = vadd.f32 1.0, %v3181_v0  ;;  %v3016_v47 = vld [vmem:[%s6057_s10 + $0x58] sm:$0xff] }
 0x38f   : > { %3975 = vlog2.f32 %v3160_v41  ;;  %v3135_v25 = vmul.f32 0.6931472, %v3972_v59  ;;  %v3159_v8 = vsel %vm5827_vm7, %v3156_v20, %v3153_v55  ;;  %v3080_v16 = vand.u32 2147483647, %v5844_v52  ;;  %v3011_v20 = vld [vmem:[%s6057_s10 + $0x30] sm:$0xff] }
 0x390   : > { %3977 = vlog2.f32 %v3178_v60  ;;  %v3177_v36 = vsel %vm5851_vm8, %v3174_v62, %v3171_v37  ;;  %v3279_v21 = vadd.f32 %v3159_v8, %v3055_v49  ;;  %v3147_v29 = vmul.f32 %v3966_v58, %v3146_v45  ;;  %v5876_v49 = vpop.xlane.xlu0 %2991 }
 0x391   : > { %3979 = vpow2.f32 %v3115_v63  ;;  %v3141_v17 = vsel %vm5855_vm9, %v3138_v32, %v3135_v25  ;;  %v3164_v3 = vadd.f32 1.0, %v3163_v51  ;;  %vm3149_vm10 = vcmp.lt.f32.partialorder %v3148_v1, 0.0004427343 }
 0x392   : > { %3981 = vpow2.f32 %v3117_v5  ;;  %v5869_v35 = vsub.f32 %v3028_v12, %v3044_v38  ;;  %v3113_v31 = vmul.f32 1.442695, %v3091_v15  ;;  %v3277_v9 = vadd.f32 %v3141_v17, %v5813_v53 }
 0x393   : > { %v3166_v61 = vand.u32 2147483647, %v5809_v44  ;;  %v3079_v30 = vand.u32 2147483647, %v5866_v26  ;;  %v3281_v58 = vadd.f32 %v3177_v36, %v5811_v42  ;;  %vm5879_vm11 = vcmp.lt.f32.partialorder %v3184_v2, 0.0004427343 }
 0x394   : > { %v3974_v19 = vpop.eup %3973  ;;  %v3296_v53 = vsel %vm1364_vm1, %v3279_v21, 0.0  ;;  %v3183_v14 = vmul.f32 %v5806_v50, %v3182_v6  ;;  %v3096_v60 = vsub.f32 0.0, %v3080_v16  ;;  %v3165_v24 = vmul.f32 %v5809_v44, %v3164_v3 }
 0x395   : > { %v3976_v18 = vpop.eup %3975  ;;  %v3144_v48 = vmul.f32 0.6931472, %v3974_v19  ;;  %3983 = vpow2.f32 %v3113_v31  ;;  %v3293_v34 = vsel %vm1364_vm1, %v3277_v9, 0.0  ;;  %vm5897_vm12 = vcmp.lt.f32.partialorder %v3166_v61, 0.0004427343  ;;  %v5921_v10 = vpop.xlane.xlu1 %2999 }
 0x396   : > { %v3978_v23 = vpop.eup %3977  ;;  %v3162_v56 = vmul.f32 0.6931472, %v3976_v18  ;;  %v3027_v50 = vmax.f32 %v5834_v11, 0.0  ;;  %v3095_v44 = vsub.f32 0.0, %v3079_v30  ;;  %v3078_v39 = vand.u32 2147483647, %v5876_v49 }
 0x397   : > { %v5871_v43 = vpop.eup %3979  ;;  %v3150_v13 = vsel %vm3149_vm10, %v3147_v29, %v3144_v48  ;;  %v3180_v62 = vmul.f32 0.6931472, %v3978_v23  ;;  %v3043_v32 = vmul.f32 %v3011_v20, %v5834_v11  ;;  %v3123_v0 = vmul.f32 1.442695, %v3096_v60  ;;  %v3015_v11 = vld [vmem:[%s6057_s10 + $0x50] sm:$0xff] }
 0x398   : > { %v3278_v28 = vadd.f32 %v3150_v13, %v5819_v27  ;;  %v5884_v57 = vpop.eup %3981  ;;  %v3196_v42 = vadd.f32 1.0, %v5871_v43  ;;  %v5894_v27 = vpop.xlane.xlu2 %3001  ;;  %v3168_v63 = vsel %vm5897_vm12, %v3165_v24, %v3162_v56  ;;  %v3121_v5 = vmul.f32 1.442695, %v3095_v44 }
 0x399   : > { %v3205_v46 = vadd.f32 1.0, %v5884_v57  ;;  %v3083_v37 = vand.u32 2147483647, %v5894_v27  ;;  %v3186_v25 = vsel %vm5879_vm11, %v3183_v14, %v3180_v62  ;;  %v3032_v7 = vmax.f32 %v5844_v52, 0.0  ;;  %v5923_v36 = vpop.xlane.xlu0 %2997 }
 0x39a   : > { %v3294_v59 = vsel %vm1364_vm1, %v3278_v28, 0.0  ;;  %3985 = vlog2.f32 %v3196_v42  ;;  %v3094_v45 = vsub.f32 0.0, %v3078_v39  ;;  %v3280_v12 = vadd.f32 %v3168_v63, %v5817_v4 }
 0x39b   : > { %v3295_v55 = vadd.f32 %v3294_v59, %v3293_v34  ;;  %v3208_v38 = vmul.f32 -0.5, %v5884_v57  ;;  %v3048_v8 = vmul.f32 %v3016_v47, %v5844_v52  ;;  %3987 = vpow2.f32 %v3121_v5  ;;  %v3984_v51 = vpop.eup %3983  ;;  %v3014_v47 = vld [vmem:[%s6057_s10 + $0x48] sm:$0xff] }
 0x39c   : > { %3989 = vlog2.f32 %v3205_v46  ;;  %v3199_v15 = vmul.f32 -0.5, %v5871_v43  ;;  %v3119_v22 = vmul.f32 1.442695, %v3094_v45  ;;  %v3187_v2 = vadd.f32 1.0, %v3984_v51 }
 0x39d   : > { %v3297_v1 = vadd.f32 %v3296_v53, %v3295_v55  ;;  %v3190_v19 = vmul.f32 -0.5, %v3984_v51  ;;  %3991 = vpow2.f32 %v3123_v0  ;;  %v3099_v4 = vsub.f32 0.0, %v3083_v37 }
 0x39e   : > { %v3282_v52 = vadd.f32 %v3186_v25, %v5815_v40  ;;  %v3031_v17 = vmax.f32 %v5866_v26, 0.0  ;;  %v3047_v6 = vmul.f32 %v3015_v11, %v5866_v26  ;;  %3993 = vpow2.f32 %v3119_v22 }
 0x39f   : > { %v3300_v18 = vsel %vm1364_vm1, %v3281_v58, 0.0  ;;  %v3298_v21 = vsel %vm1364_vm1, %v3280_v12, 0.0  ;;  %3995 = vlog2.f32 %v3187_v2  ;;  %v3082_v48 = vand.u32 2147483647, %v5921_v10 }
 0x3a0   : > { %v3986_v29 = vpop.eup %3985  ;;  %v3299_v16 = vadd.f32 %v3298_v21, %v3297_v1  ;;  %v3209_v23 = vadd.f32 1.0, %v3208_v38  ;;  %v3202_v3 = vand.u32 2147483647, %v5871_v43  ;;  %v3059_v31 = vsub.f32 %v3027_v50, %v3043_v32 }
 0x3a1   : > { %v5932_v9 = vpop.eup %3987  ;;  %v3200_v40 = vadd.f32 1.0, %v3199_v15  ;;  %v3191_v61 = vadd.f32 1.0, %v3190_v19  ;;  %v5934_v13 = vsub.f32 %v3032_v7, %v3048_v8  ;;  %v3129_v26 = vmul.f32 1.442695, %v3099_v4  ;;  %v5956_v5 = vpop.xlane.xlu0 %3003 }
 0x3a2   : > { %v3990_v30 = vpop.eup %3989  ;;  %v3302_v58 = vsel %vm1364_vm1, %v3282_v52, 0.0  ;;  %v5937_v41 = vsub.f32 %v3031_v17, %v3047_v6  ;;  %v3223_v56 = vadd.f32 1.0, %v5932_v9  ;;  %v3030_v28 = vmax.f32 %v5876_v49, 0.0 }
 0x3a3   : > { %v5941_v53 = vpop.eup %3991  ;;  %v3198_v62 = vmul.f32 0.6931472, %v3986_v29  ;;  %v3193_v14 = vand.u32 2147483647, %v3984_v51  ;;  %3997 = vpow2.f32 %v3129_v26  ;;  %v3098_v60 = vsub.f32 0.0, %v3082_v48 }
 0x3a4   : > { %v3994_v24 = vpop.eup %3993  ;;  %v3210_v59 = vmul.f32 %v5884_v57, %v3209_v23  ;;  %v3211_v42 = vand.u32 2147483647, %v5884_v57  ;;  %vm5945_vm13 = vcmp.lt.f32.partialorder %v3202_v3, 0.0004427343  ;;  %v3301_v34 = vadd.f32 %v3300_v18, %v3299_v16 }
 0x3a5   : > { %v3996_v33 = vpop.eup %3995  ;;  %v3207_v50 = vmul.f32 0.6931472, %v3990_v30  ;;  %v3201_v44 = vmul.f32 %v5871_v43, %v3200_v40  ;;  %v3192_v63 = vmul.f32 %v3984_v51, %v3191_v61  ;;  %v3214_v55 = vadd.f32 1.0, %v3994_v24  ;;  %v3018_v40 = vld [vmem:[%s6057_s10 + $0x68] sm:$0xff] }
 0x3a6   : > { %v3189_v46 = vmul.f32 0.6931472, %v3996_v33  ;;  %3999 = vlog2.f32 %v3223_v56  ;;  %v3217_v39 = vmul.f32 -0.5, %v3994_v24  ;;  %v3127_v32 = vmul.f32 1.442695, %v3098_v60 }
 0x3a7   : > { %v3204_v57 = vsel %vm5945_vm13, %v3201_v44, %v3198_v62  ;;  %vm3194_vm14 = vcmp.lt.f32.partialorder %v3193_v14, 0.0004427343  ;;  %4001 = vlog2.f32 %v3214_v55  ;;  %v3081_v0 = vand.u32 2147483647, %v5923_v36 }
 0x3a8   : > { %v3303_v43 = vadd.f32 %v3302_v58, %v3301_v34  ;;  %v3195_v37 = vsel %vm3194_vm14, %v3192_v63, %v3189_v46  ;;  %v3232_v25 = vadd.f32 1.0, %v5941_v53  ;;  %4003 = vpow2.f32 %v3127_v32  ;;  %v3017_v34 = vld [vmem:[%s6057_s10 + $0x60] sm:$0xff] }
 0x3a9   : > { %v5959_v7 = vpop.eup %3997  ;;  %vm5961_vm15 = vcmp.lt.f32.partialorder %v3211_v42, 0.0004427343  ;;  %v3283_v12 = vadd.f32 %v3195_v37, %v3059_v31  ;;  %v3046_v38 = vmul.f32 %v3014_v47, %v5876_v49  ;;  %v3097_v8 = vsub.f32 0.0, %v3081_v0  ;;  %v3019_v42 = vld [vmem:[%s6057_s10 + $0x70] sm:$0xff] }
 0x3aa   : > { %v3213_v11 = vsel %vm5961_vm15, %v3210_v59, %v3207_v50  ;;  %v3226_v51 = vmul.f32 -0.5, %v5932_v9  ;;  %v3218_v1 = vadd.f32 1.0, %v3217_v39  ;;  %v3084_v15 = vand.u32 2147483647, %v5956_v5 }
 0x3ab   : > { %v3284_v22 = vadd.f32 %v3204_v57, %v5869_v35  ;;  %v3304_v2 = vsel %vm1364_vm1, %v3283_v12, 0.0  ;;  %v3220_v19 = vand.u32 2147483647, %v3994_v24  ;;  %v3125_v4 = vmul.f32 1.442695, %v3097_v8 }
 0x3ac   : > { %v4000_v52 = vpop.eup %3999  ;;  %v3305_v17 = vadd.f32 %v3304_v2, %v3303_v43  ;;  %4005 = vlog2.f32 %v3232_v25  ;;  %v3100_v6 = vsub.f32 0.0, %v3084_v15  ;;  %v3259_v49 = vadd.f32 1.0, %v5959_v7 }
 0x3ad   : > { %v4002_v18 = vpop.eup %4001  ;;  %v3285_v21 = vadd.f32 %v3213_v11, %v5864_v54  ;;  %v3235_v48 = vmul.f32 -0.5, %v5941_v53  ;;  %v3062_v29 = vsub.f32 %v3030_v28, %v3046_v38  ;;  %4007 = vpow2.f32 %v3125_v4 }
 0x3ae   : > { %v5975_v16 = vpop.eup %4003  ;;  %v3227_v35 = vadd.f32 1.0, %v3226_v51  ;;  %v3229_v23 = vand.u32 2147483647, %v5932_v9  ;;  %v3216_v3 = vmul.f32 0.6931472, %v4002_v18  ;;  %v3219_v31 = vmul.f32 %v3994_v24, %v3218_v1  ;;  %v3020_v18 = vld [vmem:[%s6057_s10 + $0x78] sm:$0xff] }
 0x3af   : > { %v3306_v61 = vsel %vm1364_vm1, %v3284_v22, 0.0  ;;  %vm3221_vm0 = vcmp.lt.f32.partialorder %v3220_v19, 0.0004427343  ;;  %v3131_v26 = vmul.f32 1.442695, %v3100_v6  ;;  %v3250_v54 = vadd.f32 1.0, %v5975_v16 }
 0x3b0   : > { %v3307_v30 = vadd.f32 %v3306_v61, %v3305_v17  ;;  %v3225_v58 = vmul.f32 0.6931472, %v4000_v52  ;;  %v3222_v56 = vsel %vm3221_vm0, %v3219_v31, %v3216_v3  ;;  %4009 = vlog2.f32 %v3259_v49 }
 0x3b1   : > { %v3286_v28 = vadd.f32 %v3222_v56, %v3062_v29  ;;  %v3035_v62 = vmax.f32 %v5894_v27, 0.0  ;;  %v3034_v14 = vmax.f32 %v5921_v10, 0.0  ;;  %4011 = vpow2.f32 %v3131_v26 }
 0x3b2   : > { %v4006_v60 = vpop.eup %4005  ;;  %v3308_v24 = vsel %vm1364_vm1, %v3285_v21, 0.0  ;;  %v3228_v59 = vmul.f32 %v5932_v9, %v3227_v35  ;;  %v3050_v20 = vmul.f32 %v3018_v40, %v5921_v10  ;;  %4013 = vlog2.f32 %v3250_v54 }
 0x3b3   : > { %v4008_v33 = vpop.eup %4007  ;;  %v3236_v50 = vadd.f32 1.0, %v3235_v48  ;;  %v3238_v44 = vand.u32 2147483647, %v5941_v53  ;;  %vm5995_vm2 = vcmp.lt.f32.partialorder %v3229_v23, 0.0004427343  ;;  %v3253_v9 = vmul.f32 -0.5, %v5975_v16 }
 0x3b4   : > { %v3231_v55 = vsel %vm5995_vm2, %v3228_v59, %v3225_v58  ;;  %v3309_v46 = vadd.f32 %v3308_v24, %v3307_v30  ;;  %v3241_v10 = vadd.f32 1.0, %v4008_v33  ;;  %v3262_v47 = vmul.f32 -0.5, %v5959_v7 }
 0x3b5   : > { %v3234_v39 = vmul.f32 0.6931472, %v4006_v60  ;;  %v3310_v32 = vsel %vm1364_vm1, %v3286_v28, 0.0  ;;  %v3051_v57 = vmul.f32 %v3019_v42, %v5894_v27  ;;  %v3244_v0 = vmul.f32 -0.5, %v4008_v33 }
 0x3b6   : > { %v4010_v43 = vpop.eup %4009  ;;  %v3066_v37 = vsub.f32 %v3034_v14, %v3050_v20  ;;  %v3033_v25 = vmax.f32 %v5923_v36, 0.0  ;;  %v3049_v45 = vmul.f32 %v3017_v34, %v5923_v36  ;;  %4015 = vlog2.f32 %v3241_v10 }
 0x3b7   : > { %v4012_v12 = vpop.eup %4011  ;;  %v3237_v38 = vmul.f32 %v5941_v53, %v3236_v50  ;;  %vm6008_vm3 = vcmp.lt.f32.partialorder %v3238_v44, 0.0004427343  ;;  %v3287_v11 = vadd.f32 %v3231_v55, %v5937_v41  ;;  %v3254_v51 = vadd.f32 1.0, %v3253_v9 }
 0x3b8   : > { %v4014_v1 = vpop.eup %4013  ;;  %v3311_v15 = vadd.f32 %v3310_v32, %v3309_v46  ;;  %v3256_v22 = vand.u32 2147483647, %v5975_v16  ;;  %v3263_v2 = vadd.f32 1.0, %v3262_v47  ;;  %v3268_v19 = vadd.f32 1.0, %v4012_v12 }
 0x3b9   : > { %v3240_v36 = vsel %vm6008_vm3, %v3237_v38, %v3234_v39  ;;  %v3245_v4 = vadd.f32 1.0, %v3244_v0  ;;  %v3252_v52 = vmul.f32 0.6931472, %v4014_v1  ;;  %v3271_v17 = vmul.f32 -0.5, %v4012_v12 }
 0x3ba   : > { %v3065_v53 = vsub.f32 %v3033_v25, %v3049_v45  ;;  %v3247_v6 = vand.u32 2147483647, %v4008_v33  ;;  %v3265_v49 = vand.u32 2147483647, %v5959_v7  ;;  %4017 = vlog2.f32 %v3268_v19  ;;  %v3354_v25 = vld [vmem:[#allocation5] sm:$0x1] }
 0x3bb   : > { %v3312_v41 = vsel %vm1364_vm1, %v3287_v11, 0.0  ;;  %v3036_v21 = vmax.f32 %v5956_v5, 0.0  ;;  %v3255_v48 = vmul.f32 %v5975_v16, %v3254_v51  ;;  %v3261_v29 = vmul.f32 0.6931472, %v4010_v43 }
 0x3bc   : > { %v4016_v35 = vpop.eup %4015  ;;  %v3288_v23 = vadd.f32 %v3240_v36, %v5934_v13  ;;  %v3313_v3 = vadd.f32 %v3312_v41, %v3311_v15  ;;  %vm6024_vm4 = vcmp.lt.f32.partialorder %v3256_v22, 0.0004427343  ;;  %v3264_v40 = vmul.f32 %v5959_v7, %v3263_v2 }
 0x3bd   : > { %v3243_v61 = vmul.f32 0.6931472, %v4016_v35  ;;  %v3246_v26 = vmul.f32 %v4008_v33, %v3245_v4  ;;  %v3258_v54 = vsel %vm6024_vm4, %v3255_v48, %v3252_v52  ;;  %v3272_v30 = vadd.f32 1.0, %v3271_v17  ;;  %v3342_v48 = vld [vmem:[#allocation2] sm:$0x1] }
 0x3be   : > { %vm3248_vm5 = vcmp.lt.f32.partialorder %v3247_v6, 0.0004427343  ;;  %v3052_v16 = vmul.f32 %v3020_v18, %v5956_v5  ;;  %vm3266_vm7 = vcmp.lt.f32.partialorder %v3265_v49, 0.0004427343  ;;  %v3274_v58 = vand.u32 2147483647, %v4012_v12 }
 0x3bf   : > { %v3249_v56 = vsel %vm3248_vm5, %v3246_v26, %v3243_v61  ;;  %v3267_v13 = vsel %vm3266_vm7, %v3264_v40, %v3261_v29  ;;  %v3314_v14 = vsel %vm1364_vm1, %v3288_v23, 0.0  ;;  %v3067_v60 = vsub.f32 %v3035_v62, %v3051_v57  ;;  %v3343_v29 = vld [vmem:[#allocation3] sm:$0x1] }
 0x3c0   : > { %v4018_v28 = vpop.eup %4017  ;;  %v3289_v7 = vadd.f32 %v3249_v56, %v3065_v53  ;;  %v3290_v24 = vadd.f32 %v3258_v54, %v3066_v37  ;;  %v3273_v42 = vmul.f32 %v4012_v12, %v3272_v30  ;;  %v3315_v20 = vadd.f32 %v3314_v14, %v3313_v3  ;;  %v3353_v54 = vld [vmem:[#allocation4] sm:$0x1] }
 0x3c1   : > { %v3270_v59 = vmul.f32 0.6931472, %v4018_v28  ;;  %v3068_v33 = vsub.f32 %v3036_v21, %v3052_v16  ;;  %vm3275_vm8 = vcmp.lt.f32.partialorder %v3274_v58, 0.0004427343  ;;  %v3291_v5 = vadd.f32 %v3267_v13, %v3067_v60  ;;  %v3372_v28 = vld [vmem:[#allocation6] sm:$0x1] }
 0x3c2   : > { %v3316_v34 = vsel %vm1364_vm1, %v3289_v7, 0.0  ;;  %v3318_v9 = vsel %vm1364_vm1, %v3290_v24, 0.0  ;;  %v3355_v45 = vmul.f32 96.0, %v3354_v25  ;;  %v4069_v38 = vmov 512.0  }
 0x3c3   : > { %v3276_v50 = vsel %vm3275_vm8, %v3273_v42, %v3270_v59  ;;  %v3317_v44 = vadd.f32 %v3316_v34, %v3315_v20  ;;  %v3320_v46 = vsel %vm1364_vm1, %v3291_v5, 0.0  ;;  %v4070_v11 = vmov 8192.0  }
 0x3c4   : > { %v3292_v63 = vadd.f32 %v3276_v50, %v3068_v33  ;;  %v3356_v12 = vadd.f32 1e-08, %v3355_v45  ;;  %v4071_v2 = vmov 128.0   ;;  %v3344_v61 = vadd.f32 %v3343_v29, %v3342_v48 }
 0x3c5   : > { %v3319_v55 = vadd.f32 %v3318_v9, %v3317_v44 }
 0x3c6   : > { %v3322_v27 = vsel %vm1364_vm1, %v3292_v63, 0.0  ;;  %4019 = vrcp.f32 %v3356_v12  ;;  %vm3362_vm1 = vweird.f32 %v3356_v12  ;;  %v3368_v6 = vand.u32 2147483648, %v3356_v12 }
 0x3c7   : > { %v3321_v62 = vadd.f32 %v3320_v46, %v3319_v55  ;;  %4021 = vrcp.f32 %v4069_v38  ;;  %v3366_v18 = vand.u32 2147483647, %v3356_v12 }
 0x3c8   : > { %4023 = vrcp.f32 %v4070_v11  ;;  %v3369_v23 = vor.u32 1.1754944e-38, %v3368_v6 }
 0x3c9   : > { %v3323_v10 = vadd.f32 %v3322_v27, %v3321_v62  ;;  %4025 = vrcp.f32 %v4071_v2  ;;  %vm3367_vm12 = vcmp.eq.f32.partialorder %v3366_v18, 8.507059e+37 }
 0x3cb   : > { %3324 = vadd.xlane.f32.xlu1 %v3323_v10 }
 0x3cc   : > { %v4020_v8 = vpop.eup %4019 }
 0x3cd   : > { %v4022_v51 = vpop.eup %4021  ;;  %v3358_v1 = vmul.f32 %v4020_v8, %v3356_v12  ;;  %vm3363_vm9 = vweird.f32 %v4020_v8 }
 0x3ce   : > { %v3346_v15 = vmul.f32 512.0, %v4022_v51  ;;  %v4024_v22 = vpop.eup %4023  ;;  %vm3364_vm10 = vmor %vm3362_vm1, %vm3363_vm9  ;;  %vm3350_vm11 = vweird.f32 %v4022_v51 }
 0x3cf   : > { %v3359_v19 = vsub.f32 1.0, %v3358_v1  ;;  %v3374_v4 = vmul.f32 8192.0, %v4024_v22  ;;  %v4026_v17 = vpop.eup %4025  ;;  %vm3378_vm13 = vweird.f32 %v4024_v22 }
 0x3d0   : > { %v3347_v36 = vsub.f32 1.0, %v3346_v15  ;;  %v3335_v21 = vmul.f32 128.0, %v4026_v17  ;;  %vm3339_vm14 = vweird.f32 %v4026_v17 }
 0x3d1   : > { %v3360_v52 = vmul.f32 %v4020_v8, %v3359_v19  ;;  %v3375_v49 = vsub.f32 1.0, %v3374_v4 }
 0x3d2   : > { %v3348_v53 = vmul.f32 %v4022_v51, %v3347_v36  ;;  %v3336_v40 = vsub.f32 1.0, %v3335_v21 }
 0x3d3   : > { %v3361_v41 = vadd.f32 %v4020_v8, %v3360_v52  ;;  %v3376_v3 = vmul.f32 %v4024_v22, %v3375_v49 }
 0x3d4   : > { %v3349_v35 = vadd.f32 %v4022_v51, %v3348_v53  ;;  %v3337_v58 = vmul.f32 %v4026_v17, %v3336_v40 }
 0x3d5   : > { %v3365_v31 = vsel %vm3364_vm10, %v4020_v8, %v3361_v41  ;;  %v3377_v16 = vadd.f32 %v4024_v22, %v3376_v3 }
 0x3d6   : > { %v3351_v26 = vsel %vm3350_vm11, %v4022_v51, %v3349_v35  ;;  %v3370_v30 = vsel %vm3367_vm12, %v3369_v23, %v3365_v31  ;;  %v3338_v60 = vadd.f32 %v4026_v17, %v3337_v58 }
 0x3d7   : > { %v3352_v56 = vmul.f32 %v3351_v26, %v3344_v61  ;;  %v3371_v13 = vmul.f32 %v3370_v30, %v3353_v54  ;;  %v3379_v14 = vsel %vm3378_vm13, %v4024_v22, %v3377_v16 }
 0x3d8   : > { %v3380_v7 = vmul.f32 %v3379_v14, %v3372_v28  ;;  %v3340_v59 = vsel %vm3339_vm14, %v4026_v17, %v3338_v60 }
 0x3d9   : > { %v3381_v24 = vadd.f32 %v3371_v13, %v3352_v56 }
 0x3db   : > { %v3382_v42 = vadd.f32 %v3381_v24, %v3380_v7 }
 0x43e   : > { %v3325_v47 = vpop.xlane.xlu1 %3324 }
 0x43f   : > { %v3326_v39 = vrot.slane %v3325_v47, 4 }
 0x441   : > { %v3327_v32 = vadd.f32 %v3326_v39, %v3325_v47 }
 0x443   : > { %v3328_v57 = vrot.slane %v3327_v32, 2 }
 0x445   : > { %v3329_v0 = vadd.f32 %v3328_v57, %v3327_v32 }
 0x447   : > { %v3330_v43 = vrot.slane %v3329_v0, 1 }
 0x449   : > { %v3331_v37 = vadd.f32 %v3330_v43, %v3329_v0 }
 0x44b   : > { %3671 = vpush %v3331_v37 }
 0x47c   : > { %s3672_s22 = spop %3671 }
 0x47d   : > { %v3333_v20 = vstv %s3672_s22 }
 0x47e   : > { %v3341_v34 = vmul.f32 %v3340_v59, %v3333_v20 }
 0x480   : > { %v3383_v33 = vadd.f32 %v3382_v42, %v3341_v34 }
 0x482   : > { %3384 = vst.msk [vmem:[#allocation7] sm:$0x1] %vm1439_vm6, %v3383_v33 }
 0x483 PF: > { %p3677_p6 = scmp.eq.s32.totalorder %s4139_s18, 1  ;;  %s4072_s24 = smov [#allocation7]  }
 0x484   : > { %s3391_s27 = sshll.u32 %s4072_s24, 4  ;;  %s3393_s19 = sshll.u32 %s6058_s11, 4  ;;  %s3392_s27 = int_to_ptr.vmem [resolvable:$true] %s3391_s27  ;;  %s3394_s19 = int_to_ptr.hbm [resolvable:$true] %s3393_s19 }
 0x485   : > { %3674 = dma.vmem_to_hbm [thread:$0]  (%p3677_p6), %s3392_s27, 16, %s3394_s19, [#allocation8]  }
 0x486   : > { %4060 = dma.done.wait (%p3677_p6), [#allocation8], 16  }
 0x487   : > { %4062 = vsyncadd (%p3677_p6), [#allocation8], 4294967280 }
 0x488 PF: > { %s22_s17 = sadd.s32 1, %s4065_s17  }
 0x489   : > { %p19_p7 = scmp.ge.s32.totalorder %s22_s17, 4  }
 0x48b   :  { %21 = sbr.rel (!%p19_p7) target bundleno = 1 (0x1), region = 111 }
 0x490   :  { %3407 = vsyncpa [#allocation8], 1 }
 0x491   :  { %3409 = vsyncpa [#allocation8 + $0x1], 1 }

</bundles_post_ra>
